<compile_context>
chip_gen: v6e
topology: v6e:2x2x1
jax: 0.10.0
libtpu: 0.0.40
codegen_flags: <defaults>
</compile_context>

<pallas_src>
import functools
import jax
import jax.numpy as jnp
from jax.experimental import pallas as pl
from jax.experimental.pallas import tpu as pltpu

EPS = 1e-5          # nn.BatchNorm2d default eps
NEG_SLOPE = 0.01    # F.leaky_relu default negative_slope
CP = 128            # padded input-channel group width (lanes)
COP = 128           # padded conv output channels (lanes)


def _cparams(*sem):
    return pltpu.CompilerParams(dimension_semantics=sem,
                                vmem_limit_bytes=32 * 1024 * 1024)


def _pick_tile_m(m, cap=1024):
    for t in (1024, 512, 256, 128, 64, 32, 16):
        if t <= cap and m % t == 0:
            return t
    return m


def _pick_row_tile(h, cap=32):
    t = min(h, cap)
    while h % t:
        t -= 1
    return t


def _pad_vec(v, n=COP):
    return jnp.zeros((1, n), jnp.float32).at[0, :v.shape[0]].set(v.astype(jnp.float32))


def _pack_conv3x3(w, in_splits):
    """(3,3,Cin,Cout) f32 -> (9, len(in_splits)*CP, COP) bf16; each real input
    channel group is placed at a 128-channel offset (matches padded activations)."""
    _, _, cin, cout = w.shape
    assert cin == sum(in_splits) and cout <= COP
    g = len(in_splits)
    wp = jnp.zeros((3, 3, g * CP, COP), jnp.float32)
    src = 0
    for gi, c in enumerate(in_splits):
        wp = wp.at[:, :, gi * CP:gi * CP + c, :cout].set(w[:, :, src:src + c, :])
        src += c
    return wp.reshape(9, g * CP, COP).astype(jnp.bfloat16)


# ---------------------------------------------------------------------------
# conv3x3 (+ bias) kernel with per-tile BatchNorm partial statistics
# ---------------------------------------------------------------------------
def _conv3x3_kernel(x_ref, w_ref, b_ref, y_ref, st_ref, *, th, wd, cin_p, cout_p):
    xs = x_ref[0, 0].astype(jnp.float32)                 # (th+2, wd+2, cin_p)
    acc = jnp.zeros((th * wd, cout_p), jnp.float32)
    for dy in range(3):
        for dx in range(3):
            tap = xs[dy:dy + th, dx:dx + wd, :].reshape(th * wd, cin_p)
            acc = acc + jnp.dot(tap.astype(jnp.bfloat16), w_ref[dy * 3 + dx],
                                preferred_element_type=jnp.float32)
    y = acc + b_ref[...]                                 # (th*wd, cout_p) f32
    y_ref[0, 0] = y.reshape(th, wd, cout_p)
    st_ref[0, 0] = jnp.concatenate(
        [jnp.sum(y, axis=0, keepdims=True),              # row 0: per-col sum
         jnp.sum(y * y, axis=0, keepdims=True),          # row 1: per-col sumsq
         jnp.zeros((6, cout_p), jnp.float32)], axis=0)


def _affine_act_kernel(y_ref, s_ref, t_ref, o_ref, *, act):
    o = y_ref[...] * s_ref[...] + t_ref[...]
    if act:
        o = jnp.where(o >= 0, o, NEG_SLOPE * o)
    o_ref[...] = o.astype(o_ref.dtype)


def conv3x3_bn_act(x, w_packed, b_packed, gamma_p, beta_p, use_bn):
    """x: (N,H,W,G*CP) bf16; w_packed: (9,G*CP,COP) bf16; vecs: (1,COP) f32."""
    n, h, wd, cin_p = x.shape
    th = _pick_row_tile(h)
    hb = h // th
    xp = jnp.pad(x, ((0, 0), (1, 1), (1, 1), (0, 0)))
    if hb == 1:
        slabs = xp[:, None]                               # (n, 1, h+2, w+2, c)
    else:                                                 # overlapping row slabs
        slabs = jnp.stack([xp[:, k * th:k * th + th + 2] for k in range(hb)], axis=1)

    kernel = functools.partial(_conv3x3_kernel, th=th, wd=wd,
                               cin_p=cin_p, cout_p=COP)
    y, stats = pl.pallas_call(
        kernel,
        grid=(n, hb),
        in_specs=[
            pl.BlockSpec((1, 1, th + 2, wd + 2, cin_p), lambda i, j: (i, j, 0, 0, 0)),
            pl.BlockSpec((9, cin_p, COP), lambda i, j: (0, 0, 0)),
            pl.BlockSpec((1, COP), lambda i, j: (0, 0)),
        ],
        out_specs=(
            pl.BlockSpec((1, 1, th, wd, COP), lambda i, j: (i, j, 0, 0, 0)),
            pl.BlockSpec((1, 1, 8, COP), lambda i, j: (i, j, 0, 0)),
        ),
        out_shape=(
            jax.ShapeDtypeStruct((n, hb, th, wd, COP), jnp.float32),
            jax.ShapeDtypeStruct((n, hb, 8, COP), jnp.float32),
        ),
        compiler_params=_cparams("parallel", "parallel"),
    )(slabs, w_packed, b_packed)

    m_rows = n * h * wd
    if use_bn:
        # exact training-mode batch statistics over all (N,H,W) rows
        ssum = stats[:, :, 0, :].sum(axis=(0, 1))
        ssq = stats[:, :, 1, :].sum(axis=(0, 1))
        mean = ssum / m_rows
        var = jnp.maximum(ssq / m_rows - mean * mean, 0.0)
        scale = gamma_p * jax.lax.rsqrt(var + EPS)        # (1, COP)
        shift = beta_p - mean * scale
    else:
        scale = jnp.ones((1, COP), jnp.float32)
        shift = jnp.zeros((1, COP), jnp.float32)

    y_flat = y.reshape(m_rows, COP)
    tm = _pick_tile_m(m_rows)
    out = pl.pallas_call(
        functools.partial(_affine_act_kernel, act=True),
        grid=(m_rows // tm,),
        in_specs=[pl.BlockSpec((tm, COP), lambda i: (i, 0)),
                  pl.BlockSpec((1, COP), lambda i: (0, 0)),
                  pl.BlockSpec((1, COP), lambda i: (0, 0))],
        out_specs=pl.BlockSpec((tm, COP), lambda i: (i, 0)),
        out_shape=jax.ShapeDtypeStruct((m_rows, COP), jnp.bfloat16),
        compiler_params=_cparams("parallel"),
    )(y_flat, scale, shift)
    return out.reshape(n, h, wd, COP)


# ---------------------------------------------------------------------------
# MaxPool2d(kernel_size=3, stride=2, padding=1)
# ---------------------------------------------------------------------------
def _max9_kernel(*refs):
    o_ref = refs[-1]
    m = refs[0][...]
    for r in refs[1:-1]:
        m = jnp.maximum(m, r[...])
    o_ref[...] = m


def maxpool3x3s2(x):
    n, h, wd, cp = x.shape
    ho = (h + 2 - 3) // 2 + 1
    wo = (wd + 2 - 3) // 2 + 1
    xp = jnp.pad(x, ((0, 0), (1, 1), (1, 1), (0, 0)), constant_values=-jnp.inf)
    # TODO(synk): stride-2 tap decimation stays wrapper-side (XLA); the Pallas
    # kernel fuses the 9-way max on tiled, lane-dense blocks.
    taps = []
    for dy in range(3):
        for dx in range(3):
            t = jax.lax.slice(xp, (0, dy, dx, 0),
                              (n, dy + 2 * ho - 1, dx + 2 * wo - 1, cp),
                              (1, 2, 2, 1))
            taps.append(t.reshape(n * ho * wo, cp))
    mo = n * ho * wo
    tm = _pick_tile_m(mo)
    out = pl.pallas_call(
        _max9_kernel,
        grid=(mo // tm,),
        in_specs=[pl.BlockSpec((tm, cp), lambda i: (i, 0)) for _ in range(9)],
        out_specs=pl.BlockSpec((tm, cp), lambda i: (i, 0)),
        out_shape=jax.ShapeDtypeStruct((mo, cp), x.dtype),
        compiler_params=_cparams("parallel"),
    )(*taps)
    return out.reshape(n, ho, wo, cp)


# ---------------------------------------------------------------------------
# F.upsample(scale_factor=2, mode='bilinear')  (align_corners=False)
# ---------------------------------------------------------------------------
def _bilinear2x_kernel(x_ref, o_ref):
    x = x_ref[0].astype(jnp.float32)                      # (H, W, C)
    up = jnp.concatenate([x[:1], x[:-1]], axis=0)         # row i-1 (edge clamp)
    dn = jnp.concatenate([x[1:], x[-1:]], axis=0)         # row i+1 (edge clamp)
    rows = (0.25 * up + 0.75 * x,                         # even output rows
            0.75 * x + 0.25 * dn)                         # odd output rows
    for p, r in enumerate(rows):
        lf = jnp.concatenate([r[:, :1], r[:, :-1]], axis=1)
        rt = jnp.concatenate([r[:, 1:], r[:, -1:]], axis=1)
        even = 0.25 * lf + 0.75 * r                       # even output cols
        odd = 0.75 * r + 0.25 * rt                        # odd output cols
        o_ref[0, :, p, :, :] = jnp.concatenate([even, odd], axis=-1).astype(o_ref.dtype)


def upsample_bilinear_x2(x):
    n, h, wd, cp = x.shape
    out = pl.pallas_call(
        _bilinear2x_kernel,
        grid=(n,),
        in_specs=[pl.BlockSpec((1, h, wd, cp), lambda i: (i, 0, 0, 0))],
        out_specs=pl.BlockSpec((1, h, 2, wd, 2 * cp), lambda i: (i, 0, 0, 0, 0)),
        out_shape=jax.ShapeDtypeStruct((n, h, 2, wd, 2 * cp), x.dtype),
        compiler_params=_cparams("parallel"),
    )(x)
    # interleave is a pure row-major (free) reshape
    return out.reshape(n, 2 * h, wd, 2, cp).reshape(n, 2 * h, 2 * wd, cp)


# ---------------------------------------------------------------------------
# 1x1 output conv (matmul + bias)
# ---------------------------------------------------------------------------
def _matmul_bias_kernel(x_ref, w_ref, b_ref, o_ref):
    o_ref[...] = jnp.dot(x_ref[...], w_ref[...],
                         preferred_element_type=jnp.float32) + b_ref[...]


def conv1x1(x, w, b):
    n, h, wd, cp = x.shape
    cin, cout = w.shape
    wp = jnp.zeros((cp, COP), jnp.float32).at[:cin, :cout].set(w).astype(jnp.bfloat16)
    bp = _pad_vec(b)
    m = n * h * wd
    xf = x.reshape(m, cp)
    tm = _pick_tile_m(m)
    out = pl.pallas_call(
        _matmul_bias_kernel,
        grid=(m // tm,),
        in_specs=[pl.BlockSpec((tm, cp), lambda i: (i, 0)),
                  pl.BlockSpec((cp, COP), lambda i: (0, 0)),
                  pl.BlockSpec((1, COP), lambda i: (0, 0))],
        out_specs=pl.BlockSpec((tm, COP), lambda i: (i, 0)),
        out_shape=jax.ShapeDtypeStruct((m, COP), jnp.float32),
        compiler_params=_cparams("parallel"),
    )(xf, wp, bp)
    return out.reshape(n, h, wd, COP)


# ---------------------------------------------------------------------------
# UNetConvBlock / UNet
# ---------------------------------------------------------------------------
def unet_conv_block(x, p, in_splits, use_bn):
    # NOTE: the PyTorch block shares one BatchNorm2d across both convs.
    gamma_p = _pad_vec(p['gamma'])
    beta_p = _pad_vec(p['beta'])
    x = conv3x3_bn_act(x, _pack_conv3x3(p['w0'], in_splits), _pad_vec(p['b0']),
                       gamma_p, beta_p, use_bn)
    x = conv3x3_bn_act(x, _pack_conv3x3(p['w1'], (p['w1'].shape[2],)), _pad_vec(p['b1']),
                       gamma_p, beta_p, use_bn)
    return x


def unet_forward(x_nchw, params, conv_channels, input_nch=3, output_nch=2, use_bn=True):
    n_stages = len(conv_channels)
    x = jnp.transpose(x_nchw, (0, 2, 3, 1)).astype(jnp.float32)      # NCHW -> NHWC
    x = jnp.pad(x, ((0, 0), (0, 0), (0, 0), (0, CP - input_nch))).astype(jnp.bfloat16)
    real = input_nch

    down_fmaps, down_real = [], []
    for i in range(n_stages - 1):
        x = unet_conv_block(x, params['down'][i], (real,), use_bn)
        real = conv_channels[i]
        x = maxpool3x3s2(x)
        down_fmaps.insert(0, x)
        down_real.insert(0, real)
    x = unet_conv_block(x, params['down'][n_stages - 1], (real,), use_bn)
    real = conv_channels[-1]
    x = unet_conv_block(x, params['up'][0], (real,), use_bn)
    real = params['up'][0]['w1'].shape[-1]
    for i, (fmap, freal) in enumerate(zip(down_fmaps, down_real)):
        # TODO(synk): the skip concat is a lane-aligned XLA concat of two
        # 128-channel-padded maps; fully fusing it as a second conv-kernel input
        # (split weight matrix) would save one HBM round-trip per up-stage.
        x = jnp.concatenate([x, fmap], axis=-1)
        x = unet_conv_block(x, params['up'][i + 1], (real, freal), use_bn)
        real = params['up'][i + 1]['w1'].shape[-1]
        x = upsample_bilinear_x2(x)
    x = conv1x1(x, params['out_w'], params['out_b'])
    x = x[..., :output_nch]
    return jnp.transpose(x, (0, 3, 1, 2))                            # NHWC -> NCHW


# ---------------------------------------------------------------------------
# deterministic synthetic parameters (logical PyTorch shapes, HWIO conv layout)
# ---------------------------------------------------------------------------
def init_conv_block(key, in_ch, out_ch):
    k = jax.random.split(key, 6)
    return {
        'w0': 0.1 * jax.random.normal(k[0], (3, 3, in_ch, out_ch), jnp.float32),
        'b0': 0.1 * jax.random.normal(k[1], (out_ch,), jnp.float32),
        'w1': 0.1 * jax.random.normal(k[2], (3, 3, out_ch, out_ch), jnp.float32),
        'b1': 0.1 * jax.random.normal(k[3], (out_ch,), jnp.float32),
        'gamma': 1.0 + 0.1 * jax.random.normal(k[4], (out_ch,), jnp.float32),
        'beta': 0.1 * jax.random.normal(k[5], (out_ch,), jnp.float32),
    }


def init_unet_params(key, conv_channels, input_nch=3, output_nch=2):
    n_stages = len(conv_channels)
    keys = jax.random.split(key, 2 * n_stages + 2)
    down, up = [], []
    in_nch = input_nch
    ki = 0
    for i, out_nch in enumerate(conv_channels):
        down.append(init_conv_block(keys[ki], in_nch, out_nch)); ki += 1
        up_in = 2 * out_nch if i < n_stages - 1 else out_nch
        up_out = out_nch if i == 0 else in_nch
        up.insert(0, init_conv_block(keys[ki], up_in, up_out)); ki += 1
        in_nch = out_nch
    return {
        'down': down,
        'up': up,
        'out_w': 0.1 * jax.random.normal(keys[ki], (conv_channels[0], output_nch), jnp.float32),
        'out_b': 0.1 * jax.random.normal(keys[ki + 1], (output_nch,), jnp.float32),
    }


if __name__ == "__main__":
    conv_channels = [8, 16]            # 2-stage UNet
    key = jax.random.PRNGKey(0)
    kx, kp = jax.random.split(key)
    x = jax.random.normal(kx, (2, 3, 16, 16), jnp.float32)           # NCHW input
    params = init_unet_params(kp, conv_channels, input_nch=3, output_nch=2)

    fwd = jax.jit(functools.partial(unet_forward,
                                    conv_channels=conv_channels,
                                    input_nch=3, output_nch=2, use_bn=True))
    out = fwd(x, params)
    jax.block_until_ready(out)
    assert out.shape == (2, 2, 16, 16), out.shape
    print("KERNEL_OK")
</pallas_src>

<mosaic_0001>
module attributes {stable_mosaic.version = 11 : i64} {
  func.func @_affine_act_kernel(%arg0: i32, %arg1: memref<512x128xf32, #tpu.memory_space<vmem>>, %arg2: memref<1x128xf32, #tpu.memory_space<vmem>>, %arg3: memref<1x128xf32, #tpu.memory_space<vmem>>, %arg4: memref<512x128xbf16, #tpu.memory_space<vmem>>) attributes {dimension_semantics = [#tpu.dimension_semantics<parallel>], iteration_bounds = array<i64: 1>, scalar_prefetch = 0 : i64, scratch_operands = 0 : i64, tpu.core_type = #tpu.core_type<tc>, window_params = [{transform_indices = @transform_0, window_bounds = array<i64: 512, 128>}, {pipeline_mode = #tpu.pipeline_mode<synchronous>, transform_indices = @transform_1, window_bounds = array<i64: 1, 128>}, {pipeline_mode = #tpu.pipeline_mode<synchronous>, transform_indices = @transform_2, window_bounds = array<i64: 1, 128>}, {transform_indices = @transform_3, window_bounds = array<i64: 512, 128>}]} {
    %c0 = arith.constant 0 : index
    %c0_0 = arith.constant 0 : index
    %0 = vector.load %arg1[%c0, %c0_0] : memref<512x128xf32, #tpu.memory_space<vmem>>, vector<512x128xf32>
    %c0_1 = arith.constant 0 : index
    %c0_2 = arith.constant 0 : index
    %1 = vector.load %arg2[%c0_1, %c0_2] : memref<1x128xf32, #tpu.memory_space<vmem>>, vector<1x128xf32>
    %2 = vector.broadcast %1 : vector<1x128xf32> to vector<512x128xf32>
    %3 = arith.mulf %0, %2 : vector<512x128xf32>
    %c0_3 = arith.constant 0 : index
    %c0_4 = arith.constant 0 : index
    %4 = vector.load %arg3[%c0_3, %c0_4] : memref<1x128xf32, #tpu.memory_space<vmem>>, vector<1x128xf32>
    %5 = vector.broadcast %4 : vector<1x128xf32> to vector<512x128xf32>
    %6 = arith.addf %3, %5 : vector<512x128xf32>
    %cst = arith.constant 0.000000e+00 : f32
    %7 = vector.broadcast %cst : f32 to vector<512x128xf32>
    %8 = arith.cmpf oge, %6, %7 : vector<512x128xf32>
    %cst_5 = arith.constant 0.00999999977 : f32
    %9 = vector.broadcast %cst_5 : f32 to vector<512x128xf32>
    %10 = arith.mulf %9, %6 : vector<512x128xf32>
    %11 = arith.select %8, %6, %10 : vector<512x128xi1>, vector<512x128xf32>
    %12 = arith.truncf %11 : vector<512x128xf32> to vector<512x128xbf16>
    %c0_6 = arith.constant 0 : index
    %c0_7 = arith.constant 0 : index
    %13 = vector.load %arg4[%c0_6, %c0_7] : memref<512x128xbf16, #tpu.memory_space<vmem>>, vector<512x128xbf16>
    tpu.vector_store %arg4[%c0_6, %c0_7], %12 {strides = array<i32>} : memref<512x128xbf16, #tpu.memory_space<vmem>>, vector<512x128xbf16>,
    return
  }
  func.func @transform_0(%arg0: i32) -> (i32, i32) {
    %c0_i32 = arith.constant 0 : i32
    %c0_i32_0 = arith.constant 0 : i32
    return %arg0, %c0_i32 : i32, i32
  }
  func.func @transform_1(%arg0: i32) -> (i32, i32) {
    %c0_i32 = arith.constant 0 : i32
    %c0_i32_0 = arith.constant 0 : i32
    %c0_i32_1 = arith.constant 0 : i32
    return %c0_i32, %c0_i32_0 : i32, i32
  }
  func.func @transform_2(%arg0: i32) -> (i32, i32) {
    %c0_i32 = arith.constant 0 : i32
    %c0_i32_0 = arith.constant 0 : i32
    %c0_i32_1 = arith.constant 0 : i32
    return %c0_i32, %c0_i32_0 : i32, i32
  }
  func.func @transform_3(%arg0: i32) -> (i32, i32) {
    %c0_i32 = arith.constant 0 : i32
    %c0_i32_0 = arith.constant 0 : i32
    return %arg0, %c0_i32 : i32, i32
  }
}

module attributes {stable_mosaic.version = 11 : i64} {
  func.func @_conv3x3_kernel(%arg0: i32, %arg1: i32, %arg2: memref<1x1x18x18x128xbf16, #tpu.memory_space<vmem>>, %arg3: memref<9x128x128xbf16, #tpu.memory_space<vmem>>, %arg4: memref<1x128xf32, #tpu.memory_space<vmem>>, %arg5: memref<1x1x16x16x128xf32, #tpu.memory_space<vmem>>, %arg6: memref<1x1x8x128xf32, #tpu.memory_space<vmem>>) attributes {dimension_semantics = [#tpu.dimension_semantics<parallel>, #tpu.dimension_semantics<parallel>], iteration_bounds = array<i64: 2, 1>, scalar_prefetch = 0 : i64, scratch_operands = 0 : i64, tpu.core_type = #tpu.core_type<tc>, window_params = [{transform_indices = @transform_0, window_bounds = array<i64: 1, 1, 18, 18, 128>}, {pipeline_mode = #tpu.pipeline_mode<synchronous>, transform_indices = @transform_1, window_bounds = array<i64: 9, 128, 128>}, {pipeline_mode = #tpu.pipeline_mode<synchronous>, transform_indices = @transform_2, window_bounds = array<i64: 1, 128>}, {transform_indices = @transform_3, window_bounds = array<i64: 1, 1, 16, 16, 128>}, {transform_indices = @transform_4, window_bounds = array<i64: 1, 1, 8, 128>}]} {
    %c0 = arith.constant 0 : index
    %c0_0 = arith.constant 0 : index
    %c0_1 = arith.constant 0 : index
    %c0_2 = arith.constant 0 : index
    %c0_3 = arith.constant 0 : index
    %0 = vector.load %arg2[%c0, %c0_0, %c0_1, %c0_2, %c0_3] : memref<1x1x18x18x128xbf16, #tpu.memory_space<vmem>>, vector<1x1x18x18x128xbf16>
    %1 = vector.shape_cast %0 : vector<1x1x18x18x128xbf16> to vector<18x18x128xbf16>
    %2 = arith.extf %1 : vector<18x18x128xbf16> to vector<18x18x128xf32>
    %cst = arith.constant 0.000000e+00 : f32
    %3 = vector.broadcast %cst : f32 to vector<256x128xf32>
    %4 = vector.extract_strided_slice %2 {offsets = [0, 0, 0], sizes = [16, 16, 128], strides = [1, 1, 1]} : vector<18x18x128xf32> to vector<16x16x128xf32>
    %5 = vector.shape_cast %4 : vector<16x16x128xf32> to vector<256x128xf32>
    %6 = arith.truncf %5 : vector<256x128xf32> to vector<256x128xbf16>
    %c0_4 = arith.constant 0 : index
    %c0_5 = arith.constant 0 : index
    %c0_6 = arith.constant 0 : index
    %7 = vector.load %arg3[%c0_4, %c0_5, %c0_6] : memref<9x128x128xbf16, #tpu.memory_space<vmem>>, vector<1x128x128xbf16>
    %8 = vector.shape_cast %7 : vector<1x128x128xbf16> to vector<128x128xbf16>
    %cst_7 = arith.constant dense<0.000000e+00> : vector<256x128xf32>
    %9 = tpu.matmul %6, %8, %cst_7 {dimension_numbers = #tpu.dot_dimension_numbers<[1], [0], [0], [1], [0, 0, 1, 1], [], []>} : vector<256x128xbf16>, vector<128x128xbf16>, vector<256x128xf32> -> vector<256x128xf32>
    %10 = arith.addf %3, %9 : vector<256x128xf32>
    %11 = vector.extract_strided_slice %2 {offsets = [0, 1, 0], sizes = [16, 16, 128], strides = [1, 1, 1]} : vector<18x18x128xf32> to vector<16x16x128xf32>
    %12 = vector.shape_cast %11 : vector<16x16x128xf32> to vector<256x128xf32>
    %13 = arith.truncf %12 : vector<256x128xf32> to vector<256x128xbf16>
    %c1 = arith.constant 1 : index
    %c0_8 = arith.constant 0 : index
    %c0_9 = arith.constant 0 : index
    %14 = vector.load %arg3[%c1, %c0_8, %c0_9] : memref<9x128x128xbf16, #tpu.memory_space<vmem>>, vector<1x128x128xbf16>
    %15 = vector.shape_cast %14 : vector<1x128x128xbf16> to vector<128x128xbf16>
    %cst_10 = arith.constant dense<0.000000e+00> : vector<256x128xf32>
    %16 = tpu.matmul %13, %15, %cst_10 {dimension_numbers = #tpu.dot_dimension_numbers<[1], [0], [0], [1], [0, 0, 1, 1], [], []>} : vector<256x128xbf16>, vector<128x128xbf16>, vector<256x128xf32> -> vector<256x128xf32>
    %17 = arith.addf %10, %16 : vector<256x128xf32>
    %18 = vector.extract_strided_slice %2 {offsets = [0, 2, 0], sizes = [16, 16, 128], strides = [1, 1, 1]} : vector<18x18x128xf32> to vector<16x16x128xf32>
    %19 = vector.shape_cast %18 : vector<16x16x128xf32> to vector<256x128xf32>
    %20 = arith.truncf %19 : vector<256x128xf32> to vector<256x128xbf16>
    %c2 = arith.constant 2 : index
    %c0_11 = arith.constant 0 : index
    %c0_12 = arith.constant 0 : index
    %21 = vector.load %arg3[%c2, %c0_11, %c0_12] : memref<9x128x128xbf16, #tpu.memory_space<vmem>>, vector<1x128x128xbf16>
    %22 = vector.shape_cast %21 : vector<1x128x128xbf16> to vector<128x128xbf16>
    %cst_13 = arith.constant dense<0.000000e+00> : vector<256x128xf32>
    %23 = tpu.matmul %20, %22, %cst_13 {dimension_numbers = #tpu.dot_dimension_numbers<[1], [0], [0], [1], [0, 0, 1, 1], [], []>} : vector<256x128xbf16>, vector<128x128xbf16>, vector<256x128xf32> -> vector<256x128xf32>
    %24 = arith.addf %17, %23 : vector<256x128xf32>
    %25 = vector.extract_strided_slice %2 {offsets = [1, 0, 0], sizes = [16, 16, 128], strides = [1, 1, 1]} : vector<18x18x128xf32> to vector<16x16x128xf32>
    %26 = vector.shape_cast %25 : vector<16x16x128xf32> to vector<256x128xf32>
    %27 = arith.truncf %26 : vector<256x128xf32> to vector<256x128xbf16>
    %c3 = arith.constant 3 : index
    %c0_14 = arith.constant 0 : index
    %c0_15 = arith.constant 0 : index
    %28 = vector.load %arg3[%c3, %c0_14, %c0_15] : memref<9x128x128xbf16, #tpu.memory_space<vmem>>, vector<1x128x128xbf16>
    %29 = vector.shape_cast %28 : vector<1x128x128xbf16> to vector<128x128xbf16>
    %cst_16 = arith.constant dense<0.000000e+00> : vector<256x128xf32>
    %30 = tpu.matmul %27, %29, %cst_16 {dimension_numbers = #tpu.dot_dimension_numbers<[1], [0], [0], [1], [0, 0, 1, 1], [], []>} : vector<256x128xbf16>, vector<128x128xbf16>, vector<256x128xf32> -> vector<256x128xf32>
    %31 = arith.addf %24, %30 : vector<256x128xf32>
    %32 = vector.extract_strided_slice %2 {offsets = [1, 1, 0], sizes = [16, 16, 128], strides = [1, 1, 1]} : vector<18x18x128xf32> to vector<16x16x128xf32>
    %33 = vector.shape_cast %32 : vector<16x16x128xf32> to vector<256x128xf32>
    %34 = arith.truncf %33 : vector<256x128xf32> to vector<256x128xbf16>
    %c4 = arith.constant 4 : index
    %c0_17 = arith.constant 0 : index
    %c0_18 = arith.constant 0 : index
    %35 = vector.load %arg3[%c4, %c0_17, %c0_18] : memref<9x128x128xbf16, #tpu.memory_space<vmem>>, vector<1x128x128xbf16>
    %36 = vector.shape_cast %35 : vector<1x128x128xbf16> to vector<128x128xbf16>
    %cst_19 = arith.constant dense<0.000000e+00> : vector<256x128xf32>
    %37 = tpu.matmul %34, %36, %cst_19 {dimension_numbers = #tpu.dot_dimension_numbers<[1], [0], [0], [1], [0, 0, 1, 1], [], []>} : vector<256x128xbf16>, vector<128x128xbf16>, vector<256x128xf32> -> vector<256x128xf32>
    %38 = arith.addf %31, %37 : vector<256x128xf32>
    %39 = vector.extract_strided_slice %2 {offsets = [1, 2, 0], sizes = [16, 16, 128], strides = [1, 1, 1]} : vector<18x18x128xf32> to vector<16x16x128xf32>
    %40 = vector.shape_cast %39 : vector<16x16x128xf32> to vector<256x128xf32>
    %41 = arith.truncf %40 : vector<256x128xf32> to vector<256x128xbf16>
    %c5 = arith.constant 5 : index
    %c0_20 = arith.constant 0 : index
    %c0_21 = arith.constant 0 : index
    %42 = vector.load %arg3[%c5, %c0_20, %c0_21] : memref<9x128x128xbf16, #tpu.memory_space<vmem>>, vector<1x128x128xbf16>
    %43 = vector.shape_cast %42 : vector<1x128x128xbf16> to vector<128x128xbf16>
    %cst_22 = arith.constant dense<0.000000e+00> : vector<256x128xf32>
    %44 = tpu.matmul %41, %43, %cst_22 {dimension_numbers = #tpu.dot_dimension_numbers<[1], [0], [0], [1], [0, 0, 1, 1], [], []>} : vector<256x128xbf16>, vector<128x128xbf16>, vector<256x128xf32> -> vector<256x128xf32>
    %45 = arith.addf %38, %44 : vector<256x128xf32>
    %46 = vector.extract_strided_slice %2 {offsets = [2, 0, 0], sizes = [16, 16, 128], strides = [1, 1, 1]} : vector<18x18x128xf32> to vector<16x16x128xf32>
    %47 = vector.shape_cast %46 : vector<16x16x128xf32> to vector<256x128xf32>
    %48 = arith.truncf %47 : vector<256x128xf32> to vector<256x128xbf16>
    %c6 = arith.constant 6 : index
    %c0_23 = arith.constant 0 : index
    %c0_24 = arith.constant 0 : index
    %49 = vector.load %arg3[%c6, %c0_23, %c0_24] : memref<9x128x128xbf16, #tpu.memory_space<vmem>>, vector<1x128x128xbf16>
    %50 = vector.shape_cast %49 : vector<1x128x128xbf16> to vector<128x128xbf16>
    %cst_25 = arith.constant dense<0.000000e+00> : vector<256x128xf32>
    %51 = tpu.matmul %48, %50, %cst_25 {dimension_numbers = #tpu.dot_dimension_numbers<[1], [0], [0], [1], [0, 0, 1, 1], [], []>} : vector<256x128xbf16>, vector<128x128xbf16>, vector<256x128xf32> -> vector<256x128xf32>
    %52 = arith.addf %45, %51 : vector<256x128xf32>
    %53 = vector.extract_strided_slice %2 {offsets = [2, 1, 0], sizes = [16, 16, 128], strides = [1, 1, 1]} : vector<18x18x128xf32> to vector<16x16x128xf32>
    %54 = vector.shape_cast %53 : vector<16x16x128xf32> to vector<256x128xf32>
    %55 = arith.truncf %54 : vector<256x128xf32> to vector<256x128xbf16>
    %c7 = arith.constant 7 : index
    %c0_26 = arith.constant 0 : index
    %c0_27 = arith.constant 0 : index
    %56 = vector.load %arg3[%c7, %c0_26, %c0_27] : memref<9x128x128xbf16, #tpu.memory_space<vmem>>, vector<1x128x128xbf16>
    %57 = vector.shape_cast %56 : vector<1x128x128xbf16> to vector<128x128xbf16>
    %cst_28 = arith.constant dense<0.000000e+00> : vector<256x128xf32>
    %58 = tpu.matmul %55, %57, %cst_28 {dimension_numbers = #tpu.dot_dimension_numbers<[1], [0], [0], [1], [0, 0, 1, 1], [], []>} : vector<256x128xbf16>, vector<128x128xbf16>, vector<256x128xf32> -> vector<256x128xf32>
    %59 = arith.addf %52, %58 : vector<256x128xf32>
    %60 = vector.extract_strided_slice %2 {offsets = [2, 2, 0], sizes = [16, 16, 128], strides = [1, 1, 1]} : vector<18x18x128xf32> to vector<16x16x128xf32>
    %61 = vector.shape_cast %60 : vector<16x16x128xf32> to vector<256x128xf32>
    %62 = arith.truncf %61 : vector<256x128xf32> to vector<256x128xbf16>
    %c8 = arith.constant 8 : index
    %c0_29 = arith.constant 0 : index
    %c0_30 = arith.constant 0 : index
    %63 = vector.load %arg3[%c8, %c0_29, %c0_30] : memref<9x128x128xbf16, #tpu.memory_space<vmem>>, vector<1x128x128xbf16>
    %64 = vector.shape_cast %63 : vector<1x128x128xbf16> to vector<128x128xbf16>
    %cst_31 = arith.constant dense<0.000000e+00> : vector<256x128xf32>
    %65 = tpu.matmul %62, %64, %cst_31 {dimension_numbers = #tpu.dot_dimension_numbers<[1], [0], [0], [1], [0, 0, 1, 1], [], []>} : vector<256x128xbf16>, vector<128x128xbf16>, vector<256x128xf32> -> vector<256x128xf32>
    %66 = arith.addf %59, %65 : vector<256x128xf32>
    %c0_32 = arith.constant 0 : index
    %c0_33 = arith.constant 0 : index
    %67 = vector.load %arg4[%c0_32, %c0_33] : memref<1x128xf32, #tpu.memory_space<vmem>>, vector<1x128xf32>
    %68 = vector.broadcast %67 : vector<1x128xf32> to vector<256x128xf32>
    %69 = arith.addf %66, %68 : vector<256x128xf32>
    %70 = vector.shape_cast %69 : vector<256x128xf32> to vector<16x16x128xf32>
    %c0_34 = arith.constant 0 : index
    %c0_35 = arith.constant 0 : index
    %c0_36 = arith.constant 0 : index
    %c0_37 = arith.constant 0 : index
    %c0_38 = arith.constant 0 : index
    %71 = vector.load %arg5[%c0_34, %c0_35, %c0_36, %c0_37, %c0_38] : memref<1x1x16x16x128xf32, #tpu.memory_space<vmem>>, vector<1x1x16x16x128xf32>
    %72 = vector.shape_cast %71 : vector<1x1x16x16x128xf32> to vector<16x16x128xf32>
    %73 = vector.shape_cast %70 : vector<16x16x128xf32> to vector<1x1x16x16x128xf32>
    tpu.vector_store %arg5[%c0_34, %c0_35, %c0_36, %c0_37, %c0_38], %73 {strides = array<i32>} : memref<1x1x16x16x128xf32, #tpu.memory_space<vmem>>, vector<1x1x16x16x128xf32>,
    %cst_39 = arith.constant dense<0.000000e+00> : vector<128xf32>
    %74 = vector.multi_reduction <add>, %69, %cst_39 [0] : vector<256x128xf32> to vector<128xf32>
    %75 = vector.shape_cast %74 : vector<128xf32> to vector<1x128xf32>
    %76 = arith.mulf %69, %69 : vector<256x128xf32>
    %cst_40 = arith.constant dense<0.000000e+00> : vector<128xf32>
    %77 = vector.multi_reduction <add>, %76, %cst_40 [0] : vector<256x128xf32> to vector<128xf32>
    %78 = vector.shape_cast %77 : vector<128xf32> to vector<1x128xf32>
    %cst_41 = arith.constant 0.000000e+00 : f32
    %79 = vector.broadcast %cst_41 : f32 to vector<6x128xf32>
    %80 = tpu.concatenate %75, %78, %79 in 0 : vector<1x128xf32>, vector<1x128xf32>, vector<6x128xf32> -> vector<8x128xf32>
    %c0_42 = arith.constant 0 : index
    %c0_43 = arith.constant 0 : index
    %c0_44 = arith.constant 0 : index
    %c0_45 = arith.constant 0 : index
    %81 = vector.load %arg6[%c0_42, %c0_43, %c0_44, %c0_45] : memref<1x1x8x128xf32, #tpu.memory_space<vmem>>, vector<1x1x8x128xf32>
    %82 = vector.shape_cast %81 : vector<1x1x8x128xf32> to vector<8x128xf32>
    %83 = vector.shape_cast %80 : vector<8x128xf32> to vector<1x1x8x128xf32>
    tpu.vector_store %arg6[%c0_42, %c0_43, %c0_44, %c0_45], %83 {strides = array<i32>} : memref<1x1x8x128xf32, #tpu.memory_space<vmem>>, vector<1x1x8x128xf32>,
    return
  }
  func.func @transform_0(%arg0: i32, %arg1: i32) -> (i32, i32, i32, i32, i32) {
    %c0_i32 = arith.constant 0 : i32
    %c0_i32_0 = arith.constant 0 : i32
    %c0_i32_1 = arith.constant 0 : i32
    %c0_i32_2 = arith.constant 0 : i32
    return %arg0, %arg1, %c0_i32, %c0_i32_0, %c0_i32_1 : i32, i32, i32, i32, i32
  }
  func.func @transform_1(%arg0: i32, %arg1: i32) -> (i32, i32, i32) {
    %c0_i32 = arith.constant 0 : i32
    %c0_i32_0 = arith.constant 0 : i32
    %c0_i32_1 = arith.constant 0 : i32
    %c0_i32_2 = arith.constant 0 : i32
    return %c0_i32, %c0_i32_0, %c0_i32_1 : i32, i32, i32
  }
  func.func @transform_2(%arg0: i32, %arg1: i32) -> (i32, i32) {
    %c0_i32 = arith.constant 0 : i32
    %c0_i32_0 = arith.constant 0 : i32
    %c0_i32_1 = arith.constant 0 : i32
    return %c0_i32, %c0_i32_0 : i32, i32
  }
  func.func @transform_3(%arg0: i32, %arg1: i32) -> (i32, i32, i32, i32, i32) {
    %c0_i32 = arith.constant 0 : i32
    %c0_i32_0 = arith.constant 0 : i32
    %c0_i32_1 = arith.constant 0 : i32
    %c0_i32_2 = arith.constant 0 : i32
    return %arg0, %arg1, %c0_i32, %c0_i32_0, %c0_i32_1 : i32, i32, i32, i32, i32
  }
  func.func @transform_4(%arg0: i32, %arg1: i32) -> (i32, i32, i32, i32) {
    %c0_i32 = arith.constant 0 : i32
    %c0_i32_0 = arith.constant 0 : i32
    %c0_i32_1 = arith.constant 0 : i32
    return %arg0, %arg1, %c0_i32, %c0_i32_0 : i32, i32, i32, i32
  }
}

module attributes {stable_mosaic.version = 11 : i64} {
  func.func @_max9_kernel(%arg0: i32, %arg1: memref<128x128xbf16, #tpu.memory_space<vmem>>, %arg2: memref<128x128xbf16, #tpu.memory_space<vmem>>, %arg3: memref<128x128xbf16, #tpu.memory_space<vmem>>, %arg4: memref<128x128xbf16, #tpu.memory_space<vmem>>, %arg5: memref<128x128xbf16, #tpu.memory_space<vmem>>, %arg6: memref<128x128xbf16, #tpu.memory_space<vmem>>, %arg7: memref<128x128xbf16, #tpu.memory_space<vmem>>, %arg8: memref<128x128xbf16, #tpu.memory_space<vmem>>, %arg9: memref<128x128xbf16, #tpu.memory_space<vmem>>, %arg10: memref<128x128xbf16, #tpu.memory_space<vmem>>) attributes {dimension_semantics = [#tpu.dimension_semantics<parallel>], iteration_bounds = array<i64: 1>, scalar_prefetch = 0 : i64, scratch_operands = 0 : i64, tpu.core_type = #tpu.core_type<tc>, window_params = [{transform_indices = @transform_0, window_bounds = array<i64: 128, 128>}, {transform_indices = @transform_1, window_bounds = array<i64: 128, 128>}, {transform_indices = @transform_2, window_bounds = array<i64: 128, 128>}, {transform_indices = @transform_3, window_bounds = array<i64: 128, 128>}, {transform_indices = @transform_4, window_bounds = array<i64: 128, 128>}, {transform_indices = @transform_5, window_bounds = array<i64: 128, 128>}, {transform_indices = @transform_6, window_bounds = array<i64: 128, 128>}, {transform_indices = @transform_7, window_bounds = array<i64: 128, 128>}, {transform_indices = @transform_8, window_bounds = array<i64: 128, 128>}, {transform_indices = @transform_9, window_bounds = array<i64: 128, 128>}]} {
    %c0 = arith.constant 0 : index
    %c0_0 = arith.constant 0 : index
    %0 = vector.load %arg1[%c0, %c0_0] : memref<128x128xbf16, #tpu.memory_space<vmem>>, vector<128x128xbf16>
    %c0_1 = arith.constant 0 : index
    %c0_2 = arith.constant 0 : index
    %1 = vector.load %arg2[%c0_1, %c0_2] : memref<128x128xbf16, #tpu.memory_space<vmem>>, vector<128x128xbf16>
    %2 = arith.maximumf %0, %1 : vector<128x128xbf16>
    %c0_3 = arith.constant 0 : index
    %c0_4 = arith.constant 0 : index
    %3 = vector.load %arg3[%c0_3, %c0_4] : memref<128x128xbf16, #tpu.memory_space<vmem>>, vector<128x128xbf16>
    %4 = arith.maximumf %2, %3 : vector<128x128xbf16>
    %c0_5 = arith.constant 0 : index
    %c0_6 = arith.constant 0 : index
    %5 = vector.load %arg4[%c0_5, %c0_6] : memref<128x128xbf16, #tpu.memory_space<vmem>>, vector<128x128xbf16>
    %6 = arith.maximumf %4, %5 : vector<128x128xbf16>
    %c0_7 = arith.constant 0 : index
    %c0_8 = arith.constant 0 : index
    %7 = vector.load %arg5[%c0_7, %c0_8] : memref<128x128xbf16, #tpu.memory_space<vmem>>, vector<128x128xbf16>
    %8 = arith.maximumf %6, %7 : vector<128x128xbf16>
    %c0_9 = arith.constant 0 : index
    %c0_10 = arith.constant 0 : index
    %9 = vector.load %arg6[%c0_9, %c0_10] : memref<128x128xbf16, #tpu.memory_space<vmem>>, vector<128x128xbf16>
    %10 = arith.maximumf %8, %9 : vector<128x128xbf16>
    %c0_11 = arith.constant 0 : index
    %c0_12 = arith.constant 0 : index
    %11 = vector.load %arg7[%c0_11, %c0_12] : memref<128x128xbf16, #tpu.memory_space<vmem>>, vector<128x128xbf16>
    %12 = arith.maximumf %10, %11 : vector<128x128xbf16>
    %c0_13 = arith.constant 0 : index
    %c0_14 = arith.constant 0 : index
    %13 = vector.load %arg8[%c0_13, %c0_14] : memref<128x128xbf16, #tpu.memory_space<vmem>>, vector<128x128xbf16>
    %14 = arith.maximumf %12, %13 : vector<128x128xbf16>
    %c0_15 = arith.constant 0 : index
    %c0_16 = arith.constant 0 : index
    %15 = vector.load %arg9[%c0_15, %c0_16] : memref<128x128xbf16, #tpu.memory_space<vmem>>, vector<128x128xbf16>
    %16 = arith.maximumf %14, %15 : vector<128x128xbf16>
    %c0_17 = arith.constant 0 : index
    %c0_18 = arith.constant 0 : index
    %17 = vector.load %arg10[%c0_17, %c0_18] : memref<128x128xbf16, #tpu.memory_space<vmem>>, vector<128x128xbf16>
    tpu.vector_store %arg10[%c0_17, %c0_18], %16 {strides = array<i32>} : memref<128x128xbf16, #tpu.memory_space<vmem>>, vector<128x128xbf16>,
    return
  }
  func.func @transform_0(%arg0: i32) -> (i32, i32) {
    %c0_i32 = arith.constant 0 : i32
    %c0_i32_0 = arith.constant 0 : i32
    return %arg0, %c0_i32 : i32, i32
  }
  func.func @transform_1(%arg0: i32) -> (i32, i32) {
    %c0_i32 = arith.constant 0 : i32
    %c0_i32_0 = arith.constant 0 : i32
    return %arg0, %c0_i32 : i32, i32
  }
  func.func @transform_2(%arg0: i32) -> (i32, i32) {
    %c0_i32 = arith.constant 0 : i32
    %c0_i32_0 = arith.constant 0 : i32
    return %arg0, %c0_i32 : i32, i32
  }
  func.func @transform_3(%arg0: i32) -> (i32, i32) {
    %c0_i32 = arith.constant 0 : i32
    %c0_i32_0 = arith.constant 0 : i32
    return %arg0, %c0_i32 : i32, i32
  }
  func.func @transform_4(%arg0: i32) -> (i32, i32) {
    %c0_i32 = arith.constant 0 : i32
    %c0_i32_0 = arith.constant 0 : i32
    return %arg0, %c0_i32 : i32, i32
  }
  func.func @transform_5(%arg0: i32) -> (i32, i32) {
    %c0_i32 = arith.constant 0 : i32
    %c0_i32_0 = arith.constant 0 : i32
    return %arg0, %c0_i32 : i32, i32
  }
  func.func @transform_6(%arg0: i32) -> (i32, i32) {
    %c0_i32 = arith.constant 0 : i32
    %c0_i32_0 = arith.constant 0 : i32
    return %arg0, %c0_i32 : i32, i32
  }
  func.func @transform_7(%arg0: i32) -> (i32, i32) {
    %c0_i32 = arith.constant 0 : i32
    %c0_i32_0 = arith.constant 0 : i32
    return %arg0, %c0_i32 : i32, i32
  }
  func.func @transform_8(%arg0: i32) -> (i32, i32) {
    %c0_i32 = arith.constant 0 : i32
    %c0_i32_0 = arith.constant 0 : i32
    return %arg0, %c0_i32 : i32, i32
  }
  func.func @transform_9(%arg0: i32) -> (i32, i32) {
    %c0_i32 = arith.constant 0 : i32
    %c0_i32_0 = arith.constant 0 : i32
    return %arg0, %c0_i32 : i32, i32
  }
}

module attributes {stable_mosaic.version = 11 : i64} {
  func.func @_affine_act_kernel(%arg0: i32, %arg1: memref<128x128xf32, #tpu.memory_space<vmem>>, %arg2: memref<1x128xf32, #tpu.memory_space<vmem>>, %arg3: memref<1x128xf32, #tpu.memory_space<vmem>>, %arg4: memref<128x128xbf16, #tpu.memory_space<vmem>>) attributes {dimension_semantics = [#tpu.dimension_semantics<parallel>], iteration_bounds = array<i64: 1>, scalar_prefetch = 0 : i64, scratch_operands = 0 : i64, tpu.core_type = #tpu.core_type<tc>, window_params = [{transform_indices = @transform_0, window_bounds = array<i64: 128, 128>}, {pipeline_mode = #tpu.pipeline_mode<synchronous>, transform_indices = @transform_1, window_bounds = array<i64: 1, 128>}, {pipeline_mode = #tpu.pipeline_mode<synchronous>, transform_indices = @transform_2, window_bounds = array<i64: 1, 128>}, {transform_indices = @transform_3, window_bounds = array<i64: 128, 128>}]} {
    %c0 = arith.constant 0 : index
    %c0_0 = arith.constant 0 : index
    %0 = vector.load %arg1[%c0, %c0_0] : memref<128x128xf32, #tpu.memory_space<vmem>>, vector<128x128xf32>
    %c0_1 = arith.constant 0 : index
    %c0_2 = arith.constant 0 : index
    %1 = vector.load %arg2[%c0_1, %c0_2] : memref<1x128xf32, #tpu.memory_space<vmem>>, vector<1x128xf32>
    %2 = vector.broadcast %1 : vector<1x128xf32> to vector<128x128xf32>
    %3 = arith.mulf %0, %2 : vector<128x128xf32>
    %c0_3 = arith.constant 0 : index
    %c0_4 = arith.constant 0 : index
    %4 = vector.load %arg3[%c0_3, %c0_4] : memref<1x128xf32, #tpu.memory_space<vmem>>, vector<1x128xf32>
    %5 = vector.broadcast %4 : vector<1x128xf32> to vector<128x128xf32>
    %6 = arith.addf %3, %5 : vector<128x128xf32>
    %cst = arith.constant 0.000000e+00 : f32
    %7 = vector.broadcast %cst : f32 to vector<128x128xf32>
    %8 = arith.cmpf oge, %6, %7 : vector<128x128xf32>
    %cst_5 = arith.constant 0.00999999977 : f32
    %9 = vector.broadcast %cst_5 : f32 to vector<128x128xf32>
    %10 = arith.mulf %9, %6 : vector<128x128xf32>
    %11 = arith.select %8, %6, %10 : vector<128x128xi1>, vector<128x128xf32>
    %12 = arith.truncf %11 : vector<128x128xf32> to vector<128x128xbf16>
    %c0_6 = arith.constant 0 : index
    %c0_7 = arith.constant 0 : index
    %13 = vector.load %arg4[%c0_6, %c0_7] : memref<128x128xbf16, #tpu.memory_space<vmem>>, vector<128x128xbf16>
    tpu.vector_store %arg4[%c0_6, %c0_7], %12 {strides = array<i32>} : memref<128x128xbf16, #tpu.memory_space<vmem>>, vector<128x128xbf16>,
    return
  }
  func.func @transform_0(%arg0: i32) -> (i32, i32) {
    %c0_i32 = arith.constant 0 : i32
    %c0_i32_0 = arith.constant 0 : i32
    return %arg0, %c0_i32 : i32, i32
  }
  func.func @transform_1(%arg0: i32) -> (i32, i32) {
    %c0_i32 = arith.constant 0 : i32
    %c0_i32_0 = arith.constant 0 : i32
    %c0_i32_1 = arith.constant 0 : i32
    return %c0_i32, %c0_i32_0 : i32, i32
  }
  func.func @transform_2(%arg0: i32) -> (i32, i32) {
    %c0_i32 = arith.constant 0 : i32
    %c0_i32_0 = arith.constant 0 : i32
    %c0_i32_1 = arith.constant 0 : i32
    return %c0_i32, %c0_i32_0 : i32, i32
  }
  func.func @transform_3(%arg0: i32) -> (i32, i32) {
    %c0_i32 = arith.constant 0 : i32
    %c0_i32_0 = arith.constant 0 : i32
    return %arg0, %c0_i32 : i32, i32
  }
}

module attributes {stable_mosaic.version = 11 : i64} {
  func.func @_conv3x3_kernel(%arg0: i32, %arg1: i32, %arg2: memref<1x1x10x10x128xbf16, #tpu.memory_space<vmem>>, %arg3: memref<9x128x128xbf16, #tpu.memory_space<vmem>>, %arg4: memref<1x128xf32, #tpu.memory_space<vmem>>, %arg5: memref<1x1x8x8x128xf32, #tpu.memory_space<vmem>>, %arg6: memref<1x1x8x128xf32, #tpu.memory_space<vmem>>) attributes {dimension_semantics = [#tpu.dimension_semantics<parallel>, #tpu.dimension_semantics<parallel>], iteration_bounds = array<i64: 2, 1>, scalar_prefetch = 0 : i64, scratch_operands = 0 : i64, tpu.core_type = #tpu.core_type<tc>, window_params = [{transform_indices = @transform_0, window_bounds = array<i64: 1, 1, 10, 10, 128>}, {pipeline_mode = #tpu.pipeline_mode<synchronous>, transform_indices = @transform_1, window_bounds = array<i64: 9, 128, 128>}, {pipeline_mode = #tpu.pipeline_mode<synchronous>, transform_indices = @transform_2, window_bounds = array<i64: 1, 128>}, {transform_indices = @transform_3, window_bounds = array<i64: 1, 1, 8, 8, 128>}, {transform_indices = @transform_4, window_bounds = array<i64: 1, 1, 8, 128>}]} {
    %c0 = arith.constant 0 : index
    %c0_0 = arith.constant 0 : index
    %c0_1 = arith.constant 0 : index
    %c0_2 = arith.constant 0 : index
    %c0_3 = arith.constant 0 : index
    %0 = vector.load %arg2[%c0, %c0_0, %c0_1, %c0_2, %c0_3] : memref<1x1x10x10x128xbf16, #tpu.memory_space<vmem>>, vector<1x1x10x10x128xbf16>
    %1 = vector.shape_cast %0 : vector<1x1x10x10x128xbf16> to vector<10x10x128xbf16>
    %2 = arith.extf %1 : vector<10x10x128xbf16> to vector<10x10x128xf32>
    %cst = arith.constant 0.000000e+00 : f32
    %3 = vector.broadcast %cst : f32 to vector<64x128xf32>
    %4 = vector.extract_strided_slice %2 {offsets = [0, 0, 0], sizes = [8, 8, 128], strides = [1, 1, 1]} : vector<10x10x128xf32> to vector<8x8x128xf32>
    %5 = vector.shape_cast %4 : vector<8x8x128xf32> to vector<64x128xf32>
    %6 = arith.truncf %5 : vector<64x128xf32> to vector<64x128xbf16>
    %c0_4 = arith.constant 0 : index
    %c0_5 = arith.constant 0 : index
    %c0_6 = arith.constant 0 : index
    %7 = vector.load %arg3[%c0_4, %c0_5, %c0_6] : memref<9x128x128xbf16, #tpu.memory_space<vmem>>, vector<1x128x128xbf16>
    %8 = vector.shape_cast %7 : vector<1x128x128xbf16> to vector<128x128xbf16>
    %cst_7 = arith.constant dense<0.000000e+00> : vector<64x128xf32>
    %9 = tpu.matmul %6, %8, %cst_7 {dimension_numbers = #tpu.dot_dimension_numbers<[1], [0], [0], [1], [0, 0, 1, 1], [], []>} : vector<64x128xbf16>, vector<128x128xbf16>, vector<64x128xf32> -> vector<64x128xf32>
    %10 = arith.addf %3, %9 : vector<64x128xf32>
    %11 = vector.extract_strided_slice %2 {offsets = [0, 1, 0], sizes = [8, 8, 128], strides = [1, 1, 1]} : vector<10x10x128xf32> to vector<8x8x128xf32>
    %12 = vector.shape_cast %11 : vector<8x8x128xf32> to vector<64x128xf32>
    %13 = arith.truncf %12 : vector<64x128xf32> to vector<64x128xbf16>
    %c1 = arith.constant 1 : index
    %c0_8 = arith.constant 0 : index
    %c0_9 = arith.constant 0 : index
    %14 = vector.load %arg3[%c1, %c0_8, %c0_9] : memref<9x128x128xbf16, #tpu.memory_space<vmem>>, vector<1x128x128xbf16>
    %15 = vector.shape_cast %14 : vector<1x128x128xbf16> to vector<128x128xbf16>
    %cst_10 = arith.constant dense<0.000000e+00> : vector<64x128xf32>
    %16 = tpu.matmul %13, %15, %cst_10 {dimension_numbers = #tpu.dot_dimension_numbers<[1], [0], [0], [1], [0, 0, 1, 1], [], []>} : vector<64x128xbf16>, vector<128x128xbf16>, vector<64x128xf32> -> vector<64x128xf32>
    %17 = arith.addf %10, %16 : vector<64x128xf32>
    %18 = vector.extract_strided_slice %2 {offsets = [0, 2, 0], sizes = [8, 8, 128], strides = [1, 1, 1]} : vector<10x10x128xf32> to vector<8x8x128xf32>
    %19 = vector.shape_cast %18 : vector<8x8x128xf32> to vector<64x128xf32>
    %20 = arith.truncf %19 : vector<64x128xf32> to vector<64x128xbf16>
    %c2 = arith.constant 2 : index
    %c0_11 = arith.constant 0 : index
    %c0_12 = arith.constant 0 : index
    %21 = vector.load %arg3[%c2, %c0_11, %c0_12] : memref<9x128x128xbf16, #tpu.memory_space<vmem>>, vector<1x128x128xbf16>
    %22 = vector.shape_cast %21 : vector<1x128x128xbf16> to vector<128x128xbf16>
    %cst_13 = arith.constant dense<0.000000e+00> : vector<64x128xf32>
    %23 = tpu.matmul %20, %22, %cst_13 {dimension_numbers = #tpu.dot_dimension_numbers<[1], [0], [0], [1], [0, 0, 1, 1], [], []>} : vector<64x128xbf16>, vector<128x128xbf16>, vector<64x128xf32> -> vector<64x128xf32>
    %24 = arith.addf %17, %23 : vector<64x128xf32>
    %25 = vector.extract_strided_slice %2 {offsets = [1, 0, 0], sizes = [8, 8, 128], strides = [1, 1, 1]} : vector<10x10x128xf32> to vector<8x8x128xf32>
    %26 = vector.shape_cast %25 : vector<8x8x128xf32> to vector<64x128xf32>
    %27 = arith.truncf %26 : vector<64x128xf32> to vector<64x128xbf16>
    %c3 = arith.constant 3 : index
    %c0_14 = arith.constant 0 : index
    %c0_15 = arith.constant 0 : index
    %28 = vector.load %arg3[%c3, %c0_14, %c0_15] : memref<9x128x128xbf16, #tpu.memory_space<vmem>>, vector<1x128x128xbf16>
    %29 = vector.shape_cast %28 : vector<1x128x128xbf16> to vector<128x128xbf16>
    %cst_16 = arith.constant dense<0.000000e+00> : vector<64x128xf32>
    %30 = tpu.matmul %27, %29, %cst_16 {dimension_numbers = #tpu.dot_dimension_numbers<[1], [0], [0], [1], [0, 0, 1, 1], [], []>} : vector<64x128xbf16>, vector<128x128xbf16>, vector<64x128xf32> -> vector<64x128xf32>
    %31 = arith.addf %24, %30 : vector<64x128xf32>
    %32 = vector.extract_strided_slice %2 {offsets = [1, 1, 0], sizes = [8, 8, 128], strides = [1, 1, 1]} : vector<10x10x128xf32> to vector<8x8x128xf32>
    %33 = vector.shape_cast %32 : vector<8x8x128xf32> to vector<64x128xf32>
    %34 = arith.truncf %33 : vector<64x128xf32> to vector<64x128xbf16>
    %c4 = arith.constant 4 : index
    %c0_17 = arith.constant 0 : index
    %c0_18 = arith.constant 0 : index
    %35 = vector.load %arg3[%c4, %c0_17, %c0_18] : memref<9x128x128xbf16, #tpu.memory_space<vmem>>, vector<1x128x128xbf16>
    %36 = vector.shape_cast %35 : vector<1x128x128xbf16> to vector<128x128xbf16>
    %cst_19 = arith.constant dense<0.000000e+00> : vector<64x128xf32>
    %37 = tpu.matmul %34, %36, %cst_19 {dimension_numbers = #tpu.dot_dimension_numbers<[1], [0], [0], [1], [0, 0, 1, 1], [], []>} : vector<64x128xbf16>, vector<128x128xbf16>, vector<64x128xf32> -> vector<64x128xf32>
    %38 = arith.addf %31, %37 : vector<64x128xf32>
    %39 = vector.extract_strided_slice %2 {offsets = [1, 2, 0], sizes = [8, 8, 128], strides = [1, 1, 1]} : vector<10x10x128xf32> to vector<8x8x128xf32>
    %40 = vector.shape_cast %39 : vector<8x8x128xf32> to vector<64x128xf32>
    %41 = arith.truncf %40 : vector<64x128xf32> to vector<64x128xbf16>
    %c5 = arith.constant 5 : index
    %c0_20 = arith.constant 0 : index
    %c0_21 = arith.constant 0 : index
    %42 = vector.load %arg3[%c5, %c0_20, %c0_21] : memref<9x128x128xbf16, #tpu.memory_space<vmem>>, vector<1x128x128xbf16>
    %43 = vector.shape_cast %42 : vector<1x128x128xbf16> to vector<128x128xbf16>
    %cst_22 = arith.constant dense<0.000000e+00> : vector<64x128xf32>
    %44 = tpu.matmul %41, %43, %cst_22 {dimension_numbers = #tpu.dot_dimension_numbers<[1], [0], [0], [1], [0, 0, 1, 1], [], []>} : vector<64x128xbf16>, vector<128x128xbf16>, vector<64x128xf32> -> vector<64x128xf32>
    %45 = arith.addf %38, %44 : vector<64x128xf32>
    %46 = vector.extract_strided_slice %2 {offsets = [2, 0, 0], sizes = [8, 8, 128], strides = [1, 1, 1]} : vector<10x10x128xf32> to vector<8x8x128xf32>
    %47 = vector.shape_cast %46 : vector<8x8x128xf32> to vector<64x128xf32>
    %48 = arith.truncf %47 : vector<64x128xf32> to vector<64x128xbf16>
    %c6 = arith.constant 6 : index
    %c0_23 = arith.constant 0 : index
    %c0_24 = arith.constant 0 : index
    %49 = vector.load %arg3[%c6, %c0_23, %c0_24] : memref<9x128x128xbf16, #tpu.memory_space<vmem>>, vector<1x128x128xbf16>
    %50 = vector.shape_cast %49 : vector<1x128x128xbf16> to vector<128x128xbf16>
    %cst_25 = arith.constant dense<0.000000e+00> : vector<64x128xf32>
    %51 = tpu.matmul %48, %50, %cst_25 {dimension_numbers = #tpu.dot_dimension_numbers<[1], [0], [0], [1], [0, 0, 1, 1], [], []>} : vector<64x128xbf16>, vector<128x128xbf16>, vector<64x128xf32> -> vector<64x128xf32>
    %52 = arith.addf %45, %51 : vector<64x128xf32>
    %53 = vector.extract_strided_slice %2 {offsets = [2, 1, 0], sizes = [8, 8, 128], strides = [1, 1, 1]} : vector<10x10x128xf32> to vector<8x8x128xf32>
    %54 = vector.shape_cast %53 : vector<8x8x128xf32> to vector<64x128xf32>
    %55 = arith.truncf %54 : vector<64x128xf32> to vector<64x128xbf16>
    %c7 = arith.constant 7 : index
    %c0_26 = arith.constant 0 : index
    %c0_27 = arith.constant 0 : index
    %56 = vector.load %arg3[%c7, %c0_26, %c0_27] : memref<9x128x128xbf16, #tpu.memory_space<vmem>>, vector<1x128x128xbf16>
    %57 = vector.shape_cast %56 : vector<1x128x128xbf16> to vector<128x128xbf16>
    %cst_28 = arith.constant dense<0.000000e+00> : vector<64x128xf32>
    %58 = tpu.matmul %55, %57, %cst_28 {dimension_numbers = #tpu.dot_dimension_numbers<[1], [0], [0], [1], [0, 0, 1, 1], [], []>} : vector<64x128xbf16>, vector<128x128xbf16>, vector<64x128xf32> -> vector<64x128xf32>
    %59 = arith.addf %52, %58 : vector<64x128xf32>
    %60 = vector.extract_strided_slice %2 {offsets = [2, 2, 0], sizes = [8, 8, 128], strides = [1, 1, 1]} : vector<10x10x128xf32> to vector<8x8x128xf32>
    %61 = vector.shape_cast %60 : vector<8x8x128xf32> to vector<64x128xf32>
    %62 = arith.truncf %61 : vector<64x128xf32> to vector<64x128xbf16>
    %c8 = arith.constant 8 : index
    %c0_29 = arith.constant 0 : index
    %c0_30 = arith.constant 0 : index
    %63 = vector.load %arg3[%c8, %c0_29, %c0_30] : memref<9x128x128xbf16, #tpu.memory_space<vmem>>, vector<1x128x128xbf16>
    %64 = vector.shape_cast %63 : vector<1x128x128xbf16> to vector<128x128xbf16>
    %cst_31 = arith.constant dense<0.000000e+00> : vector<64x128xf32>
    %65 = tpu.matmul %62, %64, %cst_31 {dimension_numbers = #tpu.dot_dimension_numbers<[1], [0], [0], [1], [0, 0, 1, 1], [], []>} : vector<64x128xbf16>, vector<128x128xbf16>, vector<64x128xf32> -> vector<64x128xf32>
    %66 = arith.addf %59, %65 : vector<64x128xf32>
    %c0_32 = arith.constant 0 : index
    %c0_33 = arith.constant 0 : index
    %67 = vector.load %arg4[%c0_32, %c0_33] : memref<1x128xf32, #tpu.memory_space<vmem>>, vector<1x128xf32>
    %68 = vector.broadcast %67 : vector<1x128xf32> to vector<64x128xf32>
    %69 = arith.addf %66, %68 : vector<64x128xf32>
    %70 = vector.shape_cast %69 : vector<64x128xf32> to vector<8x8x128xf32>
    %c0_34 = arith.constant 0 : index
    %c0_35 = arith.constant 0 : index
    %c0_36 = arith.constant 0 : index
    %c0_37 = arith.constant 0 : index
    %c0_38 = arith.constant 0 : index
    %71 = vector.load %arg5[%c0_34, %c0_35, %c0_36, %c0_37, %c0_38] : memref<1x1x8x8x128xf32, #tpu.memory_space<vmem>>, vector<1x1x8x8x128xf32>
    %72 = vector.shape_cast %71 : vector<1x1x8x8x128xf32> to vector<8x8x128xf32>
    %73 = vector.shape_cast %70 : vector<8x8x128xf32> to vector<1x1x8x8x128xf32>
    tpu.vector_store %arg5[%c0_34, %c0_35, %c0_36, %c0_37, %c0_38], %73 {strides = array<i32>} : memref<1x1x8x8x128xf32, #tpu.memory_space<vmem>>, vector<1x1x8x8x128xf32>,
    %cst_39 = arith.constant dense<0.000000e+00> : vector<128xf32>
    %74 = vector.multi_reduction <add>, %69, %cst_39 [0] : vector<64x128xf32> to vector<128xf32>
    %75 = vector.shape_cast %74 : vector<128xf32> to vector<1x128xf32>
    %76 = arith.mulf %69, %69 : vector<64x128xf32>
    %cst_40 = arith.constant dense<0.000000e+00> : vector<128xf32>
    %77 = vector.multi_reduction <add>, %76, %cst_40 [0] : vector<64x128xf32> to vector<128xf32>
    %78 = vector.shape_cast %77 : vector<128xf32> to vector<1x128xf32>
    %cst_41 = arith.constant 0.000000e+00 : f32
    %79 = vector.broadcast %cst_41 : f32 to vector<6x128xf32>
    %80 = tpu.concatenate %75, %78, %79 in 0 : vector<1x128xf32>, vector<1x128xf32>, vector<6x128xf32> -> vector<8x128xf32>
    %c0_42 = arith.constant 0 : index
    %c0_43 = arith.constant 0 : index
    %c0_44 = arith.constant 0 : index
    %c0_45 = arith.constant 0 : index
    %81 = vector.load %arg6[%c0_42, %c0_43, %c0_44, %c0_45] : memref<1x1x8x128xf32, #tpu.memory_space<vmem>>, vector<1x1x8x128xf32>
    %82 = vector.shape_cast %81 : vector<1x1x8x128xf32> to vector<8x128xf32>
    %83 = vector.shape_cast %80 : vector<8x128xf32> to vector<1x1x8x128xf32>
    tpu.vector_store %arg6[%c0_42, %c0_43, %c0_44, %c0_45], %83 {strides = array<i32>} : memref<1x1x8x128xf32, #tpu.memory_space<vmem>>, vector<1x1x8x128xf32>,
    return
  }
  func.func @transform_0(%arg0: i32, %arg1: i32) -> (i32, i32, i32, i32, i32) {
    %c0_i32 = arith.constant 0 : i32
    %c0_i32_0 = arith.constant 0 : i32
    %c0_i32_1 = arith.constant 0 : i32
    %c0_i32_2 = arith.constant 0 : i32
    return %arg0, %arg1, %c0_i32, %c0_i32_0, %c0_i32_1 : i32, i32, i32, i32, i32
  }
  func.func @transform_1(%arg0: i32, %arg1: i32) -> (i32, i32, i32) {
    %c0_i32 = arith.constant 0 : i32
    %c0_i32_0 = arith.constant 0 : i32
    %c0_i32_1 = arith.constant 0 : i32
    %c0_i32_2 = arith.constant 0 : i32
    return %c0_i32, %c0_i32_0, %c0_i32_1 : i32, i32, i32
  }
  func.func @transform_2(%arg0: i32, %arg1: i32) -> (i32, i32) {
    %c0_i32 = arith.constant 0 : i32
    %c0_i32_0 = arith.constant 0 : i32
    %c0_i32_1 = arith.constant 0 : i32
    return %c0_i32, %c0_i32_0 : i32, i32
  }
  func.func @transform_3(%arg0: i32, %arg1: i32) -> (i32, i32, i32, i32, i32) {
    %c0_i32 = arith.constant 0 : i32
    %c0_i32_0 = arith.constant 0 : i32
    %c0_i32_1 = arith.constant 0 : i32
    %c0_i32_2 = arith.constant 0 : i32
    return %arg0, %arg1, %c0_i32, %c0_i32_0, %c0_i32_1 : i32, i32, i32, i32, i32
  }
  func.func @transform_4(%arg0: i32, %arg1: i32) -> (i32, i32, i32, i32) {
    %c0_i32 = arith.constant 0 : i32
    %c0_i32_0 = arith.constant 0 : i32
    %c0_i32_1 = arith.constant 0 : i32
    return %arg0, %arg1, %c0_i32, %c0_i32_0 : i32, i32, i32, i32
  }
}

module attributes {stable_mosaic.version = 11 : i64} {
  func.func @_conv3x3_kernel(%arg0: i32, %arg1: i32, %arg2: memref<1x1x10x10x256xbf16, #tpu.memory_space<vmem>>, %arg3: memref<9x256x128xbf16, #tpu.memory_space<vmem>>, %arg4: memref<1x128xf32, #tpu.memory_space<vmem>>, %arg5: memref<1x1x8x8x128xf32, #tpu.memory_space<vmem>>, %arg6: memref<1x1x8x128xf32, #tpu.memory_space<vmem>>) attributes {dimension_semantics = [#tpu.dimension_semantics<parallel>, #tpu.dimension_semantics<parallel>], iteration_bounds = array<i64: 2, 1>, scalar_prefetch = 0 : i64, scratch_operands = 0 : i64, tpu.core_type = #tpu.core_type<tc>, window_params = [{transform_indices = @transform_0, window_bounds = array<i64: 1, 1, 10, 10, 256>}, {pipeline_mode = #tpu.pipeline_mode<synchronous>, transform_indices = @transform_1, window_bounds = array<i64: 9, 256, 128>}, {pipeline_mode = #tpu.pipeline_mode<synchronous>, transform_indices = @transform_2, window_bounds = array<i64: 1, 128>}, {transform_indices = @transform_3, window_bounds = array<i64: 1, 1, 8, 8, 128>}, {transform_indices = @transform_4, window_bounds = array<i64: 1, 1, 8, 128>}]} {
    %c0 = arith.constant 0 : index
    %c0_0 = arith.constant 0 : index
    %c0_1 = arith.constant 0 : index
    %c0_2 = arith.constant 0 : index
    %c0_3 = arith.constant 0 : index
    %0 = vector.load %arg2[%c0, %c0_0, %c0_1, %c0_2, %c0_3] : memref<1x1x10x10x256xbf16, #tpu.memory_space<vmem>>, vector<1x1x10x10x256xbf16>
    %1 = vector.shape_cast %0 : vector<1x1x10x10x256xbf16> to vector<10x10x256xbf16>
    %2 = arith.extf %1 : vector<10x10x256xbf16> to vector<10x10x256xf32>
    %cst = arith.constant 0.000000e+00 : f32
    %3 = vector.broadcast %cst : f32 to vector<64x128xf32>
    %4 = vector.extract_strided_slice %2 {offsets = [0, 0, 0], sizes = [8, 8, 256], strides = [1, 1, 1]} : vector<10x10x256xf32> to vector<8x8x256xf32>
    %5 = vector.shape_cast %4 : vector<8x8x256xf32> to vector<64x256xf32>
    %6 = arith.truncf %5 : vector<64x256xf32> to vector<64x256xbf16>
    %c0_4 = arith.constant 0 : index
    %c0_5 = arith.constant 0 : index
    %c0_6 = arith.constant 0 : index
    %7 = vector.load %arg3[%c0_4, %c0_5, %c0_6] : memref<9x256x128xbf16, #tpu.memory_space<vmem>>, vector<1x256x128xbf16>
    %8 = vector.shape_cast %7 : vector<1x256x128xbf16> to vector<256x128xbf16>
    %cst_7 = arith.constant dense<0.000000e+00> : vector<64x128xf32>
    %9 = tpu.matmul %6, %8, %cst_7 {dimension_numbers = #tpu.dot_dimension_numbers<[1], [0], [0], [1], [0, 0, 1, 1], [], []>} : vector<64x256xbf16>, vector<256x128xbf16>, vector<64x128xf32> -> vector<64x128xf32>
    %10 = arith.addf %3, %9 : vector<64x128xf32>
    %11 = vector.extract_strided_slice %2 {offsets = [0, 1, 0], sizes = [8, 8, 256], strides = [1, 1, 1]} : vector<10x10x256xf32> to vector<8x8x256xf32>
    %12 = vector.shape_cast %11 : vector<8x8x256xf32> to vector<64x256xf32>
    %13 = arith.truncf %12 : vector<64x256xf32> to vector<64x256xbf16>
    %c1 = arith.constant 1 : index
    %c0_8 = arith.constant 0 : index
    %c0_9 = arith.constant 0 : index
    %14 = vector.load %arg3[%c1, %c0_8, %c0_9] : memref<9x256x128xbf16, #tpu.memory_space<vmem>>, vector<1x256x128xbf16>
    %15 = vector.shape_cast %14 : vector<1x256x128xbf16> to vector<256x128xbf16>
    %cst_10 = arith.constant dense<0.000000e+00> : vector<64x128xf32>
    %16 = tpu.matmul %13, %15, %cst_10 {dimension_numbers = #tpu.dot_dimension_numbers<[1], [0], [0], [1], [0, 0, 1, 1], [], []>} : vector<64x256xbf16>, vector<256x128xbf16>, vector<64x128xf32> -> vector<64x128xf32>
    %17 = arith.addf %10, %16 : vector<64x128xf32>
    %18 = vector.extract_strided_slice %2 {offsets = [0, 2, 0], sizes = [8, 8, 256], strides = [1, 1, 1]} : vector<10x10x256xf32> to vector<8x8x256xf32>
    %19 = vector.shape_cast %18 : vector<8x8x256xf32> to vector<64x256xf32>
    %20 = arith.truncf %19 : vector<64x256xf32> to vector<64x256xbf16>
    %c2 = arith.constant 2 : index
    %c0_11 = arith.constant 0 : index
    %c0_12 = arith.constant 0 : index
    %21 = vector.load %arg3[%c2, %c0_11, %c0_12] : memref<9x256x128xbf16, #tpu.memory_space<vmem>>, vector<1x256x128xbf16>
    %22 = vector.shape_cast %21 : vector<1x256x128xbf16> to vector<256x128xbf16>
    %cst_13 = arith.constant dense<0.000000e+00> : vector<64x128xf32>
    %23 = tpu.matmul %20, %22, %cst_13 {dimension_numbers = #tpu.dot_dimension_numbers<[1], [0], [0], [1], [0, 0, 1, 1], [], []>} : vector<64x256xbf16>, vector<256x128xbf16>, vector<64x128xf32> -> vector<64x128xf32>
    %24 = arith.addf %17, %23 : vector<64x128xf32>
    %25 = vector.extract_strided_slice %2 {offsets = [1, 0, 0], sizes = [8, 8, 256], strides = [1, 1, 1]} : vector<10x10x256xf32> to vector<8x8x256xf32>
    %26 = vector.shape_cast %25 : vector<8x8x256xf32> to vector<64x256xf32>
    %27 = arith.truncf %26 : vector<64x256xf32> to vector<64x256xbf16>
    %c3 = arith.constant 3 : index
    %c0_14 = arith.constant 0 : index
    %c0_15 = arith.constant 0 : index
    %28 = vector.load %arg3[%c3, %c0_14, %c0_15] : memref<9x256x128xbf16, #tpu.memory_space<vmem>>, vector<1x256x128xbf16>
    %29 = vector.shape_cast %28 : vector<1x256x128xbf16> to vector<256x128xbf16>
    %cst_16 = arith.constant dense<0.000000e+00> : vector<64x128xf32>
    %30 = tpu.matmul %27, %29, %cst_16 {dimension_numbers = #tpu.dot_dimension_numbers<[1], [0], [0], [1], [0, 0, 1, 1], [], []>} : vector<64x256xbf16>, vector<256x128xbf16>, vector<64x128xf32> -> vector<64x128xf32>
    %31 = arith.addf %24, %30 : vector<64x128xf32>
    %32 = vector.extract_strided_slice %2 {offsets = [1, 1, 0], sizes = [8, 8, 256], strides = [1, 1, 1]} : vector<10x10x256xf32> to vector<8x8x256xf32>
    %33 = vector.shape_cast %32 : vector<8x8x256xf32> to vector<64x256xf32>
    %34 = arith.truncf %33 : vector<64x256xf32> to vector<64x256xbf16>
    %c4 = arith.constant 4 : index
    %c0_17 = arith.constant 0 : index
    %c0_18 = arith.constant 0 : index
    %35 = vector.load %arg3[%c4, %c0_17, %c0_18] : memref<9x256x128xbf16, #tpu.memory_space<vmem>>, vector<1x256x128xbf16>
    %36 = vector.shape_cast %35 : vector<1x256x128xbf16> to vector<256x128xbf16>
    %cst_19 = arith.constant dense<0.000000e+00> : vector<64x128xf32>
    %37 = tpu.matmul %34, %36, %cst_19 {dimension_numbers = #tpu.dot_dimension_numbers<[1], [0], [0], [1], [0, 0, 1, 1], [], []>} : vector<64x256xbf16>, vector<256x128xbf16>, vector<64x128xf32> -> vector<64x128xf32>
    %38 = arith.addf %31, %37 : vector<64x128xf32>
    %39 = vector.extract_strided_slice %2 {offsets = [1, 2, 0], sizes = [8, 8, 256], strides = [1, 1, 1]} : vector<10x10x256xf32> to vector<8x8x256xf32>
    %40 = vector.shape_cast %39 : vector<8x8x256xf32> to vector<64x256xf32>
    %41 = arith.truncf %40 : vector<64x256xf32> to vector<64x256xbf16>
    %c5 = arith.constant 5 : index
    %c0_20 = arith.constant 0 : index
    %c0_21 = arith.constant 0 : index
    %42 = vector.load %arg3[%c5, %c0_20, %c0_21] : memref<9x256x128xbf16, #tpu.memory_space<vmem>>, vector<1x256x128xbf16>
    %43 = vector.shape_cast %42 : vector<1x256x128xbf16> to vector<256x128xbf16>
    %cst_22 = arith.constant dense<0.000000e+00> : vector<64x128xf32>
    %44 = tpu.matmul %41, %43, %cst_22 {dimension_numbers = #tpu.dot_dimension_numbers<[1], [0], [0], [1], [0, 0, 1, 1], [], []>} : vector<64x256xbf16>, vector<256x128xbf16>, vector<64x128xf32> -> vector<64x128xf32>
    %45 = arith.addf %38, %44 : vector<64x128xf32>
    %46 = vector.extract_strided_slice %2 {offsets = [2, 0, 0], sizes = [8, 8, 256], strides = [1, 1, 1]} : vector<10x10x256xf32> to vector<8x8x256xf32>
    %47 = vector.shape_cast %46 : vector<8x8x256xf32> to vector<64x256xf32>
    %48 = arith.truncf %47 : vector<64x256xf32> to vector<64x256xbf16>
    %c6 = arith.constant 6 : index
    %c0_23 = arith.constant 0 : index
    %c0_24 = arith.constant 0 : index
    %49 = vector.load %arg3[%c6, %c0_23, %c0_24] : memref<9x256x128xbf16, #tpu.memory_space<vmem>>, vector<1x256x128xbf16>
    %50 = vector.shape_cast %49 : vector<1x256x128xbf16> to vector<256x128xbf16>
    %cst_25 = arith.constant dense<0.000000e+00> : vector<64x128xf32>
    %51 = tpu.matmul %48, %50, %cst_25 {dimension_numbers = #tpu.dot_dimension_numbers<[1], [0], [0], [1], [0, 0, 1, 1], [], []>} : vector<64x256xbf16>, vector<256x128xbf16>, vector<64x128xf32> -> vector<64x128xf32>
    %52 = arith.addf %45, %51 : vector<64x128xf32>
    %53 = vector.extract_strided_slice %2 {offsets = [2, 1, 0], sizes = [8, 8, 256], strides = [1, 1, 1]} : vector<10x10x256xf32> to vector<8x8x256xf32>
    %54 = vector.shape_cast %53 : vector<8x8x256xf32> to vector<64x256xf32>
    %55 = arith.truncf %54 : vector<64x256xf32> to vector<64x256xbf16>
    %c7 = arith.constant 7 : index
    %c0_26 = arith.constant 0 : index
    %c0_27 = arith.constant 0 : index
    %56 = vector.load %arg3[%c7, %c0_26, %c0_27] : memref<9x256x128xbf16, #tpu.memory_space<vmem>>, vector<1x256x128xbf16>
    %57 = vector.shape_cast %56 : vector<1x256x128xbf16> to vector<256x128xbf16>
    %cst_28 = arith.constant dense<0.000000e+00> : vector<64x128xf32>
    %58 = tpu.matmul %55, %57, %cst_28 {dimension_numbers = #tpu.dot_dimension_numbers<[1], [0], [0], [1], [0, 0, 1, 1], [], []>} : vector<64x256xbf16>, vector<256x128xbf16>, vector<64x128xf32> -> vector<64x128xf32>
    %59 = arith.addf %52, %58 : vector<64x128xf32>
    %60 = vector.extract_strided_slice %2 {offsets = [2, 2, 0], sizes = [8, 8, 256], strides = [1, 1, 1]} : vector<10x10x256xf32> to vector<8x8x256xf32>
    %61 = vector.shape_cast %60 : vector<8x8x256xf32> to vector<64x256xf32>
    %62 = arith.truncf %61 : vector<64x256xf32> to vector<64x256xbf16>
    %c8 = arith.constant 8 : index
    %c0_29 = arith.constant 0 : index
    %c0_30 = arith.constant 0 : index
    %63 = vector.load %arg3[%c8, %c0_29, %c0_30] : memref<9x256x128xbf16, #tpu.memory_space<vmem>>, vector<1x256x128xbf16>
    %64 = vector.shape_cast %63 : vector<1x256x128xbf16> to vector<256x128xbf16>
    %cst_31 = arith.constant dense<0.000000e+00> : vector<64x128xf32>
    %65 = tpu.matmul %62, %64, %cst_31 {dimension_numbers = #tpu.dot_dimension_numbers<[1], [0], [0], [1], [0, 0, 1, 1], [], []>} : vector<64x256xbf16>, vector<256x128xbf16>, vector<64x128xf32> -> vector<64x128xf32>
    %66 = arith.addf %59, %65 : vector<64x128xf32>
    %c0_32 = arith.constant 0 : index
    %c0_33 = arith.constant 0 : index
    %67 = vector.load %arg4[%c0_32, %c0_33] : memref<1x128xf32, #tpu.memory_space<vmem>>, vector<1x128xf32>
    %68 = vector.broadcast %67 : vector<1x128xf32> to vector<64x128xf32>
    %69 = arith.addf %66, %68 : vector<64x128xf32>
    %70 = vector.shape_cast %69 : vector<64x128xf32> to vector<8x8x128xf32>
    %c0_34 = arith.constant 0 : index
    %c0_35 = arith.constant 0 : index
    %c0_36 = arith.constant 0 : index
    %c0_37 = arith.constant 0 : index
    %c0_38 = arith.constant 0 : index
    %71 = vector.load %arg5[%c0_34, %c0_35, %c0_36, %c0_37, %c0_38] : memref<1x1x8x8x128xf32, #tpu.memory_space<vmem>>, vector<1x1x8x8x128xf32>
    %72 = vector.shape_cast %71 : vector<1x1x8x8x128xf32> to vector<8x8x128xf32>
    %73 = vector.shape_cast %70 : vector<8x8x128xf32> to vector<1x1x8x8x128xf32>
    tpu.vector_store %arg5[%c0_34, %c0_35, %c0_36, %c0_37, %c0_38], %73 {strides = array<i32>} : memref<1x1x8x8x128xf32, #tpu.memory_space<vmem>>, vector<1x1x8x8x128xf32>,
    %cst_39 = arith.constant dense<0.000000e+00> : vector<128xf32>
    %74 = vector.multi_reduction <add>, %69, %cst_39 [0] : vector<64x128xf32> to vector<128xf32>
    %75 = vector.shape_cast %74 : vector<128xf32> to vector<1x128xf32>
    %76 = arith.mulf %69, %69 : vector<64x128xf32>
    %cst_40 = arith.constant dense<0.000000e+00> : vector<128xf32>
    %77 = vector.multi_reduction <add>, %76, %cst_40 [0] : vector<64x128xf32> to vector<128xf32>
    %78 = vector.shape_cast %77 : vector<128xf32> to vector<1x128xf32>
    %cst_41 = arith.constant 0.000000e+00 : f32
    %79 = vector.broadcast %cst_41 : f32 to vector<6x128xf32>
    %80 = tpu.concatenate %75, %78, %79 in 0 : vector<1x128xf32>, vector<1x128xf32>, vector<6x128xf32> -> vector<8x128xf32>
    %c0_42 = arith.constant 0 : index
    %c0_43 = arith.constant 0 : index
    %c0_44 = arith.constant 0 : index
    %c0_45 = arith.constant 0 : index
    %81 = vector.load %arg6[%c0_42, %c0_43, %c0_44, %c0_45] : memref<1x1x8x128xf32, #tpu.memory_space<vmem>>, vector<1x1x8x128xf32>
    %82 = vector.shape_cast %81 : vector<1x1x8x128xf32> to vector<8x128xf32>
    %83 = vector.shape_cast %80 : vector<8x128xf32> to vector<1x1x8x128xf32>
    tpu.vector_store %arg6[%c0_42, %c0_43, %c0_44, %c0_45], %83 {strides = array<i32>} : memref<1x1x8x128xf32, #tpu.memory_space<vmem>>, vector<1x1x8x128xf32>,
    return
  }
  func.func @transform_0(%arg0: i32, %arg1: i32) -> (i32, i32, i32, i32, i32) {
    %c0_i32 = arith.constant 0 : i32
    %c0_i32_0 = arith.constant 0 : i32
    %c0_i32_1 = arith.constant 0 : i32
    %c0_i32_2 = arith.constant 0 : i32
    return %arg0, %arg1, %c0_i32, %c0_i32_0, %c0_i32_1 : i32, i32, i32, i32, i32
  }
  func.func @transform_1(%arg0: i32, %arg1: i32) -> (i32, i32, i32) {
    %c0_i32 = arith.constant 0 : i32
    %c0_i32_0 = arith.constant 0 : i32
    %c0_i32_1 = arith.constant 0 : i32
    %c0_i32_2 = arith.constant 0 : i32
    return %c0_i32, %c0_i32_0, %c0_i32_1 : i32, i32, i32
  }
  func.func @transform_2(%arg0: i32, %arg1: i32) -> (i32, i32) {
    %c0_i32 = arith.constant 0 : i32
    %c0_i32_0 = arith.constant 0 : i32
    %c0_i32_1 = arith.constant 0 : i32
    return %c0_i32, %c0_i32_0 : i32, i32
  }
  func.func @transform_3(%arg0: i32, %arg1: i32) -> (i32, i32, i32, i32, i32) {
    %c0_i32 = arith.constant 0 : i32
    %c0_i32_0 = arith.constant 0 : i32
    %c0_i32_1 = arith.constant 0 : i32
    %c0_i32_2 = arith.constant 0 : i32
    return %arg0, %arg1, %c0_i32, %c0_i32_0, %c0_i32_1 : i32, i32, i32, i32, i32
  }
  func.func @transform_4(%arg0: i32, %arg1: i32) -> (i32, i32, i32, i32) {
    %c0_i32 = arith.constant 0 : i32
    %c0_i32_0 = arith.constant 0 : i32
    %c0_i32_1 = arith.constant 0 : i32
    return %arg0, %arg1, %c0_i32, %c0_i32_0 : i32, i32, i32, i32
  }
}

module attributes {stable_mosaic.version = 11 : i64} {
  func.func @_bilinear2x_kernel(%arg0: i32, %arg1: memref<1x8x8x128xbf16, #tpu.memory_space<vmem>>, %arg2: memref<1x8x2x8x256xbf16, #tpu.memory_space<vmem>>) attributes {dimension_semantics = [#tpu.dimension_semantics<parallel>], iteration_bounds = array<i64: 2>, scalar_prefetch = 0 : i64, scratch_operands = 0 : i64, tpu.core_type = #tpu.core_type<tc>, window_params = [{transform_indices = @transform_0, window_bounds = array<i64: 1, 8, 8, 128>}, {transform_indices = @transform_1, window_bounds = array<i64: 1, 8, 2, 8, 256>}]} {
    %c0 = arith.constant 0 : index
    %c0_0 = arith.constant 0 : index
    %c0_1 = arith.constant 0 : index
    %c0_2 = arith.constant 0 : index
    %0 = vector.load %arg1[%c0, %c0_0, %c0_1, %c0_2] : memref<1x8x8x128xbf16, #tpu.memory_space<vmem>>, vector<1x8x8x128xbf16>
    %1 = vector.shape_cast %0 : vector<1x8x8x128xbf16> to vector<8x8x128xbf16>
    %2 = arith.extf %1 : vector<8x8x128xbf16> to vector<8x8x128xf32>
    %3 = vector.extract_strided_slice %2 {offsets = [0, 0, 0], sizes = [1, 8, 128], strides = [1, 1, 1]} : vector<8x8x128xf32> to vector<1x8x128xf32>
    %4 = vector.extract_strided_slice %2 {offsets = [0, 0, 0], sizes = [7, 8, 128], strides = [1, 1, 1]} : vector<8x8x128xf32> to vector<7x8x128xf32>
    %5 = tpu.concatenate %3, %4 in 0 : vector<1x8x128xf32>, vector<7x8x128xf32> -> vector<8x8x128xf32>
    %6 = vector.extract_strided_slice %2 {offsets = [1, 0, 0], sizes = [7, 8, 128], strides = [1, 1, 1]} : vector<8x8x128xf32> to vector<7x8x128xf32>
    %7 = vector.extract_strided_slice %2 {offsets = [7, 0, 0], sizes = [1, 8, 128], strides = [1, 1, 1]} : vector<8x8x128xf32> to vector<1x8x128xf32>
    %8 = tpu.concatenate %6, %7 in 0 : vector<7x8x128xf32>, vector<1x8x128xf32> -> vector<8x8x128xf32>
    %cst = arith.constant 2.500000e-01 : f32
    %9 = vector.broadcast %cst : f32 to vector<8x8x128xf32>
    %10 = arith.mulf %9, %5 : vector<8x8x128xf32>
    %cst_3 = arith.constant 7.500000e-01 : f32
    %11 = vector.broadcast %cst_3 : f32 to vector<8x8x128xf32>
    %12 = arith.mulf %11, %2 : vector<8x8x128xf32>
    %13 = arith.addf %10, %12 : vector<8x8x128xf32>
    %cst_4 = arith.constant 7.500000e-01 : f32
    %14 = vector.broadcast %cst_4 : f32 to vector<8x8x128xf32>
    %15 = arith.mulf %14, %2 : vector<8x8x128xf32>
    %cst_5 = arith.constant 2.500000e-01 : f32
    %16 = vector.broadcast %cst_5 : f32 to vector<8x8x128xf32>
    %17 = arith.mulf %16, %8 : vector<8x8x128xf32>
    %18 = arith.addf %15, %17 : vector<8x8x128xf32>
    %19 = vector.extract_strided_slice %13 {offsets = [0, 0, 0], sizes = [8, 1, 128], strides = [1, 1, 1]} : vector<8x8x128xf32> to vector<8x1x128xf32>
    %20 = vector.extract_strided_slice %13 {offsets = [0, 0, 0], sizes = [8, 7, 128], strides = [1, 1, 1]} : vector<8x8x128xf32> to vector<8x7x128xf32>
    %21 = tpu.concatenate %19, %20 in 1 : vector<8x1x128xf32>, vector<8x7x128xf32> -> vector<8x8x128xf32>
    %22 = vector.extract_strided_slice %13 {offsets = [0, 1, 0], sizes = [8, 7, 128], strides = [1, 1, 1]} : vector<8x8x128xf32> to vector<8x7x128xf32>
    %23 = vector.extract_strided_slice %13 {offsets = [0, 7, 0], sizes = [8, 1, 128], strides = [1, 1, 1]} : vector<8x8x128xf32> to vector<8x1x128xf32>
    %24 = tpu.concatenate %22, %23 in 1 : vector<8x7x128xf32>, vector<8x1x128xf32> -> vector<8x8x128xf32>
    %cst_6 = arith.constant 2.500000e-01 : f32
    %25 = vector.broadcast %cst_6 : f32 to vector<8x8x128xf32>
    %26 = arith.mulf %25, %21 : vector<8x8x128xf32>
    %cst_7 = arith.constant 7.500000e-01 : f32
    %27 = vector.broadcast %cst_7 : f32 to vector<8x8x128xf32>
    %28 = arith.mulf %27, %13 : vector<8x8x128xf32>
    %29 = arith.addf %26, %28 : vector<8x8x128xf32>
    %cst_8 = arith.constant 7.500000e-01 : f32
    %30 = vector.broadcast %cst_8 : f32 to vector<8x8x128xf32>
    %31 = arith.mulf %30, %13 : vector<8x8x128xf32>
    %cst_9 = arith.constant 2.500000e-01 : f32
    %32 = vector.broadcast %cst_9 : f32 to vector<8x8x128xf32>
    %33 = arith.mulf %32, %24 : vector<8x8x128xf32>
    %34 = arith.addf %31, %33 : vector<8x8x128xf32>
    %35 = tpu.concatenate %29, %34 in 2 : vector<8x8x128xf32>, vector<8x8x128xf32> -> vector<8x8x256xf32>
    %36 = arith.truncf %35 : vector<8x8x256xf32> to vector<8x8x256xbf16>
    %c0_10 = arith.constant 0 : index
    %c0_11 = arith.constant 0 : index
    %c0_12 = arith.constant 0 : index
    %c0_13 = arith.constant 0 : index
    %c0_14 = arith.constant 0 : index
    %37 = vector.load %arg2[%c0_10, %c0_11, %c0_12, %c0_13, %c0_14] : memref<1x8x2x8x256xbf16, #tpu.memory_space<vmem>>, vector<1x8x1x8x256xbf16>
    %38 = vector.shape_cast %37 : vector<1x8x1x8x256xbf16> to vector<8x8x256xbf16>
    %39 = vector.shape_cast %36 : vector<8x8x256xbf16> to vector<1x8x1x8x256xbf16>
    tpu.vector_store %arg2[%c0_10, %c0_11, %c0_12, %c0_13, %c0_14], %39 {strides = array<i32>} : memref<1x8x2x8x256xbf16, #tpu.memory_space<vmem>>, vector<1x8x1x8x256xbf16>,
    %40 = vector.extract_strided_slice %18 {offsets = [0, 0, 0], sizes = [8, 1, 128], strides = [1, 1, 1]} : vector<8x8x128xf32> to vector<8x1x128xf32>
    %41 = vector.extract_strided_slice %18 {offsets = [0, 0, 0], sizes = [8, 7, 128], strides = [1, 1, 1]} : vector<8x8x128xf32> to vector<8x7x128xf32>
    %42 = tpu.concatenate %40, %41 in 1 : vector<8x1x128xf32>, vector<8x7x128xf32> -> vector<8x8x128xf32>
    %43 = vector.extract_strided_slice %18 {offsets = [0, 1, 0], sizes = [8, 7, 128], strides = [1, 1, 1]} : vector<8x8x128xf32> to vector<8x7x128xf32>
    %44 = vector.extract_strided_slice %18 {offsets = [0, 7, 0], sizes = [8, 1, 128], strides = [1, 1, 1]} : vector<8x8x128xf32> to vector<8x1x128xf32>
    %45 = tpu.concatenate %43, %44 in 1 : vector<8x7x128xf32>, vector<8x1x128xf32> -> vector<8x8x128xf32>
    %cst_15 = arith.constant 2.500000e-01 : f32
    %46 = vector.broadcast %cst_15 : f32 to vector<8x8x128xf32>
    %47 = arith.mulf %46, %42 : vector<8x8x128xf32>
    %cst_16 = arith.constant 7.500000e-01 : f32
    %48 = vector.broadcast %cst_16 : f32 to vector<8x8x128xf32>
    %49 = arith.mulf %48, %18 : vector<8x8x128xf32>
    %50 = arith.addf %47, %49 : vector<8x8x128xf32>
    %cst_17 = arith.constant 7.500000e-01 : f32
    %51 = vector.broadcast %cst_17 : f32 to vector<8x8x128xf32>
    %52 = arith.mulf %51, %18 : vector<8x8x128xf32>
    %cst_18 = arith.constant 2.500000e-01 : f32
    %53 = vector.broadcast %cst_18 : f32 to vector<8x8x128xf32>
    %54 = arith.mulf %53, %45 : vector<8x8x128xf32>
    %55 = arith.addf %52, %54 : vector<8x8x128xf32>
    %56 = tpu.concatenate %50, %55 in 2 : vector<8x8x128xf32>, vector<8x8x128xf32> -> vector<8x8x256xf32>
    %57 = arith.truncf %56 : vector<8x8x256xf32> to vector<8x8x256xbf16>
    %c0_19 = arith.constant 0 : index
    %c0_20 = arith.constant 0 : index
    %c1 = arith.constant 1 : index
    %c0_21 = arith.constant 0 : index
    %c0_22 = arith.constant 0 : index
    %58 = vector.load %arg2[%c0_19, %c0_20, %c1, %c0_21, %c0_22] : memref<1x8x2x8x256xbf16, #tpu.memory_space<vmem>>, vector<1x8x1x8x256xbf16>
    %59 = vector.shape_cast %58 : vector<1x8x1x8x256xbf16> to vector<8x8x256xbf16>
    %60 = vector.shape_cast %57 : vector<8x8x256xbf16> to vector<1x8x1x8x256xbf16>
    tpu.vector_store %arg2[%c0_19, %c0_20, %c1, %c0_21, %c0_22], %60 {strides = array<i32>} : memref<1x8x2x8x256xbf16, #tpu.memory_space<vmem>>, vector<1x8x1x8x256xbf16>,
    return
  }
  func.func @transform_0(%arg0: i32) -> (i32, i32, i32, i32) {
    %c0_i32 = arith.constant 0 : i32
    %c0_i32_0 = arith.constant 0 : i32
    %c0_i32_1 = arith.constant 0 : i32
    %c0_i32_2 = arith.constant 0 : i32
    return %arg0, %c0_i32, %c0_i32_0, %c0_i32_1 : i32, i32, i32, i32
  }
  func.func @transform_1(%arg0: i32) -> (i32, i32, i32, i32, i32) {
    %c0_i32 = arith.constant 0 : i32
    %c0_i32_0 = arith.constant 0 : i32
    %c0_i32_1 = arith.constant 0 : i32
    %c0_i32_2 = arith.constant 0 : i32
    %c0_i32_3 = arith.constant 0 : i32
    return %arg0, %c0_i32, %c0_i32_0, %c0_i32_1, %c0_i32_2 : i32, i32, i32, i32, i32
  }
}

module attributes {stable_mosaic.version = 11 : i64} {
  func.func @_matmul_bias_kernel(%arg0: i32, %arg1: memref<512x128xbf16, #tpu.memory_space<vmem>>, %arg2: memref<128x128xbf16, #tpu.memory_space<vmem>>, %arg3: memref<1x128xf32, #tpu.memory_space<vmem>>, %arg4: memref<512x128xf32, #tpu.memory_space<vmem>>) attributes {dimension_semantics = [#tpu.dimension_semantics<parallel>], iteration_bounds = array<i64: 1>, scalar_prefetch = 0 : i64, scratch_operands = 0 : i64, tpu.core_type = #tpu.core_type<tc>, window_params = [{transform_indices = @transform_0, window_bounds = array<i64: 512, 128>}, {pipeline_mode = #tpu.pipeline_mode<synchronous>, transform_indices = @transform_1, window_bounds = array<i64: 128, 128>}, {pipeline_mode = #tpu.pipeline_mode<synchronous>, transform_indices = @transform_2, window_bounds = array<i64: 1, 128>}, {transform_indices = @transform_3, window_bounds = array<i64: 512, 128>}]} {
    %c0 = arith.constant 0 : index
    %c0_0 = arith.constant 0 : index
    %0 = vector.load %arg1[%c0, %c0_0] : memref<512x128xbf16, #tpu.memory_space<vmem>>, vector<512x128xbf16>
    %c0_1 = arith.constant 0 : index
    %c0_2 = arith.constant 0 : index
    %1 = vector.load %arg2[%c0_1, %c0_2] : memref<128x128xbf16, #tpu.memory_space<vmem>>, vector<128x128xbf16>
    %cst = arith.constant dense<0.000000e+00> : vector<512x128xf32>
    %2 = tpu.matmul %0, %1, %cst {dimension_numbers = #tpu.dot_dimension_numbers<[1], [0], [0], [1], [0, 0, 1, 1], [], []>} : vector<512x128xbf16>, vector<128x128xbf16>, vector<512x128xf32> -> vector<512x128xf32>
    %c0_3 = arith.constant 0 : index
    %c0_4 = arith.constant 0 : index
    %3 = vector.load %arg3[%c0_3, %c0_4] : memref<1x128xf32, #tpu.memory_space<vmem>>, vector<1x128xf32>
    %4 = vector.broadcast %3 : vector<1x128xf32> to vector<512x128xf32>
    %5 = arith.addf %2, %4 : vector<512x128xf32>
    %c0_5 = arith.constant 0 : index
    %c0_6 = arith.constant 0 : index
    %6 = vector.load %arg4[%c0_5, %c0_6] : memref<512x128xf32, #tpu.memory_space<vmem>>, vector<512x128xf32>
    tpu.vector_store %arg4[%c0_5, %c0_6], %5 {strides = array<i32>} : memref<512x128xf32, #tpu.memory_space<vmem>>, vector<512x128xf32>,
    return
  }
  func.func @transform_0(%arg0: i32) -> (i32, i32) {
    %c0_i32 = arith.constant 0 : i32
    %c0_i32_0 = arith.constant 0 : i32
    return %arg0, %c0_i32 : i32, i32
  }
  func.func @transform_1(%arg0: i32) -> (i32, i32) {
    %c0_i32 = arith.constant 0 : i32
    %c0_i32_0 = arith.constant 0 : i32
    %c0_i32_1 = arith.constant 0 : i32
    return %c0_i32, %c0_i32_0 : i32, i32
  }
  func.func @transform_2(%arg0: i32) -> (i32, i32) {
    %c0_i32 = arith.constant 0 : i32
    %c0_i32_0 = arith.constant 0 : i32
    %c0_i32_1 = arith.constant 0 : i32
    return %c0_i32, %c0_i32_0 : i32, i32
  }
  func.func @transform_3(%arg0: i32) -> (i32, i32) {
    %c0_i32 = arith.constant 0 : i32
    %c0_i32_0 = arith.constant 0 : i32
    return %arg0, %c0_i32 : i32, i32
  }
}

</mosaic_0001>

<bundles_post_ra>
// kernel: unet_forward.20
= control target key start
LH: loop header
LB: loop body
LE: loop exit
PB: predicated region body
PF: predicated region fallthrough
CT: control target
= control target key end

     0   :  { %s1503_s0 = inlined_call_operand.vmem [shape: f32[512,128], index: 0, kind: input, shape index: {}]   ;;  %s1504_s1 = inlined_call_operand.vmem [shape: f32[1,128], index: 1, kind: input, shape index: {}]   ;;  %s1505_s2 = inlined_call_operand.vmem [shape: f32[1,128], index: 2, kind: input, shape index: {}]   ;;  %s1506_s3 = inlined_call_operand.vmem [shape: bf16[512,128], index: 3, kind: output, shape index: {}]  }
   0x1   :  { %v14_v0 = vld [vmem:[%s1503_s0] sm:$0xff]  ;;  %v15_v1 = vld [vmem:[%s1503_s0 + $0x8] sm:$0xff]  ;;  %v16_v6 = vld [vmem:[%s1503_s0 + $0x10] sm:$0xff] }
   0x2   :  { %v1086_v2 = vld [vmem:[%s1504_s1] ss:$0 sm:$0xff]  ;;  %v17_v7 = vld [vmem:[%s1503_s0 + $0x18] sm:$0xff]  ;;  %v19_v11 = vld [vmem:[%s1503_s0 + $0x28] sm:$0xff] }
   0x3   :  { %v85_v3 = vmul.f32 %v1086_v2, %v14_v0  ;;  %v86_v4 = vmul.f32 %v1086_v2, %v15_v1  ;;  %v1093_v5 = vld [vmem:[%s1505_s2] ss:$0 sm:$0xff]  ;;  %v87_v8 = vmul.f32 %v1086_v2, %v16_v6  ;;  %v88_v9 = vmul.f32 %v1086_v2, %v17_v7  ;;  %v20_v12 = vld [vmem:[%s1503_s0 + $0x30] sm:$0xff]  ;;  %v21_v17 = vld [vmem:[%s1503_s0 + $0x38] sm:$0xff] }
   0x4   :  { %v18_v10 = vld [vmem:[%s1503_s0 + $0x20] sm:$0xff]  ;;  %v90_v16 = vmul.f32 %v1086_v2, %v19_v11  ;;  %v91_v20 = vmul.f32 %v1086_v2, %v20_v12  ;;  %v92_v21 = vmul.f32 %v1086_v2, %v21_v17  ;;  %v23_v35 = vld [vmem:[%s1503_s0 + $0x48] sm:$0xff]  ;;  %v24_v36 = vld [vmem:[%s1503_s0 + $0x50] sm:$0xff] }
   0x5   :  { %v156_v13 = vadd.f32 %v1093_v5, %v85_v3  ;;  %v157_v14 = vadd.f32 %v1093_v5, %v86_v4  ;;  %v89_v15 = vmul.f32 %v1086_v2, %v18_v10  ;;  %v158_v18 = vadd.f32 %v1093_v5, %v87_v8  ;;  %v22_v34 = vld [vmem:[%s1503_s0 + $0x40] sm:$0xff]  ;;  %v25_v42 = vld [vmem:[%s1503_s0 + $0x58] sm:$0xff]  ;;  %v27_v48 = vld [vmem:[%s1503_s0 + $0x68] sm:$0xff] }
   0x6   :  { %v159_v19 = vadd.f32 %v1093_v5, %v88_v9  ;;  %v161_v29 = vadd.f32 %v1093_v5, %v90_v16  ;;  %v162_v33 = vadd.f32 %v1093_v5, %v91_v20  ;;  %v163_v40 = vadd.f32 %v1093_v5, %v92_v21  ;;  %v26_v47 = vld [vmem:[%s1503_s0 + $0x60] sm:$0xff]  ;;  %v28_v60 = vld [vmem:[%s1503_s0 + $0x70] sm:$0xff]  ;;  %v29_v7 = vld [vmem:[%s1503_s0 + $0x78] sm:$0xff] }
   0x7   :  { %vm220_vm0 = vcmp.ge.f32.partialorder %v156_v13, 0.0  ;;  %vm221_vm1 = vcmp.ge.f32.partialorder %v157_v14, 0.0  ;;  %v284_v22 = vmul.f32 0.01, %v156_v13  ;;  %v285_v23 = vmul.f32 0.01, %v157_v14 }
   0x8   :  { %vm222_vm2 = vcmp.ge.f32.partialorder %v158_v18, 0.0  ;;  %vm223_vm3 = vcmp.ge.f32.partialorder %v159_v19, 0.0  ;;  %v286_v24 = vmul.f32 0.01, %v158_v18  ;;  %v287_v25 = vmul.f32 0.01, %v159_v19 }
   0x9   :  { %v348_v26 = vsel %vm220_vm0, %v156_v13, %v284_v22  ;;  %v349_v27 = vsel %vm221_vm1, %v157_v14, %v285_v23  ;;  %v160_v28 = vadd.f32 %v1093_v5, %v89_v15  ;;  %vm225_vm5 = vcmp.ge.f32.partialorder %v161_v29, 0.0  ;;  %v30_v12 = vld [vmem:[%s1503_s0 + $0x80] sm:$0xff]  ;;  %v31_v13 = vld [vmem:[%s1503_s0 + $0x88] sm:$0xff]  ;;  %v32_v20 = vld [vmem:[%s1503_s0 + $0x90] sm:$0xff] }
   0xa   :  { %v869_v30 = vpack.c.bf16 %v349_v27, %v348_v26  ;;  %v350_v31 = vsel %vm222_vm2, %v158_v18, %v286_v24  ;;  %v351_v32 = vsel %vm223_vm3, %v159_v19, %v287_v25  ;;  %v289_v39 = vmul.f32 0.01, %v161_v29  ;;  %v33_v25 = vld [vmem:[%s1503_s0 + $0x98] sm:$0xff] }
   0xb   :  { %v874_v37 = vpack.c.bf16 %v351_v32, %v350_v31  ;;  %vm224_vm4 = vcmp.ge.f32.partialorder %v160_v28, 0.0  ;;  %v288_v38 = vmul.f32 0.01, %v160_v28  ;;  %vm226_vm6 = vcmp.ge.f32.partialorder %v162_v33, 0.0 }
   0xc   :  { %870 = vst [vmem:[%s1506_s3] sm:$0xff] %v869_v30   ;;  %v290_v41 = vmul.f32 0.01, %v162_v33  ;;  %v93_v44 = vmul.f32 %v1086_v2, %v22_v34  ;;  %v94_v45 = vmul.f32 %v1086_v2, %v23_v35  ;;  %v95_v46 = vmul.f32 %v1086_v2, %v24_v36 }
   0xd   :  { %1026 = vst [vmem:[%s1506_s3 + $0x8] sm:$0xff] %v874_v37   ;;  %v352_v43 = vsel %vm224_vm4, %v160_v28, %v288_v38  ;;  %v353_v49 = vsel %vm225_vm5, %v161_v29, %v289_v39  ;;  %vm227_vm7 = vcmp.ge.f32.partialorder %v163_v40, 0.0  ;;  %v291_v50 = vmul.f32 0.01, %v163_v40  ;;  %v35_v37 = vld [vmem:[%s1503_s0 + $0xa8] sm:$0xff] }
   0xe   :  { %v354_v51 = vsel %vm226_vm6, %v162_v33, %v290_v41  ;;  %v879_v52 = vpack.c.bf16 %v353_v49, %v352_v43  ;;  %v164_v53 = vadd.f32 %v1093_v5, %v93_v44  ;;  %v165_v54 = vadd.f32 %v1093_v5, %v94_v45  ;;  %v34_v33 = vld [vmem:[%s1503_s0 + $0xa0] sm:$0xff]  ;;  %v36_v44 = vld [vmem:[%s1503_s0 + $0xb0] sm:$0xff]  ;;  %v37_v49 = vld [vmem:[%s1503_s0 + $0xb8] sm:$0xff] }
   0xf   :  { %v96_v55 = vmul.f32 %v1086_v2, %v25_v42  ;;  %v355_v56 = vsel %vm227_vm7, %v163_v40, %v291_v50  ;;  %v166_v57 = vadd.f32 %v1093_v5, %v95_v46  ;;  %v97_v58 = vmul.f32 %v1086_v2, %v26_v47  ;;  %v38_v50 = vld [vmem:[%s1503_s0 + $0xc0] sm:$0xff] }
  0x10   :  { %v98_v59 = vmul.f32 %v1086_v2, %v27_v48  ;;  %1027 = vst [vmem:[%s1506_s3 + $0x10] sm:$0xff] %v879_v52   ;;  %v884_v61 = vpack.c.bf16 %v355_v56, %v354_v51  ;;  %vm228_vm8 = vcmp.ge.f32.partialorder %v164_v53, 0.0  ;;  %vm229_vm9 = vcmp.ge.f32.partialorder %v165_v54, 0.0  ;;  %v39_v51 = vld [vmem:[%s1503_s0 + $0xc8] sm:$0xff] }
  0x11   :  { %v292_v62 = vmul.f32 0.01, %v164_v53  ;;  %v293_v63 = vmul.f32 0.01, %v165_v54  ;;  %v167_v0 = vadd.f32 %v1093_v5, %v96_v55  ;;  %vm230_vm10 = vcmp.ge.f32.partialorder %v166_v57, 0.0 }
  0x12   :  { %v294_v1 = vmul.f32 0.01, %v166_v57  ;;  %1028 = vst [vmem:[%s1506_s3 + $0x18] sm:$0xff] %v884_v61   ;;  %v168_v4 = vadd.f32 %v1093_v5, %v97_v58  ;;  %v169_v6 = vadd.f32 %v1093_v5, %v98_v59  ;;  %v99_v8 = vmul.f32 %v1086_v2, %v28_v60 }
  0x13   :  { %v356_v3 = vsel %vm228_vm8, %v164_v53, %v292_v62  ;;  %v357_v9 = vsel %vm229_vm9, %v165_v54, %v293_v63  ;;  %vm231_vm11 = vcmp.ge.f32.partialorder %v167_v0, 0.0  ;;  %v295_v10 = vmul.f32 0.01, %v167_v0  ;;  %v40_v62 = vld [vmem:[%s1503_s0 + $0xd0] sm:$0xff] }
  0x14   :  { %v358_v11 = vsel %vm230_vm10, %v166_v57, %v294_v1  ;;  %v889_v14 = vpack.c.bf16 %v357_v9, %v356_v3  ;;  %vm232_vm12 = vcmp.ge.f32.partialorder %v168_v4, 0.0  ;;  %vm233_vm13 = vcmp.ge.f32.partialorder %v169_v6, 0.0 }
  0x15   :  { %v296_v15 = vmul.f32 0.01, %v168_v4  ;;  %v359_v16 = vsel %vm231_vm11, %v167_v0, %v295_v10  ;;  %v297_v17 = vmul.f32 0.01, %v169_v6  ;;  %v100_v18 = vmul.f32 %v1086_v2, %v29_v7  ;;  %v41_v10 = vld [vmem:[%s1503_s0 + $0xd8] sm:$0xff] }
  0x16   :  { %v170_v19 = vadd.f32 %v1093_v5, %v99_v8  ;;  %1029 = vst [vmem:[%s1506_s3 + $0x20] sm:$0xff] %v889_v14   ;;  %v894_v21 = vpack.c.bf16 %v359_v16, %v358_v11  ;;  %v101_v23 = vmul.f32 %v1086_v2, %v30_v12  ;;  %v102_v24 = vmul.f32 %v1086_v2, %v31_v13  ;;  %v42_v14 = vld [vmem:[%s1503_s0 + $0xe0] sm:$0xff] }
  0x17   :  { %v360_v22 = vsel %vm232_vm12, %v168_v4, %v296_v15  ;;  %v361_v26 = vsel %vm233_vm13, %v169_v6, %v297_v17  ;;  %v171_v27 = vadd.f32 %v1093_v5, %v100_v18  ;;  %v103_v32 = vmul.f32 %v1086_v2, %v32_v20  ;;  %v43_v15 = vld [vmem:[%s1503_s0 + $0xe8] sm:$0xff] }
  0x18   :  { %vm234_vm14 = vcmp.ge.f32.partialorder %v170_v19, 0.0  ;;  %v298_v28 = vmul.f32 0.01, %v170_v19  ;;  %1030 = vst [vmem:[%s1506_s3 + $0x28] sm:$0xff] %v894_v21   ;;  %v899_v29 = vpack.c.bf16 %v361_v26, %v360_v22  ;;  %v172_v30 = vadd.f32 %v1093_v5, %v101_v23  ;;  %v44_v26 = vld [vmem:[%s1503_s0 + $0xf0] sm:$0xff] }
  0x19   :  { %v173_v31 = vadd.f32 %v1093_v5, %v102_v24  ;;  %vm235_vm15 = vcmp.ge.f32.partialorder %v171_v27, 0.0  ;;  %v299_v34 = vmul.f32 0.01, %v171_v27  ;;  %v104_v36 = vmul.f32 %v1086_v2, %v33_v25 }
  0x1a   :  { %v362_v35 = vsel %vm234_vm14, %v170_v19, %v298_v28  ;;  %1031 = vst [vmem:[%s1506_s3 + $0x30] sm:$0xff] %v899_v29   ;;  %vm236_vm0 = vcmp.ge.f32.partialorder %v172_v30, 0.0  ;;  %v300_v38 = vmul.f32 0.01, %v172_v30  ;;  %v174_v41 = vadd.f32 %v1093_v5, %v103_v32 }
  0x1b   :  { %vm237_vm1 = vcmp.ge.f32.partialorder %v173_v31, 0.0  ;;  %v301_v39 = vmul.f32 0.01, %v173_v31  ;;  %v363_v40 = vsel %vm235_vm15, %v171_v27, %v299_v34  ;;  %v175_v42 = vadd.f32 %v1093_v5, %v104_v36 }
  0x1c   :  { %v105_v43 = vmul.f32 %v1086_v2, %v34_v33  ;;  %v904_v45 = vpack.c.bf16 %v363_v40, %v362_v35  ;;  %v364_v46 = vsel %vm236_vm0, %v172_v30, %v300_v38  ;;  %v106_v48 = vmul.f32 %v1086_v2, %v35_v37  ;;  %v46_v38 = vld [vmem:[%s1503_s0 + $0x100] sm:$0xff] }
  0x1d   :  { %v365_v47 = vsel %vm237_vm1, %v173_v31, %v301_v39  ;;  %vm238_vm2 = vcmp.ge.f32.partialorder %v174_v41, 0.0  ;;  %vm239_vm3 = vcmp.ge.f32.partialorder %v175_v42, 0.0  ;;  %v302_v53 = vmul.f32 0.01, %v174_v41  ;;  %v45_v31 = vld [vmem:[%s1503_s0 + $0xf8] sm:$0xff] }
  0x1e   :  { %v909_v52 = vpack.c.bf16 %v365_v47, %v364_v46  ;;  %1032 = vst [vmem:[%s1506_s3 + $0x38] sm:$0xff] %v904_v45   ;;  %v303_v54 = vmul.f32 0.01, %v175_v42  ;;  %v176_v55 = vadd.f32 %v1093_v5, %v105_v43  ;;  %v177_v56 = vadd.f32 %v1093_v5, %v106_v48 }
  0x1f   :  { %v107_v57 = vmul.f32 %v1086_v2, %v36_v44  ;;  %v366_v58 = vsel %vm238_vm2, %v174_v41, %v302_v53  ;;  %v108_v59 = vmul.f32 %v1086_v2, %v37_v49  ;;  %v109_v60 = vmul.f32 %v1086_v2, %v38_v50  ;;  %v48_v50 = vld [vmem:[%s1503_s0 + $0x110] sm:$0xff] }
  0x20   :  { %1033 = vst [vmem:[%s1506_s3 + $0x40] sm:$0xff] %v909_v52   ;;  %v110_v61 = vmul.f32 %v1086_v2, %v39_v51  ;;  %v367_v63 = vsel %vm239_vm3, %v175_v42, %v303_v54  ;;  %vm240_vm4 = vcmp.ge.f32.partialorder %v176_v55, 0.0  ;;  %vm241_vm5 = vcmp.ge.f32.partialorder %v177_v56, 0.0  ;;  %v47_v42 = vld [vmem:[%s1503_s0 + $0x108] sm:$0xff]  ;;  %v49_v51 = vld [vmem:[%s1503_s0 + $0x118] sm:$0xff] }
  0x21   :  { %v304_v0 = vmul.f32 0.01, %v176_v55  ;;  %v914_v1 = vpack.c.bf16 %v367_v63, %v366_v58  ;;  %v305_v3 = vmul.f32 0.01, %v177_v56  ;;  %v178_v4 = vadd.f32 %v1093_v5, %v107_v57  ;;  %v51_v63 = vld [vmem:[%s1503_s0 + $0x128] sm:$0xff] }
  0x22   :  { %v179_v6 = vadd.f32 %v1093_v5, %v108_v59  ;;  %v180_v8 = vadd.f32 %v1093_v5, %v109_v60  ;;  %v181_v9 = vadd.f32 %v1093_v5, %v110_v61  ;;  %v111_v11 = vmul.f32 %v1086_v2, %v40_v62 }
  0x23   :  { %v368_v7 = vsel %vm240_vm4, %v176_v55, %v304_v0  ;;  %1034 = vst [vmem:[%s1506_s3 + $0x48] sm:$0xff] %v914_v1   ;;  %v369_v12 = vsel %vm241_vm5, %v177_v56, %v305_v3  ;;  %vm242_vm6 = vcmp.ge.f32.partialorder %v178_v4, 0.0  ;;  %v306_v13 = vmul.f32 0.01, %v178_v4  ;;  %v50_v55 = vld [vmem:[%s1503_s0 + $0x120] sm:$0xff] }
  0x24   :  { %vm243_vm7 = vcmp.ge.f32.partialorder %v179_v6, 0.0  ;;  %v919_v16 = vpack.c.bf16 %v369_v12, %v368_v7  ;;  %v307_v17 = vmul.f32 0.01, %v179_v6  ;;  %vm244_vm8 = vcmp.ge.f32.partialorder %v180_v8, 0.0 }
  0x25   :  { %vm245_vm9 = vcmp.ge.f32.partialorder %v181_v9, 0.0  ;;  %v370_v18 = vsel %vm242_vm6, %v178_v4, %v306_v13  ;;  %v308_v19 = vmul.f32 0.01, %v180_v8  ;;  %v309_v20 = vmul.f32 0.01, %v181_v9  ;;  %v52_v4 = vld [vmem:[%s1503_s0 + $0x130] sm:$0xff] }
  0x26   :  { %v112_v21 = vmul.f32 %v1086_v2, %v41_v10  ;;  %1035 = vst [vmem:[%s1506_s3 + $0x50] sm:$0xff] %v919_v16   ;;  %v371_v22 = vsel %vm243_vm7, %v179_v6, %v307_v17  ;;  %v182_v23 = vadd.f32 %v1093_v5, %v111_v11  ;;  %v113_v24 = vmul.f32 %v1086_v2, %v42_v14  ;;  %v53_v13 = vld [vmem:[%s1503_s0 + $0x138] sm:$0xff] }
  0x27   :  { %v114_v25 = vmul.f32 %v1086_v2, %v43_v15  ;;  %v924_v27 = vpack.c.bf16 %v371_v22, %v370_v18  ;;  %v372_v28 = vsel %vm244_vm8, %v180_v8, %v308_v19  ;;  %v373_v29 = vsel %vm245_vm9, %v181_v9, %v309_v20  ;;  %v54_v20 = vld [vmem:[%s1503_s0 + $0x140] sm:$0xff] }
  0x28   :  { %v183_v30 = vadd.f32 %v1093_v5, %v112_v21  ;;  %v929_v32 = vpack.c.bf16 %v373_v29, %v372_v28  ;;  %vm246_vm10 = vcmp.ge.f32.partialorder %v182_v23, 0.0  ;;  %v310_v33 = vmul.f32 0.01, %v182_v23 }
  0x29   :  { %v184_v34 = vadd.f32 %v1093_v5, %v113_v24  ;;  %1036 = vst [vmem:[%s1506_s3 + $0x58] sm:$0xff] %v924_v27   ;;  %v185_v36 = vadd.f32 %v1093_v5, %v114_v25  ;;  %v115_v37 = vmul.f32 %v1086_v2, %v44_v26  ;;  %v116_v41 = vmul.f32 %v1086_v2, %v45_v31  ;;  %v55_v24 = vld [vmem:[%s1503_s0 + $0x148] sm:$0xff] }
  0x2a   :  { %vm247_vm11 = vcmp.ge.f32.partialorder %v183_v30, 0.0  ;;  %v311_v35 = vmul.f32 0.01, %v183_v30  ;;  %1037 = vst [vmem:[%s1506_s3 + $0x60] sm:$0xff] %v929_v32   ;;  %v374_v39 = vsel %vm246_vm10, %v182_v23, %v310_v33  ;;  %v117_v49 = vmul.f32 %v1086_v2, %v46_v38  ;;  %v56_v32 = vld [vmem:[%s1503_s0 + $0x150] sm:$0xff]  ;;  %v57_v33 = vld [vmem:[%s1503_s0 + $0x158] sm:$0xff] }
  0x2b   :  { %vm248_vm12 = vcmp.ge.f32.partialorder %v184_v34, 0.0  ;;  %v312_v40 = vmul.f32 0.01, %v184_v34  ;;  %vm249_vm13 = vcmp.ge.f32.partialorder %v185_v36, 0.0  ;;  %v313_v44 = vmul.f32 0.01, %v185_v36 }
  0x2c   :  { %v375_v43 = vsel %vm247_vm11, %v183_v30, %v311_v35  ;;  %v186_v45 = vadd.f32 %v1093_v5, %v115_v37  ;;  %v187_v48 = vadd.f32 %v1093_v5, %v116_v41  ;;  %v118_v54 = vmul.f32 %v1086_v2, %v47_v42  ;;  %v58_v37 = vld [vmem:[%s1503_s0 + $0x160] sm:$0xff] }
  0x2d   :  { %v934_v46 = vpack.c.bf16 %v375_v43, %v374_v39  ;;  %v376_v47 = vsel %vm248_vm12, %v184_v34, %v312_v40  ;;  %v377_v52 = vsel %vm249_vm13, %v185_v36, %v313_v44  ;;  %v188_v58 = vadd.f32 %v1093_v5, %v117_v49  ;;  %v60_v49 = vld [vmem:[%s1503_s0 + $0x170] sm:$0xff] }
  0x2e   :  { %vm250_vm14 = vcmp.ge.f32.partialorder %v186_v45, 0.0  ;;  %v314_v53 = vmul.f32 0.01, %v186_v45  ;;  %v939_v56 = vpack.c.bf16 %v377_v52, %v376_v47  ;;  %vm251_vm15 = vcmp.ge.f32.partialorder %v187_v48, 0.0 }
  0x2f   :  { %1038 = vst [vmem:[%s1506_s3 + $0x68] sm:$0xff] %v934_v46   ;;  %v315_v57 = vmul.f32 0.01, %v187_v48  ;;  %v189_v60 = vadd.f32 %v1093_v5, %v118_v54  ;;  %v119_v61 = vmul.f32 %v1086_v2, %v48_v50  ;;  %v120_v62 = vmul.f32 %v1086_v2, %v49_v51 }
  0x30   :  { %v378_v59 = vsel %vm250_vm14, %v186_v45, %v314_v53  ;;  %1039 = vst [vmem:[%s1506_s3 + $0x70] sm:$0xff] %v939_v56   ;;  %vm252_vm0 = vcmp.ge.f32.partialorder %v188_v58, 0.0  ;;  %v316_v1 = vmul.f32 0.01, %v188_v58  ;;  %v121_v3 = vmul.f32 %v1086_v2, %v50_v55  ;;  %v59_v45 = vld [vmem:[%s1503_s0 + $0x168] sm:$0xff] }
  0x31   :  { %v379_v0 = vsel %vm251_vm15, %v187_v48, %v315_v57  ;;  %vm253_vm1 = vcmp.ge.f32.partialorder %v189_v60, 0.0  ;;  %v317_v7 = vmul.f32 0.01, %v189_v60  ;;  %v190_v8 = vadd.f32 %v1093_v5, %v119_v61  ;;  %v61_v57 = vld [vmem:[%s1503_s0 + $0x178] sm:$0xff] }
  0x32   :  { %v944_v6 = vpack.c.bf16 %v379_v0, %v378_v59  ;;  %v380_v9 = vsel %vm252_vm0, %v188_v58, %v316_v1  ;;  %v191_v10 = vadd.f32 %v1093_v5, %v120_v62  ;;  %v122_v11 = vmul.f32 %v1086_v2, %v51_v63  ;;  %v62_v0 = vld [vmem:[%s1503_s0 + $0x180] sm:$0xff] }
  0x33   :  { %v192_v12 = vadd.f32 %v1093_v5, %v121_v3  ;;  %v381_v14 = vsel %vm253_vm1, %v189_v60, %v317_v7  ;;  %vm254_vm2 = vcmp.ge.f32.partialorder %v190_v8, 0.0  ;;  %v318_v15 = vmul.f32 0.01, %v190_v8 }
  0x34   :  { %1040 = vst [vmem:[%s1506_s3 + $0x78] sm:$0xff] %v944_v6   ;;  %v123_v16 = vmul.f32 %v1086_v2, %v52_v4  ;;  %v949_v17 = vpack.c.bf16 %v381_v14, %v380_v9  ;;  %vm255_vm3 = vcmp.ge.f32.partialorder %v191_v10, 0.0  ;;  %v319_v18 = vmul.f32 0.01, %v191_v10  ;;  %v63_v6 = vld [vmem:[%s1503_s0 + $0x188] sm:$0xff]  ;;  %v64_v14 = vld [vmem:[%s1503_s0 + $0x190] sm:$0xff] }
  0x35   :  { %v193_v19 = vadd.f32 %v1093_v5, %v122_v11  ;;  %v382_v21 = vsel %vm254_vm2, %v190_v8, %v318_v15  ;;  %vm256_vm4 = vcmp.ge.f32.partialorder %v192_v12, 0.0  ;;  %v320_v22 = vmul.f32 0.01, %v192_v12  ;;  %v65_v15 = vld [vmem:[%s1503_s0 + $0x198] sm:$0xff] }
  0x36   :  { %v124_v23 = vmul.f32 %v1086_v2, %v53_v13  ;;  %1041 = vst [vmem:[%s1506_s3 + $0x80] sm:$0xff] %v949_v17   ;;  %v383_v25 = vsel %vm255_vm3, %v191_v10, %v319_v18  ;;  %v194_v27 = vadd.f32 %v1093_v5, %v123_v16  ;;  %v125_v31 = vmul.f32 %v1086_v2, %v54_v20 }
  0x37   :  { %vm257_vm5 = vcmp.ge.f32.partialorder %v193_v19, 0.0  ;;  %v321_v26 = vmul.f32 0.01, %v193_v19  ;;  %v954_v28 = vpack.c.bf16 %v383_v25, %v382_v21  ;;  %v384_v29 = vsel %vm256_vm4, %v192_v12, %v320_v22 }
  0x38   :  { %v195_v30 = vadd.f32 %v1093_v5, %v124_v23  ;;  %vm258_vm6 = vcmp.ge.f32.partialorder %v194_v27, 0.0  ;;  %v322_v35 = vmul.f32 0.01, %v194_v27  ;;  %v126_v36 = vmul.f32 %v1086_v2, %v55_v24 }
  0x39   :  { %v385_v34 = vsel %vm257_vm5, %v193_v19, %v321_v26  ;;  %1042 = vst [vmem:[%s1506_s3 + $0x88] sm:$0xff] %v954_v28   ;;  %v196_v40 = vadd.f32 %v1093_v5, %v125_v31  ;;  %v127_v43 = vmul.f32 %v1086_v2, %v56_v32  ;;  %v128_v44 = vmul.f32 %v1086_v2, %v57_v33  ;;  %v66_v19 = vld [vmem:[%s1503_s0 + $0x1a0] sm:$0xff]  ;;  %v68_v31 = vld [vmem:[%s1503_s0 + $0x1b0] sm:$0xff] }
  0x3a   :  { %v959_v38 = vpack.c.bf16 %v385_v34, %v384_v29  ;;  %vm259_vm7 = vcmp.ge.f32.partialorder %v195_v30, 0.0  ;;  %v323_v39 = vmul.f32 0.01, %v195_v30  ;;  %v386_v41 = vsel %vm258_vm6, %v194_v27, %v322_v35  ;;  %v67_v27 = vld [vmem:[%s1503_s0 + $0x1a8] sm:$0xff] }
  0x3b   :  { %v197_v42 = vadd.f32 %v1093_v5, %v126_v36  ;;  %vm260_vm8 = vcmp.ge.f32.partialorder %v196_v40, 0.0  ;;  %v324_v47 = vmul.f32 0.01, %v196_v40  ;;  %v129_v48 = vmul.f32 %v1086_v2, %v58_v37 }
  0x3c   :  { %1043 = vst [vmem:[%s1506_s3 + $0x90] sm:$0xff] %v959_v38   ;;  %v387_v46 = vsel %vm259_vm7, %v195_v30, %v323_v39  ;;  %v198_v52 = vadd.f32 %v1093_v5, %v127_v43  ;;  %v199_v54 = vadd.f32 %v1093_v5, %v128_v44  ;;  %v130_v55 = vmul.f32 %v1086_v2, %v59_v45  ;;  %v69_v39 = vld [vmem:[%s1503_s0 + $0x1b8] sm:$0xff] }
  0x3d   :  { %v964_v50 = vpack.c.bf16 %v387_v46, %v386_v41  ;;  %vm261_vm9 = vcmp.ge.f32.partialorder %v197_v42, 0.0  ;;  %v325_v51 = vmul.f32 0.01, %v197_v42  ;;  %v388_v53 = vsel %vm260_vm8, %v196_v40, %v324_v47  ;;  %v70_v46 = vld [vmem:[%s1503_s0 + $0x1c0] sm:$0xff] }
  0x3e   :  { %v200_v56 = vadd.f32 %v1093_v5, %v129_v48  ;;  %vm262_vm10 = vcmp.ge.f32.partialorder %v198_v52, 0.0  ;;  %v326_v59 = vmul.f32 0.01, %v198_v52  ;;  %v131_v60 = vmul.f32 %v1086_v2, %v60_v49 }
  0x3f   :  { %1044 = vst [vmem:[%s1506_s3 + $0x98] sm:$0xff] %v964_v50   ;;  %v389_v58 = vsel %vm261_vm9, %v197_v42, %v325_v51  ;;  %vm263_vm11 = vcmp.ge.f32.partialorder %v199_v54, 0.0  ;;  %v327_v62 = vmul.f32 0.01, %v199_v54  ;;  %v201_v63 = vadd.f32 %v1093_v5, %v130_v55  ;;  %v71_v50 = vld [vmem:[%s1503_s0 + $0x1c8] sm:$0xff] }
  0x40   :  { %v969_v61 = vpack.c.bf16 %v389_v58, %v388_v53  ;;  %v390_v1 = vsel %vm262_vm10, %v198_v52, %v326_v59  ;;  %vm264_vm12 = vcmp.ge.f32.partialorder %v200_v56, 0.0  ;;  %v328_v3 = vmul.f32 0.01, %v200_v56  ;;  %v72_v58 = vld [vmem:[%s1503_s0 + $0x1d0] sm:$0xff]  ;;  %v73_v59 = vld [vmem:[%s1503_s0 + $0x1d8] sm:$0xff] }
  0x41   :  { %v132_v4 = vmul.f32 %v1086_v2, %v61_v57  ;;  %v391_v7 = vsel %vm263_vm11, %v199_v54, %v327_v62  ;;  %vm265_vm13 = vcmp.ge.f32.partialorder %v201_v63, 0.0  ;;  %v329_v8 = vmul.f32 0.01, %v201_v63 }
  0x42   :  { %1045 = vst [vmem:[%s1506_s3 + $0xa0] sm:$0xff] %v969_v61   ;;  %v202_v9 = vadd.f32 %v1093_v5, %v131_v60  ;;  %v974_v10 = vpack.c.bf16 %v391_v7, %v390_v1  ;;  %v392_v11 = vsel %vm264_vm12, %v200_v56, %v328_v3  ;;  %v133_v13 = vmul.f32 %v1086_v2, %v62_v0 }
  0x43   :  { %v203_v12 = vadd.f32 %v1093_v5, %v132_v4  ;;  %v393_v16 = vsel %vm265_vm13, %v201_v63, %v329_v8  ;;  %v134_v18 = vmul.f32 %v1086_v2, %v63_v6  ;;  %v135_v25 = vmul.f32 %v1086_v2, %v64_v14  ;;  %v74_v63 = vld [vmem:[%s1503_s0 + $0x1e0] sm:$0xff] }
  0x44   :  { %vm266_vm14 = vcmp.ge.f32.partialorder %v202_v9, 0.0  ;;  %v330_v17 = vmul.f32 0.01, %v202_v9  ;;  %1046 = vst [vmem:[%s1506_s3 + $0xa8] sm:$0xff] %v974_v10   ;;  %v979_v20 = vpack.c.bf16 %v393_v16, %v392_v11  ;;  %v204_v22 = vadd.f32 %v1093_v5, %v133_v13  ;;  %v76_v13 = vld [vmem:[%s1503_s0 + $0x1f0] sm:$0xff] }
  0x45   :  { %vm267_vm15 = vcmp.ge.f32.partialorder %v203_v12, 0.0  ;;  %v331_v21 = vmul.f32 0.01, %v203_v12  ;;  %v205_v24 = vadd.f32 %v1093_v5, %v134_v18  ;;  %v136_v26 = vmul.f32 %v1086_v2, %v65_v15 }
  0x46   :  { %v394_v23 = vsel %vm266_vm14, %v202_v9, %v330_v17  ;;  %1047 = vst [vmem:[%s1506_s3 + $0xb0] sm:$0xff] %v979_v20   ;;  %vm268_vm0 = vcmp.ge.f32.partialorder %v204_v22, 0.0  ;;  %v332_v29 = vmul.f32 0.01, %v204_v22  ;;  %v137_v30 = vmul.f32 %v1086_v2, %v66_v19  ;;  %v75_v9 = vld [vmem:[%s1503_s0 + $0x1e8] sm:$0xff] }
  0x47   :  { %v395_v28 = vsel %vm267_vm15, %v203_v12, %v331_v21  ;;  %vm269_vm1 = vcmp.ge.f32.partialorder %v205_v24, 0.0  ;;  %v333_v33 = vmul.f32 0.01, %v205_v24  ;;  %v206_v34 = vadd.f32 %v1093_v5, %v135_v25  ;;  %v77_v21 = vld [vmem:[%s1503_s0 + $0x1f8] sm:$0xff] }
  0x48   :  { %v984_v32 = vpack.c.bf16 %v395_v28, %v394_v23  ;;  %v396_v35 = vsel %vm268_vm0, %v204_v22, %v332_v29  ;;  %v207_v36 = vadd.f32 %v1093_v5, %v136_v26  ;;  %v138_v37 = vmul.f32 %v1086_v2, %v67_v27 }
  0x49   :  { %v208_v38 = vadd.f32 %v1093_v5, %v137_v30  ;;  %v397_v40 = vsel %vm269_vm1, %v205_v24, %v333_v33  ;;  %vm270_vm2 = vcmp.ge.f32.partialorder %v206_v34, 0.0  ;;  %v334_v41 = vmul.f32 0.01, %v206_v34 }
  0x4a   :  { %1048 = vst [vmem:[%s1506_s3 + $0xb8] sm:$0xff] %v984_v32   ;;  %v139_v42 = vmul.f32 %v1086_v2, %v68_v31  ;;  %v989_v43 = vpack.c.bf16 %v397_v40, %v396_v35  ;;  %vm271_vm3 = vcmp.ge.f32.partialorder %v207_v36, 0.0  ;;  %v335_v44 = vmul.f32 0.01, %v207_v36 }
  0x4b   :  { %v209_v45 = vadd.f32 %v1093_v5, %v138_v37  ;;  %v398_v47 = vsel %vm270_vm2, %v206_v34, %v334_v41  ;;  %vm272_vm4 = vcmp.ge.f32.partialorder %v208_v38, 0.0  ;;  %v336_v48 = vmul.f32 0.01, %v208_v38 }
  0x4c   :  { %v140_v49 = vmul.f32 %v1086_v2, %v69_v39  ;;  %1049 = vst [vmem:[%s1506_s3 + $0xc0] sm:$0xff] %v989_v43   ;;  %v399_v51 = vsel %vm271_vm3, %v207_v36, %v335_v44  ;;  %v210_v53 = vadd.f32 %v1093_v5, %v139_v42  ;;  %v141_v57 = vmul.f32 %v1086_v2, %v70_v46 }
  0x4d   :  { %vm273_vm5 = vcmp.ge.f32.partialorder %v209_v45, 0.0  ;;  %v337_v52 = vmul.f32 0.01, %v209_v45  ;;  %v994_v54 = vpack.c.bf16 %v399_v51, %v398_v47  ;;  %v400_v55 = vsel %vm272_vm4, %v208_v38, %v336_v48 }
  0x4e   :  { %v211_v56 = vadd.f32 %v1093_v5, %v140_v49  ;;  %vm274_vm6 = vcmp.ge.f32.partialorder %v210_v53, 0.0  ;;  %v338_v61 = vmul.f32 0.01, %v210_v53  ;;  %v142_v62 = vmul.f32 %v1086_v2, %v71_v50 }
  0x4f   :  { %v401_v60 = vsel %vm273_vm5, %v209_v45, %v337_v52  ;;  %1050 = vst [vmem:[%s1506_s3 + $0xc8] sm:$0xff] %v994_v54   ;;  %v212_v3 = vadd.f32 %v1093_v5, %v141_v57  ;;  %v143_v7 = vmul.f32 %v1086_v2, %v72_v58  ;;  %v144_v8 = vmul.f32 %v1086_v2, %v73_v59 }
  0x50   :  { %v999_v0 = vpack.c.bf16 %v401_v60, %v400_v55  ;;  %vm275_vm7 = vcmp.ge.f32.partialorder %v211_v56, 0.0  ;;  %v339_v1 = vmul.f32 0.01, %v211_v56  ;;  %v402_v4 = vsel %vm274_vm6, %v210_v53, %v338_v61 }
  0x51   :  { %v213_v6 = vadd.f32 %v1093_v5, %v142_v62  ;;  %vm276_vm8 = vcmp.ge.f32.partialorder %v212_v3, 0.0  ;;  %v340_v11 = vmul.f32 0.01, %v212_v3  ;;  %v145_v12 = vmul.f32 %v1086_v2, %v74_v63 }
  0x52   :  { %1051 = vst [vmem:[%s1506_s3 + $0xd0] sm:$0xff] %v999_v0   ;;  %v403_v10 = vsel %vm275_vm7, %v211_v56, %v339_v1  ;;  %v214_v16 = vadd.f32 %v1093_v5, %v143_v7  ;;  %v215_v18 = vadd.f32 %v1093_v5, %v144_v8  ;;  %v146_v19 = vmul.f32 %v1086_v2, %v75_v9 }
  0x53   :  { %v1004_v14 = vpack.c.bf16 %v403_v10, %v402_v4  ;;  %vm277_vm9 = vcmp.ge.f32.partialorder %v213_v6, 0.0  ;;  %v341_v15 = vmul.f32 0.01, %v213_v6  ;;  %v404_v17 = vsel %vm276_vm8, %v212_v3, %v340_v11 }
  0x54   :  { %v216_v20 = vadd.f32 %v1093_v5, %v145_v12  ;;  %vm278_vm10 = vcmp.ge.f32.partialorder %v214_v16, 0.0  ;;  %v342_v23 = vmul.f32 0.01, %v214_v16  ;;  %v147_v24 = vmul.f32 %v1086_v2, %v76_v13 }
  0x55   :  { %1052 = vst [vmem:[%s1506_s3 + $0xd8] sm:$0xff] %v1004_v14   ;;  %v405_v22 = vsel %vm277_vm9, %v213_v6, %v341_v15  ;;  %vm279_vm11 = vcmp.ge.f32.partialorder %v215_v18, 0.0  ;;  %v343_v26 = vmul.f32 0.01, %v215_v18  ;;  %v217_v27 = vadd.f32 %v1093_v5, %v146_v19 }
  0x56   :  { %v1009_v25 = vpack.c.bf16 %v405_v22, %v404_v17  ;;  %v406_v28 = vsel %vm278_vm10, %v214_v16, %v342_v23  ;;  %vm280_vm12 = vcmp.ge.f32.partialorder %v216_v20, 0.0  ;;  %v344_v29 = vmul.f32 0.01, %v216_v20 }
  0x57   :  { %v148_v30 = vmul.f32 %v1086_v2, %v77_v21  ;;  %v407_v31 = vsel %vm279_vm11, %v215_v18, %v343_v26  ;;  %vm281_vm13 = vcmp.ge.f32.partialorder %v217_v27, 0.0  ;;  %v345_v32 = vmul.f32 0.01, %v217_v27 }
  0x58   :  { %1053 = vst [vmem:[%s1506_s3 + $0xe0] sm:$0xff] %v1009_v25   ;;  %v218_v33 = vadd.f32 %v1093_v5, %v147_v24  ;;  %v1014_v34 = vpack.c.bf16 %v407_v31, %v406_v28  ;;  %v408_v35 = vsel %vm280_vm12, %v216_v20, %v344_v29 }
  0x59   :  { %v219_v36 = vadd.f32 %v1093_v5, %v148_v30  ;;  %v409_v37 = vsel %vm281_vm13, %v217_v27, %v345_v32 }
  0x5a   :  { %vm282_vm14 = vcmp.ge.f32.partialorder %v218_v33, 0.0  ;;  %v346_v38 = vmul.f32 0.01, %v218_v33  ;;  %1054 = vst [vmem:[%s1506_s3 + $0xe8] sm:$0xff] %v1014_v34   ;;  %v1019_v2 = vpack.c.bf16 %v409_v37, %v408_v35 }
  0x5b   :  { %vm283_vm15 = vcmp.ge.f32.partialorder %v219_v36, 0.0  ;;  %v347_v39 = vmul.f32 0.01, %v219_v36 }
  0x5c   :  { %v410_v40 = vsel %vm282_vm14, %v218_v33, %v346_v38  ;;  %1055 = vst [vmem:[%s1506_s3 + $0xf0] sm:$0xff] %v1019_v2  }
  0x5d   :  { %v411_v41 = vsel %vm283_vm15, %v219_v36, %v347_v39 }
  0x5e   :  { %v1024_v42 = vpack.c.bf16 %v411_v41, %v410_v40 }
  0x60   :  { %1056 = vst [vmem:[%s1506_s3 + $0xf8] sm:$0xff] %v1024_v42  }

// kernel: unet_forward.23
= control target key start
LH: loop header
LB: loop body
LE: loop exit
PB: predicated region body
PF: predicated region fallthrough
CT: control target
= control target key end

     0   :  { %s885_s0 = inlined_call_operand.vmem [shape: bf16[128,128], index: 0, kind: input, shape index: {}]   ;;  %s886_s1 = inlined_call_operand.vmem [shape: bf16[128,128], index: 1, kind: input, shape index: {}]   ;;  %s887_s2 = inlined_call_operand.vmem [shape: bf16[128,128], index: 2, kind: input, shape index: {}]   ;;  %s888_s3 = inlined_call_operand.vmem [shape: bf16[128,128], index: 3, kind: input, shape index: {}]   ;;  %s889_s4 = inlined_call_operand.vmem [shape: bf16[128,128], index: 4, kind: input, shape index: {}]   ;;  %s890_s5 = inlined_call_operand.vmem [shape: bf16[128,128], index: 5, kind: input, shape index: {}]   ;;  %s891_s6 = inlined_call_operand.vmem [shape: bf16[128,128], index: 6, kind: input, shape index: {}]   ;;  %s892_s7 = inlined_call_operand.vmem [shape: bf16[128,128], index: 7, kind: input, shape index: {}]   ;;  %s893_s8 = inlined_call_operand.vmem [shape: bf16[128,128], index: 8, kind: input, shape index: {}]   ;;  %s894_s9 = inlined_call_operand.vmem [shape: bf16[128,128], index: 9, kind: output, shape index: {}]  }
   0x1   :  { %v32_v0 = vld [vmem:[%s885_s0] sm:$0xf]  ;;  %v33_v1 = vld [vmem:[%s885_s0 + $0x4] sm:$0xf]  ;;  %v34_v18 = vld [vmem:[%s885_s0 + $0x8] sm:$0xf] }
   0x2   :  { %v48_v2 = vld [vmem:[%s886_s1] sm:$0xf]  ;;  %v49_v3 = vld [vmem:[%s886_s1 + $0x4] sm:$0xf]  ;;  %v35_v19 = vld [vmem:[%s885_s0 + $0xc] sm:$0xf] }
   0x3   :  { %v64_v4 = vmax.bf16 %v48_v2, %v32_v0  ;;  %v80_v5 = vld [vmem:[%s887_s2] sm:$0xf]  ;;  %v81_v6 = vld [vmem:[%s887_s2 + $0x4] sm:$0xf]  ;;  %v65_v7 = vmax.bf16 %v49_v3, %v33_v1  ;;  %v50_v20 = vld [vmem:[%s886_s1 + $0x8] sm:$0xf] }
   0x4   :  { %v112_v8 = vld [vmem:[%s888_s3] sm:$0xf]  ;;  %v113_v10 = vld [vmem:[%s888_s3 + $0x4] sm:$0xf]  ;;  %v51_v22 = vld [vmem:[%s886_s1 + $0xc] sm:$0xf]  ;;  %v66_v23 = vmax.bf16 %v50_v20, %v34_v18 }
   0x5   :  { %v96_v9 = vmax.bf16 %v80_v5, %v64_v4  ;;  %v97_v11 = vmax.bf16 %v81_v6, %v65_v7  ;;  %v144_v12 = vld [vmem:[%s889_s4] sm:$0xf]  ;;  %v145_v14 = vld [vmem:[%s889_s4 + $0x4] sm:$0xf]  ;;  %v82_v24 = vld [vmem:[%s887_s2 + $0x8] sm:$0xf]  ;;  %v67_v28 = vmax.bf16 %v51_v22, %v35_v19 }
   0x6   :  { %v176_v15 = vld [vmem:[%s890_s5] sm:$0xf]  ;;  %v177_v16 = vld [vmem:[%s890_s5 + $0x4] sm:$0xf]  ;;  %v83_v25 = vld [vmem:[%s887_s2 + $0xc] sm:$0xf]  ;;  %v98_v33 = vmax.bf16 %v82_v24, %v66_v23 }
   0x7   :  { %v128_v13 = vmax.bf16 %v112_v8, %v96_v9  ;;  %v129_v17 = vmax.bf16 %v113_v10, %v97_v11  ;;  %v208_v27 = vld [vmem:[%s891_s6] sm:$0xf]  ;;  %v114_v29 = vld [vmem:[%s888_s3 + $0x8] sm:$0xf]  ;;  %v209_v31 = vld [vmem:[%s891_s6 + $0x4] sm:$0xf]  ;;  %v99_v38 = vmax.bf16 %v83_v25, %v67_v28 }
   0x8   :  { %v240_v32 = vld [vmem:[%s892_s7] sm:$0xf]  ;;  %v115_v34 = vld [vmem:[%s888_s3 + $0xc] sm:$0xf]  ;;  %v241_v36 = vld [vmem:[%s892_s7 + $0x4] sm:$0xf]  ;;  %v130_v42 = vmax.bf16 %v114_v29, %v98_v33 }
   0x9   :  { %v160_v21 = vmax.bf16 %v144_v12, %v128_v13  ;;  %v161_v26 = vmax.bf16 %v145_v14, %v129_v17  ;;  %v272_v37 = vld [vmem:[%s893_s8] sm:$0xf]  ;;  %v146_v39 = vld [vmem:[%s889_s4 + $0x8] sm:$0xf]  ;;  %v273_v41 = vld [vmem:[%s893_s8 + $0x4] sm:$0xf]  ;;  %v131_v47 = vmax.bf16 %v115_v34, %v99_v38 }
   0xa   :  { %v147_v43 = vld [vmem:[%s889_s4 + $0xc] sm:$0xf]  ;;  %v178_v44 = vld [vmem:[%s890_s5 + $0x8] sm:$0xf]  ;;  %v36_v48 = vld [vmem:[%s885_s0 + $0x10] sm:$0xf]  ;;  %v162_v52 = vmax.bf16 %v146_v39, %v130_v42 }
   0xb   :  { %v192_v30 = vmax.bf16 %v176_v15, %v160_v21  ;;  %v193_v35 = vmax.bf16 %v177_v16, %v161_v26  ;;  %v179_v45 = vld [vmem:[%s890_s5 + $0xc] sm:$0xf]  ;;  %v37_v49 = vld [vmem:[%s885_s0 + $0x14] sm:$0xf]  ;;  %v52_v50 = vld [vmem:[%s886_s1 + $0x10] sm:$0xf]  ;;  %v163_v58 = vmax.bf16 %v147_v43, %v131_v47 }
   0xc   :  { %v53_v53 = vld [vmem:[%s886_s1 + $0x14] sm:$0xf]  ;;  %v68_v54 = vmax.bf16 %v52_v50, %v36_v48  ;;  %v84_v55 = vld [vmem:[%s887_s2 + $0x10] sm:$0xf]  ;;  %v210_v59 = vld [vmem:[%s891_s6 + $0x8] sm:$0xf]  ;;  %v194_v63 = vmax.bf16 %v178_v44, %v162_v52 }
   0xd   :  { %v224_v40 = vmax.bf16 %v208_v27, %v192_v30  ;;  %v225_v46 = vmax.bf16 %v209_v31, %v193_v35  ;;  %v85_v56 = vld [vmem:[%s887_s2 + $0x14] sm:$0xf]  ;;  %v69_v60 = vmax.bf16 %v53_v53, %v37_v49  ;;  %v116_v61 = vld [vmem:[%s888_s3 + $0x10] sm:$0xf]  ;;  %v211_v0 = vld [vmem:[%s891_s6 + $0xc] sm:$0xf]  ;;  %v195_v5 = vmax.bf16 %v179_v45, %v163_v58 }
   0xe   :  { %v242_v1 = vld [vmem:[%s892_s7 + $0x8] sm:$0xf]  ;;  %v100_v2 = vmax.bf16 %v84_v55, %v68_v54  ;;  %v117_v3 = vld [vmem:[%s888_s3 + $0x14] sm:$0xf]  ;;  %v243_v6 = vld [vmem:[%s892_s7 + $0xc] sm:$0xf]  ;;  %v226_v10 = vmax.bf16 %v210_v59, %v194_v63 }
   0xf   :  { %v256_v51 = vmax.bf16 %v240_v32, %v224_v40  ;;  %v257_v57 = vmax.bf16 %v241_v36, %v225_v46  ;;  %v274_v7 = vld [vmem:[%s893_s8 + $0x8] sm:$0xf]  ;;  %v101_v8 = vmax.bf16 %v85_v56, %v69_v60  ;;  %v148_v9 = vld [vmem:[%s889_s4 + $0x10] sm:$0xf]  ;;  %v275_v11 = vld [vmem:[%s893_s8 + $0xc] sm:$0xf]  ;;  %v227_v17 = vmax.bf16 %v211_v0, %v195_v5 }
  0x10   :  { %v132_v12 = vmax.bf16 %v116_v61, %v100_v2  ;;  %v149_v13 = vld [vmem:[%s889_s4 + $0x14] sm:$0xf]  ;;  %v180_v14 = vld [vmem:[%s890_s5 + $0x10] sm:$0xf]  ;;  %v38_v19 = vld [vmem:[%s885_s0 + $0x18] sm:$0xf]  ;;  %v258_v22 = vmax.bf16 %v242_v1, %v226_v10 }
  0x11   :  { %v288_v62 = vmax.bf16 %v272_v37, %v256_v51  ;;  %v289_v4 = vmax.bf16 %v273_v41, %v257_v57  ;;  %v181_v15 = vld [vmem:[%s890_s5 + $0x14] sm:$0xf]  ;;  %v133_v18 = vmax.bf16 %v117_v3, %v101_v8  ;;  %v39_v20 = vld [vmem:[%s885_s0 + $0x1c] sm:$0xf]  ;;  %v54_v21 = vld [vmem:[%s886_s1 + $0x18] sm:$0xf]  ;;  %v259_v28 = vmax.bf16 %v243_v6, %v227_v17 }
  0x12   :  { %v164_v23 = vmax.bf16 %v148_v9, %v132_v12  ;;  %v55_v24 = vld [vmem:[%s886_s1 + $0x1c] sm:$0xf]  ;;  %v70_v25 = vmax.bf16 %v54_v21, %v38_v19  ;;  %v86_v26 = vld [vmem:[%s887_s2 + $0x18] sm:$0xf]  ;;  %v212_v30 = vld [vmem:[%s891_s6 + $0x10] sm:$0xf]  ;;  %v290_v33 = vmax.bf16 %v274_v7, %v258_v22 }
  0x13   :  { %v364_v16 = vcombine.low %v288_v62, %v289_v4  ;;  %v87_v27 = vld [vmem:[%s887_s2 + $0x1c] sm:$0xf]  ;;  %v165_v29 = vmax.bf16 %v149_v13, %v133_v18  ;;  %v71_v31 = vmax.bf16 %v55_v24, %v39_v20  ;;  %v118_v32 = vld [vmem:[%s888_s3 + $0x18] sm:$0xf]  ;;  %v213_v35 = vld [vmem:[%s891_s6 + $0x14] sm:$0xf]  ;;  %v291_v39 = vmax.bf16 %v275_v11, %v259_v28 }
  0x14   :  { %v196_v34 = vmax.bf16 %v180_v14, %v164_v23  ;;  %v244_v36 = vld [vmem:[%s892_s7 + $0x10] sm:$0xf]  ;;  %v102_v37 = vmax.bf16 %v86_v26, %v70_v25  ;;  %v119_v38 = vld [vmem:[%s888_s3 + $0x1c] sm:$0xf]  ;;  %v245_v41 = vld [vmem:[%s892_s7 + $0x14] sm:$0xf] }
  0x15   :  { %328 = vst [vmem:[%s894_s9] sm:$0xff] %v364_v16   ;;  %v197_v40 = vmax.bf16 %v181_v15, %v165_v29  ;;  %v276_v42 = vld [vmem:[%s893_s8 + $0x10] sm:$0xf]  ;;  %v103_v43 = vmax.bf16 %v87_v27, %v71_v31  ;;  %v150_v44 = vld [vmem:[%s889_s4 + $0x18] sm:$0xf]  ;;  %v277_v46 = vld [vmem:[%s893_s8 + $0x14] sm:$0xf]  ;;  %v365_v51 = vcombine.low %v290_v33, %v291_v39 }
  0x16   :  { %v228_v45 = vmax.bf16 %v212_v30, %v196_v34  ;;  %v134_v47 = vmax.bf16 %v118_v32, %v102_v37  ;;  %v151_v48 = vld [vmem:[%s889_s4 + $0x1c] sm:$0xf]  ;;  %v182_v49 = vld [vmem:[%s890_s5 + $0x18] sm:$0xf]  ;;  %v40_v54 = vld [vmem:[%s885_s0 + $0x20] sm:$0xf] }
  0x17   :  { %v183_v50 = vld [vmem:[%s890_s5 + $0x1c] sm:$0xf]  ;;  %v229_v52 = vmax.bf16 %v213_v35, %v197_v40  ;;  %v135_v53 = vmax.bf16 %v119_v38, %v103_v43  ;;  %v41_v55 = vld [vmem:[%s885_s0 + $0x24] sm:$0xf]  ;;  %v56_v56 = vld [vmem:[%s886_s1 + $0x20] sm:$0xf] }
  0x18   :  { %v260_v57 = vmax.bf16 %v244_v36, %v228_v45  ;;  %v166_v58 = vmax.bf16 %v150_v44, %v134_v47  ;;  %v57_v59 = vld [vmem:[%s886_s1 + $0x24] sm:$0xf]  ;;  %v72_v60 = vmax.bf16 %v56_v56, %v40_v54  ;;  %v88_v61 = vld [vmem:[%s887_s2 + $0x20] sm:$0xf]  ;;  %366 = vst [vmem:[%s894_s9 + $0x8] sm:$0xff] %v365_v51  }
  0x19   :  { %v89_v62 = vld [vmem:[%s887_s2 + $0x24] sm:$0xf]  ;;  %v261_v63 = vmax.bf16 %v245_v41, %v229_v52  ;;  %v167_v0 = vmax.bf16 %v151_v48, %v135_v53  ;;  %v214_v1 = vld [vmem:[%s891_s6 + $0x18] sm:$0xf]  ;;  %v73_v2 = vmax.bf16 %v57_v59, %v41_v55  ;;  %v120_v3 = vld [vmem:[%s888_s3 + $0x20] sm:$0xf] }
  0x1a   :  { %v292_v4 = vmax.bf16 %v276_v42, %v260_v57  ;;  %v198_v5 = vmax.bf16 %v182_v49, %v166_v58  ;;  %v215_v6 = vld [vmem:[%s891_s6 + $0x1c] sm:$0xf]  ;;  %v246_v7 = vld [vmem:[%s892_s7 + $0x18] sm:$0xf]  ;;  %v104_v8 = vmax.bf16 %v88_v61, %v72_v60  ;;  %v121_v9 = vld [vmem:[%s888_s3 + $0x24] sm:$0xf] }
  0x1b   :  { %v293_v10 = vmax.bf16 %v277_v46, %v261_v63  ;;  %v199_v11 = vmax.bf16 %v183_v50, %v167_v0  ;;  %v247_v12 = vld [vmem:[%s892_s7 + $0x1c] sm:$0xf]  ;;  %v278_v13 = vld [vmem:[%s893_s8 + $0x18] sm:$0xf]  ;;  %v105_v14 = vmax.bf16 %v89_v62, %v73_v2  ;;  %v152_v15 = vld [vmem:[%s889_s4 + $0x20] sm:$0xf] }
  0x1c   :  { %v230_v16 = vmax.bf16 %v214_v1, %v198_v5  ;;  %v279_v17 = vld [vmem:[%s893_s8 + $0x1c] sm:$0xf]  ;;  %v136_v18 = vmax.bf16 %v120_v3, %v104_v8  ;;  %v153_v19 = vld [vmem:[%s889_s4 + $0x24] sm:$0xf]  ;;  %v184_v20 = vld [vmem:[%s890_s5 + $0x20] sm:$0xf] }
  0x1d   :  { %v185_v21 = vld [vmem:[%s890_s5 + $0x24] sm:$0xf]  ;;  %v367_v22 = vcombine.low %v292_v4, %v293_v10  ;;  %v231_v23 = vmax.bf16 %v215_v6, %v199_v11  ;;  %v137_v24 = vmax.bf16 %v121_v9, %v105_v14  ;;  %v42_v25 = vld [vmem:[%s885_s0 + $0x28] sm:$0xf]  ;;  %v43_v26 = vld [vmem:[%s885_s0 + $0x2c] sm:$0xf] }
  0x1e   :  { %v58_v27 = vld [vmem:[%s886_s1 + $0x28] sm:$0xf]  ;;  %v262_v28 = vmax.bf16 %v246_v7, %v230_v16  ;;  %v168_v29 = vmax.bf16 %v152_v15, %v136_v18  ;;  %v59_v30 = vld [vmem:[%s886_s1 + $0x2c] sm:$0xf]  ;;  %v216_v36 = vld [vmem:[%s891_s6 + $0x20] sm:$0xf] }
  0x1f   :  { %v74_v31 = vmax.bf16 %v58_v27, %v42_v25  ;;  %v90_v32 = vld [vmem:[%s887_s2 + $0x28] sm:$0xf]  ;;  %v91_v33 = vld [vmem:[%s887_s2 + $0x2c] sm:$0xf]  ;;  %368 = vst [vmem:[%s894_s9 + $0x10] sm:$0xff] %v367_v22   ;;  %v263_v34 = vmax.bf16 %v247_v12, %v231_v23  ;;  %v169_v35 = vmax.bf16 %v153_v19, %v137_v24  ;;  %v75_v37 = vmax.bf16 %v59_v30, %v43_v26 }
  0x20   :  { %v122_v38 = vld [vmem:[%s888_s3 + $0x28] sm:$0xf]  ;;  %v294_v39 = vmax.bf16 %v278_v13, %v262_v28  ;;  %v200_v40 = vmax.bf16 %v184_v20, %v168_v29  ;;  %v217_v41 = vld [vmem:[%s891_s6 + $0x24] sm:$0xf]  ;;  %v248_v42 = vld [vmem:[%s892_s7 + $0x20] sm:$0xf] }
  0x21   :  { %v106_v43 = vmax.bf16 %v90_v32, %v74_v31  ;;  %v123_v44 = vld [vmem:[%s888_s3 + $0x2c] sm:$0xf]  ;;  %v295_v45 = vmax.bf16 %v279_v17, %v263_v34  ;;  %v201_v46 = vmax.bf16 %v185_v21, %v169_v35  ;;  %v249_v47 = vld [vmem:[%s892_s7 + $0x24] sm:$0xf]  ;;  %v280_v48 = vld [vmem:[%s893_s8 + $0x20] sm:$0xf]  ;;  %v107_v49 = vmax.bf16 %v91_v33, %v75_v37 }
  0x22   :  { %v154_v50 = vld [vmem:[%s889_s4 + $0x28] sm:$0xf]  ;;  %v232_v51 = vmax.bf16 %v216_v36, %v200_v40  ;;  %v281_v52 = vld [vmem:[%s893_s8 + $0x24] sm:$0xf]  ;;  %v155_v54 = vld [vmem:[%s889_s4 + $0x2c] sm:$0xf] }
  0x23   :  { %v138_v53 = vmax.bf16 %v122_v38, %v106_v43  ;;  %v186_v55 = vld [vmem:[%s890_s5 + $0x28] sm:$0xf]  ;;  %v187_v56 = vld [vmem:[%s890_s5 + $0x2c] sm:$0xf]  ;;  %v369_v57 = vcombine.low %v294_v39, %v295_v45  ;;  %v233_v58 = vmax.bf16 %v217_v41, %v201_v46  ;;  %v139_v59 = vmax.bf16 %v123_v44, %v107_v49  ;;  %v44_v60 = vld [vmem:[%s885_s0 + $0x30] sm:$0xf] }
  0x24   :  { %v45_v61 = vld [vmem:[%s885_s0 + $0x34] sm:$0xf]  ;;  %v60_v62 = vld [vmem:[%s886_s1 + $0x30] sm:$0xf]  ;;  %v264_v63 = vmax.bf16 %v248_v42, %v232_v51  ;;  %v218_v7 = vld [vmem:[%s891_s6 + $0x28] sm:$0xf] }
  0x25   :  { %v170_v0 = vmax.bf16 %v154_v50, %v138_v53  ;;  %v61_v1 = vld [vmem:[%s886_s1 + $0x34] sm:$0xf]  ;;  %v76_v2 = vmax.bf16 %v60_v62, %v44_v60  ;;  %v92_v3 = vld [vmem:[%s887_s2 + $0x30] sm:$0xf]  ;;  %370 = vst [vmem:[%s894_s9 + $0x18] sm:$0xff] %v369_v57   ;;  %v265_v5 = vmax.bf16 %v249_v47, %v233_v58  ;;  %v171_v6 = vmax.bf16 %v155_v54, %v139_v59 }
  0x26   :  { %v93_v4 = vld [vmem:[%s887_s2 + $0x34] sm:$0xf]  ;;  %v77_v8 = vmax.bf16 %v61_v1, %v45_v61  ;;  %v124_v9 = vld [vmem:[%s888_s3 + $0x30] sm:$0xf]  ;;  %v296_v10 = vmax.bf16 %v280_v48, %v264_v63  ;;  %v219_v12 = vld [vmem:[%s891_s6 + $0x2c] sm:$0xf] }
  0x27   :  { %v202_v11 = vmax.bf16 %v186_v55, %v170_v0  ;;  %v250_v13 = vld [vmem:[%s892_s7 + $0x28] sm:$0xf]  ;;  %v108_v14 = vmax.bf16 %v92_v3, %v76_v2  ;;  %v125_v15 = vld [vmem:[%s888_s3 + $0x34] sm:$0xf]  ;;  %v297_v16 = vmax.bf16 %v281_v52, %v265_v5  ;;  %v203_v17 = vmax.bf16 %v187_v56, %v171_v6  ;;  %v251_v18 = vld [vmem:[%s892_s7 + $0x2c] sm:$0xf] }
  0x28   :  { %v282_v19 = vld [vmem:[%s893_s8 + $0x28] sm:$0xf]  ;;  %v109_v20 = vmax.bf16 %v93_v4, %v77_v8  ;;  %v156_v21 = vld [vmem:[%s889_s4 + $0x30] sm:$0xf]  ;;  %v283_v23 = vld [vmem:[%s893_s8 + $0x2c] sm:$0xf] }
  0x29   :  { %v234_v22 = vmax.bf16 %v218_v7, %v202_v11  ;;  %v140_v24 = vmax.bf16 %v124_v9, %v108_v14  ;;  %v157_v25 = vld [vmem:[%s889_s4 + $0x34] sm:$0xf]  ;;  %v188_v26 = vld [vmem:[%s890_s5 + $0x30] sm:$0xf]  ;;  %v371_v28 = vcombine.low %v296_v10, %v297_v16  ;;  %v235_v29 = vmax.bf16 %v219_v12, %v203_v17  ;;  %v46_v31 = vld [vmem:[%s885_s0 + $0x38] sm:$0xf] }
  0x2a   :  { %v189_v27 = vld [vmem:[%s890_s5 + $0x34] sm:$0xf]  ;;  %v141_v30 = vmax.bf16 %v125_v15, %v109_v20  ;;  %v47_v32 = vld [vmem:[%s885_s0 + $0x3c] sm:$0xf]  ;;  %v62_v33 = vld [vmem:[%s886_s1 + $0x38] sm:$0xf] }
  0x2b   :  { %v266_v34 = vmax.bf16 %v250_v13, %v234_v22  ;;  %v172_v35 = vmax.bf16 %v156_v21, %v140_v24  ;;  %v63_v36 = vld [vmem:[%s886_s1 + $0x3c] sm:$0xf]  ;;  %v78_v37 = vmax.bf16 %v62_v33, %v46_v31  ;;  %v94_v38 = vld [vmem:[%s887_s2 + $0x38] sm:$0xf]  ;;  %372 = vst [vmem:[%s894_s9 + $0x20] sm:$0xff] %v371_v28   ;;  %v267_v40 = vmax.bf16 %v251_v18, %v235_v29 }
  0x2c   :  { %v95_v39 = vld [vmem:[%s887_s2 + $0x3c] sm:$0xf]  ;;  %v173_v41 = vmax.bf16 %v157_v25, %v141_v30  ;;  %v220_v42 = vld [vmem:[%s891_s6 + $0x30] sm:$0xf]  ;;  %v79_v43 = vmax.bf16 %v63_v36, %v47_v32  ;;  %v126_v44 = vld [vmem:[%s888_s3 + $0x38] sm:$0xf] }
  0x2d   :  { %v298_v45 = vmax.bf16 %v282_v19, %v266_v34  ;;  %v204_v46 = vmax.bf16 %v188_v26, %v172_v35  ;;  %v221_v47 = vld [vmem:[%s891_s6 + $0x34] sm:$0xf]  ;;  %v110_v48 = vmax.bf16 %v94_v38, %v78_v37  ;;  %v127_v49 = vld [vmem:[%s888_s3 + $0x3c] sm:$0xf]  ;;  %v299_v50 = vmax.bf16 %v283_v23, %v267_v40  ;;  %v252_v52 = vld [vmem:[%s892_s7 + $0x30] sm:$0xf] }
  0x2e   :  { %v205_v51 = vmax.bf16 %v189_v27, %v173_v41  ;;  %v111_v53 = vmax.bf16 %v95_v39, %v79_v43  ;;  %v158_v54 = vld [vmem:[%s889_s4 + $0x38] sm:$0xf]  ;;  %v253_v56 = vld [vmem:[%s892_s7 + $0x34] sm:$0xf]  ;;  %v159_v58 = vld [vmem:[%s889_s4 + $0x3c] sm:$0xf] }
  0x2f   :  { %v236_v55 = vmax.bf16 %v220_v42, %v204_v46  ;;  %v142_v57 = vmax.bf16 %v126_v44, %v110_v48  ;;  %v373_v59 = vcombine.low %v298_v45, %v299_v50  ;;  %v284_v61 = vld [vmem:[%s893_s8 + $0x30] sm:$0xf]  ;;  %v190_v63 = vld [vmem:[%s890_s5 + $0x38] sm:$0xf]  ;;  %v285_v1 = vld [vmem:[%s893_s8 + $0x34] sm:$0xf] }
  0x30   :  { %v237_v60 = vmax.bf16 %v221_v47, %v205_v51  ;;  %v143_v62 = vmax.bf16 %v127_v49, %v111_v53  ;;  %v191_v3 = vld [vmem:[%s890_s5 + $0x3c] sm:$0xf]  ;;  %v222_v6 = vld [vmem:[%s891_s6 + $0x38] sm:$0xf] }
  0x31   :  { %v268_v0 = vmax.bf16 %v252_v52, %v236_v55  ;;  %v174_v2 = vmax.bf16 %v158_v54, %v142_v57  ;;  %374 = vst [vmem:[%s894_s9 + $0x28] sm:$0xff] %v373_v59   ;;  %v223_v9 = vld [vmem:[%s891_s6 + $0x3c] sm:$0xf]  ;;  %v254_v12 = vld [vmem:[%s892_s7 + $0x38] sm:$0xf] }
  0x32   :  { %v269_v4 = vmax.bf16 %v253_v56, %v237_v60  ;;  %v175_v5 = vmax.bf16 %v159_v58, %v143_v62  ;;  %v255_v14 = vld [vmem:[%s892_s7 + $0x3c] sm:$0xf]  ;;  %v286_v17 = vld [vmem:[%s893_s8 + $0x38] sm:$0xf] }
  0x33   :  { %v300_v7 = vmax.bf16 %v284_v61, %v268_v0  ;;  %v206_v8 = vmax.bf16 %v190_v63, %v174_v2  ;;  %v287_v19 = vld [vmem:[%s893_s8 + $0x3c] sm:$0xf] }
  0x34   :  { %v301_v10 = vmax.bf16 %v285_v1, %v269_v4  ;;  %v207_v11 = vmax.bf16 %v191_v3, %v175_v5 }
  0x35   :  { %v238_v13 = vmax.bf16 %v222_v6, %v206_v8 }
  0x36   :  { %v375_v15 = vcombine.low %v300_v7, %v301_v10  ;;  %v239_v16 = vmax.bf16 %v223_v9, %v207_v11 }
  0x37   :  { %v270_v18 = vmax.bf16 %v254_v12, %v238_v13 }
  0x38   :  { %376 = vst [vmem:[%s894_s9 + $0x30] sm:$0xff] %v375_v15   ;;  %v271_v20 = vmax.bf16 %v255_v14, %v239_v16 }
  0x39   :  { %v302_v21 = vmax.bf16 %v286_v17, %v270_v18 }
  0x3a   :  { %v303_v22 = vmax.bf16 %v287_v19, %v271_v20 }
  0x3c   :  { %v377_v23 = vcombine.low %v302_v21, %v303_v22 }
  0x3e   :  { %378 = vst [vmem:[%s894_s9 + $0x38] sm:$0xff] %v377_v23  }

// kernel: unet_forward.25
= control target key start
LH: loop header
LB: loop body
LE: loop exit
PB: predicated region body
PF: predicated region fallthrough
CT: control target
= control target key end

     0   :  { %s423_s0 = inlined_call_operand.vmem [shape: f32[128,128], index: 0, kind: input, shape index: {}]   ;;  %s424_s1 = inlined_call_operand.vmem [shape: f32[1,128], index: 1, kind: input, shape index: {}]   ;;  %s425_s2 = inlined_call_operand.vmem [shape: f32[1,128], index: 2, kind: input, shape index: {}]   ;;  %s426_s3 = inlined_call_operand.vmem [shape: bf16[128,128], index: 3, kind: output, shape index: {}]  }
   0x1   :  { %v14_v0 = vld [vmem:[%s423_s0] sm:$0xff]  ;;  %v15_v1 = vld [vmem:[%s423_s0 + $0x8] sm:$0xff]  ;;  %v16_v6 = vld [vmem:[%s423_s0 + $0x10] sm:$0xff] }
   0x2   :  { %v318_v2 = vld [vmem:[%s424_s1] ss:$0 sm:$0xff]  ;;  %v17_v7 = vld [vmem:[%s423_s0 + $0x18] sm:$0xff]  ;;  %v19_v11 = vld [vmem:[%s423_s0 + $0x28] sm:$0xff] }
   0x3   :  { %v37_v3 = vmul.f32 %v318_v2, %v14_v0  ;;  %v38_v4 = vmul.f32 %v318_v2, %v15_v1  ;;  %v325_v5 = vld [vmem:[%s425_s2] ss:$0 sm:$0xff]  ;;  %v39_v8 = vmul.f32 %v318_v2, %v16_v6  ;;  %v40_v9 = vmul.f32 %v318_v2, %v17_v7  ;;  %v20_v12 = vld [vmem:[%s423_s0 + $0x30] sm:$0xff]  ;;  %v21_v17 = vld [vmem:[%s423_s0 + $0x38] sm:$0xff] }
   0x4   :  { %v18_v10 = vld [vmem:[%s423_s0 + $0x20] sm:$0xff]  ;;  %v42_v16 = vmul.f32 %v318_v2, %v19_v11  ;;  %v43_v20 = vmul.f32 %v318_v2, %v20_v12  ;;  %v44_v21 = vmul.f32 %v318_v2, %v21_v17  ;;  %v23_v35 = vld [vmem:[%s423_s0 + $0x48] sm:$0xff]  ;;  %v24_v36 = vld [vmem:[%s423_s0 + $0x50] sm:$0xff] }
   0x5   :  { %v60_v13 = vadd.f32 %v325_v5, %v37_v3  ;;  %v61_v14 = vadd.f32 %v325_v5, %v38_v4  ;;  %v41_v15 = vmul.f32 %v318_v2, %v18_v10  ;;  %v62_v18 = vadd.f32 %v325_v5, %v39_v8  ;;  %v22_v34 = vld [vmem:[%s423_s0 + $0x40] sm:$0xff]  ;;  %v25_v42 = vld [vmem:[%s423_s0 + $0x58] sm:$0xff]  ;;  %v27_v48 = vld [vmem:[%s423_s0 + $0x68] sm:$0xff] }
   0x6   :  { %v63_v19 = vadd.f32 %v325_v5, %v40_v9  ;;  %v65_v29 = vadd.f32 %v325_v5, %v42_v16  ;;  %v66_v33 = vadd.f32 %v325_v5, %v43_v20  ;;  %v67_v40 = vadd.f32 %v325_v5, %v44_v21  ;;  %v26_v47 = vld [vmem:[%s423_s0 + $0x60] sm:$0xff]  ;;  %v28_v60 = vld [vmem:[%s423_s0 + $0x70] sm:$0xff]  ;;  %v29_v7 = vld [vmem:[%s423_s0 + $0x78] sm:$0xff] }
   0x7   :  { %vm76_vm0 = vcmp.ge.f32.partialorder %v60_v13, 0.0  ;;  %vm77_vm1 = vcmp.ge.f32.partialorder %v61_v14, 0.0  ;;  %v92_v22 = vmul.f32 0.01, %v60_v13  ;;  %v93_v23 = vmul.f32 0.01, %v61_v14 }
   0x8   :  { %vm78_vm2 = vcmp.ge.f32.partialorder %v62_v18, 0.0  ;;  %vm79_vm3 = vcmp.ge.f32.partialorder %v63_v19, 0.0  ;;  %v94_v24 = vmul.f32 0.01, %v62_v18  ;;  %v95_v25 = vmul.f32 0.01, %v63_v19 }
   0x9   :  { %v108_v26 = vsel %vm76_vm0, %v60_v13, %v92_v22  ;;  %v109_v27 = vsel %vm77_vm1, %v61_v14, %v93_v23  ;;  %v64_v28 = vadd.f32 %v325_v5, %v41_v15  ;;  %vm81_vm5 = vcmp.ge.f32.partialorder %v65_v29, 0.0 }
   0xa   :  { %v245_v30 = vpack.c.bf16 %v109_v27, %v108_v26  ;;  %v110_v31 = vsel %vm78_vm2, %v62_v18, %v94_v24  ;;  %v111_v32 = vsel %vm79_vm3, %v63_v19, %v95_v25  ;;  %v97_v39 = vmul.f32 0.01, %v65_v29 }
   0xb   :  { %v250_v37 = vpack.c.bf16 %v111_v32, %v110_v31  ;;  %vm80_vm4 = vcmp.ge.f32.partialorder %v64_v28, 0.0  ;;  %v96_v38 = vmul.f32 0.01, %v64_v28  ;;  %vm82_vm6 = vcmp.ge.f32.partialorder %v66_v33, 0.0 }
   0xc   :  { %246 = vst [vmem:[%s426_s3] sm:$0xff] %v245_v30   ;;  %v98_v41 = vmul.f32 0.01, %v66_v33  ;;  %v45_v44 = vmul.f32 %v318_v2, %v22_v34  ;;  %v46_v45 = vmul.f32 %v318_v2, %v23_v35  ;;  %v47_v46 = vmul.f32 %v318_v2, %v24_v36 }
   0xd   :  { %282 = vst [vmem:[%s426_s3 + $0x8] sm:$0xff] %v250_v37   ;;  %v112_v43 = vsel %vm80_vm4, %v64_v28, %v96_v38  ;;  %v113_v49 = vsel %vm81_vm5, %v65_v29, %v97_v39  ;;  %vm83_vm7 = vcmp.ge.f32.partialorder %v67_v40, 0.0  ;;  %v99_v50 = vmul.f32 0.01, %v67_v40 }
   0xe   :  { %v114_v51 = vsel %vm82_vm6, %v66_v33, %v98_v41  ;;  %v255_v52 = vpack.c.bf16 %v113_v49, %v112_v43  ;;  %v68_v53 = vadd.f32 %v325_v5, %v45_v44  ;;  %v69_v54 = vadd.f32 %v325_v5, %v46_v45 }
   0xf   :  { %v48_v55 = vmul.f32 %v318_v2, %v25_v42  ;;  %v115_v56 = vsel %vm83_vm7, %v67_v40, %v99_v50  ;;  %v70_v57 = vadd.f32 %v325_v5, %v47_v46  ;;  %v49_v58 = vmul.f32 %v318_v2, %v26_v47 }
  0x10   :  { %v50_v59 = vmul.f32 %v318_v2, %v27_v48  ;;  %283 = vst [vmem:[%s426_s3 + $0x10] sm:$0xff] %v255_v52   ;;  %v260_v61 = vpack.c.bf16 %v115_v56, %v114_v51  ;;  %vm84_vm8 = vcmp.ge.f32.partialorder %v68_v53, 0.0  ;;  %vm85_vm9 = vcmp.ge.f32.partialorder %v69_v54, 0.0 }
  0x11   :  { %v100_v62 = vmul.f32 0.01, %v68_v53  ;;  %v101_v63 = vmul.f32 0.01, %v69_v54  ;;  %v71_v0 = vadd.f32 %v325_v5, %v48_v55  ;;  %vm86_vm10 = vcmp.ge.f32.partialorder %v70_v57, 0.0 }
  0x12   :  { %v102_v1 = vmul.f32 0.01, %v70_v57  ;;  %284 = vst [vmem:[%s426_s3 + $0x18] sm:$0xff] %v260_v61   ;;  %v72_v4 = vadd.f32 %v325_v5, %v49_v58  ;;  %v73_v6 = vadd.f32 %v325_v5, %v50_v59  ;;  %v51_v8 = vmul.f32 %v318_v2, %v28_v60 }
  0x13   :  { %v116_v3 = vsel %vm84_vm8, %v68_v53, %v100_v62  ;;  %v117_v9 = vsel %vm85_vm9, %v69_v54, %v101_v63  ;;  %vm87_vm11 = vcmp.ge.f32.partialorder %v71_v0, 0.0  ;;  %v103_v10 = vmul.f32 0.01, %v71_v0 }
  0x14   :  { %v118_v11 = vsel %vm86_vm10, %v70_v57, %v102_v1  ;;  %v265_v12 = vpack.c.bf16 %v117_v9, %v116_v3  ;;  %vm88_vm12 = vcmp.ge.f32.partialorder %v72_v4, 0.0  ;;  %vm89_vm13 = vcmp.ge.f32.partialorder %v73_v6, 0.0 }
  0x15   :  { %v104_v13 = vmul.f32 0.01, %v72_v4  ;;  %v119_v14 = vsel %vm87_vm11, %v71_v0, %v103_v10  ;;  %v105_v15 = vmul.f32 0.01, %v73_v6  ;;  %v52_v16 = vmul.f32 %v318_v2, %v29_v7 }
  0x16   :  { %v74_v17 = vadd.f32 %v325_v5, %v51_v8  ;;  %285 = vst [vmem:[%s426_s3 + $0x20] sm:$0xff] %v265_v12   ;;  %v270_v18 = vpack.c.bf16 %v119_v14, %v118_v11 }
  0x17   :  { %v120_v19 = vsel %vm88_vm12, %v72_v4, %v104_v13  ;;  %v121_v20 = vsel %vm89_vm13, %v73_v6, %v105_v15  ;;  %v75_v21 = vadd.f32 %v325_v5, %v52_v16 }
  0x18   :  { %vm90_vm14 = vcmp.ge.f32.partialorder %v74_v17, 0.0  ;;  %v106_v22 = vmul.f32 0.01, %v74_v17  ;;  %286 = vst [vmem:[%s426_s3 + $0x28] sm:$0xff] %v270_v18   ;;  %v275_v23 = vpack.c.bf16 %v121_v20, %v120_v19 }
  0x19   :  { %vm91_vm15 = vcmp.ge.f32.partialorder %v75_v21, 0.0  ;;  %v107_v2 = vmul.f32 0.01, %v75_v21 }
  0x1a   :  { %v122_v24 = vsel %vm90_vm14, %v74_v17, %v106_v22  ;;  %287 = vst [vmem:[%s426_s3 + $0x30] sm:$0xff] %v275_v23  }
  0x1b   :  { %v123_v25 = vsel %vm91_vm15, %v75_v21, %v107_v2 }
  0x1c   :  { %v280_v26 = vpack.c.bf16 %v123_v25, %v122_v24 }
  0x1e   :  { %288 = vst [vmem:[%s426_s3 + $0x38] sm:$0xff] %v280_v26  }

// kernel: unet_forward.19
= control target key start
LH: loop header
LB: loop body
LE: loop exit
PB: predicated region body
PF: predicated region fallthrough
CT: control target
= control target key end

     0   :  { %s4375_s15 = smov 0   ;;  %s4377_s16 = smov 0   ;;  %s5803_s0 = inlined_call_operand.vmem [shape: bf16[2,1,18,18,128], index: 0, kind: input, shape index: {}]   ;;  %s5804_s1 = inlined_call_operand.vmem [shape: bf16[9,128,128], index: 1, kind: input, shape index: {}]   ;;  %s5805_s2 = inlined_call_operand.vmem [shape: f32[1,128], index: 2, kind: input, shape index: {}]   ;;  %s5806_s3 = inlined_call_operand.vmem [shape: f32[2,1,16,16,128], index: 3, kind: output, shape index: {0}]   ;;  %s5807_s4 = inlined_call_operand.vmem [shape: f32[2,1,8,128], index: 4, kind: output, shape index: {1}]  }
   0x1   :  { %s4379_s17 = smov 0  }
   0x2 LB: > { %s27_s18 = sadd.s32 1, %s4344_s16  ;;  %p3300_p0 = scmp.ge.s32.totalorder %s4348_s17, 1  ;;  %s4348_s17 = sphi %s4379_s17, %s15_s17   ;;  %s4344_s16 = sphi %s4377_s16, %s6023_s16   ;;  %s4340_s15 = sphi %s4375_s15, %s6022_s15  }
   0x3   : > { %p29_p1 = scmp.ge.s32.totalorder %s27_s18, 2  ;;  %p187_p2 = scmp.lt.s32.totalorder %s4348_s17, 3 }
   0x5   : > { %s6025_s18 = smov (%p29_p1, %s27_s18), 0  ;;  %p188_p3 = pnand %p3300_p0, %p187_p2 }
   0x7   : > { %191 = sbr.rel (%p188_p3) target bundleno = 554 (0x22a), region = 32 }
   0xc   : > { %v4216_v0 = vld [vmem:[%s5804_s1 + $0x78] sm:$0xff]   ;;  %p228_p4 = scmp.lt.s32.totalorder %s4340_s15, 1  ;;  %v4217_v1 = vld [vmem:[%s5804_s1 + $0x70] sm:$0xff]   ;;  %v4218_v2 = vld [vmem:[%s5804_s1 + $0x68] sm:$0xff]   ;;  %vm442_vm0 = vcmask 1046528   ;;  %vm1006_vm1 = vcmask 1045504  }
   0xd   : > { %3743 = vmatprep.subr.bf16.mxu0 %v4216_v0  ;;  %4175 = vmatprep.subr.bf16.mxu1 %v4216_v0  ;;  %v4219_v3 = vld [vmem:[%s5804_s1 + $0x60] sm:$0xff]   ;;  %v4220_v22 = vld [vmem:[%s5804_s1 + $0x58] sm:$0xff]   ;;  %v4221_v37 = vld [vmem:[%s5804_s1 + $0x50] sm:$0xff]   ;;  %vm3158_vm2 = vcmask 1040384   ;;  %vm3160_vm3 = vcmask 1041408  }
   0xe   : > { %s6027_s15 = smov (!%p228_p4, %s4340_s15), 1  ;;  %3744 = vmatpush3.bf16.msra.mxu0 %v4216_v0  ;;  %4183 = vmatpush3.bf16.msra.mxu1 %v4216_v0  ;;  %v4222_v46 = vld [vmem:[%s5804_s1 + $0x48] sm:$0xff]  }
   0xf   : > { %3745 = vmatprep.subr.bf16.mxu0 %v4217_v1  ;;  %4176 = vmatprep.subr.bf16.mxu1 %v4217_v1  ;;  %s4191_s25 = smul.u32 216, %s6027_s15  ;;  %s3304_s24 = sshll.u32 %s6027_s15, 3 }
  0x10   : > { %s252_s27 = scalar_lea.vmem %s5807_s4, %s3304_s24 }
  0x11   : > { %s4408_s28 = scalar_lea.vmem %s5803_s0, %s4191_s25 }
  0x12   : > { %3746 = vmatpush3.bf16.msra.mxu0 %v4217_v1  ;;  %4184 = vmatpush3.bf16.msra.mxu1 %v4217_v1  ;;  %v4414_v4 = vld [vmem:[%s4408_s28] sm:$0xff]   ;;  %v4417_v5 = vld [vmem:[%s4408_s28 + $0x8] sm:$0x1]  ;;  %v4430_v12 = vld [vmem:[%s4408_s28 + $0xc] sm:$0xff]  }
  0x13   : > { %3747 = vmatprep.subr.bf16.mxu0 %v4218_v2  ;;  %4177 = vmatprep.subr.bf16.mxu1 %v4218_v2  ;;  %v4420_v6 = vld [vmem:[%s4408_s28 + $0x60] sm:$0xff]   ;;  %v5842_v7 = vunpack.c.l.bf16 %v4414_v4  ;;  %v5841_v8 = vunpack.c.h.bf16 %v4414_v4  ;;  %v5834_v9 = vunpack.c.l.bf16 %v4417_v5  ;;  %v4426_v10 = vld [vmem:[%s4408_s28 + $0x68] sm:$0x1]  ;;  %v4433_v13 = vld [vmem:[%s4408_s28 + $0x14] sm:$0x1]  ;;  %v5843_v16 = vunpack.c.l.bf16 %v4430_v12 }
  0x14   : > { %v5826_v11 = vunpack.c.l.bf16 %v4420_v6  ;;  %v5825_v14 = vunpack.c.h.bf16 %v4420_v6  ;;  %v5817_v15 = vunpack.c.l.bf16 %v4426_v10  ;;  %v5833_v17 = vunpack.c.h.bf16 %v4430_v12  ;;  %v4456_v26 = vld [vmem:[%s4408_s28 + $0x6c] sm:$0xff]   ;;  %v4465_v31 = vld [vmem:[%s4408_s28 + $0x74] sm:$0x1]  ;;  %v4479_v40 = vld [vmem:[%s4408_s28 + $0x18] sm:$0xff]  }
  0x15   : > { %v443_v18 = vrot.slane %v5842_v7, 1  ;;  %v444_v19 = vrot.slane %v5841_v8, 1  ;;  %v446_v20 = vrot.slane %v5834_v9, 1  ;;  %v5832_v25 = vunpack.c.l.bf16 %v4433_v13  ;;  %v4482_v41 = vld [vmem:[%s4408_s28 + $0x20] sm:$0x1]  ;;  %v4488_v44 = vld [vmem:[%s4408_s28 + $0x78] sm:$0xff]  }
  0x16   : > { %3748 = vmatpush3.bf16.msra.mxu0 %v4218_v2  ;;  %4185 = vmatpush3.bf16.msra.mxu1 %v4218_v2  ;;  %v483_v21 = vrot.slane %v5826_v11, 1  ;;  %v484_v23 = vrot.slane %v5825_v14, 1  ;;  %v486_v24 = vrot.slane %v5817_v15, 1  ;;  %v448_v29 = vrot.slane %v5843_v16, 1  ;;  %v4491_v45 = vld [vmem:[%s4408_s28 + $0x80] sm:$0x1] }
  0x17   : > { %3749 = vmatprep.subr.bf16.mxu0 %v4219_v3  ;;  %4178 = vmatprep.subr.bf16.mxu1 %v4219_v3  ;;  %v445_v27 = vsel %vm442_vm0, %v443_v18, %v444_v19  ;;  %v447_v28 = vsel %vm442_vm0, %v444_v19, %v446_v20  ;;  %v449_v30 = vrot.slane %v5833_v17, 1  ;;  %v451_v35 = vrot.slane %v5832_v25, 1  ;;  %v4501_v51 = vld [vmem:[%s4408_s28 + $0x2c] sm:$0x1]  ;;  %v4508_v54 = vld [vmem:[%s4408_s28 + $0x24] sm:$0xff]  }
  0x18   : > { %v555_v32 = vpack.c.bf16 %v447_v28, %v445_v27  ;;  %v485_v33 = vsel %vm442_vm0, %v483_v21, %v484_v23  ;;  %v487_v34 = vsel %vm442_vm0, %v484_v23, %v486_v24  ;;  %v5816_v38 = vunpack.c.l.bf16 %v4456_v26  ;;  %v4511_v55 = vld [vmem:[%s4408_s28 + $0x84] sm:$0xff]   ;;  %v4517_v59 = vld [vmem:[%s4408_s28 + $0x8c] sm:$0x1]  ;;  %v4636_v25 = vld [vmem:[%s4408_s28 + $0x50] sm:$0x1] }
  0x19   : > { %v4471_v36 = vpack.c.bf16 %v487_v34, %v485_v33  ;;  %v5815_v39 = vunpack.c.h.bf16 %v4456_v26  ;;  %v5812_v42 = vunpack.c.l.bf16 %v4465_v31  ;;  %v5831_v43 = vunpack.c.l.bf16 %v4479_v40  ;;  %v4702_v7 = vld [vmem:[%s4408_s28 + $0xbc] sm:$0x1] }
  0x1a   : > { %3750 = vmatpush3.bf16.msra.mxu0 %v4219_v3  ;;  %4186 = vmatpush3.bf16.msra.mxu1 %v4219_v3  ;;  %v450_v47 = vsel %vm442_vm0, %v448_v29, %v449_v30  ;;  %v452_v48 = vsel %vm442_vm0, %v449_v30, %v451_v35  ;;  %v5830_v49 = vunpack.c.h.bf16 %v4479_v40  ;;  %v5829_v50 = vunpack.c.l.bf16 %v4482_v41  ;;  %v4223_v3 = vld [vmem:[%s5804_s1 + $0x40] sm:$0xff]   ;;  %v4549_v29 = vld [vmem:[%s4408_s28 + $0x38] sm:$0x1]  ;;  %v4552_v30 = vld [vmem:[%s4408_s28 + $0x90] sm:$0xff]  }
  0x1b   : > { %3751 = vmatprep.subr.bf16.mxu0 %v4220_v22  ;;  %4179 = vmatprep.subr.bf16.mxu1 %v4220_v22  ;;  %v488_v52 = vrot.slane %v5816_v38, 1  ;;  %v489_v53 = vrot.slane %v5815_v39, 1  ;;  %v5810_v56 = vunpack.c.l.bf16 %v4488_v44  ;;  %v5809_v57 = vunpack.c.h.bf16 %v4488_v44 }
  0x1c   : > { %3759 = vmatprep.mubr.bf16.mxu0 %v555_v32  ;;  %3775 = vmatprep.mubr.bf16.mxu1 %v4471_v36  ;;  %v5808_v58 = vunpack.c.l.bf16 %v4491_v45  ;;  %v4519_v60 = vpack.c.bf16 %v452_v48, %v450_v47  ;;  %v491_v61 = vrot.slane %v5812_v42, 1  ;;  %v453_v62 = vrot.slane %v5831_v43, 1  ;;  %v4224_v47 = vld [vmem:[%s5804_s1 + $0x38] sm:$0xff]  }
  0x1d   : > { %v454_v63 = vrot.slane %v5830_v49, 1  ;;  %v456_v0 = vrot.slane %v5829_v50, 1  ;;  %v5828_v1 = vunpack.c.l.bf16 %v4508_v54  ;;  %v5827_v2 = vunpack.c.h.bf16 %v4508_v54  ;;  %v4225_v48 = vld [vmem:[%s5804_s1 + $0xb8] sm:$0xff]  }
  0x1e   : > { %3752 = vmatpush3.bf16.msra.mxu0 %v4220_v22  ;;  %4187 = vmatpush3.bf16.msra.mxu1 %v4220_v22  ;;  %v490_v18 = vsel %vm442_vm0, %v488_v52, %v489_v53  ;;  %v5811_v19 = vunpack.c.l.bf16 %v4501_v51  ;;  %v5813_v20 = vunpack.c.l.bf16 %v4511_v55  ;;  %v5814_v21 = vunpack.c.h.bf16 %v4511_v55  ;;  %v4539_v22 = vld [vmem:[%s4408_s28 + $0x30] sm:$0xff]  }
  0x1f   : > { %3753 = vmatprep.subr.bf16.mxu0 %v4221_v37  ;;  %4180 = vmatprep.subr.bf16.mxu1 %v4221_v37  ;;  %v493_v23 = vrot.slane %v5810_v56, 1  ;;  %v494_v24 = vrot.slane %v5809_v57, 1  ;;  %v496_v27 = vrot.slane %v5808_v58, 1  ;;  %v5818_v28 = vunpack.c.l.bf16 %v4517_v59  ;;  %v4577_v57 = vld [vmem:[%s4408_s28 + $0x3c] sm:$0xff]  }
  0x20   : > { %v492_v32 = vsel %vm442_vm0, %v489_v53, %v491_v61  ;;  %v458_v33 = vrot.slane %v5828_v1, 1  ;;  %v459_v34 = vrot.slane %v5827_v2, 1  ;;  %v461_v35 = vrot.slane %v5811_v19, 1  ;;  %v4629_v2 = vld [vmem:[%s4408_s28 + $0x48] sm:$0xff]  }
  0x21   : > { %v498_v52 = vrot.slane %v5813_v20, 1  ;;  %v499_v53 = vrot.slane %v5814_v21, 1  ;;  %v5819_v61 = vunpack.c.l.bf16 %v4539_v22  ;;  %v5820_v58 = vunpack.c.h.bf16 %v4539_v22 }
  0x22   : > { %3754 = vmatpush3.bf16.msra.mxu0 %v4221_v37  ;;  %4188 = vmatpush3.bf16.msra.mxu1 %v4221_v37  ;;  %v4562_v37 = vld [vmem:[%s4408_s28 + $0x98] sm:$0x1]  ;;  %v455_v56 = vsel %vm442_vm0, %v453_v62, %v454_v63  ;;  %v457_v19 = vsel %vm442_vm0, %v454_v63, %v456_v0  ;;  %v5821_v42 = vunpack.c.l.bf16 %v4549_v29  ;;  %v5823_v20 = vunpack.c.l.bf16 %v4552_v30  ;;  %v4593_v62 = vld [vmem:[%s4408_s28 + $0x9c] sm:$0xff]  }
  0x23   : > { %3755 = vmatprep.subr.bf16.mxu0 %v4222_v46  ;;  %4181 = vmatprep.subr.bf16.mxu1 %v4222_v46  ;;  %v4583_v21 = vpack.c.bf16 %v492_v32, %v490_v18  ;;  %v495_v39 = vsel %vm442_vm0, %v493_v23, %v494_v24  ;;  %v497_v38 = vsel %vm442_vm0, %v494_v24, %v496_v27  ;;  %v501_v15 = vrot.slane %v5818_v28, 1 }
  0x24   : > { %v463_v63 = vrot.slane %v5819_v61, 1  ;;  %v464_v0 = vrot.slane %v5820_v58, 1  ;;  %v5822_v18 = vunpack.c.h.bf16 %v4552_v30  ;;  %v5824_v23 = vunpack.c.l.bf16 %v4562_v37 }
  0x25   : > { %v4601_v32 = vpack.c.bf16 %v457_v19, %v455_v56  ;;  %v466_v24 = vrot.slane %v5821_v42, 1  ;;  %v5837_v27 = vunpack.c.l.bf16 %v4577_v57  ;;  %v5836_v28 = vunpack.c.h.bf16 %v4577_v57  ;;  %v4615_v42 = vld [vmem:[%s4408_s28 + $0xa4] sm:$0x1] }
  0x26   : > { %3756 = vmatpush3.bf16.msra.mxu0 %v4222_v46  ;;  %4189 = vmatpush3.bf16.msra.mxu1 %v4222_v46  ;;  %v4590_v46 = vld [vmem:[%s4408_s28 + $0x44] sm:$0x1]  ;;  %v503_v61 = vrot.slane %v5823_v20, 1  ;;  %v504_v58 = vrot.slane %v5822_v18, 1  ;;  %v506_v56 = vrot.slane %v5824_v23, 1  ;;  %v4227_v18 = vld [vmem:[%s5804_s1 + $0xb0] sm:$0xff]   ;;  %v4623_v20 = vpack.c.bf16 %v497_v38, %v495_v39 }
  0x27   : > { %3757 = vmatprep.subr.bf16.mxu0 %v4223_v3  ;;  %4182 = vmatprep.subr.bf16.mxu1 %v4223_v3  ;;  %v5835_v19 = vunpack.c.l.bf16 %v4590_v46  ;;  %v460_v23 = vsel %vm442_vm0, %v458_v33, %v459_v34  ;;  %v462_v14 = vsel %vm442_vm0, %v459_v34, %v461_v35  ;;  %v5840_v11 = vunpack.c.l.bf16 %v4593_v62  ;;  %v4639_v38 = vld [vmem:[%s4408_s28 + $0xa8] sm:$0xff]   ;;  %v4642_v39 = vld [vmem:[%s4408_s28 + $0xb0] sm:$0x1] }
  0x28   : > { %5860 = vst [vmem:[#allocation2_spill] sm:$0xff] %v4623_v20  ;;  %v500_v1 = vsel %vm442_vm0, %v498_v52, %v499_v53  ;;  %v502_v50 = vsel %vm442_vm0, %v499_v53, %v501_v15  ;;  %v465_v49 = vsel %vm442_vm0, %v463_v63, %v464_v0  ;;  %v5839_v43 = vunpack.c.h.bf16 %v4593_v62  ;;  %v4228_v33 = vld [vmem:[%s5804_s1 + $0x28] sm:$0xff]  }
  0x29   : > { %v4229_v15 = vld [vmem:[%s5804_s1 + $0xa8] sm:$0xff]   ;;  %v467_v34 = vsel %vm442_vm0, %v464_v0, %v466_v24  ;;  %v468_v35 = vrot.slane %v5837_v27, 1  ;;  %v469_v52 = vrot.slane %v5836_v28, 1  ;;  %v5838_v53 = vunpack.c.l.bf16 %v4615_v42  ;;  %v4682_v27 = vld [vmem:[%s4408_s28 + $0x5c] sm:$0x1] }
  0x2a   : > { %3758 = vmatpush3.bf16.msra.mxu0 %v4223_v3  ;;  %4190 = vmatpush3.bf16.msra.mxu1 %v4223_v3  ;;  %v4226_v3 = vld [vmem:[%s5804_s1 + $0x30] sm:$0xff]   ;;  %v505_v63 = vsel %vm442_vm0, %v503_v61, %v504_v58  ;;  %v507_v17 = vsel %vm442_vm0, %v504_v58, %v506_v56  ;;  %v471_v9 = vrot.slane %v5835_v19, 1  ;;  %v508_v0 = vrot.slane %v5840_v11, 1 }
  0x2b   : > { %3791 = vmatprep.subr.bf16.mxu1 %v4224_v47  ;;  %3839 = vmatprep.subr.bf16.mxu0 %v4225_v48  ;;  %v509_v24 = vrot.slane %v5839_v43, 1  ;;  %v5844_v61 = vunpack.c.h.bf16 %v4629_v2  ;;  %v4671_v58 = vld [vmem:[%s4408_s28 + $0x54] sm:$0xff]   ;;  %v4675_v56 = vpack.c.bf16 %v462_v14, %v460_v23  ;;  %v4677_v19 = vpack.c.bf16 %v502_v50, %v500_v1  ;;  %v4231_v43 = vld [vmem:[%s5804_s1 + $0xa0] sm:$0xff]  }
  0x2c   : > { %v4679_v28 = vpack.c.bf16 %v467_v34, %v465_v49  ;;  %v5846_v11 = vunpack.c.l.bf16 %v4636_v25  ;;  %v5847_v14 = vunpack.c.l.bf16 %v4639_v38  ;;  %v4695_v49 = vld [vmem:[%s4408_s28 + $0xb4] sm:$0xff]   ;;  %v4697_v1 = vpack.c.bf16 %v507_v17, %v505_v63 }
  0x2d   : > { %3760 = vmatmul.mubr.bf16.vlgmr.msra.gmra.mxu0 %v4519_v60  ;;  %3776 = vmatmul.mubr.bf16.vlgmr.msra.gmra.mxu1 %v4583_v21  ;;  %5861 = vst [vmem:[#allocation3_spill] sm:$0xff] %v4677_v19  ;;  %v470_v34 = vsel %vm442_vm0, %v468_v35, %v469_v52  ;;  %v472_v8 = vsel %vm442_vm0, %v469_v52, %v471_v9  ;;  %v5850_v17 = vunpack.c.l.bf16 %v4671_v58 }
  0x2e   : > { %3792 = vmatpush3.bf16.msra.mxu1 %v4224_v47  ;;  %3840 = vmatpush3.bf16.msra.mxu0 %v4225_v48  ;;  %v511_v47 = vrot.slane %v5838_v53, 1  ;;  %v5845_v48 = vunpack.c.l.bf16 %v4629_v2  ;;  %v4230_v53 = vld [vmem:[%s5804_s1 + $0x20] sm:$0xff]   ;;  %5862 = vst [vmem:[#allocation4_spill] sm:$0xff] %v4697_v1  ;;  %v510_v16 = vsel %vm442_vm0, %v508_v0, %v509_v24  ;;  %v476_v52 = vrot.slane %v5846_v11, 1 }
  0x2f   : > { %3793 = vmatprep.subr.bf16.mxu1 %v4226_v3  ;;  %3841 = vmatprep.subr.bf16.mxu0 %v4227_v18  ;;  %v513_v63 = vrot.slane %v5847_v14, 1  ;;  %v5863_v0 = vunpack.c.h.bf16 %v4639_v38  ;;  %v4729_v11 = vpack.c.bf16 %v472_v8, %v470_v34  ;;  %v4234_v34 = vld [vmem:[%s5804_s1 + $0x10] sm:$0xff]  }
  0x30   : > { %3763 = vmatprep.mubr.bf16.mxu0 %v4601_v32  ;;  %3779 = vmatprep.mubr.bf16.mxu1 %v4623_v20  ;;  %v512_v23 = vsel %vm442_vm0, %v509_v24, %v511_v47  ;;  %v473_v50 = vrot.slane %v5845_v48, 1  ;;  %v5864_v47 = vunpack.c.l.bf16 %v4642_v39  ;;  %v4232_v48 = vld [vmem:[%s5804_s1 + $0x18] sm:$0xff]   ;;  %v5873_v20 = vunpack.c.l.bf16 %v4417_v5  ;;  %v4237_v5 = vld [vmem:[%s5804_s1 + $0x88] sm:$0xff]  }
  0x31   : > { %v514_v24 = vrot.slane %v5863_v0, 1  ;;  %v4731_v14 = vpack.c.bf16 %v512_v23, %v510_v16  ;;  %v4233_v0 = vld [vmem:[%s5804_s1 + $0x98] sm:$0xff]   ;;  %v5867_v16 = vunpack.c.l.bf16 %v4695_v49 }
  0x32   : > { %3794 = vmatpush3.bf16.msra.mxu1 %v4226_v3  ;;  %3842 = vmatpush3.bf16.msra.mxu0 %v4227_v18  ;;  %v474_v18 = vrot.slane %v5844_v61, 1  ;;  %v5851_v3 = vunpack.c.h.bf16 %v4671_v58  ;;  %v516_v61 = vrot.slane %v5864_v47, 1  ;;  %v5866_v47 = vunpack.c.l.bf16 %v4682_v27 }
  0x33   : > { %3795 = vmatprep.subr.bf16.mxu1 %v4228_v33  ;;  %3843 = vmatprep.subr.bf16.mxu0 %v4229_v15  ;;  %5865 = vst [vmem:[#allocation5_spill] sm:$0xff] %v4731_v14  ;;  %v518_v23 = vrot.slane %v5867_v16, 1 }
  0x34   : > { %v481_v8 = vrot.slane %v5866_v47, 1  ;;  %v475_v9 = vsel %vm442_vm0, %v473_v50, %v474_v18  ;;  %v477_v35 = vsel %vm442_vm0, %v474_v18, %v476_v52  ;;  %v4235_v50 = vld [vmem:[%s5804_s1 + $0x90] sm:$0xff]   ;;  %v5870_v18 = vunpack.c.l.bf16 %v4430_v12 }
  0x35   : > { %3764 = vmatmul.mubr.bf16.gmra.mxu0 %v4675_v56  ;;  %3780 = vmatmul.mubr.bf16.gmra.mxu1 %v4677_v19  ;;  %v5869_v19 = vunpack.c.l.bf16 %v4702_v7 }
  0x36   : > { %3796 = vmatpush3.bf16.msra.mxu1 %v4228_v33  ;;  %3844 = vmatpush3.bf16.msra.mxu0 %v4229_v15  ;;  %v478_v33 = vrot.slane %v5850_v17, 1  ;;  %v479_v15 = vrot.slane %v5851_v3, 1  ;;  %v517_v17 = vsel %vm442_vm0, %v514_v24, %v516_v61  ;;  %v5868_v3 = vunpack.c.h.bf16 %v4695_v49 }
  0x37   : > { %3797 = vmatprep.subr.bf16.mxu1 %v4230_v53  ;;  %3845 = vmatprep.subr.bf16.mxu0 %v4231_v43  ;;  %v521_v16 = vrot.slane %v5869_v19, 1  ;;  %v1012_v52 = vrot.slane %v5870_v18, 2  ;;  %v5871_v19 = vunpack.c.l.bf16 %v4414_v4  ;;  %v1010_v18 = vrot.slane %v5873_v20, 2 }
  0x38   : > { %3767 = vmatprep.mubr.bf16.mxu0 %v4679_v28  ;;  %3783 = vmatprep.mubr.bf16.mxu1 %v4697_v1  ;;  %v515_v1 = vsel %vm442_vm0, %v513_v63, %v514_v24  ;;  %v519_v47 = vrot.slane %v5868_v3, 1  ;;  %v4762_v63 = vpack.c.bf16 %v477_v35, %v475_v9  ;;  %v5872_v3 = vunpack.c.h.bf16 %v4414_v4 }
  0x39   : > { %v4764_v61 = vpack.c.bf16 %v517_v17, %v515_v1  ;;  %v5874_v9 = vunpack.c.h.bf16 %v4430_v12  ;;  %v482_v17 = vsel %vm442_vm0, %v479_v15, %v481_v8  ;;  %v4239_v8 = vld [vmem:[%s5804_s1 + $0x80] sm:$0xff]  }
  0x3a   : > { %3798 = vmatpush3.bf16.msra.mxu1 %v4230_v53  ;;  %3846 = vmatpush3.bf16.msra.mxu0 %v4231_v43  ;;  %v480_v43 = vsel %vm442_vm0, %v478_v33, %v479_v15  ;;  %v1007_v53 = vrot.slane %v5871_v19, 2  ;;  %v1008_v24 = vrot.slane %v5872_v3, 2  ;;  %v520_v35 = vsel %vm442_vm0, %v518_v23, %v519_v47  ;;  %v4236_v19 = vld [vmem:[%s5804_s1 + $0x8] sm:$0xff]  }
  0x3b   : > { %3799 = vmatprep.subr.bf16.mxu1 %v4232_v48  ;;  %3847 = vmatprep.subr.bf16.mxu0 %v4233_v0  ;;  %v1013_v1 = vrot.slane %v5874_v9, 2  ;;  %v522_v33 = vsel %vm442_vm0, %v519_v47, %v521_v16  ;;  %v5875_v3 = vunpack.c.l.bf16 %v4433_v13  ;;  %v4790_v20 = vpack.c.bf16 %v482_v17, %v480_v43  ;;  %v4238_v13 = vld [vmem:[%s5804_s1] sm:$0xff]  }
  0x3c   : > { %v1011_v15 = vsel %vm1006_vm1, %v1008_v24, %v1010_v18  ;;  %v5876_v16 = vunpack.c.l.bf16 %v4479_v40  ;;  %v5879_v9 = vunpack.c.l.bf16 %v4508_v54 }
  0x3d   : > { %3768 = vmatmul.mubr.bf16.gmra.mxu0 %v4729_v11  ;;  %3784 = vmatmul.mubr.bf16.gmra.mxu1 %v4731_v14  ;;  %v1015_v14 = vrot.slane %v5875_v3, 2  ;;  %v1014_v23 = vsel %vm1006_vm1, %v1012_v52, %v1013_v1  ;;  %v5880_v52 = vunpack.c.h.bf16 %v4508_v54  ;;  %v5882_v3 = vunpack.c.h.bf16 %v4420_v6 }
  0x3e   : > { %3800 = vmatpush3.bf16.msra.mxu1 %v4232_v48  ;;  %3848 = vmatpush3.bf16.msra.mxu0 %v4233_v0  ;;  %v4792_v48 = vpack.c.bf16 %v522_v33, %v520_v35  ;;  %v1009_v0 = vsel %vm1006_vm1, %v1007_v53, %v1008_v24  ;;  %v1017_v43 = vrot.slane %v5876_v16, 2  ;;  %v5878_v24 = vunpack.c.l.bf16 %v4482_v41 }
  0x3f   : > { %3801 = vmatprep.subr.bf16.mxu1 %v4234_v34  ;;  %3849 = vmatprep.subr.bf16.mxu0 %v4235_v50  ;;  %v1016_v47 = vsel %vm1006_vm1, %v1013_v1, %v1015_v14  ;;  %v1119_v53 = vpack.c.bf16 %v1011_v15, %v1009_v0  ;;  %v1022_v17 = vrot.slane %v5879_v9, 2  ;;  %v4242_v14 = vld [vmem:[%s5804_s1 + $0xf8] sm:$0xff]   ;;  %v1023_v1 = vrot.slane %v5880_v52, 2 }
  0x40   : > { %3771 = vmatprep.mubr.bf16.mxu0 %v4762_v63  ;;  %3787 = vmatprep.mubr.bf16.mxu1 %v4764_v61  ;;  %v1020_v18 = vrot.slane %v5878_v24, 2  ;;  %v5881_v35 = vunpack.c.l.bf16 %v4420_v6  ;;  %v4821_v41 = vpack.c.bf16 %v1016_v47, %v1014_v23  ;;  %v1048_v0 = vrot.slane %v5882_v3, 2 }
  0x41   : > { %v5883_v15 = vunpack.c.l.bf16 %v4426_v10  ;;  %v5884_v9 = vunpack.c.l.bf16 %v4456_v26  ;;  %v5886_v6 = vunpack.c.l.bf16 %v4465_v31  ;;  %v5887_v52 = vunpack.c.l.bf16 %v4501_v51 }
  0x42   : > { %3802 = vmatpush3.bf16.msra.mxu1 %v4234_v34  ;;  %3850 = vmatpush3.bf16.msra.mxu0 %v4235_v50  ;;  %v5877_v34 = vunpack.c.h.bf16 %v4479_v40  ;;  %v1047_v33 = vrot.slane %v5881_v35, 2  ;;  %v5890_v51 = vunpack.c.l.bf16 %v4549_v29  ;;  %v4246_v29 = vld [vmem:[%s5804_s1 + $0xf0] sm:$0xff]  }
  0x43   : > { %3803 = vmatprep.subr.bf16.mxu1 %v4236_v19  ;;  %3851 = vmatprep.subr.bf16.mxu0 %v4237_v5  ;;  %v1050_v16 = vrot.slane %v5883_v15, 2  ;;  %v1055_v47 = vrot.slane %v5886_v6, 2  ;;  %v1025_v35 = vrot.slane %v5887_v52, 2  ;;  %v5888_v15 = vunpack.c.l.bf16 %v4539_v22 }
  0x44   : > { %v1018_v50 = vrot.slane %v5877_v34, 2  ;;  %v4243_v34 = vld [vmem:[%s5804_s1 + $0x138] sm:$0xff]   ;;  %v1049_v3 = vsel %vm1006_vm1, %v1047_v33, %v1048_v0  ;;  %v5891_v33 = vunpack.c.l.bf16 %v4511_v55  ;;  %v1024_v6 = vsel %vm1006_vm1, %v1022_v17, %v1023_v1 }
  0x45   : > { %3772 = vmatmul.mubr.bf16.gmra.mxu0 %v4790_v20  ;;  %3788 = vmatmul.mubr.bf16.gmra.mxu1 %v4792_v48  ;;  %v5894_v52 = vunpack.c.l.bf16 %v4593_v62 }
  0x46   : > { %3804 = vmatpush3.bf16.msra.mxu1 %v4236_v19  ;;  %3852 = vmatpush3.bf16.msra.mxu0 %v4237_v5  ;;  %v1019_v24 = vsel %vm1006_vm1, %v1017_v43, %v1018_v50  ;;  %v1052_v19 = vrot.slane %v5884_v9, 2  ;;  %v5885_v5 = vunpack.c.h.bf16 %v4456_v26  ;;  %v1021_v10 = vsel %vm1006_vm1, %v1018_v50, %v1020_v18 }
  0x47   : > { %3805 = vmatprep.subr.bf16.mxu1 %v4238_v13  ;;  %3853 = vmatprep.subr.bf16.mxu0 %v4239_v8  ;;  %v1051_v43 = vsel %vm1006_vm1, %v1048_v0, %v1050_v16  ;;  %v1027_v9 = vrot.slane %v5888_v15, 2  ;;  %v1062_v0 = vrot.slane %v5891_v33, 2  ;;  %v4857_v16 = vpack.c.bf16 %v1021_v10, %v1019_v24 }
  0x48   : > { %v1053_v23 = vrot.slane %v5885_v5, 2  ;;  %3807 = vmatprep.mubr.bf16.mxu1 %v4414_v4  ;;  %3855 = vmatprep.mubr.bf16.mxu0 %v1119_v53  ;;  %v4845_v26 = vpack.c.bf16 %v1051_v43, %v1049_v3  ;;  %v5889_v4 = vunpack.c.h.bf16 %v4539_v22  ;;  %v1030_v53 = vrot.slane %v5890_v51, 2 }
  0x49   : > { %v1026_v24 = vsel %vm1006_vm1, %v1023_v1, %v1025_v35  ;;  %v1072_v3 = vrot.slane %v5894_v52, 2  ;;  %v4250_v1 = vld [vmem:[%s5804_s1 + $0xe8] sm:$0xff]   ;;  %v5898_v51 = vunpack.c.h.bf16 %v4577_v57 }
  0x4a   : > { %v1054_v31 = vsel %vm1006_vm1, %v1052_v19, %v1053_v23  ;;  %v1056_v5 = vsel %vm1006_vm1, %v1053_v23, %v1055_v47  ;;  %3806 = vmatpush3.bf16.msra.mxu1 %v4238_v13  ;;  %3854 = vmatpush3.bf16.msra.mxu0 %v4239_v8  ;;  %v1028_v50 = vrot.slane %v5889_v4, 2  ;;  %v5892_v19 = vunpack.c.h.bf16 %v4511_v55  ;;  %v4247_v47 = vld [vmem:[%s5804_s1 + $0x130] sm:$0xff]  }
  0x4b   : > { %v4853_v18 = vpack.c.bf16 %v1056_v5, %v1054_v31  ;;  %3887 = vmatprep.subr.bf16.mxu1 %v4242_v14  ;;  %3935 = vmatprep.subr.bf16.mxu0 %v4243_v34  ;;  %v5893_v13 = vunpack.c.l.bf16 %v4517_v59  ;;  %v5896_v31 = vunpack.c.l.bf16 %v4615_v42  ;;  %v4893_v4 = vpack.c.bf16 %v1026_v24, %v1024_v6 }
  0x4c   : > { %v1063_v23 = vrot.slane %v5892_v19, 2  ;;  %v1029_v43 = vsel %vm1006_vm1, %v1027_v9, %v1028_v50  ;;  %v1031_v15 = vsel %vm1006_vm1, %v1028_v50, %v1030_v53  ;;  %v5897_v9 = vunpack.c.l.bf16 %v4577_v57 }
  0x4d   : > { %v1065_v8 = vrot.slane %v5893_v13, 2  ;;  %3808 = vmatmul.mubr.bf16.vlgmr.msra.gmra.mxu1 %v4430_v12  ;;  %3856 = vmatmul.mubr.bf16.vlgmr.msra.gmra.mxu0 %v4821_v41  ;;  %v1075_v5 = vrot.slane %v5896_v31, 2  ;;  %v1033_v53 = vrot.slane %v5898_v51, 2  ;;  %v5899_v19 = vunpack.c.l.bf16 %v4695_v49 }
  0x4e   : > { %v1064_v10 = vsel %vm1006_vm1, %v1062_v0, %v1063_v23  ;;  %3888 = vmatpush3.bf16.msra.mxu1 %v4242_v14  ;;  %3936 = vmatpush3.bf16.msra.mxu0 %v4243_v34  ;;  %v4251_v14 = vld [vmem:[%s5804_s1 + $0x128] sm:$0xff]   ;;  %v5895_v34 = vunpack.c.h.bf16 %v4593_v62  ;;  %v1032_v50 = vrot.slane %v5897_v9, 2  ;;  %v5900_v42 = vunpack.c.h.bf16 %v4695_v49 }
  0x4f   : > { %v1066_v59 = vsel %vm1006_vm1, %v1063_v23, %v1065_v8  ;;  %3811 = vmatprep.mubr.bf16.mxu1 %v4479_v40  ;;  %3859 = vmatprep.mubr.bf16.mxu0 %v4857_v16  ;;  %v1082_v23 = vrot.slane %v5899_v19, 2  ;;  %v4905_v8 = vpack.c.bf16 %v1031_v15, %v1029_v43  ;;  %v5901_v6 = vunpack.c.l.bf16 %v4590_v46  ;;  %v4254_v46 = vld [vmem:[%s5804_s1 + $0xe0] sm:$0xff]   ;;  %v4259_v19 = vld [vmem:[%s5804_s1 + $0x118] sm:$0xff]  }
  0x50   : > { %v4875_v17 = vpack.c.bf16 %v1066_v59, %v1064_v10  ;;  %v1073_v35 = vrot.slane %v5895_v34, 2  ;;  %3889 = vmatprep.subr.bf16.mxu1 %v4246_v29  ;;  %3937 = vmatprep.subr.bf16.mxu0 %v4247_v47  ;;  %v1083_v13 = vrot.slane %v5900_v42, 2  ;;  %v5902_v59 = vunpack.c.l.bf16 %v4702_v7  ;;  %v4255_v7 = vld [vmem:[%s5804_s1 + $0x120] sm:$0xff]  }
  0x51   : > { %v1035_v24 = vrot.slane %v5901_v6, 2 }
  0x52   : > { %v1074_v33 = vsel %vm1006_vm1, %v1072_v3, %v1073_v35  ;;  %v1076_v0 = vsel %vm1006_vm1, %v1073_v35, %v1075_v5  ;;  %3890 = vmatpush3.bf16.msra.mxu1 %v4246_v29  ;;  %3938 = vmatpush3.bf16.msra.mxu0 %v4247_v47  ;;  %v1085_v52 = vrot.slane %v5902_v59, 2  ;;  %v5903_v3 = vunpack.c.l.bf16 %v4629_v2  ;;  %v4263_v59 = vld [vmem:[%s5804_s1 + $0x110] sm:$0xff]  }
  0x53   : > { %v4909_v10 = vpack.c.bf16 %v1076_v0, %v1074_v33  ;;  %3891 = vmatprep.subr.bf16.mxu1 %v4250_v1  ;;  %3939 = vmatprep.subr.bf16.mxu0 %v4251_v14  ;;  %v5904_v35 = vunpack.c.h.bf16 %v4629_v2  ;;  %v5905_v29 = vunpack.c.l.bf16 %v4636_v25  ;;  %v1084_v43 = vsel %vm1006_vm1, %v1082_v23, %v1083_v13  ;;  %v4258_v0 = vld [vmem:[%s5804_s1 + $0xd8] sm:$0xff]  }
  0x54   : > { %v1037_v34 = vrot.slane %v5903_v3, 2  ;;  %v1086_v15 = vsel %vm1006_vm1, %v1083_v13, %v1085_v52  ;;  %v1034_v25 = vsel %vm1006_vm1, %v1032_v50, %v1033_v53  ;;  %v1036_v9 = vsel %vm1006_vm1, %v1033_v53, %v1035_v24  ;;  %v4262_v24 = vld [vmem:[%s5804_s1 + $0xd0] sm:$0xff]   ;;  %v4266_v3 = vld [vmem:[%s5804_s1 + $0xc8] sm:$0xff]  }
  0x55   : > { %v1038_v31 = vrot.slane %v5904_v35, 2  ;;  %v1040_v47 = vrot.slane %v5905_v29, 2  ;;  %3812 = vmatmul.mubr.bf16.gmra.mxu1 %v4508_v54  ;;  %3860 = vmatmul.mubr.bf16.gmra.mxu0 %v4893_v4  ;;  %v4929_v5 = vpack.c.bf16 %v1086_v15, %v1084_v43  ;;  %v4943_v23 = vpack.c.bf16 %v1036_v9, %v1034_v25  ;;  %v4270_v25 = vld [vmem:[%s5804_s1 + $0xc0] sm:$0xff]  }
  0x56   : > { %3815 = vmatprep.mubr.bf16.mxu1 %v4539_v22  ;;  %3863 = vmatprep.mubr.bf16.mxu0 %v4905_v8  ;;  %v5906_v50 = vunpack.c.l.bf16 %v4671_v58  ;;  %v5907_v53 = vunpack.c.h.bf16 %v4671_v58  ;;  %v5908_v13 = vunpack.c.l.bf16 %v4682_v27  ;;  %v5909_v29 = vunpack.c.l.bf16 %v4488_v44  ;;  %v4271_v9 = vld [vmem:[%s5804_s1 + $0x100] sm:$0xff]  }
  0x57   : > { %3892 = vmatpush3.bf16.msra.mxu1 %v4250_v1  ;;  %3940 = vmatpush3.bf16.msra.mxu0 %v4251_v14  ;;  %v1039_v51 = vsel %vm1006_vm1, %v1037_v34, %v1038_v31  ;;  %v1041_v33 = vsel %vm1006_vm1, %v1038_v31, %v1040_v47  ;;  %v4267_v34 = vld [vmem:[%s5804_s1 + $0x108] sm:$0xff]   ;;  %v4974_v31 = vld [vmem:[%s4408_s28 + $0x60] sm:$0xff]  }
  0x58   : > { %3893 = vmatprep.subr.bf16.mxu1 %v4254_v46  ;;  %3941 = vmatprep.subr.bf16.mxu0 %v4255_v7  ;;  %v1042_v1 = vrot.slane %v5906_v50, 2  ;;  %v4947_v14 = vpack.c.bf16 %v1041_v33, %v1039_v51  ;;  %v1043_v42 = vrot.slane %v5907_v53, 2  ;;  %v1045_v6 = vrot.slane %v5908_v13, 2  ;;  %v4272_v33 = vld [vmem:[%s5804_s1 + $0x178] sm:$0xff]  }
  0x59   : > { %v1057_v47 = vrot.slane %v5909_v29, 2 }
  0x5a   : > { %v1044_v27 = vsel %vm1006_vm1, %v1042_v1, %v1043_v42  ;;  %v1046_v52 = vsel %vm1006_vm1, %v1043_v42, %v1045_v6  ;;  %v5912_v1 = vunpack.c.l.bf16 %v4552_v30  ;;  %v5913_v42 = vunpack.c.h.bf16 %v4552_v30 }
  0x5b   : > { %3894 = vmatpush3.bf16.msra.mxu1 %v4254_v46  ;;  %3942 = vmatpush3.bf16.msra.mxu0 %v4255_v7  ;;  %v4971_v35 = vpack.c.bf16 %v1046_v52, %v1044_v27  ;;  %v5910_v46 = vunpack.c.h.bf16 %v4488_v44  ;;  %v5911_v7 = vunpack.c.l.bf16 %v4491_v45  ;;  %v5914_v6 = vunpack.c.l.bf16 %v4562_v37 }
  0x5c   : > { %3895 = vmatprep.subr.bf16.mxu1 %v4258_v0  ;;  %3943 = vmatprep.subr.bf16.mxu0 %v4259_v19  ;;  %v1067_v53 = vrot.slane %v5912_v1, 2  ;;  %v1068_v13 = vrot.slane %v5913_v42, 2  ;;  %v5915_v52 = vunpack.c.l.bf16 %v4639_v38 }
  0x5d   : > { %3816 = vmatmul.mubr.bf16.gmra.mxu1 %v4577_v57  ;;  %3864 = vmatmul.mubr.bf16.gmra.mxu0 %v4943_v23  ;;  %v1058_v43 = vrot.slane %v5910_v46, 2  ;;  %v1060_v15 = vrot.slane %v5911_v7, 2 }
  0x5e   : > { %3819 = vmatprep.mubr.bf16.mxu1 %v4629_v2  ;;  %3867 = vmatprep.mubr.bf16.mxu0 %v4947_v14 }
  0x5f   : > { %3896 = vmatpush3.bf16.msra.mxu1 %v4258_v0  ;;  %3944 = vmatpush3.bf16.msra.mxu0 %v4259_v19  ;;  %v1059_v45 = vsel %vm1006_vm1, %v1057_v47, %v1058_v43  ;;  %v1061_v51 = vsel %vm1006_vm1, %v1058_v43, %v1060_v15  ;;  %v4273_v0 = vld [vmem:[%s5804_s1 + $0x1b8] sm:$0xff]   ;;  %v5001_v19 = vld [vmem:[%s4408_s28 + $0x6c] sm:$0xff]   ;;  %v5917_v47 = vunpack.c.l.bf16 %v4642_v39  ;;  %v5032_v15 = vld [vmem:[%s4408_s28 + $0xc0] sm:$0xff]  }
  0x60   : > { %3897 = vmatprep.subr.bf16.mxu1 %v4262_v24  ;;  %3945 = vmatprep.subr.bf16.mxu0 %v4263_v59  ;;  %v5003_v50 = vpack.c.bf16 %v1061_v51, %v1059_v45  ;;  %v356_v39 = vunpack.c.l.bf16 %v5032_v15  ;;  %v357_v45 = vunpack.c.h.bf16 %v5032_v15 }
  0x61   : > { %v1080_v46 = vrot.slane %v5917_v47, 2  ;;  %v4284_v47 = vld [vmem:[%s5804_s1 + $0x148] sm:$0xff]  }
  0x62   : > { %v1921_v51 = vrot.slane %v356_v39, 2  ;;  %v1922_v1 = vrot.slane %v357_v45, 2 }
  0x63   : > { %3898 = vmatpush3.bf16.msra.mxu1 %v4262_v24  ;;  %3946 = vmatpush3.bf16.msra.mxu0 %v4263_v59  ;;  %v1070_v24 = vrot.slane %v5914_v6, 2  ;;  %v1069_v59 = vsel %vm1006_vm1, %v1067_v53, %v1068_v13 }
  0x64   : > { %3899 = vmatprep.subr.bf16.mxu1 %v4266_v3  ;;  %3947 = vmatprep.subr.bf16.mxu0 %v4267_v34 }
  0x65   : > { %3820 = vmatmul.mubr.bf16.gmra.mxu1 %v4671_v58  ;;  %3868 = vmatmul.mubr.bf16.gmra.mxu0 %v4971_v35  ;;  %v1071_v27 = vsel %vm1006_vm1, %v1068_v13, %v1070_v24  ;;  %v1923_v13 = vsel %vm1006_vm1, %v1921_v51, %v1922_v1  ;;  %v4289_v51 = vld [vmem:[%s5804_s1 + $0x1f8] sm:$0xff]  }
  0x66   : > { %3823 = vmatprep.mubr.bf16.mxu1 %v4974_v31  ;;  %3871 = vmatprep.mubr.bf16.mxu0 %v4845_v26  ;;  %v5017_v37 = vpack.c.bf16 %v1071_v27, %v1069_v59  ;;  %v4274_v59 = vld [vmem:[%s5804_s1 + $0x170] sm:$0xff]  }
  0x67   : > { %3900 = vmatpush3.bf16.msra.mxu1 %v4266_v3  ;;  %3948 = vmatpush3.bf16.msra.mxu0 %v4267_v34  ;;  %v1077_v3 = vrot.slane %v5915_v52, 2  ;;  %v5916_v34 = vunpack.c.h.bf16 %v4639_v38  ;;  %v4275_v27 = vld [vmem:[%s5804_s1 + $0x1b0] sm:$0xff]   ;;  %v4280_v52 = vld [vmem:[%s5804_s1 + $0x158] sm:$0xff]  }
  0x68   : > { %3901 = vmatprep.subr.bf16.mxu1 %v4270_v25  ;;  %3949 = vmatprep.subr.bf16.mxu0 %v4271_v9 }
  0x69   : > { %v1078_v29 = vrot.slane %v5916_v34, 2  ;;  %v4282_v34 = vld [vmem:[%s5804_s1 + $0x150] sm:$0xff]  }
  0x6b   : > { %3902 = vmatpush3.bf16.msra.mxu1 %v4270_v25  ;;  %3950 = vmatpush3.bf16.msra.mxu0 %v4271_v9  ;;  %v1079_v43 = vsel %vm1006_vm1, %v1077_v3, %v1078_v29  ;;  %v1081_v7 = vsel %vm1006_vm1, %v1078_v29, %v1080_v46  ;;  %v5037_v9 = vld [vmem:[%s4408_s28 + $0xc8] sm:$0x1]  ;;  %v4281_v3 = vld [vmem:[%s5804_s1 + $0x198] sm:$0xff]   ;;  %v4283_v29 = vld [vmem:[%s5804_s1 + $0x190] sm:$0xff]  }
  0x6c   : > { %3983 = vmatprep.subr.bf16.mxu1 %v4272_v33  ;;  %4031 = vmatprep.subr.bf16.mxu0 %v4273_v0  ;;  %v5034_v25 = vpack.c.bf16 %v1081_v7, %v1079_v43  ;;  %v358_v53 = vunpack.c.l.bf16 %v5037_v9  ;;  %v4285_v46 = vld [vmem:[%s5804_s1 + $0x188] sm:$0xff]   ;;  %v4287_v43 = vld [vmem:[%s5804_s1 + $0x140] sm:$0xff]   ;;  %v4291_v9 = vld [vmem:[%s5804_s1 + $0x1f0] sm:$0xff]  }
  0x6d   : > { %3824 = vmatmul.mubr.bf16.gmra.mxu1 %v5001_v19  ;;  %3872 = vmatmul.mubr.bf16.gmra.mxu0 %v4853_v18  ;;  %v4288_v7 = vld [vmem:[%s5804_s1 + $0x180] sm:$0xff]  }
  0x6e   : > { %3827 = vmatprep.mubr.bf16.mxu1 %v4488_v44  ;;  %3875 = vmatprep.mubr.bf16.mxu0 %v5003_v50  ;;  %v1924_v42 = vrot.slane %v358_v53, 2 }
  0x70   : > { %v1925_v6 = vsel %vm1006_vm1, %v1922_v1, %v1924_v42  ;;  %v4290_v1 = vld [vmem:[%s5804_s1 + $0x238] sm:$0xff]   ;;  %v5919_v42 = vld [vmem:[#allocation2_spill] sm:$0xff] }
  0x71   : > { %v5054_v24 = vpack.c.bf16 %v1925_v6, %v1923_v13  ;;  %v5920_v13 = vld [vmem:[#allocation3_spill] sm:$0xff]  ;;  %v5921_v6 = vld [vmem:[#allocation4_spill] sm:$0xff] }
  0x73   : > { %5918 = vst [vmem:[#allocation6_spill] sm:$0xff] %v5054_v24 }
  0x75   : > { %3828 = vmatmul.mubr.bf16.gmra.mxu1 %v4511_v55  ;;  %3876 = vmatmul.mubr.bf16.gmra.mxu0 %v4875_v17 }
  0x76   : > { %3831 = vmatprep.mubr.bf16.mxu1 %v4552_v30  ;;  %3879 = vmatprep.mubr.bf16.mxu0 %v5017_v37 }
  0x7d   : > { %3832 = vmatmul.mubr.bf16.gmra.mxu1 %v4593_v62  ;;  %3880 = vmatmul.mubr.bf16.gmra.mxu0 %v4909_v10 }
  0x7e   : > { %3835 = vmatprep.mubr.bf16.mxu1 %v4639_v38  ;;  %3883 = vmatprep.mubr.bf16.mxu0 %v5034_v25 }
  0x85   : > { %3836 = vmatmul.mubr.bf16.gmra.mxu1 %v4695_v49  ;;  %3884 = vmatmul.mubr.bf16.gmra.mxu0 %v4929_v5 }
  0x86   : > { %3903 = vmatprep.mubr.bf16.mxu1 %v4430_v12  ;;  %3951 = vmatprep.mubr.bf16.mxu0 %v4519_v60  ;;  %v4276_v12 = vld [vmem:[%s5804_s1 + $0x168] sm:$0xff]  }
  0x87   : > { %v4277_v60 = vld [vmem:[%s5804_s1 + $0x1a8] sm:$0xff]  }
  0x8d   : > { %3904 = vmatmul.mubr.bf16.vlgmr.msra.gmra.mxu1 %v4479_v40  ;;  %3952 = vmatmul.mubr.bf16.vlgmr.msra.gmra.mxu0 %v4601_v32 }
  0x8e   : > { %3984 = vmatpush3.bf16.msra.mxu1 %v4272_v33  ;;  %4032 = vmatpush3.bf16.msra.mxu0 %v4273_v0  ;;  %v4278_v33 = vld [vmem:[%s5804_s1 + $0x160] sm:$0xff]  }
  0x8f   : > { %3907 = vmatprep.mubr.bf16.mxu1 %v4508_v54  ;;  %3955 = vmatprep.mubr.bf16.mxu0 %v4675_v56  ;;  %v4279_v0 = vld [vmem:[%s5804_s1 + $0x1a0] sm:$0xff]  }
  0x90   : > { %3985 = vmatprep.subr.bf16.mxu1 %v4274_v59  ;;  %4033 = vmatprep.subr.bf16.mxu0 %v4275_v27 }
  0x92   : > { %3986 = vmatpush3.bf16.msra.mxu1 %v4274_v59  ;;  %4034 = vmatpush3.bf16.msra.mxu0 %v4275_v27  ;;  %v5922_v59 = vld [vmem:[#allocation5_spill] sm:$0xff]  ;;  %v1655_v27 = vrot.slane %v356_v39, 1  ;;  %v4292_v39 = vld [vmem:[%s5804_s1 + $0x230] sm:$0xff]  }
  0x93   : > { %3987 = vmatprep.subr.bf16.mxu1 %v4276_v12  ;;  %4035 = vmatprep.subr.bf16.mxu0 %v4277_v60 }
  0x95   : > { %3908 = vmatmul.mubr.bf16.gmra.mxu1 %v4539_v22  ;;  %3956 = vmatmul.mubr.bf16.gmra.mxu0 %v4679_v28 }
  0x96   : > { %3911 = vmatprep.mubr.bf16.mxu1 %v4577_v57  ;;  %3959 = vmatprep.mubr.bf16.mxu0 %v4729_v11 }
  0x97   : > { %3988 = vmatpush3.bf16.msra.mxu1 %v4276_v12  ;;  %4036 = vmatpush3.bf16.msra.mxu0 %v4277_v60  ;;  %v1656_v12 = vrot.slane %v357_v45, 1  ;;  %v1658_v60 = vrot.slane %v358_v53, 1  ;;  %v4297_v45 = vld [vmem:[%s5804_s1 + $0x1d8] sm:$0xff]  }
  0x98   : > { %3989 = vmatprep.subr.bf16.mxu1 %v4278_v33  ;;  %4037 = vmatprep.subr.bf16.mxu0 %v4279_v0  ;;  %v4298_v53 = vld [vmem:[%s5804_s1 + $0x218] sm:$0xff]  }
  0x9b   : > { %3990 = vmatpush3.bf16.msra.mxu1 %v4278_v33  ;;  %4038 = vmatpush3.bf16.msra.mxu0 %v4279_v0  ;;  %v1657_v33 = vsel %vm442_vm0, %v1655_v27, %v1656_v12  ;;  %v1659_v0 = vsel %vm442_vm0, %v1656_v12, %v1658_v60 }
  0x9c   : > { %3991 = vmatprep.subr.bf16.mxu1 %v4280_v52  ;;  %4039 = vmatprep.subr.bf16.mxu0 %v4281_v3 }
  0x9d   : > { %3912 = vmatmul.mubr.bf16.gmra.mxu1 %v4629_v2  ;;  %3960 = vmatmul.mubr.bf16.gmra.mxu0 %v4762_v63 }
  0x9e   : > { %3915 = vmatprep.mubr.bf16.mxu1 %v4671_v58  ;;  %3963 = vmatprep.mubr.bf16.mxu0 %v4790_v20 }
  0x9f   : > { %3992 = vmatpush3.bf16.msra.mxu1 %v4280_v52  ;;  %4040 = vmatpush3.bf16.msra.mxu0 %v4281_v3  ;;  %v5144_v52 = vpack.c.bf16 %v1659_v0, %v1657_v33  ;;  %v4301_v3 = vld [vmem:[%s5804_s1 + $0x1c8] sm:$0xff]  }
  0xa0   : > { %3993 = vmatprep.subr.bf16.mxu1 %v4282_v34  ;;  %4041 = vmatprep.subr.bf16.mxu0 %v4283_v29 }
  0xa1   : > { %5923 = vst [vmem:[#allocation2_spill] sm:$0xff] %v5144_v52 }
  0xa3   : > { %3994 = vmatpush3.bf16.msra.mxu1 %v4282_v34  ;;  %4042 = vmatpush3.bf16.msra.mxu0 %v4283_v29  ;;  %v4302_v34 = vld [vmem:[%s5804_s1 + $0x208] sm:$0xff]  }
  0xa4   : > { %3995 = vmatprep.subr.bf16.mxu1 %v4284_v47  ;;  %4043 = vmatprep.subr.bf16.mxu0 %v4285_v46 }
  0xa5   : > { %3916 = vmatmul.mubr.bf16.gmra.mxu1 %v4974_v31  ;;  %3964 = vmatmul.mubr.bf16.gmra.mxu0 %v4471_v36 }
  0xa6   : > { %3919 = vmatprep.mubr.bf16.mxu1 %v5001_v19  ;;  %3967 = vmatprep.mubr.bf16.mxu0 %v4583_v21 }
  0xa7   : > { %3996 = vmatpush3.bf16.msra.mxu1 %v4284_v47  ;;  %4044 = vmatpush3.bf16.msra.mxu0 %v4285_v46 }
  0xa8   : > { %3997 = vmatprep.subr.bf16.mxu1 %v4287_v43  ;;  %4045 = vmatprep.subr.bf16.mxu0 %v4288_v7 }
  0xab   : > { %3998 = vmatpush3.bf16.msra.mxu1 %v4287_v43  ;;  %4046 = vmatpush3.bf16.msra.mxu0 %v4288_v7 }
  0xac   : > { %4079 = vmatprep.subr.bf16.mxu1 %v4289_v51  ;;  %4127 = vmatprep.subr.bf16.mxu0 %v4290_v1 }
  0xad   : > { %3920 = vmatmul.mubr.bf16.gmra.mxu1 %v4488_v44  ;;  %3968 = vmatmul.mubr.bf16.gmra.mxu0 %v5919_v42 }
  0xae   : > { %3923 = vmatprep.mubr.bf16.mxu1 %v4511_v55  ;;  %3971 = vmatprep.mubr.bf16.mxu0 %v5920_v13 }
  0xb5   : > { %3924 = vmatmul.mubr.bf16.gmra.mxu1 %v4552_v30  ;;  %3972 = vmatmul.mubr.bf16.gmra.mxu0 %v5921_v6 }
  0xb6   : > { %3927 = vmatprep.mubr.bf16.mxu1 %v4593_v62  ;;  %3975 = vmatprep.mubr.bf16.mxu0 %v5922_v59 }
  0xbd   : > { %3928 = vmatmul.mubr.bf16.gmra.mxu1 %v4639_v38  ;;  %3976 = vmatmul.mubr.bf16.gmra.mxu0 %v4764_v61 }
  0xbe   : > { %3931 = vmatprep.mubr.bf16.mxu1 %v4695_v49  ;;  %3979 = vmatprep.mubr.bf16.mxu0 %v4792_v48 }
  0xc5   : > { %3932 = vmatmul.mubr.bf16.gmra.mxu1 %v5032_v15  ;;  %3980 = vmatmul.mubr.bf16.gmra.mxu0 %v5144_v52 }
  0xc6   : > { %3999 = vmatprep.mubr.bf16.mxu1 %v4821_v41  ;;  %4047 = vmatprep.mubr.bf16.mxu0 %v4479_v40  ;;  %v4293_v40 = vld [vmem:[%s5804_s1 + $0x1e8] sm:$0xff]  }
  0xc7   : > { %v4294_v41 = vld [vmem:[%s5804_s1 + $0x228] sm:$0xff]  }
  0xcd   : > { %4000 = vmatmul.mubr.bf16.vlgmr.msra.gmra.mxu1 %v4857_v16  ;;  %4048 = vmatmul.mubr.bf16.vlgmr.msra.gmra.mxu0 %v4508_v54  ;;  %v4295_v54 = vld [vmem:[%s5804_s1 + $0x1e0] sm:$0xff]  }
  0xce   : > { %4080 = vmatpush3.bf16.msra.mxu1 %v4289_v51  ;;  %4128 = vmatpush3.bf16.msra.mxu0 %v4290_v1 }
  0xcf   : > { %4003 = vmatprep.mubr.bf16.mxu1 %v4893_v4  ;;  %4051 = vmatprep.mubr.bf16.mxu0 %v4539_v22  ;;  %v4296_v22 = vld [vmem:[%s5804_s1 + $0x220] sm:$0xff]  }
  0xd0   : > { %4081 = vmatprep.subr.bf16.mxu1 %v4291_v9  ;;  %4129 = vmatprep.subr.bf16.mxu0 %v4292_v39 }
  0xd2   : > { %4082 = vmatpush3.bf16.msra.mxu1 %v4291_v9  ;;  %4130 = vmatpush3.bf16.msra.mxu0 %v4292_v39 }
  0xd3   : > { %4083 = vmatprep.subr.bf16.mxu1 %v4293_v40  ;;  %4131 = vmatprep.subr.bf16.mxu0 %v4294_v41 }
  0xd5   : > { %4004 = vmatmul.mubr.bf16.gmra.mxu1 %v4905_v8  ;;  %4052 = vmatmul.mubr.bf16.gmra.mxu0 %v4577_v57  ;;  %v4299_v57 = vld [vmem:[%s5804_s1 + $0x1d0] sm:$0xff]  }
  0xd6   : > { %4007 = vmatprep.mubr.bf16.mxu1 %v4943_v23  ;;  %4055 = vmatprep.mubr.bf16.mxu0 %v4629_v2  ;;  %v4300_v2 = vld [vmem:[%s5804_s1 + $0x210] sm:$0xff]  }
  0xd7   : > { %4084 = vmatpush3.bf16.msra.mxu1 %v4293_v40  ;;  %4132 = vmatpush3.bf16.msra.mxu0 %v4294_v41 }
  0xd8   : > { %4085 = vmatprep.subr.bf16.mxu1 %v4295_v54  ;;  %4133 = vmatprep.subr.bf16.mxu0 %v4296_v22 }
  0xdb   : > { %4086 = vmatpush3.bf16.msra.mxu1 %v4295_v54  ;;  %4134 = vmatpush3.bf16.msra.mxu0 %v4296_v22 }
  0xdc   : > { %4087 = vmatprep.subr.bf16.mxu1 %v4297_v45  ;;  %4135 = vmatprep.subr.bf16.mxu0 %v4298_v53 }
  0xdd   : > { %4008 = vmatmul.mubr.bf16.gmra.mxu1 %v4947_v14  ;;  %4056 = vmatmul.mubr.bf16.gmra.mxu0 %v4671_v58  ;;  %v4304_v58 = vld [vmem:[%s5804_s1 + $0x1c0] sm:$0xff]  }
  0xde   : > { %4011 = vmatprep.mubr.bf16.mxu1 %v4971_v35  ;;  %4059 = vmatprep.mubr.bf16.mxu0 %v4974_v31  ;;  %v4305_v31 = vld [vmem:[%s5804_s1 + $0x200] sm:$0xff]  }
  0xdf   : > { %4088 = vmatpush3.bf16.msra.mxu1 %v4297_v45  ;;  %4136 = vmatpush3.bf16.msra.mxu0 %v4298_v53 }
  0xe0   : > { %4089 = vmatprep.subr.bf16.mxu1 %v4299_v57  ;;  %4137 = vmatprep.subr.bf16.mxu0 %v4300_v2 }
  0xe3   : > { %4090 = vmatpush3.bf16.msra.mxu1 %v4299_v57  ;;  %4138 = vmatpush3.bf16.msra.mxu0 %v4300_v2 }
  0xe4   : > { %4091 = vmatprep.subr.bf16.mxu1 %v4301_v3  ;;  %4139 = vmatprep.subr.bf16.mxu0 %v4302_v34 }
  0xe5   : > { %4012 = vmatmul.mubr.bf16.gmra.mxu1 %v4845_v26  ;;  %4060 = vmatmul.mubr.bf16.gmra.mxu0 %v5001_v19 }
  0xe6   : > { %4015 = vmatprep.mubr.bf16.mxu1 %v4853_v18  ;;  %4063 = vmatprep.mubr.bf16.mxu0 %v4488_v44 }
  0xe7   : > { %4092 = vmatpush3.bf16.msra.mxu1 %v4301_v3  ;;  %4140 = vmatpush3.bf16.msra.mxu0 %v4302_v34 }
  0xe8   : > { %4093 = vmatprep.subr.bf16.mxu1 %v4304_v58  ;;  %4141 = vmatprep.subr.bf16.mxu0 %v4305_v31 }
  0xeb   : > { %4094 = vmatpush3.bf16.msra.mxu1 %v4304_v58  ;;  %4142 = vmatpush3.bf16.msra.mxu0 %v4305_v31 }
  0xed   : > { %v3761_v29 = vpop.f32.mrf.mxu0  ;;  %v5208_v47 = vpop.f32.mrf.mxu1  ;;  %4016 = vmatmul.mubr.bf16.gmra.mxu1 %v5003_v50  ;;  %4064 = vmatmul.mubr.bf16.gmra.mxu0 %v4511_v55 }
  0xee   : > { %4019 = vmatprep.mubr.bf16.mxu1 %v4875_v17  ;;  %4067 = vmatprep.mubr.bf16.mxu0 %v4552_v30 }
  0xef   : > { %v670_v19 = vpop.f32.mrf.mxu0  ;;  %v5214_v46 = vpop.f32.mrf.mxu1 }
  0xf1   : > { %v3762_v44 = vpop.f32.mrf.mxu0  ;;  %v5216_v43 = vpop.f32.mrf.mxu1 }
  0xf3   : > { %v673_v7 = vpop.f32.mrf.mxu0  ;;  %v5218_v51 = vpop.f32.mrf.mxu1 }
  0xf5   : > { %v3765_v1 = vpop.f32.mrf.mxu0  ;;  %v5220_v27 = vpop.f32.mrf.mxu1  ;;  %4020 = vmatmul.mubr.bf16.gmra.mxu1 %v5017_v37  ;;  %4068 = vmatmul.mubr.bf16.gmra.mxu0 %v4593_v62  ;;  %v5245_v62 = vld [vmem:[%s4408_s28 + $0xcc] sm:$0xff]  }
  0xf6   : > { %4023 = vmatprep.mubr.bf16.mxu1 %v4909_v10  ;;  %4071 = vmatprep.mubr.bf16.mxu0 %v4639_v38 }
  0xf7   : > { %v686_v55 = vpop.f32.mrf.mxu0  ;;  %v5226_v30 = vpop.f32.mrf.mxu1 }
  0xf9   : > { %v5228_v12 = vpop.f32.mrf.mxu0  ;;  %v5230_v60 = vpop.f32.mrf.mxu1 }
  0xfb   : > { %v5232_v33 = vpop.f32.mrf.mxu0  ;;  %v5234_v0 = vpop.f32.mrf.mxu1 }
  0xfd   : > { %v5236_v9 = vpop.f32.mrf.mxu0  ;;  %v5238_v39 = vpop.f32.mrf.mxu1  ;;  %4024 = vmatmul.mubr.bf16.gmra.mxu1 %v5034_v25  ;;  %4072 = vmatmul.mubr.bf16.gmra.mxu0 %v4695_v49 }
  0xfe   : > { %5924 = vst [vmem:[#allocation3_spill] sm:$0xff] %v5238_v39  ;;  %4027 = vmatprep.mubr.bf16.mxu1 %v4929_v5  ;;  %4075 = vmatprep.mubr.bf16.mxu0 %v5032_v15 }
  0xff   : > { %v5247_v38 = vpop.f32.mrf.mxu0  ;;  %v5249_v40 = vpop.f32.mrf.mxu1 }
 0x100   : > { %5925 = vst [vmem:[#allocation4_spill] sm:$0xff] %v5249_v40 }
 0x101   : > { %v5251_v41 = vpop.f32.mrf.mxu0  ;;  %v5253_v54 = vpop.f32.mrf.mxu1 }
 0x102   : > { %5926 = vst [vmem:[#allocation5_spill] sm:$0xff] %v5253_v54 }
 0x103   : > { %v5255_v22 = vpop.f32.mrf.mxu0  ;;  %v5257_v45 = vpop.f32.mrf.mxu1 }
 0x104   : > { %5927 = vst [vmem:[#allocation7_spill] sm:$0xff] %v5257_v45 }
 0x105   : > { %v5259_v53 = vpop.f32.mrf.mxu0  ;;  %v5261_v49 = vpop.f32.mrf.mxu1  ;;  %4028 = vmatmul.mubr.bf16.gmra.mxu1 %v5054_v24  ;;  %4076 = vmatmul.mubr.bf16.gmra.mxu0 %v5245_v62 }
 0x106   : > { %5928 = vst [vmem:[#allocation8_spill] sm:$0xff] %v5261_v49  ;;  %4095 = vmatprep.mubr.bf16.mxu1 %v4601_v32  ;;  %4143 = vmatprep.mubr.bf16.mxu0 %v4857_v16 }
 0x107   : > { %v5267_v15 = vpop.f32.mrf.mxu0  ;;  %v5269_v57 = vpop.f32.mrf.mxu1 }
 0x108   : > { %5929 = vst [vmem:[#allocation9_spill] sm:$0xff] %v5269_v57 }
 0x109   : > { %v5271_v2 = vpop.f32.mrf.mxu0  ;;  %v5273_v3 = vpop.f32.mrf.mxu1 }
 0x10a   : > { %5930 = vst [vmem:[#allocation10_spill] sm:$0xff] %v5273_v3 }
 0x10b   : > { %v5275_v34 = vpop.f32.mrf.mxu0  ;;  %v5277_v58 = vpop.f32.mrf.mxu1 }
 0x10c   : > { %5931 = vst [vmem:[#allocation11_spill] sm:$0xff] %v5277_v58 }
 0x10d   : > { %v3809_v31 = vpop.f32.mrf.mxu1  ;;  %v3857_v49 = vpop.f32.mrf.mxu0  ;;  %4096 = vmatmul.mubr.bf16.vlgmr.msra.gmra.mxu1 %v4675_v56  ;;  %4144 = vmatmul.mubr.bf16.vlgmr.msra.gmra.mxu0 %v4893_v4 }
 0x10e   : > { %v888_v32 = vadd.f32 %v3809_v31, %v3761_v29  ;;  %4099 = vmatprep.mubr.bf16.mxu1 %v4679_v28  ;;  %4147 = vmatprep.mubr.bf16.mxu0 %v4905_v8 }
 0x10f   : > { %v879_v16 = vpop.f32.mrf.mxu1  ;;  %v1234_v57 = vpop.f32.mrf.mxu0 }
 0x110   : > { %v5283_v45 = vadd.f32 %v3857_v49, %v888_v32  ;;  %v880_v3 = vadd.f32 %v879_v16, %v670_v19 }
 0x111   : > { %v3810_v54 = vpop.f32.mrf.mxu1  ;;  %v3858_v40 = vpop.f32.mrf.mxu0 }
 0x112   : > { %v5285_v24 = vadd.f32 %v1234_v57, %v880_v3  ;;  %v891_v58 = vadd.f32 %v3810_v54, %v3762_v44 }
 0x113   : > { %v882_v52 = vpop.f32.mrf.mxu1  ;;  %v1237_v39 = vpop.f32.mrf.mxu0 }
 0x114   : > { %v5287_v56 = vadd.f32 %v3858_v40, %v891_v58  ;;  %v883_v4 = vadd.f32 %v882_v52, %v673_v7 }
 0x115   : > { %v3813_v29 = vpop.f32.mrf.mxu1  ;;  %v3861_v31 = vpop.f32.mrf.mxu0  ;;  %4100 = vmatmul.mubr.bf16.gmra.mxu1 %v4729_v11  ;;  %4148 = vmatmul.mubr.bf16.gmra.mxu0 %v4943_v23 }
 0x116   : > { %v5291_v28 = vadd.f32 %v1237_v39, %v883_v4  ;;  %v904_v8 = vadd.f32 %v3813_v29, %v3765_v1  ;;  %4103 = vmatprep.mubr.bf16.mxu1 %v4762_v63  ;;  %4151 = vmatprep.mubr.bf16.mxu0 %v4947_v14 }
 0x117   : > { %v895_v19 = vpop.f32.mrf.mxu1  ;;  %v1250_v44 = vpop.f32.mrf.mxu0 }
 0x118   : > { %v5295_v54 = vadd.f32 %v3861_v31, %v904_v8  ;;  %v896_v40 = vadd.f32 %v895_v19, %v686_v55 }
 0x119   : > { %v3814_v49 = vpop.f32.mrf.mxu1  ;;  %v3862_v52 = vpop.f32.mrf.mxu0 }
 0x11a   : > { %v5297_v7 = vadd.f32 %v1250_v44, %v896_v40  ;;  %v907_v11 = vadd.f32 %v3814_v49, %v5228_v12 }
 0x11b   : > { %v898_v57 = vpop.f32.mrf.mxu1  ;;  %v1253_v23 = vpop.f32.mrf.mxu0 }
 0x11c   : > { %v5300_v39 = vadd.f32 %v3862_v52, %v907_v11  ;;  %v899_v1 = vadd.f32 %v898_v57, %v5232_v33 }
 0x11d   : > { %v3817_v63 = vpop.f32.mrf.mxu1  ;;  %v3865_v3 = vpop.f32.mrf.mxu0  ;;  %4104 = vmatmul.mubr.bf16.gmra.mxu1 %v4790_v20  ;;  %4152 = vmatmul.mubr.bf16.gmra.mxu0 %v4971_v35 }
 0x11e   : > { %v5305_v14 = vadd.f32 %v1253_v23, %v899_v1  ;;  %v920_v55 = vadd.f32 %v3817_v63, %v5236_v9  ;;  %4107 = vmatprep.mubr.bf16.mxu1 %v4471_v36  ;;  %4155 = vmatprep.mubr.bf16.mxu0 %v4845_v26 }
 0x11f   : > { %v911_v12 = vpop.f32.mrf.mxu1  ;;  %v1266_v58 = vpop.f32.mrf.mxu0 }
 0x120   : > { %v5310_v32 = vadd.f32 %v3865_v3, %v920_v55  ;;  %v912_v33 = vadd.f32 %v911_v12, %v5247_v38 }
 0x121   : > { %v3818_v16 = vpop.f32.mrf.mxu1  ;;  %v3866_v4 = vpop.f32.mrf.mxu0 }
 0x122   : > { %v5313_v29 = vadd.f32 %v1266_v58, %v912_v33  ;;  %v923_v20 = vadd.f32 %v3818_v16, %v5251_v41 }
 0x123   : > { %v914_v35 = vpop.f32.mrf.mxu1  ;;  %v1269_v31 = vpop.f32.mrf.mxu0 }
 0x124   : > { %v5316_v8 = vadd.f32 %v3866_v4, %v923_v20  ;;  %v915_v36 = vadd.f32 %v914_v35, %v5255_v22  ;;  %v360_v4 = vunpack.c.h.bf16 %v5245_v62 }
 0x125   : > { %v3821_v9 = vpop.f32.mrf.mxu1  ;;  %v3869_v26 = vpop.f32.mrf.mxu0  ;;  %4108 = vmatmul.mubr.bf16.gmra.mxu1 %v4583_v21  ;;  %4156 = vmatmul.mubr.bf16.gmra.mxu0 %v4853_v18 }
 0x126   : > { %v5321_v19 = vadd.f32 %v1269_v31, %v915_v36  ;;  %v936_v38 = vadd.f32 %v3821_v9, %v5259_v53  ;;  %4111 = vmatprep.mubr.bf16.mxu1 %v5919_v42  ;;  %4159 = vmatprep.mubr.bf16.mxu0 %v5003_v50 }
 0x127   : > { %v927_v41 = vpop.f32.mrf.mxu1  ;;  %v1282_v44 = vpop.f32.mrf.mxu0 }
 0x128   : > { %v5326_v40 = vadd.f32 %v3869_v26, %v936_v38  ;;  %v928_v22 = vadd.f32 %v927_v41, %v5267_v15  ;;  %v2450_v38 = vrot.slane %v360_v4, 1  ;;  %v2716_v41 = vrot.slane %v360_v4, 2  ;;  %v5936_v4 = vld [vmem:[#allocation5_spill] sm:$0xff] }
 0x129   : > { %v3822_v49 = vpop.f32.mrf.mxu1  ;;  %v3870_v52 = vpop.f32.mrf.mxu0 }
 0x12a   : > { %v5329_v11 = vadd.f32 %v1282_v44, %v928_v22  ;;  %v939_v21 = vadd.f32 %v3822_v49, %v5271_v2 }
 0x12b   : > { %v930_v18 = vpop.f32.mrf.mxu1  ;;  %v1285_v57 = vpop.f32.mrf.mxu0 }
 0x12c   : > { %v5332_v23 = vadd.f32 %v3870_v52, %v939_v21  ;;  %v931_v42 = vadd.f32 %v930_v18, %v5275_v34 }
 0x12d   : > { %v3825_v53 = vpop.f32.mrf.mxu1  ;;  %v3873_v50 = vpop.f32.mrf.mxu0  ;;  %4112 = vmatmul.mubr.bf16.gmra.mxu1 %v5920_v13  ;;  %4160 = vmatmul.mubr.bf16.gmra.mxu0 %v4875_v17  ;;  %v307_v13 = vld [vmem:[%s4408_s28 + $0xd4] sm:$0x1]  ;;  %s3526_s28 = sshll.u32 %s6027_s15, 8 }
 0x12e   : > { %v5337_v15 = vadd.f32 %v1285_v57, %v931_v42  ;;  %v952_v1 = vadd.f32 %v3825_v53, %v5208_v47  ;;  %4115 = vmatprep.mubr.bf16.mxu1 %v5921_v6  ;;  %4163 = vmatprep.mubr.bf16.mxu0 %v5017_v37  ;;  %v359_v47 = vunpack.c.l.bf16 %v5245_v62  ;;  %s5642_s23 = scalar_lea.vmem %s5806_s3, %s3526_s28 }
 0x12f   : > { %v943_v2 = vpop.f32.mrf.mxu1  ;;  %v1298_v63 = vpop.f32.mrf.mxu0 }
 0x130   : > { %v5342_v3 = vadd.f32 %v3873_v50, %v952_v1  ;;  %v944_v34 = vadd.f32 %v943_v2, %v5214_v46  ;;  %v361_v46 = vunpack.c.l.bf16 %v307_v13  ;;  %v5932_v1 = vld [vmem:[#allocation3_spill] sm:$0xff] }
 0x131   : > { %v3826_v55 = vpop.f32.mrf.mxu1  ;;  %v3874_v12 = vpop.f32.mrf.mxu0 }
 0x132   : > { %v5345_v58 = vadd.f32 %v1298_v63, %v944_v34  ;;  %v955_v17 = vadd.f32 %v3826_v55, %v5216_v43  ;;  %v2452_v22 = vrot.slane %v361_v46, 1  ;;  %v5933_v63 = vld [vmem:[#allocation2_spill] sm:$0xff] }
 0x133   : > { %v946_v33 = vpop.f32.mrf.mxu1  ;;  %v1301_v16 = vpop.f32.mrf.mxu0  ;;  %v5934_v34 = vld [vmem:[#allocation6_spill] sm:$0xff] }
 0x134   : > { %v5350_v6 = vadd.f32 %v3874_v12, %v955_v17  ;;  %v947_v37 = vadd.f32 %v946_v33, %v5218_v51  ;;  %v2449_v51 = vrot.slane %v359_v47, 1  ;;  %v2453_v53 = vsel %vm442_vm0, %v2450_v38, %v2452_v22 }
 0x135   : > { %v3829_v20 = vpop.f32.mrf.mxu1  ;;  %v3877_v35 = vpop.f32.mrf.mxu0  ;;  %4116 = vmatmul.mubr.bf16.gmra.mxu1 %v5922_v59  ;;  %4164 = vmatmul.mubr.bf16.gmra.mxu0 %v4909_v10  ;;  %v2715_v59 = vrot.slane %v359_v47, 2 }
 0x136   : > { %v5356_v31 = vadd.f32 %v1301_v16, %v947_v37  ;;  %v968_v43 = vadd.f32 %v3829_v20, %v5220_v27  ;;  %4119 = vmatprep.mubr.bf16.mxu1 %v4764_v61  ;;  %4167 = vmatprep.mubr.bf16.mxu0 %v5034_v25  ;;  %v2718_v61 = vrot.slane %v361_v46, 2 }
 0x137   : > { %v959_v36 = vpop.f32.mrf.mxu1  ;;  %v1314_v9 = vpop.f32.mrf.mxu0  ;;  %v2717_v50 = vsel %vm1006_vm1, %v2715_v59, %v2716_v41  ;;  %v5938_v59 = vld [vmem:[#allocation8_spill] sm:$0xff] }
 0x138   : > { %v5361_v26 = vadd.f32 %v3877_v35, %v968_v43  ;;  %v960_v62 = vadd.f32 %v959_v36, %v5226_v30  ;;  %v2451_v30 = vsel %vm442_vm0, %v2449_v51, %v2450_v38  ;;  %v5937_v36 = vld [vmem:[#allocation7_spill] sm:$0xff] }
 0x139   : > { %v3830_v10 = vpop.f32.mrf.mxu1  ;;  %v3878_v44 = vpop.f32.mrf.mxu0  ;;  %v2456_v16 = vpack.c.bf16 %v2453_v53, %v2451_v30 }
 0x13a   : > { %v5364_v49 = vadd.f32 %v1314_v9, %v960_v62  ;;  %v971_v27 = vadd.f32 %v3830_v10, %v5230_v60 }
 0x13b   : > { %v962_v52 = vpop.f32.mrf.mxu1  ;;  %v1317_v25 = vpop.f32.mrf.mxu0 }
 0x13c   : > { %v5367_v21 = vadd.f32 %v3878_v44, %v971_v27  ;;  %v963_v18 = vadd.f32 %v962_v52, %v5234_v0  ;;  %v2719_v0 = vsel %vm1006_vm1, %v2716_v41, %v2718_v61  ;;  %v5939_v27 = vld [vmem:[#allocation9_spill] sm:$0xff] }
 0x13d   : > { %v3833_v57 = vpop.f32.mrf.mxu1  ;;  %v3881_v42 = vpop.f32.mrf.mxu0  ;;  %4120 = vmatmul.mubr.bf16.gmra.mxu1 %v4792_v48  ;;  %4168 = vmatmul.mubr.bf16.gmra.mxu0 %v4929_v5  ;;  %v5935_v5 = vld [vmem:[#allocation4_spill] sm:$0xff]  ;;  %v2722_v47 = vpack.c.bf16 %v2719_v0, %v2717_v50 }
 0x13e   : > { %v5375_v60 = vadd.f32 %v1317_v25, %v963_v18  ;;  %v984_v2 = vadd.f32 %v3833_v57, %v5932_v1  ;;  %4123 = vmatprep.mubr.bf16.mxu1 %v5933_v63  ;;  %4171 = vmatprep.mubr.bf16.mxu0 %v5934_v34  ;;  %v5940_v57 = vld [vmem:[#allocation10_spill] sm:$0xff]  ;;  %v5941_v1 = vld [vmem:[#allocation11_spill] sm:$0xff] }
 0x13f   : > { %v975_v55 = vpop.f32.mrf.mxu1  ;;  %v1330_v48 = vpop.f32.mrf.mxu0 }
 0x140   : > { %v5381_v12 = vadd.f32 %v3881_v42, %v984_v2  ;;  %v976_v17 = vadd.f32 %v975_v55, %v5935_v5 }
 0x141   : > { %v3834_v13 = vpop.f32.mrf.mxu1  ;;  %v3882_v33 = vpop.f32.mrf.mxu0 }
 0x142   : > { %v5384_v37 = vadd.f32 %v1330_v48, %v976_v17  ;;  %v987_v20 = vadd.f32 %v3834_v13, %v5936_v4 }
 0x143   : > { %v978_v35 = vpop.f32.mrf.mxu1  ;;  %v1333_v46 = vpop.f32.mrf.mxu0 }
 0x144   : > { %v5387_v43 = vadd.f32 %v3882_v33, %v987_v20  ;;  %v979_v9 = vadd.f32 %v978_v35, %v5937_v36 }
 0x145   : > { %v3837_v51 = vpop.f32.mrf.mxu1  ;;  %v3885_v62 = vpop.f32.mrf.mxu0  ;;  %4124 = vmatmul.mubr.bf16.gmra.mxu1 %v2456_v16  ;;  %4172 = vmatmul.mubr.bf16.gmra.mxu0 %v2722_v47 }
 0x146   : > { %v5390_v38 = vadd.f32 %v1333_v46, %v979_v9  ;;  %v1000_v41 = vadd.f32 %v3837_v51, %v5938_v59 }
 0x147   : > { %v991_v10 = vpop.f32.mrf.mxu1  ;;  %v1346_v44 = vpop.f32.mrf.mxu0 }
 0x148   : > { %v5393_v22 = vadd.f32 %v3885_v62, %v1000_v41  ;;  %v992_v61 = vadd.f32 %v991_v10, %v5939_v27 }
 0x149   : > { %v3838_v52 = vpop.f32.mrf.mxu1  ;;  %v3886_v25 = vpop.f32.mrf.mxu0 }
 0x14a   : > { %v5396_v18 = vadd.f32 %v1346_v44, %v992_v61  ;;  %v1003_v42 = vadd.f32 %v3838_v52, %v5940_v57 }
 0x14b   : > { %v994_v30 = vpop.f32.mrf.mxu1  ;;  %v1349_v53 = vpop.f32.mrf.mxu0 }
 0x14c   : > { %v5399_v50 = vadd.f32 %v3886_v25, %v1003_v42  ;;  %v995_v2 = vadd.f32 %v994_v30, %v5941_v1 }
 0x14d   : > { %v3905_v63 = vpop.f32.mrf.mxu1  ;;  %v3953_v34 = vpop.f32.mrf.mxu0 }
 0x14e   : > { %v5402_v0 = vadd.f32 %v1349_v53, %v995_v2  ;;  %v1622_v55 = vadd.f32 %v3905_v63, %v5283_v45 }
 0x14f   : > { %v1493_v48 = vpop.f32.mrf.mxu1  ;;  %v1762_v5 = vpop.f32.mrf.mxu0 }
 0x150   : > { %v5405_v17 = vadd.f32 %v3953_v34, %v1622_v55  ;;  %v1620_v13 = vadd.f32 %v1493_v48, %v5285_v24 }
 0x151   : > { %v3906_v33 = vpop.f32.mrf.mxu1  ;;  %v3954_v16 = vpop.f32.mrf.mxu0 }
 0x152   : > { %v5408_v47 = vadd.f32 %v1762_v5, %v1620_v13  ;;  %v1623_v4 = vadd.f32 %v3906_v33, %v5287_v56 }
 0x153   : > { %v1496_v20 = vpop.f32.mrf.mxu1  ;;  %v1765_v35 = vpop.f32.mrf.mxu0 }
 0x154   : > { %v5411_v46 = vadd.f32 %v3954_v16, %v1623_v4  ;;  %v1621_v36 = vadd.f32 %v1496_v20, %v5291_v28 }
 0x155   : > { %v3909_v9 = vpop.f32.mrf.mxu1  ;;  %v3957_v45 = vpop.f32.mrf.mxu0 }
 0x156   : > { %v5414_v51 = vadd.f32 %v1765_v35, %v1621_v36  ;;  %v1626_v62 = vadd.f32 %v3909_v9, %v5295_v54 }
 0x157   : > { %v1509_v59 = vpop.f32.mrf.mxu1  ;;  %v1778_v24 = vpop.f32.mrf.mxu0 }
 0x158   : > { %v5417_v41 = vadd.f32 %v3957_v45, %v1626_v62  ;;  %v1624_v10 = vadd.f32 %v1509_v59, %v5297_v7 }
 0x159   : > { %v3910_v44 = vpop.f32.mrf.mxu1  ;;  %v3958_v56 = vpop.f32.mrf.mxu0 }
 0x15a   : > { %v5420_v27 = vadd.f32 %v1778_v24, %v1624_v10  ;;  %v1627_v61 = vadd.f32 %v3910_v44, %v5300_v39 }
 0x15b   : > { %v1512_v52 = vpop.f32.mrf.mxu1  ;;  %v1781_v28 = vpop.f32.mrf.mxu0 }
 0x15c   : > { %v5423_v25 = vadd.f32 %v3958_v56, %v1627_v61  ;;  %v1625_v57 = vadd.f32 %v1512_v52, %v5305_v14 }
 0x15d   : > { %v3913_v42 = vpop.f32.mrf.mxu1  ;;  %v3961_v54 = vpop.f32.mrf.mxu0 }
 0x15e   : > { %v5426_v30 = vadd.f32 %v1781_v28, %v1625_v57  ;;  %v1630_v53 = vadd.f32 %v3913_v42, %v5310_v32 }
 0x15f   : > { %v1525_v1 = vpop.f32.mrf.mxu1  ;;  %v1794_v7 = vpop.f32.mrf.mxu0 }
 0x160   : > { %v5429_v2 = vadd.f32 %v3961_v54, %v1630_v53  ;;  %v1628_v63 = vadd.f32 %v1525_v1, %v5313_v29 }
 0x161   : > { %v3914_v34 = vpop.f32.mrf.mxu1  ;;  %v3962_v39 = vpop.f32.mrf.mxu0 }
 0x162   : > { %v5432_v55 = vadd.f32 %v1794_v7, %v1628_v63  ;;  %v1631_v48 = vadd.f32 %v3914_v34, %v5316_v8 }
 0x163   : > { %v1528_v5 = vpop.f32.mrf.mxu1  ;;  %v1797_v14 = vpop.f32.mrf.mxu0 }
 0x164   : > { %v5435_v13 = vadd.f32 %v3962_v39, %v1631_v48  ;;  %v1629_v33 = vadd.f32 %v1528_v5, %v5321_v19 }
 0x165   : > { %v3917_v16 = vpop.f32.mrf.mxu1  ;;  %v3965_v32 = vpop.f32.mrf.mxu0 }
 0x166   : > { %v5438_v4 = vadd.f32 %v1797_v14, %v1629_v33  ;;  %v1634_v20 = vadd.f32 %v3917_v16, %v5326_v40 }
 0x167   : > { %v1541_v35 = vpop.f32.mrf.mxu1  ;;  %v1810_v29 = vpop.f32.mrf.mxu0 }
 0x168   : > { %v5441_v36 = vadd.f32 %v3965_v32, %v1634_v20  ;;  %v1632_v9 = vadd.f32 %v1541_v35, %v5329_v11 }
 0x169   : > { %v3918_v45 = vpop.f32.mrf.mxu1  ;;  %v3966_v8 = vpop.f32.mrf.mxu0 }
 0x16a   : > { %v5444_v62 = vadd.f32 %v1810_v29, %v1632_v9  ;;  %v1635_v59 = vadd.f32 %v3918_v45, %v5332_v23 }
 0x16b   : > { %v1544_v24 = vpop.f32.mrf.mxu1  ;;  %v1813_v19 = vpop.f32.mrf.mxu0 }
 0x16c   : > { %v5447_v10 = vadd.f32 %v3966_v8, %v1635_v59  ;;  %v1633_v44 = vadd.f32 %v1544_v24, %v5337_v15 }
 0x16d   : > { %v3921_v56 = vpop.f32.mrf.mxu1  ;;  %v3969_v40 = vpop.f32.mrf.mxu0 }
 0x16e   : > { %v5450_v61 = vadd.f32 %v1813_v19, %v1633_v44  ;;  %v1638_v52 = vadd.f32 %v3921_v56, %v5342_v3 }
 0x16f   : > { %v1557_v28 = vpop.f32.mrf.mxu1  ;;  %v1826_v11 = vpop.f32.mrf.mxu0 }
 0x170   : > { %v5453_v57 = vadd.f32 %v3969_v40, %v1638_v52  ;;  %v1636_v42 = vadd.f32 %v1557_v28, %v5345_v58 }
 0x171   : > { %v3922_v54 = vpop.f32.mrf.mxu1  ;;  %v3970_v23 = vpop.f32.mrf.mxu0 }
 0x172   : > { %v5456_v53 = vadd.f32 %v1826_v11, %v1636_v42  ;;  %v1639_v1 = vadd.f32 %v3922_v54, %v5350_v6 }
 0x173   : > { %v1560_v7 = vpop.f32.mrf.mxu1  ;;  %v1829_v15 = vpop.f32.mrf.mxu0 }
 0x174   : > { %v5459_v63 = vadd.f32 %v3970_v23, %v1639_v1  ;;  %v1637_v34 = vadd.f32 %v1560_v7, %v5356_v31 }
 0x175   : > { %v3925_v39 = vpop.f32.mrf.mxu1  ;;  %v3973_v3 = vpop.f32.mrf.mxu0 }
 0x176   : > { %v5462_v48 = vadd.f32 %v1829_v15, %v1637_v34  ;;  %v1642_v5 = vadd.f32 %v3925_v39, %v5361_v26 }
 0x177   : > { %v1573_v14 = vpop.f32.mrf.mxu1  ;;  %v1842_v58 = vpop.f32.mrf.mxu0 }
 0x178   : > { %5942 = vst [vmem:[#allocation3_spill] sm:$0xff] %v5462_v48  ;;  %v5465_v33 = vadd.f32 %v3973_v3, %v1642_v5  ;;  %v1640_v16 = vadd.f32 %v1573_v14, %v5364_v49 }
 0x179   : > { %v3926_v32 = vpop.f32.mrf.mxu1  ;;  %v3974_v6 = vpop.f32.mrf.mxu0 }
 0x17a   : > { %5943 = vst [vmem:[#allocation2_spill] sm:$0xff] %v5465_v33  ;;  %v5468_v20 = vadd.f32 %v1842_v58, %v1640_v16  ;;  %v1643_v35 = vadd.f32 %v3926_v32, %v5367_v21 }
 0x17b   : > { %v1576_v29 = vpop.f32.mrf.mxu1  ;;  %v1845_v31 = vpop.f32.mrf.mxu0 }
 0x17c   : > { %5944 = vst [vmem:[#allocation6_spill] sm:$0xff] %v5468_v20  ;;  %v5471_v9 = vadd.f32 %v3974_v6, %v1643_v35  ;;  %v1641_v45 = vadd.f32 %v1576_v29, %v5375_v60 }
 0x17d   : > { %v3929_v8 = vpop.f32.mrf.mxu1  ;;  %v3977_v26 = vpop.f32.mrf.mxu0 }
 0x17e   : > { %5945 = vst [vmem:[#allocation4_spill] sm:$0xff] %v5471_v9  ;;  %v5474_v59 = vadd.f32 %v1845_v31, %v1641_v45  ;;  %v1646_v24 = vadd.f32 %v3929_v8, %v5381_v12 }
 0x17f   : > { %v1589_v19 = vpop.f32.mrf.mxu1  ;;  %v1858_v49 = vpop.f32.mrf.mxu0 }
 0x180   : > { %5946 = vst [vmem:[#allocation5_spill] sm:$0xff] %v5474_v59  ;;  %v5477_v44 = vadd.f32 %v3977_v26, %v1646_v24  ;;  %v1644_v56 = vadd.f32 %v1589_v19, %v5384_v37 }
 0x181   : > { %v3930_v40 = vpop.f32.mrf.mxu1  ;;  %v3978_v21 = vpop.f32.mrf.mxu0 }
 0x182   : > { %5947 = vst [vmem:[#allocation7_spill] sm:$0xff] %v5477_v44  ;;  %v5480_v52 = vadd.f32 %v1858_v49, %v1644_v56  ;;  %v1647_v28 = vadd.f32 %v3930_v40, %v5387_v43 }
 0x183   : > { %v1592_v11 = vpop.f32.mrf.mxu1  ;;  %v1861_v60 = vpop.f32.mrf.mxu0 }
 0x184   : > { %5948 = vst [vmem:[#allocation8_spill] sm:$0xff] %v5480_v52  ;;  %v5483_v42 = vadd.f32 %v3978_v21, %v1647_v28  ;;  %v1645_v54 = vadd.f32 %v1592_v11, %v5390_v38 }
 0x185   : > { %v3933_v23 = vpop.f32.mrf.mxu1  ;;  %v3981_v12 = vpop.f32.mrf.mxu0 }
 0x186   : > { %5949 = vst [vmem:[#allocation9_spill] sm:$0xff] %v5483_v42  ;;  %v5486_v1 = vadd.f32 %v1861_v60, %v1645_v54  ;;  %v1650_v7 = vadd.f32 %v3933_v23, %v5393_v22 }
 0x187   : > { %v1605_v15 = vpop.f32.mrf.mxu1  ;;  %v1874_v37 = vpop.f32.mrf.mxu0 }
 0x188   : > { %5950 = vst [vmem:[#allocation10_spill] sm:$0xff] %v5486_v1  ;;  %v5489_v34 = vadd.f32 %v3981_v12, %v1650_v7  ;;  %v1648_v39 = vadd.f32 %v1605_v15, %v5396_v18 }
 0x189   : > { %v3934_v3 = vpop.f32.mrf.mxu1  ;;  %v3982_v43 = vpop.f32.mrf.mxu0 }
 0x18a   : > { %5951 = vst [vmem:[#allocation11_spill] sm:$0xff] %v5489_v34  ;;  %v5492_v5 = vadd.f32 %v1874_v37, %v1648_v39  ;;  %v1651_v14 = vadd.f32 %v3934_v3, %v5399_v50 }
 0x18b   : > { %v1608_v58 = vpop.f32.mrf.mxu1  ;;  %v1877_v38 = vpop.f32.mrf.mxu0 }
 0x18c   : > { %5952 = vst [vmem:[#allocation12_spill] sm:$0xff] %v5492_v5  ;;  %v5495_v16 = vadd.f32 %v3982_v43, %v1651_v14  ;;  %v1649_v32 = vadd.f32 %v1608_v58, %v5402_v0 }
 0x18d   : > { %v4001_v6 = vpop.f32.mrf.mxu1  ;;  %v5498_v22 = vpop.f32.mrf.mxu0 }
 0x18e   : > { %5953 = vst [vmem:[#allocation13_spill] sm:$0xff] %v5495_v16  ;;  %v5500_v35 = vadd.f32 %v1877_v38, %v1649_v32 }
 0x18f   : > { %v2028_v29 = vpop.f32.mrf.mxu1  ;;  %v5502_v31 = vpop.f32.mrf.mxu0 }
 0x190   : > { %5954 = vst [vmem:[#allocation14_spill] sm:$0xff] %v5500_v35 }
 0x191   : > { %v5504_v18 = vpop.f32.mrf.mxu1  ;;  %v5506_v45 = vpop.f32.mrf.mxu0 }
 0x193   : > { %v2031_v8 = vpop.f32.mrf.mxu1  ;;  %v5508_v50 = vpop.f32.mrf.mxu0 }
 0x195   : > { %v5510_v26 = vpop.f32.mrf.mxu1  ;;  %v5512_v24 = vpop.f32.mrf.mxu0 }
 0x197   : > { %v5514_v0 = vpop.f32.mrf.mxu1  ;;  %v5516_v19 = vpop.f32.mrf.mxu0 }
 0x199   : > { %v5518_v49 = vpop.f32.mrf.mxu1  ;;  %v5520_v56 = vpop.f32.mrf.mxu0 }
 0x19b   : > { %v5522_v40 = vpop.f32.mrf.mxu1  ;;  %v5524_v21 = vpop.f32.mrf.mxu0 }
 0x19d   : > { %v5526_v28 = vpop.f32.mrf.mxu1  ;;  %v5528_v11 = vpop.f32.mrf.mxu0 }
 0x19f   : > { %v5530_v60 = vpop.f32.mrf.mxu1  ;;  %v5532_v54 = vpop.f32.mrf.mxu0 }
 0x1a1   : > { %v5534_v23 = vpop.f32.mrf.mxu1  ;;  %v5536_v12 = vpop.f32.mrf.mxu0 }
 0x1a3   : > { %v5538_v7 = vpop.f32.mrf.mxu1  ;;  %v5540_v15 = vpop.f32.mrf.mxu0 }
 0x1a5   : > { %v5542_v37 = vpop.f32.mrf.mxu1  ;;  %v5544_v39 = vpop.f32.mrf.mxu0 }
 0x1a7   : > { %v5546_v3 = vpop.f32.mrf.mxu1  ;;  %v5548_v43 = vpop.f32.mrf.mxu0 }
 0x1a9   : > { %v5550_v14 = vpop.f32.mrf.mxu1  ;;  %v5552_v58 = vpop.f32.mrf.mxu0 }
 0x1ab   : > { %v5554_v38 = vpop.f32.mrf.mxu1  ;;  %v5556_v32 = vpop.f32.mrf.mxu0 }
 0x1ad   : > { %v5558_v35 = vpop.f32.mrf.mxu1  ;;  %v5560_v16 = vpop.f32.mrf.mxu0 }
 0x1ae   : > { %5955 = vst [vmem:[#allocation15_spill] sm:$0xff] %v5560_v16 }
 0x1af   : > { %v5562_v5 = vpop.f32.mrf.mxu1  ;;  %v5564_v34 = vpop.f32.mrf.mxu0 }
 0x1b0   : > { %5956 = vst [vmem:[#allocation16_spill] sm:$0xff] %v5564_v34 }
 0x1b1   : > { %v5566_v1 = vpop.f32.mrf.mxu1  ;;  %v5568_v42 = vpop.f32.mrf.mxu0 }
 0x1b2   : > { %5957 = vst [vmem:[#allocation17_spill] sm:$0xff] %v5566_v1  ;;  %5958 = vst [vmem:[#allocation18_spill] sm:$0xff] %v5568_v42 }
 0x1b3   : > { %v5570_v52 = vpop.f32.mrf.mxu1  ;;  %v5572_v44 = vpop.f32.mrf.mxu0 }
 0x1b4   : > { %5959 = vst [vmem:[#allocation19_spill] sm:$0xff] %v5570_v52  ;;  %5960 = vst [vmem:[#allocation20_spill] sm:$0xff] %v5572_v44 }
 0x1b5   : > { %v5574_v59 = vpop.f32.mrf.mxu1  ;;  %v5576_v9 = vpop.f32.mrf.mxu0 }
 0x1b6   : > { %5961 = vst [vmem:[#allocation21_spill] sm:$0xff] %v5574_v59  ;;  %5962 = vst [vmem:[#allocation22_spill] sm:$0xff] %v5576_v9 }
 0x1b7   : > { %v5578_v20 = vpop.f32.mrf.mxu1  ;;  %v5580_v33 = vpop.f32.mrf.mxu0 }
 0x1b8   : > { %5963 = vst [vmem:[#allocation23_spill] sm:$0xff] %v5578_v20  ;;  %5964 = vst [vmem:[#allocation24_spill] sm:$0xff] %v5580_v33 }
 0x1b9   : > { %v5582_v16 = vpop.f32.mrf.mxu1  ;;  %v5584_v48 = vpop.f32.mrf.mxu0 }
 0x1ba   : > { %5965 = vst [vmem:[#allocation25_spill] sm:$0xff] %v5582_v16  ;;  %5966 = vst [vmem:[#allocation26_spill] sm:$0xff] %v5584_v48 }
 0x1bb   : > { %v5586_v34 = vpop.f32.mrf.mxu1  ;;  %v5588_v1 = vpop.f32.mrf.mxu0 }
 0x1bc   : > { %5967 = vst [vmem:[#allocation27_spill] sm:$0xff] %v5586_v34  ;;  %5968 = vst [vmem:[#allocation28_spill] sm:$0xff] %v5588_v1 }
 0x1bd   : > { %v5590_v42 = vpop.f32.mrf.mxu1  ;;  %v5592_v52 = vpop.f32.mrf.mxu0 }
 0x1be   : > { %5969 = vst [vmem:[#allocation29_spill] sm:$0xff] %v5590_v42  ;;  %5970 = vst [vmem:[#allocation30_spill] sm:$0xff] %v5592_v52 }
 0x1bf   : > { %v5594_v44 = vpop.f32.mrf.mxu1  ;;  %v5596_v59 = vpop.f32.mrf.mxu0 }
 0x1c0   : > { %5971 = vst [vmem:[#allocation31_spill] sm:$0xff] %v5594_v44  ;;  %5972 = vst [vmem:[#allocation32_spill] sm:$0xff] %v5596_v59  ;;  %v2157_v44 = vadd.f32 %v4001_v6, %v5405_v17 }
 0x1c1   : > { %v5598_v9 = vpop.f32.mrf.mxu1  ;;  %v5600_v20 = vpop.f32.mrf.mxu0 }
 0x1c2   : > { %5973 = vst [vmem:[#allocation33_spill] sm:$0xff] %v5598_v9  ;;  %5974 = vst [vmem:[#allocation34_spill] sm:$0xff] %v5600_v20  ;;  %v2155_v20 = vadd.f32 %v2028_v29, %v5408_v47  ;;  %v5633_v47 = vld [vmem:[%s5805_s2] ss:$0 sm:$0xff] }
 0x1c3   : > { %v5602_v33 = vpop.f32.mrf.mxu1  ;;  %v5604_v16 = vpop.f32.mrf.mxu0 }
 0x1c4   : > { %5975 = vst [vmem:[#allocation35_spill] sm:$0xff] %v5602_v33  ;;  %5976 = vst [vmem:[#allocation36_spill] sm:$0xff] %v5604_v16  ;;  %v2414_v17 = vadd.f32 %v5502_v31, %v2155_v20 }
 0x1c5   : > { %v5606_v48 = vpop.f32.mrf.mxu1  ;;  %v5608_v34 = vpop.f32.mrf.mxu0 }
 0x1c6   : > { %5977 = vst [vmem:[#allocation37_spill] sm:$0xff] %v5606_v48  ;;  %5978 = vst [vmem:[#allocation38_spill] sm:$0xff] %v5608_v34  ;;  %v2416_v48 = vadd.f32 %v5498_v22, %v2157_v44  ;;  %v2158_v34 = vadd.f32 %v5504_v18, %v5411_v46  ;;  %v2161_v46 = vadd.f32 %v5510_v26, %v5417_v41 }
 0x1c7   : > { %v5610_v42 = vpop.f32.mrf.mxu1  ;;  %v5612_v52 = vpop.f32.mrf.mxu0 }
 0x1c8   : > { %5979 = vst [vmem:[#allocation39_spill] sm:$0xff] %v5610_v42  ;;  %5980 = vst [vmem:[#allocation40_spill] sm:$0xff] %v5612_v52  ;;  %v2156_v42 = vadd.f32 %v2031_v8, %v5414_v51  ;;  %v2417_v44 = vadd.f32 %v5506_v45, %v2158_v34 }
 0x1c9   : > { %v5615_v59 = vpop.f32.mrf.mxu1  ;;  %v5617_v9 = vpop.f32.mrf.mxu0 }
 0x1ca   : > { %v2415_v18 = vadd.f32 %v5508_v50, %v2156_v42  ;;  %v2420_v42 = vadd.f32 %v5512_v24, %v2161_v46 }
 0x1cb   : > { %v5620_v33 = vpop.f32.mrf.mxu1  ;;  %v5622_v16 = vpop.f32.mrf.mxu0 }
 0x1cc   : > { %5981 = vst [vmem:[#allocation41_spill] sm:$0xff] %v5622_v16 }
 0x1cd   : > { %v4097_v52 = vpop.f32.mrf.mxu1  ;;  %v4145_v1 = vpop.f32.mrf.mxu0 }
 0x1ce   : > { %v2685_v6 = vadd.f32 %v4097_v52, %v2416_v48  ;;  %v2159_v52 = vadd.f32 %v5514_v0, %v5420_v27  ;;  %v2160_v27 = vadd.f32 %v5522_v40, %v5426_v30 }
 0x1cf   : > { %v2556_v29 = vpop.f32.mrf.mxu1  ;;  %v2822_v16 = vpop.f32.mrf.mxu0 }
 0x1d0   : > { %v2951_v22 = vadd.f32 %v4145_v1, %v2685_v6  ;;  %v2683_v51 = vadd.f32 %v2556_v29, %v2414_v17  ;;  %v2162_v17 = vadd.f32 %v5518_v49, %v5423_v25  ;;  %v2418_v29 = vadd.f32 %v5516_v19, %v2159_v52 }
 0x1d1   : > { %v4098_v48 = vpop.f32.mrf.mxu1  ;;  %v4146_v20 = vpop.f32.mrf.mxu0  ;;  %v2166_v25 = vadd.f32 %v5534_v23, %v5435_v13 }
 0x1d2   : > { %v2990_v34 = vadd.f32 %v5633_v47, %v2951_v22  ;;  %v2949_v31 = vadd.f32 %v2822_v16, %v2683_v51  ;;  %v2686_v41 = vadd.f32 %v4098_v48, %v2417_v44  ;;  %v2165_v16 = vadd.f32 %v5526_v28, %v5429_v2 }
 0x1d3   : > { %v2559_v1 = vpop.f32.mrf.mxu1  ;;  %v2825_v45 = vpop.f32.mrf.mxu0  ;;  %v2163_v22 = vadd.f32 %v5530_v60, %v5432_v55  ;;  %v2421_v19 = vadd.f32 %v5520_v56, %v2162_v17  ;;  %v2419_v51 = vadd.f32 %v5524_v21, %v2160_v27  ;;  %v2164_v56 = vadd.f32 %v5538_v7, %v5438_v4 }
 0x1d4   : > { %3022 = vst [vmem:[%s5642_s23 + $0x10] sm:$0xff] %v2990_v34  ;;  %v2988_v8 = vadd.f32 %v5633_v47, %v2949_v31  ;;  %v2952_v50 = vadd.f32 %v4146_v20, %v2686_v41  ;;  %v2684_v26 = vadd.f32 %v2559_v1, %v2415_v18  ;;  %v2424_v18 = vadd.f32 %v5528_v11, %v2165_v16 }
 0x1d5   : > { %v4101_v0 = vpop.f32.mrf.mxu1  ;;  %v4149_v6 = vpop.f32.mrf.mxu0  ;;  %v2422_v31 = vadd.f32 %v5532_v54, %v2163_v22  ;;  %v2425_v41 = vadd.f32 %v5536_v12, %v2166_v25  ;;  %v2167_v54 = vadd.f32 %v5546_v3, %v5444_v62 }
 0x1d6   : > { %3020 = vst [vmem:[%s5642_s23] sm:$0xff] %v2988_v8  ;;  %v2991_v24 = vadd.f32 %v5633_v47, %v2952_v50  ;;  %v2950_v44 = vadd.f32 %v2825_v45, %v2684_v26  ;;  %v2689_v46 = vadd.f32 %v4101_v0, %v2420_v42  ;;  %v3089_v48 = vmul.f32 %v2988_v8, %v2988_v8 }
 0x1d7   : > { %v2572_v30 = vpop.f32.mrf.mxu1  ;;  %v2838_v49 = vpop.f32.mrf.mxu0  ;;  %v3091_v45 = vmul.f32 %v2990_v34, %v2990_v34  ;;  %v2169_v26 = vadd.f32 %v5542_v37, %v5441_v36 }
 0x1d8   : > { %3023 = vst [vmem:[%s5642_s23 + $0x18] sm:$0xff] %v2991_v24  ;;  %v2989_v2 = vadd.f32 %v5633_v47, %v2950_v44  ;;  %v2955_v40 = vadd.f32 %v4149_v6, %v2689_v46  ;;  %v2687_v28 = vadd.f32 %v2572_v30, %v2418_v29  ;;  %v3092_v7 = vmul.f32 %v2991_v24, %v2991_v24 }
 0x1d9   : > { %v4102_v20 = vpop.f32.mrf.mxu1  ;;  %v4150_v55 = vpop.f32.mrf.mxu0  ;;  %v2170_v6 = vadd.f32 %v5550_v14, %v5447_v10  ;;  %v2423_v30 = vadd.f32 %v5540_v15, %v2164_v56 }
 0x1da   : > { %3021 = vst [vmem:[%s5642_s23 + $0x8] sm:$0xff] %v2989_v2  ;;  %v3052_v60 = vadd.f32 %v2989_v2, %v2988_v8  ;;  %v3090_v13 = vmul.f32 %v2989_v2, %v2989_v2  ;;  %v2994_v23 = vadd.f32 %v5633_v47, %v2955_v40  ;;  %v2953_v52 = vadd.f32 %v2838_v49, %v2687_v28 }
 0x1db   : > { %v2690_v21 = vadd.f32 %v4102_v20, %v2421_v19  ;;  %v2575_v11 = vpop.f32.mrf.mxu1  ;;  %v2841_v1 = vpop.f32.mrf.mxu0  ;;  %v2429_v20 = vadd.f32 %v5552_v58, %v2170_v6 }
 0x1dc   : > { %v3053_v42 = vadd.f32 %v3052_v60, %v2990_v34  ;;  %v3121_v50 = vadd.f32 %v3090_v13, %v3089_v48  ;;  %3026 = vst [vmem:[%s5642_s23 + $0x30] sm:$0xff] %v2994_v23  ;;  %v2992_v8 = vadd.f32 %v5633_v47, %v2953_v52  ;;  %v2688_v17 = vadd.f32 %v2575_v11, %v2419_v51 }
 0x1dd   : > { %v2956_v12 = vadd.f32 %v4150_v55, %v2690_v21  ;;  %v4105_v27 = vpop.f32.mrf.mxu1  ;;  %v4153_v4 = vpop.f32.mrf.mxu0  ;;  %v2428_v51 = vadd.f32 %v5544_v39, %v2169_v26  ;;  %v2173_v21 = vadd.f32 %v5558_v35, %v5453_v57  ;;  %v5982_v26 = vld [vmem:[#allocation17_spill] sm:$0xff] }
 0x1de   : > { %v3122_v16 = vadd.f32 %v3121_v50, %v3091_v45  ;;  %3024 = vst [vmem:[%s5642_s23 + $0x20] sm:$0xff] %v2992_v8  ;;  %v3054_v0 = vadd.f32 %v3053_v42, %v2991_v24  ;;  %v2693_v34 = vadd.f32 %v4105_v27, %v2424_v18  ;;  %v3093_v29 = vmul.f32 %v2992_v8, %v2992_v8  ;;  %v5984_v27 = vld [vmem:[#allocation19_spill] sm:$0xff] }
 0x1df   : > { %v2995_v44 = vadd.f32 %v5633_v47, %v2956_v12  ;;  %v2954_v36 = vadd.f32 %v2841_v1, %v2688_v17  ;;  %v2588_v37 = vpop.f32.mrf.mxu1  ;;  %v2854_v46 = vpop.f32.mrf.mxu0  ;;  %v2168_v24 = vadd.f32 %v5554_v38, %v5450_v61  ;;  %v2426_v18 = vadd.f32 %v5548_v43, %v2167_v54  ;;  %v5983_v17 = vld [vmem:[#allocation3_spill] sm:$0xff] }
 0x1e0   : > { %v3055_v62 = vadd.f32 %v3054_v0, %v2992_v8  ;;  %v3123_v3 = vadd.f32 %v3122_v16, %v3092_v7  ;;  %v2959_v22 = vadd.f32 %v4153_v4, %v2693_v34  ;;  %v2691_v25 = vadd.f32 %v2588_v37, %v2422_v31  ;;  %v5986_v37 = vld [vmem:[#allocation16_spill] sm:$0xff] }
 0x1e1   : > { %3027 = vst [vmem:[%s5642_s23 + $0x38] sm:$0xff] %v2995_v44  ;;  %v2993_v10 = vadd.f32 %v5633_v47, %v2954_v36  ;;  %v4106_v14 = vpop.f32.mrf.mxu1  ;;  %v4154_v49 = vpop.f32.mrf.mxu0  ;;  %v2427_v52 = vadd.f32 %v5556_v32, %v2168_v24  ;;  %v3095_v31 = vmul.f32 %v2994_v23, %v2994_v23  ;;  %v2171_v45 = vadd.f32 %v5562_v5, %v5456_v53 }
 0x1e2   : > { %v3124_v2 = vadd.f32 %v3123_v3, %v3093_v29  ;;  %v2998_v40 = vadd.f32 %v5633_v47, %v2959_v22  ;;  %v2957_v28 = vadd.f32 %v2854_v46, %v2691_v25  ;;  %v2694_v19 = vadd.f32 %v4106_v14, %v2425_v41 }
 0x1e3   : > { %3025 = vst [vmem:[%s5642_s23 + $0x28] sm:$0xff] %v2993_v10  ;;  %v3056_v15 = vadd.f32 %v3055_v62, %v2993_v10  ;;  %v3094_v48 = vmul.f32 %v2993_v10, %v2993_v10  ;;  %v2591_v61 = vpop.f32.mrf.mxu1  ;;  %v2857_v38 = vpop.f32.mrf.mxu0  ;;  %v3096_v42 = vmul.f32 %v2995_v44, %v2995_v44  ;;  %v2174_v54 = vadd.f32 %v5982_v26, %v5459_v63 }
 0x1e4   : > { %3030 = vst [vmem:[%s5642_s23 + $0x50] sm:$0xff] %v2998_v40  ;;  %v2996_v55 = vadd.f32 %v5633_v47, %v2957_v28  ;;  %v2960_v60 = vadd.f32 %v4154_v49, %v2694_v19  ;;  %v2692_v13 = vadd.f32 %v2591_v61, %v2423_v30  ;;  %v2172_v4 = vadd.f32 %v5984_v27, %v5983_v17  ;;  %v5987_v30 = vld [vmem:[#allocation18_spill] sm:$0xff] }
 0x1e5   : > { %v3057_v41 = vadd.f32 %v3056_v15, %v2994_v23  ;;  %v3125_v39 = vadd.f32 %v3124_v2, %v3094_v48  ;;  %v4109_v43 = vpop.f32.mrf.mxu1  ;;  %v4157_v56 = vpop.f32.mrf.mxu0  ;;  %v2430_v46 = vadd.f32 %v5986_v37, %v2171_v45  ;;  %v2433_v24 = vadd.f32 %v5987_v30, %v2174_v54  ;;  %v5988_v2 = vld [vmem:[#allocation20_spill] sm:$0xff]  ;;  %v5989_v61 = vld [vmem:[#allocation2_spill] sm:$0xff] }
 0x1e6   : > { %3028 = vst [vmem:[%s5642_s23 + $0x40] sm:$0xff] %v2996_v55  ;;  %v2999_v11 = vadd.f32 %v5633_v47, %v2960_v60  ;;  %v2958_v58 = vadd.f32 %v2857_v38, %v2692_v13  ;;  %v2697_v1 = vadd.f32 %v4109_v43, %v2428_v51  ;;  %v3097_v16 = vmul.f32 %v2996_v55, %v2996_v55  ;;  %v5990_v38 = vld [vmem:[#allocation21_spill] sm:$0xff] }
 0x1e7   : > { %v3126_v32 = vadd.f32 %v3125_v39, %v3095_v31  ;;  %v3058_v50 = vadd.f32 %v3057_v41, %v2995_v44  ;;  %v2604_v23 = vpop.f32.mrf.mxu1  ;;  %v2870_v8 = vpop.f32.mrf.mxu0  ;;  %v5985_v44 = vld [vmem:[#allocation15_spill] sm:$0xff]  ;;  %v2431_v28 = vadd.f32 %v5988_v2, %v2172_v4  ;;  %v3099_v19 = vmul.f32 %v2998_v40, %v2998_v40  ;;  %v5991_v31 = vld [vmem:[#allocation6_spill] sm:$0xff] }
 0x1e8   : > { %3031 = vst [vmem:[%s5642_s23 + $0x58] sm:$0xff] %v2999_v11  ;;  %v2997_v57 = vadd.f32 %v5633_v47, %v2958_v58  ;;  %v2963_v35 = vadd.f32 %v4157_v56, %v2697_v1  ;;  %v2695_v12 = vadd.f32 %v2604_v23, %v2426_v18  ;;  %v2432_v36 = vadd.f32 %v5985_v44, %v2173_v21  ;;  %v5992_v41 = vld [vmem:[#allocation23_spill] sm:$0xff]  ;;  %v5993_v58 = vld [vmem:[#allocation4_spill] sm:$0xff]  ;;  %v5994_v1 = vld [vmem:[#allocation25_spill] sm:$0xff] }
 0x1e9   : > { %v3059_v7 = vadd.f32 %v3058_v50, %v2996_v55  ;;  %v3127_v53 = vadd.f32 %v3126_v32, %v3096_v42  ;;  %v4110_v5 = vpop.f32.mrf.mxu1  ;;  %v4158_v0 = vpop.f32.mrf.mxu0  ;;  %v2175_v39 = vadd.f32 %v5992_v41, %v5991_v31  ;;  %v2178_v45 = vadd.f32 %v5994_v1, %v5993_v58  ;;  %v5995_v23 = vld [vmem:[#allocation5_spill] sm:$0xff] }
 0x1ea   : > { %3029 = vst [vmem:[%s5642_s23 + $0x48] sm:$0xff] %v2997_v57  ;;  %v3098_v34 = vmul.f32 %v2997_v57, %v2997_v57  ;;  %v3002_v6 = vadd.f32 %v5633_v47, %v2963_v35  ;;  %v2961_v29 = vadd.f32 %v2870_v8, %v2695_v12  ;;  %v2698_v63 = vadd.f32 %v4110_v5, %v2429_v20  ;;  %v5996_v8 = vld [vmem:[#allocation27_spill] sm:$0xff] }
 0x1eb   : > { %v3128_v62 = vadd.f32 %v3127_v53, %v3097_v16  ;;  %v3060_v3 = vadd.f32 %v3059_v7, %v2997_v57  ;;  %v2607_v22 = vpop.f32.mrf.mxu1  ;;  %v2873_v25 = vpop.f32.mrf.mxu0  ;;  %v2177_v20 = vadd.f32 %v5990_v38, %v5989_v61  ;;  %v2176_v26 = vadd.f32 %v5996_v8, %v5995_v23  ;;  %v5997_v16 = vld [vmem:[#allocation22_spill] sm:$0xff] }
 0x1ec   : > { %3034 = vst [vmem:[%s5642_s23 + $0x70] sm:$0xff] %v3002_v6  ;;  %v3000_v10 = vadd.f32 %v5633_v47, %v2961_v29  ;;  %v2964_v14 = vadd.f32 %v4158_v0, %v2698_v63  ;;  %v2696_v49 = vadd.f32 %v2607_v22, %v2427_v52  ;;  %v3100_v52 = vmul.f32 %v2999_v11, %v2999_v11  ;;  %v5998_v63 = vld [vmem:[#allocation24_spill] sm:$0xff]  ;;  %v6007_v8 = vld [vmem:[#allocation30_spill] sm:$0xff] }
 0x1ed   : > { %v3061_v51 = vadd.f32 %v3060_v3, %v2998_v40  ;;  %v3129_v18 = vadd.f32 %v3128_v62, %v3098_v34  ;;  %v4113_v15 = vpop.f32.mrf.mxu1  ;;  %v4161_v48 = vpop.f32.mrf.mxu0  ;;  %v2436_v53 = vadd.f32 %v5997_v16, %v2177_v20  ;;  %v2434_v44 = vadd.f32 %v5998_v63, %v2175_v39  ;;  %v5999_v62 = vld [vmem:[#allocation26_spill] sm:$0xff] }
 0x1ee   : > { %3032 = vst [vmem:[%s5642_s23 + $0x60] sm:$0xff] %v3000_v10  ;;  %v3003_v55 = vadd.f32 %v5633_v47, %v2964_v14  ;;  %v2962_v60 = vadd.f32 %v2873_v25, %v2696_v49  ;;  %v2701_v13 = vadd.f32 %v4113_v15, %v2432_v36  ;;  %v3101_v57 = vmul.f32 %v3000_v10, %v3000_v10  ;;  %v6000_v14 = vld [vmem:[#allocation28_spill] sm:$0xff]  ;;  %v6002_v15 = vld [vmem:[#allocation29_spill] sm:$0xff] }
 0x1ef   : > { %v3130_v43 = vadd.f32 %v3129_v18, %v3099_v19  ;;  %v3062_v56 = vadd.f32 %v3061_v51, %v2999_v11  ;;  %v2620_v40 = vpop.f32.mrf.mxu1  ;;  %v2886_v21 = vpop.f32.mrf.mxu0  ;;  %v2437_v3 = vadd.f32 %v5999_v62, %v2178_v45  ;;  %v3103_v22 = vmul.f32 %v3002_v6, %v3002_v6  ;;  %v6001_v18 = vld [vmem:[#allocation7_spill] sm:$0xff] }
 0x1f0   : > { %3035 = vst [vmem:[%s5642_s23 + $0x78] sm:$0xff] %v3003_v55  ;;  %v3001_v42 = vadd.f32 %v5633_v47, %v2962_v60  ;;  %v2967_v32 = vadd.f32 %v4161_v48, %v2701_v13  ;;  %v2699_v50 = vadd.f32 %v2620_v40, %v2430_v46  ;;  %v2435_v49 = vadd.f32 %v6000_v14, %v2176_v26  ;;  %v6003_v60 = vld [vmem:[#allocation8_spill] sm:$0xff]  ;;  %v6004_v13 = vld [vmem:[#allocation31_spill] sm:$0xff] }
 0x1f1   : > { %v3063_v54 = vadd.f32 %v3062_v56, %v3000_v10  ;;  %v3131_v35 = vadd.f32 %v3130_v43, %v3100_v52  ;;  %v4114_v12 = vpop.f32.mrf.mxu1  ;;  %v4162_v17 = vpop.f32.mrf.mxu0  ;;  %v2181_v48 = vadd.f32 %v6002_v15, %v6001_v18  ;;  %v3104_v61 = vmul.f32 %v3003_v55, %v3003_v55  ;;  %v6005_v43 = vld [vmem:[#allocation9_spill] sm:$0xff] }
 0x1f2   : > { %3033 = vst [vmem:[%s5642_s23 + $0x68] sm:$0xff] %v3001_v42  ;;  %v3102_v11 = vmul.f32 %v3001_v42, %v3001_v42  ;;  %v3006_v27 = vadd.f32 %v5633_v47, %v2967_v32  ;;  %v2965_v4 = vadd.f32 %v2886_v21, %v2699_v50  ;;  %v2702_v7 = vadd.f32 %v4114_v12, %v2433_v24  ;;  %v6006_v56 = vld [vmem:[#allocation33_spill] sm:$0xff] }
 0x1f3   : > { %v3132_v5 = vadd.f32 %v3131_v35, %v3101_v57  ;;  %v3064_v0 = vadd.f32 %v3063_v54, %v3001_v42  ;;  %v2623_v34 = vpop.f32.mrf.mxu1  ;;  %v2889_v29 = vpop.f32.mrf.mxu0  ;;  %v2179_v31 = vadd.f32 %v6004_v13, %v6003_v60  ;;  %v2182_v40 = vadd.f32 %v6006_v56, %v6005_v43  ;;  %v6017_v56 = vld [vmem:[#allocation38_spill] sm:$0xff] }
 0x1f4   : > { %3038 = vst [vmem:[%s5642_s23 + $0x90] sm:$0xff] %v3006_v27  ;;  %v3004_v36 = vadd.f32 %v5633_v47, %v2965_v4  ;;  %v2968_v37 = vadd.f32 %v4162_v17, %v2702_v7  ;;  %v2700_v46 = vadd.f32 %v2623_v34, %v2431_v28  ;;  %v2440_v26 = vadd.f32 %v6007_v8, %v2181_v48  ;;  %v6008_v17 = vld [vmem:[#allocation10_spill] sm:$0xff] }
 0x1f5   : > { %v3065_v25 = vadd.f32 %v3064_v0, %v3002_v6  ;;  %v3133_v30 = vadd.f32 %v3132_v5, %v3102_v11  ;;  %v4117_v24 = vpop.f32.mrf.mxu1  ;;  %v4165_v10 = vpop.f32.mrf.mxu0  ;;  %v6009_v11 = vld [vmem:[#allocation35_spill] sm:$0xff]  ;;  %v6010_v5 = vld [vmem:[#allocation32_spill] sm:$0xff]  ;;  %v3107_v34 = vmul.f32 %v3006_v27, %v3006_v27 }
 0x1f6   : > { %3036 = vst [vmem:[%s5642_s23 + $0x80] sm:$0xff] %v3004_v36  ;;  %v3007_v2 = vadd.f32 %v5633_v47, %v2968_v37  ;;  %v2966_v19 = vadd.f32 %v2889_v29, %v2700_v46  ;;  %v2705_v51 = vadd.f32 %v4117_v24, %v2436_v53  ;;  %v3105_v58 = vmul.f32 %v3004_v36, %v3004_v36  ;;  %v6011_v37 = vld [vmem:[#allocation34_spill] sm:$0xff] }
 0x1f7   : > { %v3134_v28 = vadd.f32 %v3133_v30, %v3103_v22  ;;  %v3066_v38 = vadd.f32 %v3065_v25, %v3003_v55  ;;  %v2636_v20 = vpop.f32.mrf.mxu1  ;;  %v2902_v6 = vpop.f32.mrf.mxu0  ;;  %v2180_v4 = vadd.f32 %v6009_v11, %v6008_v17  ;;  %v2438_v0 = vadd.f32 %v6010_v5, %v2179_v31  ;;  %v6012_v25 = vld [vmem:[#allocation11_spill] sm:$0xff]  ;;  %v6013_v30 = vld [vmem:[#allocation37_spill] sm:$0xff] }
 0x1f8   : > { %3039 = vst [vmem:[%s5642_s23 + $0x98] sm:$0xff] %v3007_v2  ;;  %v3005_v41 = vadd.f32 %v5633_v47, %v2966_v19  ;;  %v2971_v39 = vadd.f32 %v4165_v10, %v2705_v51  ;;  %v2703_v52 = vadd.f32 %v2636_v20, %v2434_v44  ;;  %v2441_v46 = vadd.f32 %v6011_v37, %v2182_v40  ;;  %v6014_v51 = vld [vmem:[#allocation36_spill] sm:$0xff]  ;;  %v6021_v37 = vld [vmem:[#allocation41_spill] sm:$0xff] }
 0x1f9   : > { %v3067_v21 = vadd.f32 %v3066_v38, %v3004_v36  ;;  %v3135_v1 = vadd.f32 %v3134_v28, %v3104_v61  ;;  %v4118_v45 = vpop.f32.mrf.mxu1  ;;  %v4166_v42 = vpop.f32.mrf.mxu0  ;;  %v2185_v24 = vadd.f32 %v6013_v30, %v6012_v25  ;;  %v3108_v10 = vmul.f32 %v3007_v2, %v3007_v2  ;;  %v6015_v28 = vld [vmem:[#allocation12_spill] sm:$0xff]  ;;  %v6016_v38 = vld [vmem:[#allocation39_spill] sm:$0xff] }
 0x1fa   : > { %3037 = vst [vmem:[%s5642_s23 + $0x88] sm:$0xff] %v3005_v41  ;;  %v3106_v55 = vmul.f32 %v3005_v41, %v3005_v41  ;;  %v3010_v32 = vadd.f32 %v5633_v47, %v2971_v39  ;;  %v2969_v50 = vadd.f32 %v2902_v6, %v2703_v52  ;;  %v2706_v23 = vadd.f32 %v4118_v45, %v2437_v3 }
 0x1fb   : > { %v3136_v54 = vadd.f32 %v3135_v1, %v3105_v58  ;;  %v3068_v57 = vadd.f32 %v3067_v21, %v3005_v41  ;;  %v2639_v35 = vpop.f32.mrf.mxu1  ;;  %v2905_v12 = vpop.f32.mrf.mxu0  ;;  %v2439_v18 = vadd.f32 %v6014_v51, %v2180_v4  ;;  %v2183_v20 = vadd.f32 %v6016_v38, %v6015_v28  ;;  %v6020_v4 = vld [vmem:[#allocation40_spill] sm:$0xff] }
 0x1fc   : > { %3042 = vst [vmem:[%s5642_s23 + $0xb0] sm:$0xff] %v3010_v32  ;;  %v3008_v7 = vadd.f32 %v5633_v47, %v2969_v50  ;;  %v2972_v16 = vadd.f32 %v4166_v42, %v2706_v23  ;;  %v2704_v53 = vadd.f32 %v2639_v35, %v2435_v49  ;;  %v2444_v40 = vadd.f32 %v6017_v56, %v2185_v24  ;;  %v6018_v42 = vld [vmem:[#allocation13_spill] sm:$0xff] }
 0x1fd   : > { %v3069_v29 = vadd.f32 %v3068_v57, %v3006_v27  ;;  %v3137_v63 = vadd.f32 %v3136_v54, %v3106_v55  ;;  %v4121_v44 = vpop.f32.mrf.mxu1  ;;  %v4169_v36 = vpop.f32.mrf.mxu0  ;;  %v2186_v55 = vadd.f32 %v5615_v59, %v6018_v42  ;;  %v3111_v57 = vmul.f32 %v3010_v32, %v3010_v32 }
 0x1fe   : > { %3040 = vst [vmem:[%s5642_s23 + $0xa0] sm:$0xff] %v3008_v7  ;;  %v3011_v62 = vadd.f32 %v5633_v47, %v2972_v16  ;;  %v2970_v3 = vadd.f32 %v2905_v12, %v2704_v53  ;;  %v2709_v22 = vadd.f32 %v4121_v44, %v2440_v26  ;;  %v3109_v60 = vmul.f32 %v3008_v7, %v3008_v7  ;;  %v6019_v26 = vld [vmem:[#allocation14_spill] sm:$0xff] }
 0x1ff   : > { %v3138_v14 = vadd.f32 %v3137_v63, %v3107_v34  ;;  %v3070_v49 = vadd.f32 %v3069_v29, %v3007_v2  ;;  %v2652_v19 = vpop.f32.mrf.mxu1  ;;  %v2918_v27 = vpop.f32.mrf.mxu0  ;;  %v2184_v54 = vadd.f32 %v5620_v33, %v6019_v26  ;;  %v2445_v33 = vadd.f32 %v5617_v9, %v2186_v55 }
 0x200   : > { %3043 = vst [vmem:[%s5642_s23 + $0xb8] sm:$0xff] %v3011_v62  ;;  %v3009_v15 = vadd.f32 %v5633_v47, %v2970_v3  ;;  %v2975_v48 = vadd.f32 %v4169_v36, %v2709_v22  ;;  %v2707_v61 = vadd.f32 %v2652_v19, %v2438_v0  ;;  %v3112_v5 = vmul.f32 %v3011_v62, %v3011_v62 }
 0x201   : > { %v3071_v6 = vadd.f32 %v3070_v49, %v3008_v7  ;;  %v3139_v13 = vadd.f32 %v3138_v14, %v3108_v10  ;;  %v4122_v31 = vpop.f32.mrf.mxu1  ;;  %v4170_v41 = vpop.f32.mrf.mxu0  ;;  %v2442_v7 = vadd.f32 %v6020_v4, %v2183_v20 }
 0x202   : > { %3041 = vst [vmem:[%s5642_s23 + $0xa8] sm:$0xff] %v3009_v15  ;;  %v3110_v2 = vmul.f32 %v3009_v15, %v3009_v15  ;;  %v3014_v39 = vadd.f32 %v5633_v47, %v2975_v48  ;;  %v2973_v52 = vadd.f32 %v2918_v27, %v2707_v61  ;;  %v2710_v43 = vadd.f32 %v4122_v31, %v2441_v46 }
 0x203   : > { %v3140_v21 = vadd.f32 %v3139_v13, %v3109_v60  ;;  %v3072_v58 = vadd.f32 %v3071_v6, %v3009_v15  ;;  %v2655_v1 = vpop.f32.mrf.mxu1  ;;  %v2921_v45 = vpop.f32.mrf.mxu0  ;;  %v2443_v46 = vadd.f32 %v6021_v37, %v2184_v54 }
 0x204   : > { %3046 = vst [vmem:[%s5642_s23 + $0xd0] sm:$0xff] %v3014_v39  ;;  %v3012_v50 = vadd.f32 %v5633_v47, %v2973_v52  ;;  %v2976_v23 = vadd.f32 %v4170_v41, %v2710_v43  ;;  %v2708_v8 = vadd.f32 %v2655_v1, %v2439_v18  ;;  %v3115_v48 = vmul.f32 %v3014_v39, %v3014_v39 }
 0x205   : > { %v3073_v35 = vadd.f32 %v3072_v58, %v3010_v32  ;;  %v3141_v12 = vadd.f32 %v3140_v21, %v3110_v2  ;;  %v4125_v17 = vpop.f32.mrf.mxu1  ;;  %v4173_v11 = vpop.f32.mrf.mxu0 }
 0x206   : > { %3044 = vst [vmem:[%s5642_s23 + $0xc0] sm:$0xff] %v3012_v50  ;;  %v3015_v16 = vadd.f32 %v5633_v47, %v2976_v23  ;;  %v2974_v59 = vadd.f32 %v2921_v45, %v2708_v8  ;;  %v2713_v53 = vadd.f32 %v4125_v17, %v2444_v40  ;;  %v3113_v22 = vmul.f32 %v3012_v50, %v3012_v50 }
 0x207   : > { %v3142_v0 = vadd.f32 %v3141_v12, %v3111_v57  ;;  %v3074_v34 = vadd.f32 %v3073_v35, %v3011_v62  ;;  %v2668_v29 = vpop.f32.mrf.mxu1  ;;  %v2934_v63 = vpop.f32.mrf.mxu0 }
 0x208   : > { %3047 = vst [vmem:[%s5642_s23 + $0xd8] sm:$0xff] %v3015_v16  ;;  %v3013_v32 = vadd.f32 %v5633_v47, %v2974_v59  ;;  %v2979_v44 = vadd.f32 %v4173_v11, %v2713_v53  ;;  %v2711_v36 = vadd.f32 %v2668_v29, %v2442_v7  ;;  %v3116_v60 = vmul.f32 %v3015_v16, %v3015_v16 }
 0x209   : > { %v3075_v3 = vadd.f32 %v3074_v34, %v3012_v50  ;;  %v3143_v25 = vadd.f32 %v3142_v0, %v3112_v5  ;;  %v4126_v30 = vpop.f32.mrf.mxu1  ;;  %v4174_v24 = vpop.f32.mrf.mxu0 }
 0x20a   : > { %3045 = vst [vmem:[%s5642_s23 + $0xc8] sm:$0xff] %v3013_v32  ;;  %v3114_v62 = vmul.f32 %v3013_v32, %v3013_v32  ;;  %v3018_v10 = vadd.f32 %v5633_v47, %v2979_v44  ;;  %v2977_v14 = vadd.f32 %v2934_v63, %v2711_v36  ;;  %v2714_v9 = vadd.f32 %v4126_v30, %v2445_v33 }
 0x20b   : > { %v3144_v49 = vadd.f32 %v3143_v25, %v3113_v22  ;;  %v3076_v19 = vadd.f32 %v3075_v3, %v3013_v32  ;;  %v2671_v27 = vpop.f32.mrf.mxu1  ;;  %v2937_v38 = vpop.f32.mrf.mxu0 }
 0x20c   : > { %3050 = vst [vmem:[%s5642_s23 + $0xf0] sm:$0xff] %v3018_v10  ;;  %v3016_v51 = vadd.f32 %v5633_v47, %v2977_v14  ;;  %v2980_v18 = vadd.f32 %v4174_v24, %v2714_v9  ;;  %v2712_v15 = vadd.f32 %v2671_v27, %v2443_v46 }
 0x20d   : > { %v3077_v61 = vadd.f32 %v3076_v19, %v3014_v39  ;;  %v3145_v28 = vadd.f32 %v3144_v49, %v3114_v62  ;;  %v3119_v39 = vmul.f32 %v3018_v10, %v3018_v10 }
 0x20e   : > { %3048 = vst [vmem:[%s5642_s23 + $0xe0] sm:$0xff] %v3016_v51  ;;  %v3019_v20 = vadd.f32 %v5633_v47, %v2980_v18  ;;  %v2978_v6 = vadd.f32 %v2937_v38, %v2712_v15  ;;  %v3117_v52 = vmul.f32 %v3016_v51, %v3016_v51 }
 0x20f   : > { %v3146_v13 = vadd.f32 %v3145_v28, %v3115_v48  ;;  %v3078_v31 = vadd.f32 %v3077_v61, %v3015_v16 }
 0x210   : > { %3051 = vst [vmem:[%s5642_s23 + $0xf8] sm:$0xff] %v3019_v20  ;;  %v3017_v41 = vadd.f32 %v5633_v47, %v2978_v6  ;;  %v3120_v45 = vmul.f32 %v3019_v20, %v3019_v20 }
 0x211   : > { %v3079_v2 = vadd.f32 %v3078_v31, %v3016_v51  ;;  %v3147_v43 = vadd.f32 %v3146_v13, %v3116_v60 }
 0x212   : > { %3049 = vst [vmem:[%s5642_s23 + $0xe8] sm:$0xff] %v3017_v41  ;;  %v3118_v56 = vmul.f32 %v3017_v41, %v3017_v41 }
 0x213   : > { %v3148_v40 = vadd.f32 %v3147_v43, %v3117_v52  ;;  %v3080_v21 = vadd.f32 %v3079_v2, %v3017_v41 }
 0x215   : > { %v3081_v58 = vadd.f32 %v3080_v21, %v3018_v10  ;;  %v3149_v1 = vadd.f32 %v3148_v40, %v3118_v56 }
 0x217   : > { %v3082_v42 = vadd.f32 %v3081_v58, %v3019_v20  ;;  %v3150_v55 = vadd.f32 %v3149_v1, %v3119_v39 }
 0x219   : > { %v3083_v50 = vrot.slane %v3082_v42, 4  ;;  %v3151_v23 = vadd.f32 %v3150_v55, %v3120_v45 }
 0x21b   : > { %v3084_v8 = vadd.f32 %v3083_v50, %v3082_v42  ;;  %v3152_v26 = vrot.slane %v3151_v23, 4 }
 0x21d   : > { %v3085_v54 = vrot.slane %v3084_v8, 2  ;;  %v3153_v47 = vadd.f32 %v3152_v26, %v3151_v23 }
 0x21f   : > { %v3086_v57 = vadd.f32 %v3085_v54, %v3084_v8  ;;  %v3154_v35 = vrot.slane %v3153_v47, 2 }
 0x221   : > { %v3087_v12 = vrot.slane %v3086_v57, 1  ;;  %v3155_v17 = vadd.f32 %v3154_v35, %v3153_v47 }
 0x223   : > { %v3156_v11 = vrot.slane %v3155_v17, 1  ;;  %v3088_v4 = vadd.f32 %v3087_v12, %v3086_v57 }
 0x225   : > { %v3157_v7 = vadd.f32 %v3156_v11, %v3155_v17 }
 0x227   : > { %v3159_v16 = vsel %vm3158_vm2, %v3088_v4, %v3157_v7 }
 0x228   : > { %v3161_v59 = vsel %vm3160_vm3, %v3159_v16, 0.0 }
 0x229   : > { %3162 = vst [vmem:[%s252_s27] sm:$0xff] %v3161_v59 }
 0x22a PF: > { %s15_s17 = sadd.s32 1, %s4348_s17   ;;  %s6022_s15 = smov %s4344_s16 }
 0x22b   : > { %p12_p5 = scmp.ge.s32.totalorder %s15_s17, 4   ;;  %s6023_s16 = smov %s6025_s18 }
 0x22d   :  { %14 = sbr.rel (!%p12_p5) target bundleno = 2 (0x2), region = 82 }

// kernel: unet_forward.24
= control target key start
LH: loop header
LB: loop body
LE: loop exit
PB: predicated region body
PF: predicated region fallthrough
CT: control target
= control target key end

     0   :  { %s2560_s15 = smov 0   ;;  %s2562_s16 = smov 0   ;;  %s3122_s0 = inlined_call_operand.vmem [shape: bf16[2,1,10,10,128], index: 0, kind: input, shape index: {}]   ;;  %s3123_s1 = inlined_call_operand.vmem [shape: bf16[9,128,128], index: 1, kind: input, shape index: {}]   ;;  %s3124_s2 = inlined_call_operand.vmem [shape: f32[1,128], index: 2, kind: input, shape index: {}]   ;;  %s3125_s3 = inlined_call_operand.vmem [shape: f32[2,1,8,8,128], index: 3, kind: output, shape index: {0}]   ;;  %s3126_s4 = inlined_call_operand.vmem [shape: f32[2,1,8,128], index: 4, kind: output, shape index: {1}]  }
   0x1   :  { %s2564_s17 = smov 0  }
   0x2 LB: > { %s27_s18 = sadd.s32 1, %s2529_s16  ;;  %p1847_p0 = scmp.ge.s32.totalorder %s2533_s17, 1  ;;  %s2533_s17 = sphi %s2564_s17, %s15_s17   ;;  %s2529_s16 = sphi %s2562_s16, %s3142_s16   ;;  %s2525_s15 = sphi %s2560_s15, %s3141_s15  }
   0x3   : > { %p29_p1 = scmp.ge.s32.totalorder %s27_s18, 2  ;;  %p187_p2 = scmp.lt.s32.totalorder %s2533_s17, 3 }
   0x5   : > { %s3144_s18 = smov (%p29_p1, %s27_s18), 0  ;;  %p188_p3 = pnand %p1847_p0, %p187_p2 }
   0x7   : > { %191 = sbr.rel (%p188_p3) target bundleno = 407 (0x197), region = 32 }
   0xc   : > { %v2430_v0 = vld [vmem:[%s3123_s1 + $0x78] sm:$0xff]   ;;  %p228_p4 = scmp.lt.s32.totalorder %s2525_s15, 1  ;;  %v2432_v2 = vld [vmem:[%s3123_s1 + $0x70] sm:$0xff]   ;;  %v2434_v4 = vld [vmem:[%s3123_s1 + $0x68] sm:$0xff]   ;;  %vm330_vm0 = vcmask 1046528   ;;  %vm610_vm1 = vcmask 1045504  }
   0xd   : > { %v2431_v1 = vld [vmem:[%s3123_s1 + $0x38] sm:$0xff]   ;;  %2173 = vmatprep.subr.bf16.mxu0 %v2430_v0  ;;  %v2433_v3 = vld [vmem:[%s3123_s1 + $0x30] sm:$0xff]   ;;  %v2435_v5 = vld [vmem:[%s3123_s1 + $0x28] sm:$0xff]   ;;  %vm1705_vm2 = vcmask 1040384   ;;  %vm1707_vm3 = vcmask 1041408  }
   0xe   : > { %2197 = vmatprep.subr.bf16.mxu1 %v2431_v1  ;;  %2174 = vmatpush3.bf16.msra.mxu0 %v2430_v0  ;;  %s3146_s15 = smov (!%p228_p4, %s2525_s15), 1  ;;  %v2436_v6 = vld [vmem:[%s3123_s1 + $0x60] sm:$0xff]   ;;  %v2438_v8 = vld [vmem:[%s3123_s1 + $0x58] sm:$0xff]   ;;  %v2440_v10 = vld [vmem:[%s3123_s1 + $0x50] sm:$0xff]  }
   0xf   : > { %2198 = vmatpush3.bf16.msra.mxu1 %v2431_v1  ;;  %2175 = vmatprep.subr.bf16.mxu0 %v2432_v2  ;;  %v2437_v7 = vld [vmem:[%s3123_s1 + $0x20] sm:$0xff]   ;;  %s2405_s9 = smul.u32 80, %s3146_s15  ;;  %v2439_v9 = vld [vmem:[%s3123_s1 + $0x18] sm:$0xff]   ;;  %v2441_v11 = vld [vmem:[%s3123_s1 + $0x10] sm:$0xff]   ;;  %s2064_s11 = sshll.u32 %s3146_s15, 6 }
  0x10   : > { %2199 = vmatprep.subr.bf16.mxu1 %v2433_v3  ;;  %v2442_v31 = vld [vmem:[%s3123_s1 + $0x48] sm:$0xff]   ;;  %v2444_v42 = vld [vmem:[%s3123_s1 + $0x40] sm:$0xff]   ;;  %v2448_v44 = vld [vmem:[%s3123_s1 + $0xb8] sm:$0xff]   ;;  %s3097_s21 = scalar_lea.vmem %s3125_s3, %s2064_s11  ;;  %s1851_s22 = sshll.u32 %s3146_s15, 3 }
  0x11   : > { %s2614_s20 = scalar_lea.vmem %s3122_s0, %s2405_s9  ;;  %v2443_v33 = vld [vmem:[%s3123_s1 + $0x8] sm:$0xff]   ;;  %v2445_v43 = vld [vmem:[%s3123_s1] sm:$0xff]   ;;  %v2449_v47 = vld [vmem:[%s3123_s1 + $0xf8] sm:$0xff]   ;;  %s252_s24 = scalar_lea.vmem %s3126_s4, %s1851_s22 }
  0x12   : > { %2176 = vmatpush3.bf16.msra.mxu0 %v2432_v2  ;;  %v254_v12 = vld [vmem:[%s2614_s20] sm:$0xf]  ;;  %v255_v13 = vld [vmem:[%s2614_s20 + $0x4] sm:$0x1]  ;;  %v2625_v14 = vld [vmem:[%s2614_s20 + $0x8] sm:$0xf] }
  0x13   : > { %2200 = vmatpush3.bf16.msra.mxu1 %v2433_v3  ;;  %2177 = vmatprep.subr.bf16.mxu0 %v2434_v4  ;;  %v257_v15 = vld [vmem:[%s2614_s20 + $0xc] sm:$0x1]  ;;  %v2629_v16 = vld [vmem:[%s2614_s20 + $0x10] sm:$0xf]  ;;  %v2632_v17 = vld [vmem:[%s2614_s20 + $0x14] sm:$0x1]  ;;  %v274_v18 = vunpack.c.l.bf16 %v254_v12  ;;  %v275_v19 = vunpack.c.l.bf16 %v255_v13  ;;  %v276_v20 = vunpack.c.l.bf16 %v2625_v14  ;;  %v1852_v21 = vcombine.low %v254_v12, %v2625_v14 }
  0x14   : > { %2201 = vmatprep.subr.bf16.mxu1 %v2435_v5  ;;  %v277_v22 = vunpack.c.l.bf16 %v257_v15  ;;  %v278_v23 = vunpack.c.l.bf16 %v2629_v16  ;;  %v279_v24 = vunpack.c.l.bf16 %v2632_v17  ;;  %v2639_v25 = vld [vmem:[%s2614_s20 + $0x18] sm:$0xf]  ;;  %v2642_v26 = vld [vmem:[%s2614_s20 + $0x1c] sm:$0x1]  ;;  %v2450_v53 = vld [vmem:[%s3123_s1 + $0xb0] sm:$0xff]  }
  0x15   : > { %v331_v27 = vrot.slane %v274_v18, 1  ;;  %v332_v28 = vrot.slane %v275_v19, 1  ;;  %v334_v29 = vrot.slane %v276_v20, 1  ;;  %2213 = vmatprep.mubr.bf16.mxu1 %v1852_v21  ;;  %v280_v30 = vunpack.c.l.bf16 %v2639_v25  ;;  %v2691_v54 = vld [vmem:[%s2614_s20 + $0x20] sm:$0xf]  ;;  %v2453_v21 = vld [vmem:[%s3123_s1 + $0xe8] sm:$0xff]  }
  0x16   : > { %2178 = vmatpush3.bf16.msra.mxu0 %v2434_v4  ;;  %v335_v32 = vrot.slane %v277_v22, 1  ;;  %v281_v35 = vunpack.c.l.bf16 %v2642_v26  ;;  %v337_v37 = vrot.slane %v278_v23, 1  ;;  %v338_v38 = vrot.slane %v279_v24, 1  ;;  %v2694_v55 = vld [vmem:[%s2614_s20 + $0x24] sm:$0x1] }
  0x17   : > { %2202 = vmatpush3.bf16.msra.mxu1 %v2435_v5  ;;  %2179 = vmatprep.subr.bf16.mxu0 %v2436_v6  ;;  %v333_v34 = vsel %vm330_vm0, %v331_v27, %v332_v28  ;;  %v340_v40 = vrot.slane %v280_v30, 1  ;;  %v611_v48 = vrot.slane %v274_v18, 2  ;;  %v612_v49 = vrot.slane %v275_v19, 2  ;;  %v2697_v56 = vld [vmem:[%s2614_s20 + $0x28] sm:$0xf] }
  0x18   : > { %2203 = vmatprep.subr.bf16.mxu1 %v2437_v7  ;;  %v2654_v36 = vsel %vm330_vm0, %v334_v29, %v335_v32  ;;  %v341_v41 = vrot.slane %v281_v35, 1  ;;  %v2675_v45 = vsel %vm330_vm0, %v337_v37, %v338_v38  ;;  %v614_v50 = vrot.slane %v276_v20, 2  ;;  %v2704_v58 = vld [vmem:[%s2614_s20 + $0x2c] sm:$0x1]  ;;  %v2710_v62 = vld [vmem:[%s2614_s20 + $0x30] sm:$0xf] }
  0x19   : > { %v363_v39 = vpack.c.bf16 %v2654_v36, %v333_v34  ;;  %v615_v51 = vrot.slane %v277_v22, 2  ;;  %v2701_v57 = vcombine.low %v2629_v16, %v2639_v25  ;;  %v282_v59 = vunpack.c.l.bf16 %v2691_v54  ;;  %v2713_v63 = vld [vmem:[%s2614_s20 + $0x34] sm:$0x1]  ;;  %v2721_v2 = vld [vmem:[%s2614_s20 + $0x38] sm:$0xf]  ;;  %v2452_v18 = vld [vmem:[%s3123_s1 + $0xa8] sm:$0xff]  }
  0x1a   : > { %2180 = vmatpush3.bf16.msra.mxu0 %v2436_v6  ;;  %v2678_v46 = vsel %vm330_vm0, %v340_v40, %v341_v41  ;;  %v283_v60 = vunpack.c.l.bf16 %v2694_v55  ;;  %v284_v61 = vunpack.c.l.bf16 %v2697_v56  ;;  %v285_v0 = vunpack.c.l.bf16 %v2704_v58  ;;  %v2724_v3 = vld [vmem:[%s2614_s20 + $0x3c] sm:$0x1]  ;;  %v2451_v6 = vld [vmem:[%s3123_s1 + $0xf0] sm:$0xff]   ;;  %v2454_v38 = vld [vmem:[%s3123_s1 + $0xa0] sm:$0xff]  }
  0x1b   : > { %2204 = vmatpush3.bf16.msra.mxu1 %v2437_v7  ;;  %2181 = vmatprep.subr.bf16.mxu0 %v2438_v8  ;;  %v2685_v52 = vpack.c.bf16 %v2678_v46, %v2675_v45  ;;  %v2718_v1 = vcombine.low %v2691_v54, %v2697_v56  ;;  %v286_v4 = vunpack.c.l.bf16 %v2710_v62  ;;  %v287_v5 = vunpack.c.l.bf16 %v2713_v63  ;;  %v2467_v55 = vld [vmem:[%s3123_s1 + $0x138] sm:$0xff]  }
  0x1c   : > { %2205 = vmatprep.subr.bf16.mxu1 %v2439_v9  ;;  %2189 = vmatprep.mubr.bf16.mxu0 %v363_v39  ;;  %v343_v7 = vrot.slane %v282_v59, 1  ;;  %v289_v12 = vunpack.c.l.bf16 %v2724_v3  ;;  %v613_v32 = vsel %vm610_vm1, %v611_v48, %v612_v49  ;;  %v2785_v37 = vcombine.low %v2710_v62, %v2721_v2  ;;  %v2455_v39 = vld [vmem:[%s3123_s1 + $0xe0] sm:$0xff]   ;;  %v2462_v48 = vld [vmem:[%s3123_s1 + $0x88] sm:$0xff]  }
  0x1d   : > { %v349_v13 = vrot.slane %v286_v4, 1  ;;  %v350_v15 = vrot.slane %v287_v5, 1  ;;  %v1912_v41 = vcombine.low %v2625_v14, %v2629_v16  ;;  %v2460_v14 = vld [vmem:[%s3123_s1 + $0x90] sm:$0xff]   ;;  %v618_v49 = vrot.slane %v279_v24, 2  ;;  %v2830_v24 = vld [vmem:[%s2614_s20 + $0x40] sm:$0xf] }
  0x1e   : > { %2182 = vmatpush3.bf16.msra.mxu0 %v2438_v8  ;;  %v344_v8 = vrot.slane %v283_v60, 1  ;;  %v353_v28 = vrot.slane %v289_v12, 1  ;;  %v621_v16 = vrot.slane %v281_v35, 2  ;;  %v623_v17 = vrot.slane %v282_v59, 2 }
  0x1f   : > { %2206 = vmatpush3.bf16.msra.mxu1 %v2439_v9  ;;  %2183 = vmatprep.subr.bf16.mxu0 %v2440_v10  ;;  %v346_v9 = vrot.slane %v284_v61, 1  ;;  %v2762_v27 = vsel %vm330_vm0, %v349_v13, %v350_v15  ;;  %v624_v26 = vrot.slane %v283_v60, 2  ;;  %v290_v35 = vunpack.c.l.bf16 %v2830_v24  ;;  %v271_v60 = vld [vmem:[%s2614_s20 + $0x44] sm:$0x1] }
  0x20   : > { %2207 = vmatprep.subr.bf16.mxu1 %v2441_v11  ;;  %v2751_v19 = vsel %vm330_vm0, %v343_v7, %v344_v8  ;;  %v627_v7 = vrot.slane %v285_v0, 2  ;;  %v1914_v3 = vcombine.low %v2697_v56, %v2710_v62  ;;  %v2473_v56 = vld [vmem:[%s3123_s1 + $0x168] sm:$0xff]  }
  0x21   : > { %v929_v58 = vrot.slane %v290_v35, 1  ;;  %v2867_v13 = vsel %vm610_vm1, %v623_v17, %v624_v26  ;;  %v2481_v26 = vld [vmem:[%s3123_s1 + $0x150] sm:$0xff]  }
  0x22   : > { %2184 = vmatpush3.bf16.msra.mxu0 %v2440_v10  ;;  %v288_v10 = vunpack.c.l.bf16 %v2721_v2 }
  0x23   : > { %2208 = vmatpush3.bf16.msra.mxu1 %v2441_v11  ;;  %2185 = vmatprep.subr.bf16.mxu0 %v2442_v31  ;;  %v347_v11 = vrot.slane %v285_v0, 1  ;;  %v1913_v0 = vcombine.low %v2639_v25, %v2691_v54  ;;  %v633_v54 = vrot.slane %v289_v12, 2 }
  0x24   : > { %2209 = vmatprep.subr.bf16.mxu1 %v2443_v33  ;;  %v352_v20 = vrot.slane %v288_v10, 1  ;;  %v632_v25 = vrot.slane %v288_v10, 2 }
  0x25   : > { %v2759_v22 = vsel %vm330_vm0, %v346_v9, %v347_v11  ;;  %v291_v9 = vunpack.c.l.bf16 %v271_v60  ;;  %v2470_v11 = vld [vmem:[%s3123_s1 + $0x130] sm:$0xff]   ;;  %v2485_v60 = vld [vmem:[%s3123_s1 + $0x140] sm:$0xff]  }
  0x26   : > { %2186 = vmatpush3.bf16.msra.mxu0 %v2442_v31  ;;  %v2768_v29 = vpack.c.bf16 %v2759_v22, %v2751_v19  ;;  %v2772_v31 = vsel %vm330_vm0, %v352_v20, %v353_v28  ;;  %v630_v20 = vrot.slane %v287_v5, 2  ;;  %v2471_v28 = vld [vmem:[%s3123_s1 + $0x170] sm:$0xff]   ;;  %v2899_v12 = vsel %vm610_vm1, %v632_v25, %v633_v54  ;;  %v2495_v25 = vld [vmem:[%s3123_s1 + $0x1d8] sm:$0xff]  }
  0x27   : > { %2210 = vmatpush3.bf16.msra.mxu1 %v2443_v33  ;;  %2187 = vmatprep.subr.bf16.mxu0 %v2444_v42  ;;  %v2776_v33 = vsel %vm610_vm1, %v614_v50, %v615_v51  ;;  %v2781_v34 = vpack.c.bf16 %v2772_v31, %v2762_v27  ;;  %v2463_v50 = vld [vmem:[%s3123_s1 + $0xc8] sm:$0xff]   ;;  %v620_v51 = vrot.slane %v280_v30, 2  ;;  %v2465_v30 = vld [vmem:[%s3123_s1 + $0xc0] sm:$0xff]   ;;  %v2497_v54 = vld [vmem:[%s3123_s1 + $0x1d0] sm:$0xff]  }
  0x28   : > { %2211 = vmatprep.subr.bf16.mxu1 %v2445_v43  ;;  %v643_v40 = vpack.c.bf16 %v2776_v33, %v613_v32  ;;  %v2472_v32 = vld [vmem:[%s3123_s1 + $0x128] sm:$0xff]  }
  0x29   : > { %v2842_v59 = vsel %vm610_vm1, %v620_v51, %v621_v16  ;;  %v2480_v16 = vld [vmem:[%s3123_s1 + $0x110] sm:$0xff]  }
  0x2a   : > { %2188 = vmatpush3.bf16.msra.mxu0 %v2444_v42  ;;  %v2456_v42 = vld [vmem:[%s3123_s1 + $0x98] sm:$0xff]  }
  0x2b   : > { %2212 = vmatpush3.bf16.msra.mxu1 %v2445_v43  ;;  %2221 = vmatprep.subr.bf16.mxu0 %v2448_v44  ;;  %v2457_v43 = vld [vmem:[%s3123_s1 + $0xd8] sm:$0xff]  }
  0x2c   : > { %2245 = vmatprep.subr.bf16.mxu1 %v2449_v47 }
  0x2d   : > { %2190 = vmatmul.mubr.bf16.vlgmr.msra.gmra.mxu0 %v2685_v52 }
  0x2e   : > { %2214 = vmatmul.mubr.bf16.vlgmr.msra.gmra.mxu1 %v2701_v57  ;;  %2222 = vmatpush3.bf16.msra.mxu0 %v2448_v44  ;;  %v2461_v44 = vld [vmem:[%s3123_s1 + $0xd0] sm:$0xff]  }
  0x2f   : > { %2246 = vmatpush3.bf16.msra.mxu1 %v2449_v47  ;;  %2223 = vmatprep.subr.bf16.mxu0 %v2450_v53  ;;  %v617_v47 = vrot.slane %v278_v23, 2  ;;  %v2464_v23 = vld [vmem:[%s3123_s1 + $0x80] sm:$0xff]  }
  0x30   : > { %2247 = vmatprep.subr.bf16.mxu1 %v2451_v6  ;;  %2217 = vmatprep.mubr.bf16.mxu1 %v2718_v1 }
  0x31   : > { %2193 = vmatprep.mubr.bf16.mxu0 %v2768_v29 }
  0x32   : > { %2224 = vmatpush3.bf16.msra.mxu0 %v2450_v53  ;;  %v2839_v53 = vsel %vm610_vm1, %v617_v47, %v618_v49  ;;  %v1076_v47 = vrot.slane %v291_v9, 2 }
  0x33   : > { %2248 = vmatpush3.bf16.msra.mxu1 %v2451_v6  ;;  %2225 = vmatprep.subr.bf16.mxu0 %v2452_v18  ;;  %v626_v6 = vrot.slane %v284_v61, 2  ;;  %v2854_v8 = vpack.c.bf16 %v2842_v59, %v2839_v53  ;;  %v2468_v61 = vld [vmem:[%s3123_s1 + $0x178] sm:$0xff]  }
  0x34   : > { %2249 = vmatprep.subr.bf16.mxu1 %v2453_v21 }
  0x35   : > { %2194 = vmatmul.mubr.bf16.gmra.mxu0 %v2781_v34  ;;  %v2870_v15 = vsel %vm610_vm1, %v626_v6, %v627_v7  ;;  %v2482_v6 = vld [vmem:[%s3123_s1 + $0x108] sm:$0xff]  }
  0x36   : > { %2226 = vmatpush3.bf16.msra.mxu0 %v2452_v18  ;;  %2218 = vmatmul.mubr.bf16.gmra.mxu1 %v2785_v37  ;;  %v629_v18 = vrot.slane %v286_v4, 2  ;;  %v2885_v4 = vpack.c.bf16 %v2870_v15, %v2867_v13  ;;  %v2483_v7 = vld [vmem:[%s3123_s1 + $0x148] sm:$0xff]  }
  0x37   : > { %2250 = vmatpush3.bf16.msra.mxu1 %v2453_v21  ;;  %2227 = vmatprep.subr.bf16.mxu0 %v2454_v38  ;;  %v930_v21 = vrot.slane %v291_v9, 1  ;;  %v2487_v9 = vld [vmem:[%s3123_s1 + $0x1f8] sm:$0xff]  }
  0x38   : > { %2251 = vmatprep.subr.bf16.mxu1 %v2455_v39  ;;  %2237 = vmatprep.mubr.bf16.mxu0 %v643_v40  ;;  %v2896_v10 = vsel %vm610_vm1, %v629_v18, %v630_v20  ;;  %v933_v40 = vpack.c.bf16 %v2675_v45, %v2654_v36  ;;  %v2479_v36 = vld [vmem:[%s3123_s1 + $0x158] sm:$0xff]   ;;  %v2489_v18 = vld [vmem:[%s3123_s1 + $0x1f0] sm:$0xff]   ;;  %v935_v20 = vpack.c.bf16 %v2762_v27, %v2759_v22  ;;  %v2492_v27 = vld [vmem:[%s3123_s1 + $0x1a0] sm:$0xff]  }
  0x39   : > { %2261 = vmatprep.mubr.bf16.mxu1 %v1912_v41  ;;  %v2888_v63 = vsel %vm330_vm0, %v929_v58, %v930_v21  ;;  %v2910_v62 = vpack.c.bf16 %v2899_v12, %v2896_v10  ;;  %v2477_v41 = vld [vmem:[%s3123_s1 + $0x160] sm:$0xff]   ;;  %v934_v58 = vpack.c.bf16 %v2751_v19, %v2678_v46  ;;  %v1081_v46 = vpack.c.bf16 %v2896_v10, %v2870_v15  ;;  %v2490_v19 = vld [vmem:[%s3123_s1 + $0x1a8] sm:$0xff]   ;;  %v2494_v15 = vld [vmem:[%s3123_s1 + $0x198] sm:$0xff]  }
  0x3a   : > { %2228 = vmatpush3.bf16.msra.mxu0 %v2454_v38  ;;  %v936_v5 = vpack.c.bf16 %v2888_v63, %v2772_v31  ;;  %v1915_v38 = vcombine.low %v2721_v2, %v2830_v24  ;;  %v2478_v2 = vld [vmem:[%s3123_s1 + $0x118] sm:$0xff]   ;;  %v2496_v31 = vld [vmem:[%s3123_s1 + $0x190] sm:$0xff]   ;;  %v2500_v21 = vld [vmem:[%s3123_s1 + $0x180] sm:$0xff]  }
  0x3b   : > { %2252 = vmatpush3.bf16.msra.mxu1 %v2455_v39  ;;  %2229 = vmatprep.subr.bf16.mxu0 %v2456_v42  ;;  %v2476_v39 = vld [vmem:[%s3123_s1 + $0x120] sm:$0xff]   ;;  %v2505_v10 = vld [vmem:[%s3123_s1 + $0x228] sm:$0xff]  }
  0x3c   : > { %2253 = vmatprep.subr.bf16.mxu1 %v2457_v43 }
  0x3e   : > { %2230 = vmatpush3.bf16.msra.mxu0 %v2456_v42  ;;  %v1079_v42 = vpack.c.bf16 %v2839_v53, %v2776_v33 }
  0x3f   : > { %2254 = vmatpush3.bf16.msra.mxu1 %v2457_v43  ;;  %2231 = vmatprep.subr.bf16.mxu0 %v2460_v14  ;;  %v2929_v43 = vld [vmem:[%s2614_s20 + $0x48] sm:$0xf] }
  0x40   : > { %2255 = vmatprep.subr.bf16.mxu1 %v2461_v44  ;;  %v292_v45 = vunpack.c.l.bf16 %v2929_v43 }
  0x42   : > { %2232 = vmatpush3.bf16.msra.mxu0 %v2460_v14  ;;  %v273_v14 = vld [vmem:[%s2614_s20 + $0x4c] sm:$0x1]  ;;  %v1362_v33 = vrot.slane %v292_v45, 1  ;;  %v1505_v49 = vrot.slane %v292_v45, 2 }
  0x43   : > { %2256 = vmatpush3.bf16.msra.mxu1 %v2461_v44  ;;  %2233 = vmatprep.subr.bf16.mxu0 %v2462_v48  ;;  %v1075_v44 = vrot.slane %v290_v35, 2 }
  0x44   : > { %2257 = vmatprep.subr.bf16.mxu1 %v2463_v50 }
  0x46   : > { %2234 = vmatpush3.bf16.msra.mxu0 %v2462_v48  ;;  %v293_v48 = vunpack.c.l.bf16 %v273_v14 }
  0x47   : > { %2258 = vmatpush3.bf16.msra.mxu1 %v2463_v50  ;;  %2235 = vmatprep.subr.bf16.mxu0 %v2464_v23 }
  0x48   : > { %2259 = vmatprep.subr.bf16.mxu1 %v2465_v30  ;;  %v1363_v50 = vrot.slane %v293_v48, 1  ;;  %v1506_v51 = vrot.slane %v293_v48, 2 }
  0x4a   : > { %2236 = vmatpush3.bf16.msra.mxu0 %v2464_v23  ;;  %v2942_v23 = vsel %vm610_vm1, %v1075_v44, %v1076_v47  ;;  %v2945_v17 = vsel %vm330_vm0, %v1362_v33, %v1363_v50 }
  0x4b   : > { %2260 = vmatpush3.bf16.msra.mxu1 %v2465_v30  ;;  %2269 = vmatprep.subr.bf16.mxu0 %v2467_v55  ;;  %v2948_v30 = vsel %vm610_vm1, %v1505_v49, %v1506_v51  ;;  %v1366_v35 = vpack.c.bf16 %v2945_v17, %v2888_v63  ;;  %v1082_v22 = vpack.c.bf16 %v2942_v23, %v2899_v12 }
  0x4c   : > { %2293 = vmatprep.subr.bf16.mxu1 %v2468_v61  ;;  %v1509_v53 = vpack.c.bf16 %v2948_v30, %v2942_v23  ;;  %v1988_v12 = vcombine.low %v2830_v24, %v2929_v43  ;;  %v2510_v24 = vld [vmem:[%s3123_s1 + $0x200] sm:$0xff]  }
  0x4d   : > { %2238 = vmatmul.mubr.bf16.vlgmr.msra.gmra.mxu0 %v2854_v8 }
  0x4e   : > { %2262 = vmatmul.mubr.bf16.vlgmr.msra.gmra.mxu1 %v1913_v0  ;;  %2270 = vmatpush3.bf16.msra.mxu0 %v2467_v55  ;;  %v2484_v55 = vld [vmem:[%s3123_s1 + $0x100] sm:$0xff]   ;;  %v1080_v0 = vpack.c.bf16 %v2867_v13, %v2842_v59  ;;  %v2491_v59 = vld [vmem:[%s3123_s1 + $0x1e8] sm:$0xff]  }
  0x4f   : > { %2294 = vmatpush3.bf16.msra.mxu1 %v2468_v61  ;;  %2271 = vmatprep.subr.bf16.mxu0 %v2470_v11  ;;  %v2486_v61 = vld [vmem:[%s3123_s1 + $0x1b8] sm:$0xff]   ;;  %v2493_v13 = vld [vmem:[%s3123_s1 + $0x1e0] sm:$0xff]  }
  0x50   : > { %2295 = vmatprep.subr.bf16.mxu1 %v2471_v28  ;;  %2241 = vmatprep.mubr.bf16.mxu0 %v2885_v4 }
  0x51   : > { %2265 = vmatprep.mubr.bf16.mxu1 %v1914_v3  ;;  %v2502_v3 = vld [vmem:[%s3123_s1 + $0x238] sm:$0xff]  }
  0x52   : > { %2272 = vmatpush3.bf16.msra.mxu0 %v2470_v11  ;;  %v2488_v11 = vld [vmem:[%s3123_s1 + $0x1b0] sm:$0xff]  }
  0x53   : > { %2296 = vmatpush3.bf16.msra.mxu1 %v2471_v28  ;;  %2273 = vmatprep.subr.bf16.mxu0 %v2472_v32  ;;  %v2501_v28 = vld [vmem:[%s3123_s1 + $0x1c0] sm:$0xff]  }
  0x54   : > { %2297 = vmatprep.subr.bf16.mxu1 %v2473_v56 }
  0x55   : > { %2242 = vmatmul.mubr.bf16.gmra.mxu0 %v2910_v62 }
  0x56   : > { %2274 = vmatpush3.bf16.msra.mxu0 %v2472_v32  ;;  %2266 = vmatmul.mubr.bf16.gmra.mxu1 %v1915_v38 }
  0x57   : > { %2298 = vmatpush3.bf16.msra.mxu1 %v2473_v56  ;;  %2275 = vmatprep.subr.bf16.mxu0 %v2476_v39 }
  0x58   : > { %2299 = vmatprep.subr.bf16.mxu1 %v2477_v41  ;;  %2285 = vmatprep.mubr.bf16.mxu0 %v933_v40 }
  0x59   : > { %2309 = vmatprep.mubr.bf16.mxu1 %v1079_v42 }
  0x5a   : > { %2276 = vmatpush3.bf16.msra.mxu0 %v2476_v39 }
  0x5b   : > { %2300 = vmatpush3.bf16.msra.mxu1 %v2477_v41  ;;  %2277 = vmatprep.subr.bf16.mxu0 %v2478_v2 }
  0x5c   : > { %2301 = vmatprep.subr.bf16.mxu1 %v2479_v36 }
  0x5e   : > { %2278 = vmatpush3.bf16.msra.mxu0 %v2478_v2 }
  0x5f   : > { %2302 = vmatpush3.bf16.msra.mxu1 %v2479_v36  ;;  %2279 = vmatprep.subr.bf16.mxu0 %v2480_v16 }
  0x60   : > { %2303 = vmatprep.subr.bf16.mxu1 %v2481_v26 }
  0x62   : > { %2280 = vmatpush3.bf16.msra.mxu0 %v2480_v16 }
  0x63   : > { %2304 = vmatpush3.bf16.msra.mxu1 %v2481_v26  ;;  %2281 = vmatprep.subr.bf16.mxu0 %v2482_v6 }
  0x64   : > { %2305 = vmatprep.subr.bf16.mxu1 %v2483_v7 }
  0x66   : > { %2282 = vmatpush3.bf16.msra.mxu0 %v2482_v6 }
  0x67   : > { %2306 = vmatpush3.bf16.msra.mxu1 %v2483_v7  ;;  %2283 = vmatprep.subr.bf16.mxu0 %v2484_v55 }
  0x68   : > { %2307 = vmatprep.subr.bf16.mxu1 %v2485_v60 }
  0x6a   : > { %2284 = vmatpush3.bf16.msra.mxu0 %v2484_v55 }
  0x6b   : > { %2308 = vmatpush3.bf16.msra.mxu1 %v2485_v60  ;;  %2317 = vmatprep.subr.bf16.mxu0 %v2486_v61 }
  0x6c   : > { %2341 = vmatprep.subr.bf16.mxu1 %v2487_v9 }
  0x6d   : > { %2286 = vmatmul.mubr.bf16.vlgmr.msra.gmra.mxu0 %v934_v58 }
  0x6e   : > { %2310 = vmatmul.mubr.bf16.vlgmr.msra.gmra.mxu1 %v1080_v0  ;;  %2318 = vmatpush3.bf16.msra.mxu0 %v2486_v61 }
  0x6f   : > { %2342 = vmatpush3.bf16.msra.mxu1 %v2487_v9  ;;  %2319 = vmatprep.subr.bf16.mxu0 %v2488_v11 }
  0x70   : > { %2343 = vmatprep.subr.bf16.mxu1 %v2489_v18  ;;  %2289 = vmatprep.mubr.bf16.mxu0 %v935_v20 }
  0x71   : > { %2313 = vmatprep.mubr.bf16.mxu1 %v1081_v46 }
  0x72   : > { %2320 = vmatpush3.bf16.msra.mxu0 %v2488_v11 }
  0x73   : > { %2344 = vmatpush3.bf16.msra.mxu1 %v2489_v18  ;;  %2321 = vmatprep.subr.bf16.mxu0 %v2490_v19 }
  0x74   : > { %2345 = vmatprep.subr.bf16.mxu1 %v2491_v59 }
  0x75   : > { %2290 = vmatmul.mubr.bf16.gmra.mxu0 %v936_v5  ;;  %v2503_v5 = vld [vmem:[%s3123_s1 + $0x230] sm:$0xff]  }
  0x76   : > { %2322 = vmatpush3.bf16.msra.mxu0 %v2490_v19  ;;  %2314 = vmatmul.mubr.bf16.gmra.mxu1 %v1082_v22 }
  0x77   : > { %2346 = vmatpush3.bf16.msra.mxu1 %v2491_v59  ;;  %2323 = vmatprep.subr.bf16.mxu0 %v2492_v27 }
  0x78   : > { %2347 = vmatprep.subr.bf16.mxu1 %v2493_v13  ;;  %2333 = vmatprep.mubr.bf16.mxu0 %v2701_v57  ;;  %v2498_v57 = vld [vmem:[%s3123_s1 + $0x188] sm:$0xff]  }
  0x79   : > { %2357 = vmatprep.mubr.bf16.mxu1 %v2685_v52  ;;  %v2499_v52 = vld [vmem:[%s3123_s1 + $0x1c8] sm:$0xff]  }
  0x7a   : > { %2324 = vmatpush3.bf16.msra.mxu0 %v2492_v27 }
  0x7b   : > { %2348 = vmatpush3.bf16.msra.mxu1 %v2493_v13  ;;  %2325 = vmatprep.subr.bf16.mxu0 %v2494_v15 }
  0x7c   : > { %2349 = vmatprep.subr.bf16.mxu1 %v2495_v25 }
  0x7e   : > { %2326 = vmatpush3.bf16.msra.mxu0 %v2494_v15 }
  0x7f   : > { %2350 = vmatpush3.bf16.msra.mxu1 %v2495_v25  ;;  %2327 = vmatprep.subr.bf16.mxu0 %v2496_v31 }
  0x80   : > { %2351 = vmatprep.subr.bf16.mxu1 %v2497_v54 }
  0x82   : > { %2328 = vmatpush3.bf16.msra.mxu0 %v2496_v31 }
  0x83   : > { %2352 = vmatpush3.bf16.msra.mxu1 %v2497_v54  ;;  %2329 = vmatprep.subr.bf16.mxu0 %v2498_v57 }
  0x84   : > { %2353 = vmatprep.subr.bf16.mxu1 %v2499_v52 }
  0x86   : > { %2330 = vmatpush3.bf16.msra.mxu0 %v2498_v57 }
  0x87   : > { %2354 = vmatpush3.bf16.msra.mxu1 %v2499_v52  ;;  %2331 = vmatprep.subr.bf16.mxu0 %v2500_v21 }
  0x88   : > { %2355 = vmatprep.subr.bf16.mxu1 %v2501_v28 }
  0x8a   : > { %2332 = vmatpush3.bf16.msra.mxu0 %v2500_v21 }
  0x8b   : > { %2356 = vmatpush3.bf16.msra.mxu1 %v2501_v28  ;;  %2365 = vmatprep.subr.bf16.mxu0 %v2502_v3 }
  0x8c   : > { %2389 = vmatprep.subr.bf16.mxu1 %v2502_v3 }
  0x8d   : > { %2334 = vmatmul.mubr.bf16.vlgmr.msra.gmra.mxu0 %v2718_v1  ;;  %v2506_v1 = vld [vmem:[%s3123_s1 + $0x220] sm:$0xff]  }
  0x8e   : > { %2358 = vmatmul.mubr.bf16.vlgmr.msra.gmra.mxu1 %v2768_v29  ;;  %2366 = vmatpush3.bf16.msra.mxu0 %v2502_v3  ;;  %v2507_v29 = vld [vmem:[%s3123_s1 + $0x218] sm:$0xff]  }
  0x8f   : > { %2397 = vmatpush3.bf16.msra.mxu1 %v2502_v3  ;;  %2367 = vmatprep.subr.bf16.mxu0 %v2503_v5 }
  0x90   : > { %2390 = vmatprep.subr.bf16.mxu1 %v2503_v5  ;;  %2337 = vmatprep.mubr.bf16.mxu0 %v2785_v37  ;;  %v2509_v37 = vld [vmem:[%s3123_s1 + $0x208] sm:$0xff]  }
  0x91   : > { %2361 = vmatprep.mubr.bf16.mxu1 %v2781_v34  ;;  %v2508_v34 = vld [vmem:[%s3123_s1 + $0x210] sm:$0xff]  }
  0x92   : > { %2368 = vmatpush3.bf16.msra.mxu0 %v2503_v5 }
  0x93   : > { %2398 = vmatpush3.bf16.msra.mxu1 %v2503_v5  ;;  %2369 = vmatprep.subr.bf16.mxu0 %v2505_v10 }
  0x94   : > { %2391 = vmatprep.subr.bf16.mxu1 %v2505_v10 }
  0x95   : > { %2338 = vmatmul.mubr.bf16.gmra.mxu0 %v1988_v12 }
  0x96   : > { %2370 = vmatpush3.bf16.msra.mxu0 %v2505_v10  ;;  %2362 = vmatmul.mubr.bf16.gmra.mxu1 %v1366_v35 }
  0x97   : > { %2399 = vmatpush3.bf16.msra.mxu1 %v2505_v10  ;;  %2371 = vmatprep.subr.bf16.mxu0 %v2506_v1 }
  0x98   : > { %2392 = vmatprep.subr.bf16.mxu1 %v2506_v1  ;;  %2381 = vmatprep.mubr.bf16.mxu0 %v2854_v8 }
  0x99   : > { %2385 = vmatprep.mubr.bf16.mxu1 %v2910_v62 }
  0x9a   : > { %2372 = vmatpush3.bf16.msra.mxu0 %v2506_v1 }
  0x9b   : > { %2400 = vmatpush3.bf16.msra.mxu1 %v2506_v1  ;;  %2373 = vmatprep.subr.bf16.mxu0 %v2507_v29 }
  0x9c   : > { %2393 = vmatprep.subr.bf16.mxu1 %v2507_v29 }
  0x9e   : > { %2374 = vmatpush3.bf16.msra.mxu0 %v2507_v29 }
  0x9f   : > { %2401 = vmatpush3.bf16.msra.mxu1 %v2507_v29  ;;  %2375 = vmatprep.subr.bf16.mxu0 %v2508_v34 }
  0xa0   : > { %2394 = vmatprep.subr.bf16.mxu1 %v2508_v34 }
  0xa2   : > { %2376 = vmatpush3.bf16.msra.mxu0 %v2508_v34 }
  0xa3   : > { %2402 = vmatpush3.bf16.msra.mxu1 %v2508_v34  ;;  %2377 = vmatprep.subr.bf16.mxu0 %v2509_v37 }
  0xa4   : > { %2395 = vmatprep.subr.bf16.mxu1 %v2509_v37 }
  0xa6   : > { %2378 = vmatpush3.bf16.msra.mxu0 %v2509_v37 }
  0xa7   : > { %2403 = vmatpush3.bf16.msra.mxu1 %v2509_v37  ;;  %2379 = vmatprep.subr.bf16.mxu0 %v2510_v24 }
  0xa8   : > { %2396 = vmatprep.subr.bf16.mxu1 %v2510_v24 }
  0xaa   : > { %2380 = vmatpush3.bf16.msra.mxu0 %v2510_v24 }
  0xab   : > { %2404 = vmatpush3.bf16.msra.mxu1 %v2510_v24 }
  0xad   : > { %2382 = vmatmul.mubr.bf16.vlgmr.msra.gmra.mxu0 %v2885_v4 }
  0xae   : > { %2386 = vmatmul.mubr.bf16.vlgmr.msra.gmra.mxu1 %v1509_v53 }
  0xed   : > { %v2191_v8 = vpop.f32.mrf.mxu0 }
  0xee   : > { %v2215_v63 = vpop.f32.mrf.mxu1 }
  0xef   : > { %v466_v32 = vpop.f32.mrf.mxu0  ;;  %v588_v28 = vadd.f32 %v2215_v63, %v2191_v8 }
  0xf0   : > { %v579_v56 = vpop.f32.mrf.mxu1 }
  0xf1   : > { %v2192_v62 = vpop.f32.mrf.mxu0  ;;  %v580_v10 = vadd.f32 %v579_v56, %v466_v32 }
  0xf2   : > { %v2216_v38 = vpop.f32.mrf.mxu1 }
  0xf3   : > { %v469_v39 = vpop.f32.mrf.mxu0  ;;  %v591_v37 = vadd.f32 %v2216_v38, %v2192_v62 }
  0xf4   : > { %v582_v40 = vpop.f32.mrf.mxu1 }
  0xf5   : > { %v2195_v41 = vpop.f32.mrf.mxu0 }
  0xf6   : > { %v2219_v2 = vpop.f32.mrf.mxu1 }
  0xf7   : > { %v482_v42 = vpop.f32.mrf.mxu0  ;;  %v604_v3 = vadd.f32 %v2219_v2, %v2195_v41 }
  0xf8   : > { %v595_v43 = vpop.f32.mrf.mxu1 }
  0xf9   : > { %v2196_v36 = vpop.f32.mrf.mxu0  ;;  %v596_v29 = vadd.f32 %v595_v43, %v482_v42 }
  0xfa   : > { %v2220_v45 = vpop.f32.mrf.mxu1 }
  0xfb   : > { %v485_v14 = vpop.f32.mrf.mxu0 }
  0xfc   : > { %v598_v4 = vpop.f32.mrf.mxu1 }
  0xfd   : > { %v599_v63 = vadd.f32 %v598_v4, %v485_v14 }
 0x10d   : > { %v2239_v44 = vpop.f32.mrf.mxu0 }
 0x10e   : > { %v2263_v47 = vpop.f32.mrf.mxu1  ;;  %v779_v12 = vadd.f32 %v2239_v44, %v588_v28 }
 0x10f   : > { %v746_v48 = vpop.f32.mrf.mxu0 }
 0x110   : > { %v888_v33 = vpop.f32.mrf.mxu1  ;;  %v777_v24 = vadd.f32 %v746_v48, %v580_v10 }
 0x111   : > { %v2240_v49 = vpop.f32.mrf.mxu0 }
 0x112   : > { %v2264_v50 = vpop.f32.mrf.mxu1  ;;  %v919_v32 = vadd.f32 %v888_v33, %v777_v24 }
 0x113   : > { %v749_v51 = vpop.f32.mrf.mxu0 }
 0x114   : > { %v3071_v16 = vpop.f32.mrf.mxu1 }
 0x115   : > { %3127 = vst [vmem:[#allocation2_spill] sm:$0xff] %v3071_v16  ;;  %v2243_v23 = vpop.f32.mrf.mxu0  ;;  %v583_v16 = vadd.f32 %v582_v40, %v469_v39 }
 0x116   : > { %v2267_v17 = vpop.f32.mrf.mxu1  ;;  %v783_v34 = vadd.f32 %v2243_v23, %v604_v3 }
 0x117   : > { %v762_v30 = vpop.f32.mrf.mxu0  ;;  %v778_v56 = vadd.f32 %v749_v51, %v583_v16 }
 0x118   : > { %v904_v26 = vpop.f32.mrf.mxu1  ;;  %v925_v2 = vadd.f32 %v2267_v17, %v783_v34 }
 0x119   : > { %v2244_v35 = vpop.f32.mrf.mxu0 }
 0x11a   : > { %v2268_v53 = vpop.f32.mrf.mxu1 }
 0x11b   : > { %v765_v6 = vpop.f32.mrf.mxu0 }
 0x11c   : > { %v907_v7 = vpop.f32.mrf.mxu1  ;;  %v3134_v48 = vld [vmem:[#allocation2_spill] sm:$0xff] }
 0x11d   : > { %v920_v39 = vadd.f32 %v3134_v48, %v778_v56 }
 0x12d   : > { %v2287_v55 = vpop.f32.mrf.mxu0 }
 0x12e   : > { %v2311_v60 = vpop.f32.mrf.mxu1 }
 0x12f   : > { %v1036_v61 = vpop.f32.mrf.mxu0 }
 0x130   : > { %v1182_v9 = vpop.f32.mrf.mxu1  ;;  %v1067_v62 = vadd.f32 %v1036_v61, %v919_v32 }
 0x131   : > { %v2288_v58 = vpop.f32.mrf.mxu0 }
 0x132   : > { %v3073_v0 = vpop.f32.mrf.mxu1  ;;  %v1213_v33 = vadd.f32 %v1182_v9, %v1067_v62 }
 0x133   : > { %3128 = vst [vmem:[#allocation3_spill] sm:$0xff] %v3073_v0  ;;  %v1039_v11 = vpop.f32.mrf.mxu0 }
 0x134   : > { %v3075_v18 = vpop.f32.mrf.mxu1  ;;  %v1068_v51 = vadd.f32 %v1039_v11, %v920_v39 }
 0x135   : > { %3129 = vst [vmem:[#allocation4_spill] sm:$0xff] %v3075_v18  ;;  %v2291_v20 = vpop.f32.mrf.mxu0  ;;  %v781_v18 = vadd.f32 %v762_v30, %v596_v29 }
 0x136   : > { %v2315_v46 = vpop.f32.mrf.mxu1  ;;  %v1073_v42 = vadd.f32 %v2291_v20, %v925_v2 }
 0x137   : > { %v1052_v19 = vpop.f32.mrf.mxu0  ;;  %v923_v44 = vadd.f32 %v904_v26, %v781_v18 }
 0x138   : > { %v1198_v59 = vpop.f32.mrf.mxu1  ;;  %v1219_v14 = vadd.f32 %v2315_v46, %v1073_v42 }
 0x139   : > { %v2292_v22 = vpop.f32.mrf.mxu0 }
 0x13a   : > { %v2316_v27 = vpop.f32.mrf.mxu1 }
 0x13b   : > { %v1055_v13 = vpop.f32.mrf.mxu0 }
 0x13c   : > { %v3077_v15 = vpop.f32.mrf.mxu1 }
 0x13d   : > { %3130 = vst [vmem:[#allocation5_spill] sm:$0xff] %v3077_v15  ;;  %v607_v15 = vadd.f32 %v2220_v45, %v2196_v36  ;;  %v1071_v45 = vadd.f32 %v1052_v19, %v923_v44 }
 0x13f   : > { %v784_v41 = vadd.f32 %v2244_v35, %v607_v15  ;;  %v1217_v26 = vadd.f32 %v1198_v59, %v1071_v45 }
 0x141   : > { %v926_v36 = vadd.f32 %v2268_v53, %v784_v41 }
 0x143   : > { %v1074_v4 = vadd.f32 %v2292_v22, %v926_v36 }
 0x144   : > { %v3137_v9 = vld [vmem:[#allocation5_spill] sm:$0xff] }
 0x145   : > { %v1220_v61 = vadd.f32 %v2316_v27, %v1074_v4 }
 0x14d   : > { %v2335_v25 = vpop.f32.mrf.mxu0 }
 0x14e   : > { %v2359_v31 = vpop.f32.mrf.mxu1 }
 0x14f   : > { %v1321_v54 = vpop.f32.mrf.mxu0 }
 0x150   : > { %v3079_v57 = vpop.f32.mrf.mxu1  ;;  %v1352_v53 = vadd.f32 %v1321_v54, %v1213_v33 }
 0x151   : > { %3131 = vst [vmem:[#allocation6_spill] sm:$0xff] %v3079_v57  ;;  %v2336_v52 = vpop.f32.mrf.mxu0  ;;  %v921_v57 = vadd.f32 %v2263_v47, %v779_v12 }
 0x152   : > { %v3081_v21 = vpop.f32.mrf.mxu1 }
 0x153   : > { %3132 = vst [vmem:[#allocation7_spill] sm:$0xff] %v3081_v21  ;;  %v1324_v5 = vpop.f32.mrf.mxu0  ;;  %v780_v21 = vadd.f32 %v2240_v49, %v591_v37  ;;  %v1069_v28 = vadd.f32 %v2287_v55, %v921_v57 }
 0x154   : > { %v3083_v1 = vpop.f32.mrf.mxu1 }
 0x155   : > { %3133 = vst [vmem:[#allocation8_spill] sm:$0xff] %v3083_v1  ;;  %v2339_v0 = vpop.f32.mrf.mxu0  ;;  %v782_v1 = vadd.f32 %v765_v6, %v599_v63  ;;  %v922_v23 = vadd.f32 %v2264_v50, %v780_v21  ;;  %v1215_v40 = vadd.f32 %v2311_v60, %v1069_v28  ;;  %v3135_v6 = vld [vmem:[#allocation3_spill] sm:$0xff]  ;;  %v3136_v60 = vld [vmem:[#allocation4_spill] sm:$0xff] }
 0x156   : > { %v2363_v8 = vpop.f32.mrf.mxu1  ;;  %v1358_v50 = vadd.f32 %v2339_v0, %v1219_v14  ;;  %v2061_v0 = vld [vmem:[%s3124_s2] ss:$0 sm:$0xff] }
 0x157   : > { %v1337_v43 = vpop.f32.mrf.mxu0  ;;  %v1070_v47 = vadd.f32 %v2288_v58, %v922_v23  ;;  %v924_v49 = vadd.f32 %v907_v7, %v782_v1  ;;  %v1354_v16 = vadd.f32 %v2335_v25, %v1215_v40  ;;  %v1214_v58 = vadd.f32 %v3136_v60, %v1068_v51 }
 0x158   : > { %v1482_v38 = vpop.f32.mrf.mxu1  ;;  %v1356_v18 = vadd.f32 %v1337_v43, %v1217_v26  ;;  %v1503_v11 = vadd.f32 %v2363_v8, %v1358_v50  ;;  %v3138_v59 = vld [vmem:[#allocation6_spill] sm:$0xff] }
 0x159   : > { %v2340_v17 = vpop.f32.mrf.mxu0  ;;  %v1072_v35 = vadd.f32 %v1055_v13, %v924_v49  ;;  %v1216_v55 = vadd.f32 %v3135_v6, %v1070_v47  ;;  %v1499_v7 = vadd.f32 %v2359_v31, %v1354_v16  ;;  %v1497_v13 = vadd.f32 %v3138_v59, %v1352_v53 }
 0x15a   : > { %v2364_v30 = vpop.f32.mrf.mxu1  ;;  %v1359_v15 = vadd.f32 %v2340_v17, %v1220_v61  ;;  %v1353_v27 = vadd.f32 %v1324_v5, %v1214_v58  ;;  %v1501_v21 = vadd.f32 %v1482_v38, %v1356_v18  ;;  %v3139_v10 = vld [vmem:[#allocation7_spill] sm:$0xff] }
 0x15b   : > { %v1340_v20 = vpop.f32.mrf.mxu0  ;;  %v1355_v46 = vadd.f32 %v2336_v52, %v1216_v55  ;;  %v1218_v22 = vadd.f32 %v3137_v9, %v1072_v35 }
 0x15c   : > { %v1485_v19 = vpop.f32.mrf.mxu1  ;;  %v1504_v5 = vadd.f32 %v2364_v30, %v1359_v15  ;;  %v3140_v63 = vld [vmem:[#allocation8_spill] sm:$0xff] }
 0x15d   : > { %v1357_v3 = vadd.f32 %v1340_v20, %v1218_v22  ;;  %v1500_v12 = vadd.f32 %v3139_v10, %v1355_v46  ;;  %v1498_v2 = vadd.f32 %v3140_v63, %v1353_v27 }
 0x15f   : > { %v1502_v28 = vadd.f32 %v1485_v19, %v1357_v3 }
 0x16d   : > { %v2383_v25 = vpop.f32.mrf.mxu0 }
 0x16e   : > { %v1642_v54 = vadd.f32 %v2383_v25, %v1499_v7  ;;  %v2387_v57 = vpop.f32.mrf.mxu1 }
 0x16f   : > { %v1646_v31 = vadd.f32 %v2387_v57, %v1503_v11  ;;  %v1609_v52 = vpop.f32.mrf.mxu0 }
 0x170   : > { %v1657_v1 = vadd.f32 %v2061_v0, %v1642_v54  ;;  %v1640_v29 = vadd.f32 %v1609_v52, %v1497_v13  ;;  %v1625_v34 = vpop.f32.mrf.mxu1 }
 0x171   : > { %v1661_v37 = vadd.f32 %v2061_v0, %v1646_v31  ;;  %v1644_v24 = vadd.f32 %v1625_v34, %v1501_v21  ;;  %v2384_v8 = vpop.f32.mrf.mxu0 }
 0x172   : > { %1665 = vst [vmem:[%s3097_s21 + $0x10] sm:$0xff] %v1657_v1  ;;  %v1655_v41 = vadd.f32 %v2061_v0, %v1640_v29  ;;  %v1643_v32 = vadd.f32 %v2384_v8, %v1500_v12  ;;  %v2388_v56 = vpop.f32.mrf.mxu1  ;;  %v1686_v14 = vmul.f32 %v1657_v1, %v1657_v1 }
 0x173   : > { %1669 = vst [vmem:[%s3097_s21 + $0x30] sm:$0xff] %v1661_v37  ;;  %v1659_v44 = vadd.f32 %v2061_v0, %v1644_v24  ;;  %v1647_v42 = vadd.f32 %v2388_v56, %v1504_v5  ;;  %v1612_v43 = vpop.f32.mrf.mxu0  ;;  %v1690_v53 = vmul.f32 %v1661_v37, %v1661_v37 }
 0x174   : > { %1663 = vst [vmem:[%s3097_s21] sm:$0xff] %v1655_v41  ;;  %v1658_v23 = vadd.f32 %v2061_v0, %v1643_v32  ;;  %v1641_v62 = vadd.f32 %v1612_v43, %v1498_v2  ;;  %v1628_v38 = vpop.f32.mrf.mxu1  ;;  %v1684_v40 = vmul.f32 %v1655_v41, %v1655_v41 }
 0x175   : > { %1667 = vst [vmem:[%s3097_s21 + $0x20] sm:$0xff] %v1659_v44  ;;  %v1662_v36 = vadd.f32 %v2061_v0, %v1647_v42  ;;  %v1645_v45 = vadd.f32 %v1628_v38, %v1502_v28  ;;  %v1688_v30 = vmul.f32 %v1659_v44, %v1659_v44 }
 0x176   : > { %1666 = vst [vmem:[%s3097_s21 + $0x18] sm:$0xff] %v1658_v23  ;;  %v1656_v48 = vadd.f32 %v2061_v0, %v1641_v62  ;;  %v1687_v33 = vmul.f32 %v1658_v23, %v1658_v23 }
 0x177   : > { %1670 = vst [vmem:[%s3097_s21 + $0x38] sm:$0xff] %v1662_v36  ;;  %v1660_v39 = vadd.f32 %v2061_v0, %v1645_v45  ;;  %v1691_v20 = vmul.f32 %v1662_v36, %v1662_v36 }
 0x178   : > { %1664 = vst [vmem:[%s3097_s21 + $0x8] sm:$0xff] %v1656_v48  ;;  %v1671_v47 = vadd.f32 %v1656_v48, %v1655_v41  ;;  %v1685_v49 = vmul.f32 %v1656_v48, %v1656_v48 }
 0x179   : > { %1668 = vst [vmem:[%s3097_s21 + $0x28] sm:$0xff] %v1660_v39  ;;  %v1689_v6 = vmul.f32 %v1660_v39, %v1660_v39 }
 0x17a   : > { %v1672_v4 = vadd.f32 %v1671_v47, %v1657_v1  ;;  %v1692_v17 = vadd.f32 %v1685_v49, %v1684_v40 }
 0x17c   : > { %v1693_v51 = vadd.f32 %v1692_v17, %v1686_v14  ;;  %v1673_v16 = vadd.f32 %v1672_v4, %v1658_v23 }
 0x17e   : > { %v1674_v26 = vadd.f32 %v1673_v16, %v1659_v44  ;;  %v1694_v35 = vadd.f32 %v1693_v51, %v1687_v33 }
 0x180   : > { %v1675_v50 = vadd.f32 %v1674_v26, %v1660_v39  ;;  %v1695_v55 = vadd.f32 %v1694_v35, %v1688_v30 }
 0x182   : > { %v1676_v61 = vadd.f32 %v1675_v50, %v1661_v37  ;;  %v1696_v18 = vadd.f32 %v1695_v55, %v1689_v6 }
 0x184   : > { %v1677_v60 = vadd.f32 %v1676_v61, %v1662_v36  ;;  %v1697_v58 = vadd.f32 %v1696_v18, %v1690_v53 }
 0x186   : > { %v1678_v7 = vrot.slane %v1677_v60, 4  ;;  %v1698_v46 = vadd.f32 %v1697_v58, %v1691_v20 }
 0x188   : > { %v1679_v19 = vadd.f32 %v1678_v7, %v1677_v60  ;;  %v1699_v9 = vrot.slane %v1698_v46, 4 }
 0x18a   : > { %v1680_v22 = vrot.slane %v1679_v19, 2  ;;  %v1700_v11 = vadd.f32 %v1699_v9, %v1698_v46 }
 0x18c   : > { %v1681_v15 = vadd.f32 %v1680_v22, %v1679_v19  ;;  %v1701_v25 = vrot.slane %v1700_v11, 2 }
 0x18e   : > { %v1682_v0 = vrot.slane %v1681_v15, 1  ;;  %v1702_v59 = vadd.f32 %v1701_v25, %v1700_v11 }
 0x190   : > { %v1703_v13 = vrot.slane %v1702_v59, 1  ;;  %v1683_v27 = vadd.f32 %v1682_v0, %v1681_v15 }
 0x192   : > { %v1704_v54 = vadd.f32 %v1703_v13, %v1702_v59 }
 0x194   : > { %v1706_v57 = vsel %vm1705_vm2, %v1683_v27, %v1704_v54 }
 0x195   : > { %v1708_v21 = vsel %vm1707_vm3, %v1706_v57, 0.0 }
 0x196   : > { %1709 = vst [vmem:[%s252_s24] sm:$0xff] %v1708_v21 }
 0x197 PF: > { %s15_s17 = sadd.s32 1, %s2533_s17   ;;  %s3141_s15 = smov %s2529_s16 }
 0x198   : > { %p12_p5 = scmp.ge.s32.totalorder %s15_s17, 4   ;;  %s3142_s16 = smov %s3144_s18 }
 0x19a   :  { %14 = sbr.rel (!%p12_p5) target bundleno = 2 (0x2), region = 82 }

// kernel: unet_forward.36
= control target key start
LH: loop header
LB: loop body
LE: loop exit
PB: predicated region body
PF: predicated region fallthrough
CT: control target
= control target key end

     0   :  { %s657_s6 = smov 0   ;;  %s796_s0 = inlined_call_operand.vmem [shape: bf16[2,8,8,128], index: 0, kind: input, shape index: {}]   ;;  %s797_s1 = inlined_call_operand.vmem [shape: bf16[2,8,2,8,256], index: 1, kind: output, shape index: {}]  }
   0x1 LB: > { %s559_s7 = sadd.s32 4294967295, %s645_s6   ;;  %p563_p0 = scmp.ge.s32.totalorder %s645_s6, 1  ;;  %s645_s6 = sphi %s657_s6, %s11_s6  }
   0x2   : > { %p87_p1 = scmp.lt.s32.totalorder %s645_s6, 3 }
   0x4   : > { %p88_p2 = pnand %p563_p0, %p87_p1 }
   0x5   : > { %p107_p3 = scmp.lt.s32.totalorder (!%p88_p2), %s559_s7, 1 }
   0x6   : > { %91 = sbr.rel (%p88_p2) target bundleno = 72 (0x48), region = 24 }
   0xb   : > { %s799_s7 = smov (!%p107_p3, %s559_s7), 1  ;;  %vm189_vm0 = vcmask 1040384   ;;  %vm214_vm1 = vcmask 1046528  }
   0xc   : > { %s594_s8 = sshll.u32 %s799_s7, 5  ;;  %s595_s12 = sshll.u32 %s799_s7, 7 }
   0xd   : > { %s111_s11 = scalar_lea.vmem %s796_s0, %s594_s8  ;;  %s713_s15 = scalar_lea.vmem %s797_s1, %s595_s12 }
   0xe   : > { %v613_v0 = vld [vmem:[%s111_s11] sm:$0xff]   ;;  %v628_v1 = vld [vmem:[%s111_s11 + $0x8] sm:$0xff]   ;;  %v629_v2 = vld [vmem:[%s111_s11 + $0x10] sm:$0xff]  }
   0xf   : > { %v614_v3 = vunpack.c.l.bf16 %v613_v0  ;;  %v615_v4 = vunpack.c.h.bf16 %v613_v0  ;;  %v618_v5 = vunpack.c.l.bf16 %v628_v1  ;;  %v619_v6 = vunpack.c.h.bf16 %v628_v1  ;;  %v671_v7 = vld [vmem:[%s111_s11 + $0x18] sm:$0xff]  }
  0x10   : > { %v622_v8 = vunpack.c.l.bf16 %v629_v2  ;;  %v623_v9 = vunpack.c.h.bf16 %v629_v2  ;;  %v626_v10 = vunpack.c.l.bf16 %v671_v7  ;;  %v627_v11 = vunpack.c.h.bf16 %v671_v7 }
  0x11   : > { %v133_v12 = vmul.f32 0.25, %v614_v3  ;;  %v675_v13 = vmul.f32 0.75, %v614_v3  ;;  %v677_v14 = vmul.f32 0.75, %v615_v4  ;;  %v679_v15 = vmul.f32 0.25, %v615_v4 }
  0x12   : > { %v681_v16 = vmul.f32 0.75, %v618_v5  ;;  %v683_v17 = vmul.f32 0.25, %v618_v5  ;;  %v685_v18 = vmul.f32 0.75, %v619_v6  ;;  %v687_v19 = vmul.f32 0.25, %v619_v6 }
  0x13   : > { %v148_v20 = vadd.f32 %v675_v13, %v133_v12  ;;  %v149_v21 = vadd.f32 %v677_v14, %v133_v12  ;;  %v691_v22 = vmul.f32 0.75, %v622_v8  ;;  %v693_v23 = vmul.f32 0.25, %v622_v8 }
  0x14   : > { %v150_v24 = vadd.f32 %v681_v16, %v679_v15  ;;  %v151_v25 = vadd.f32 %v685_v18, %v683_v17  ;;  %v699_v26 = vmul.f32 0.75, %v623_v9  ;;  %v701_v27 = vmul.f32 0.25, %v623_v9 }
  0x15   : > { %v173_v28 = vrot.slane %v148_v20, 7  ;;  %v198_v29 = vrot.slane %v148_v20, 1  ;;  %v231_v30 = vmul.f32 0.75, %v148_v20  ;;  %v174_v31 = vrot.slane %v149_v21, 7 }
  0x16   : > { %v199_v32 = vrot.slane %v149_v21, 1  ;;  %v232_v33 = vmul.f32 0.75, %v149_v21  ;;  %v175_v34 = vrot.slane %v150_v24, 7  ;;  %v200_v35 = vrot.slane %v150_v24, 1 }
  0x17   : > { %v190_v36 = vsel %vm189_vm0, %v148_v20, %v173_v28  ;;  %v215_v37 = vsel %vm214_vm1, %v198_v29, %v148_v20  ;;  %v191_v38 = vsel %vm189_vm0, %v149_v21, %v174_v31  ;;  %v233_v39 = vmul.f32 0.75, %v150_v24 }
  0x18   : > { %v223_v40 = vmul.f32 0.25, %v190_v36  ;;  %v247_v41 = vmul.f32 0.25, %v215_v37  ;;  %v216_v42 = vsel %vm214_vm1, %v199_v32, %v149_v21  ;;  %v224_v43 = vmul.f32 0.25, %v191_v38 }
  0x19   : > { %v248_v44 = vmul.f32 0.25, %v216_v42  ;;  %v192_v45 = vsel %vm189_vm0, %v150_v24, %v175_v34  ;;  %v217_v46 = vsel %vm214_vm1, %v200_v35, %v150_v24  ;;  %v176_v47 = vrot.slane %v151_v25, 7 }
  0x1a   : > { %v239_v48 = vadd.f32 %v231_v30, %v223_v40  ;;  %v255_v49 = vadd.f32 %v247_v41, %v231_v30  ;;  %v240_v50 = vadd.f32 %v232_v33, %v224_v43  ;;  %v225_v51 = vmul.f32 0.25, %v192_v45 }
  0x1b   : > { %v256_v52 = vadd.f32 %v248_v44, %v232_v33  ;;  %v249_v53 = vmul.f32 0.25, %v217_v46  ;;  %v193_v54 = vsel %vm189_vm0, %v151_v25, %v176_v47  ;;  %v201_v55 = vrot.slane %v151_v25, 1 }
  0x1c   : > { %v596_v56 = vpack.c.bf16 %v255_v49, %v239_v48  ;;  %v241_v57 = vadd.f32 %v233_v39, %v225_v51  ;;  %v226_v58 = vmul.f32 0.25, %v193_v54  ;;  %v234_v59 = vmul.f32 0.75, %v151_v25 }
  0x1d   : > { %v597_v60 = vpack.c.bf16 %v256_v52, %v240_v50  ;;  %v257_v61 = vadd.f32 %v249_v53, %v233_v39  ;;  %v218_v62 = vsel %vm214_vm1, %v201_v55, %v151_v25  ;;  %v152_v63 = vadd.f32 %v691_v22, %v687_v19 }
  0x1e   : > { %327 = vst [vmem:[%s713_s15] sm:$0xff] %v596_v56  ;;  %v242_v0 = vadd.f32 %v234_v59, %v226_v58  ;;  %v250_v1 = vmul.f32 0.25, %v218_v62  ;;  %v153_v2 = vadd.f32 %v699_v26, %v693_v23  ;;  %v724_v3 = vmul.f32 0.75, %v626_v10 }
  0x1f   : > { %328 = vst [vmem:[%s713_s15 + $0x10] sm:$0xff] %v597_v60  ;;  %v598_v4 = vpack.c.bf16 %v257_v61, %v241_v57  ;;  %v177_v5 = vrot.slane %v152_v63, 7  ;;  %v202_v6 = vrot.slane %v152_v63, 1  ;;  %v235_v8 = vmul.f32 0.75, %v152_v63 }
  0x20   : > { %v258_v9 = vadd.f32 %v250_v1, %v234_v59  ;;  %v178_v12 = vrot.slane %v153_v2, 7  ;;  %v203_v20 = vrot.slane %v153_v2, 1  ;;  %v236_v21 = vmul.f32 0.75, %v153_v2 }
  0x21   : > { %329 = vst [vmem:[%s713_s15 + $0x20] sm:$0xff] %v598_v4  ;;  %v194_v24 = vsel %vm189_vm0, %v152_v63, %v177_v5  ;;  %v219_v25 = vsel %vm214_vm1, %v202_v6, %v152_v63  ;;  %v154_v28 = vadd.f32 %v724_v3, %v701_v27  ;;  %v734_v29 = vmul.f32 0.25, %v626_v10 }
  0x22   : > { %v599_v30 = vpack.c.bf16 %v258_v9, %v242_v0  ;;  %v227_v31 = vmul.f32 0.25, %v194_v24  ;;  %v251_v32 = vmul.f32 0.25, %v219_v25  ;;  %v195_v33 = vsel %vm189_vm0, %v153_v2, %v178_v12 }
  0x23   : > { %v220_v34 = vsel %vm214_vm1, %v203_v20, %v153_v2  ;;  %v228_v35 = vmul.f32 0.25, %v195_v33  ;;  %v179_v36 = vrot.slane %v154_v28, 7  ;;  %v204_v37 = vrot.slane %v154_v28, 1 }
  0x24   : > { %330 = vst [vmem:[%s713_s15 + $0x30] sm:$0xff] %v599_v30  ;;  %v243_v38 = vadd.f32 %v235_v8, %v227_v31  ;;  %v259_v39 = vadd.f32 %v251_v32, %v235_v8  ;;  %v252_v40 = vmul.f32 0.25, %v220_v34  ;;  %v237_v41 = vmul.f32 0.75, %v154_v28 }
  0x25   : > { %v244_v42 = vadd.f32 %v236_v21, %v228_v35  ;;  %v196_v10 = vsel %vm189_vm0, %v154_v28, %v179_v36  ;;  %v221_v43 = vsel %vm214_vm1, %v204_v37, %v154_v28  ;;  %v743_v44 = vmul.f32 0.75, %v627_v11 }
  0x26   : > { %v600_v45 = vpack.c.bf16 %v259_v39, %v243_v38  ;;  %v260_v46 = vadd.f32 %v252_v40, %v236_v21  ;;  %v229_v47 = vmul.f32 0.25, %v196_v10  ;;  %v253_v48 = vmul.f32 0.25, %v221_v43 }
  0x27   : > { %v155_v49 = vadd.f32 %v743_v44, %v734_v29  ;;  %v157_v50 = vadd.f32 %v675_v13, %v679_v15  ;;  %v158_v51 = vadd.f32 %v677_v14, %v683_v17  ;;  %v159_v52 = vadd.f32 %v681_v16, %v687_v19 }
  0x28   : > { %331 = vst [vmem:[%s713_s15 + $0x40] sm:$0xff] %v600_v45  ;;  %v601_v53 = vpack.c.bf16 %v260_v46, %v244_v42  ;;  %v245_v54 = vadd.f32 %v237_v41, %v229_v47  ;;  %v261_v55 = vadd.f32 %v253_v48, %v237_v41  ;;  %v160_v56 = vadd.f32 %v685_v18, %v693_v23 }
  0x29   : > { %v180_v57 = vrot.slane %v155_v49, 7  ;;  %v205_v58 = vrot.slane %v155_v49, 1  ;;  %v238_v59 = vmul.f32 0.75, %v155_v49  ;;  %v343_v60 = vrot.slane %v157_v50, 7 }
  0x2a   : > { %332 = vst [vmem:[%s713_s15 + $0x50] sm:$0xff] %v601_v53  ;;  %v602_v13 = vpack.c.bf16 %v261_v55, %v245_v54  ;;  %v367_v15 = vrot.slane %v157_v50, 1  ;;  %v399_v61 = vmul.f32 0.75, %v157_v50  ;;  %v344_v14 = vrot.slane %v158_v51, 7 }
  0x2b   : > { %v197_v17 = vsel %vm189_vm0, %v155_v49, %v180_v57  ;;  %v222_v16 = vsel %vm214_vm1, %v205_v58, %v155_v49  ;;  %v359_v19 = vsel %vm189_vm0, %v157_v50, %v343_v60  ;;  %v368_v62 = vrot.slane %v158_v51, 1 }
  0x2c   : > { %333 = vst [vmem:[%s713_s15 + $0x60] sm:$0xff] %v602_v13  ;;  %v230_v63 = vmul.f32 0.25, %v197_v17  ;;  %v254_v0 = vmul.f32 0.25, %v222_v16  ;;  %v383_v18 = vsel %vm214_vm1, %v367_v15, %v157_v50  ;;  %v391_v23 = vmul.f32 0.25, %v359_v19 }
  0x2d   : > { %v415_v1 = vmul.f32 0.25, %v383_v18  ;;  %v360_v2 = vsel %vm189_vm0, %v158_v51, %v344_v14  ;;  %v384_v4 = vsel %vm214_vm1, %v368_v62, %v158_v51  ;;  %v400_v5 = vmul.f32 0.75, %v158_v51 }
  0x2e   : > { %v246_v6 = vadd.f32 %v238_v59, %v230_v63  ;;  %v262_v8 = vadd.f32 %v254_v0, %v238_v59  ;;  %v407_v9 = vadd.f32 %v399_v61, %v391_v23  ;;  %v392_v12 = vmul.f32 0.25, %v360_v2 }
  0x2f   : > { %v423_v20 = vadd.f32 %v415_v1, %v399_v61  ;;  %v416_v21 = vmul.f32 0.25, %v384_v4  ;;  %v345_v24 = vrot.slane %v159_v52, 7  ;;  %v369_v25 = vrot.slane %v159_v52, 1 }
  0x30   : > { %v603_v28 = vpack.c.bf16 %v262_v8, %v246_v6  ;;  %v408_v30 = vadd.f32 %v400_v5, %v392_v12  ;;  %v401_v31 = vmul.f32 0.75, %v159_v52  ;;  %v346_v32 = vrot.slane %v160_v56, 7 }
  0x31   : > { %v604_v33 = vpack.c.bf16 %v423_v20, %v407_v9  ;;  %v424_v34 = vadd.f32 %v416_v21, %v400_v5  ;;  %v361_v35 = vsel %vm189_vm0, %v159_v52, %v345_v24  ;;  %v385_v36 = vsel %vm214_vm1, %v369_v25, %v159_v52 }
  0x32   : > { %334 = vst [vmem:[%s713_s15 + $0x70] sm:$0xff] %v603_v28  ;;  %v393_v37 = vmul.f32 0.25, %v361_v35  ;;  %v417_v38 = vmul.f32 0.25, %v385_v36  ;;  %v362_v39 = vsel %vm189_vm0, %v160_v56, %v346_v32  ;;  %v370_v40 = vrot.slane %v160_v56, 1 }
  0x33   : > { %584 = vst [vmem:[%s713_s15 + $0x8] sm:$0xff] %v604_v33  ;;  %v605_v41 = vpack.c.bf16 %v424_v34, %v408_v30  ;;  %v394_v42 = vmul.f32 0.25, %v362_v39  ;;  %v402_v10 = vmul.f32 0.75, %v160_v56  ;;  %v161_v43 = vadd.f32 %v691_v22, %v701_v27 }
  0x34   : > { %v409_v45 = vadd.f32 %v401_v31, %v393_v37  ;;  %v425_v46 = vadd.f32 %v417_v38, %v401_v31  ;;  %v386_v47 = vsel %vm214_vm1, %v370_v40, %v160_v56  ;;  %v162_v48 = vadd.f32 %v699_v26, %v734_v29 }
  0x35   : > { %585 = vst [vmem:[%s713_s15 + $0x18] sm:$0xff] %v605_v41  ;;  %v410_v49 = vadd.f32 %v402_v10, %v394_v42  ;;  %v418_v50 = vmul.f32 0.25, %v386_v47  ;;  %v347_v51 = vrot.slane %v161_v43, 7  ;;  %v371_v52 = vrot.slane %v161_v43, 1 }
  0x36   : > { %v606_v53 = vpack.c.bf16 %v425_v46, %v409_v45  ;;  %v403_v54 = vmul.f32 0.75, %v161_v43  ;;  %v348_v55 = vrot.slane %v162_v48, 7  ;;  %v372_v57 = vrot.slane %v162_v48, 1 }
  0x37   : > { %v426_v58 = vadd.f32 %v418_v50, %v402_v10  ;;  %v363_v22 = vsel %vm189_vm0, %v161_v43, %v347_v51  ;;  %v387_v27 = vsel %vm214_vm1, %v371_v52, %v161_v43  ;;  %v404_v59 = vmul.f32 0.75, %v162_v48 }
  0x38   : > { %586 = vst [vmem:[%s713_s15 + $0x28] sm:$0xff] %v606_v53  ;;  %v395_v56 = vmul.f32 0.25, %v363_v22  ;;  %v419_v60 = vmul.f32 0.25, %v387_v27  ;;  %v364_v26 = vsel %vm189_vm0, %v162_v48, %v348_v55  ;;  %v388_v29 = vsel %vm214_vm1, %v372_v57, %v162_v48 }
  0x39   : > { %v607_v13 = vpack.c.bf16 %v426_v58, %v410_v49  ;;  %v396_v15 = vmul.f32 0.25, %v364_v26  ;;  %v420_v61 = vmul.f32 0.25, %v388_v29  ;;  %v156_v14 = vmul.f32 0.25, %v627_v11 }
  0x3a   : > { %v411_v17 = vadd.f32 %v403_v54, %v395_v56  ;;  %v427_v16 = vadd.f32 %v419_v60, %v403_v54 }
  0x3b   : > { %587 = vst [vmem:[%s713_s15 + $0x38] sm:$0xff] %v607_v13  ;;  %v412_v19 = vadd.f32 %v404_v59, %v396_v15  ;;  %v428_v62 = vadd.f32 %v420_v61, %v404_v59  ;;  %v163_v63 = vadd.f32 %v156_v14, %v724_v3  ;;  %v164_v0 = vadd.f32 %v156_v14, %v743_v44 }
  0x3c   : > { %v608_v18 = vpack.c.bf16 %v427_v16, %v411_v17 }
  0x3d   : > { %v609_v23 = vpack.c.bf16 %v428_v62, %v412_v19  ;;  %v349_v1 = vrot.slane %v163_v63, 7  ;;  %v373_v2 = vrot.slane %v163_v63, 1  ;;  %v405_v4 = vmul.f32 0.75, %v163_v63 }
  0x3e   : > { %588 = vst [vmem:[%s713_s15 + $0x48] sm:$0xff] %v608_v18  ;;  %v350_v5 = vrot.slane %v164_v0, 7  ;;  %v374_v6 = vrot.slane %v164_v0, 1  ;;  %v406_v8 = vmul.f32 0.75, %v164_v0 }
  0x3f   : > { %589 = vst [vmem:[%s713_s15 + $0x58] sm:$0xff] %v609_v23  ;;  %v365_v7 = vsel %vm189_vm0, %v163_v63, %v349_v1  ;;  %v389_v11 = vsel %vm214_vm1, %v373_v2, %v163_v63 }
  0x40   : > { %v397_v9 = vmul.f32 0.25, %v365_v7  ;;  %v421_v3 = vmul.f32 0.25, %v389_v11  ;;  %v366_v44 = vsel %vm189_vm0, %v164_v0, %v350_v5  ;;  %v390_v12 = vsel %vm214_vm1, %v374_v6, %v164_v0 }
  0x41   : > { %v398_v20 = vmul.f32 0.25, %v366_v44  ;;  %v422_v21 = vmul.f32 0.25, %v390_v12 }
  0x42   : > { %v413_v24 = vadd.f32 %v405_v4, %v397_v9  ;;  %v429_v25 = vadd.f32 %v421_v3, %v405_v4 }
  0x43   : > { %v414_v28 = vadd.f32 %v406_v8, %v398_v20  ;;  %v430_v30 = vadd.f32 %v422_v21, %v406_v8 }
  0x44   : > { %v610_v31 = vpack.c.bf16 %v429_v25, %v413_v24 }
  0x45   : > { %v611_v32 = vpack.c.bf16 %v430_v30, %v414_v28 }
  0x46   : > { %590 = vst [vmem:[%s713_s15 + $0x68] sm:$0xff] %v610_v31 }
  0x47   : > { %591 = vst [vmem:[%s713_s15 + $0x78] sm:$0xff] %v611_v32 }
  0x48 PF: > { %s11_s6 = sadd.s32 1, %s645_s6  }
  0x49   : > { %p8_p4 = scmp.ge.s32.totalorder %s11_s6, 4  }
  0x4b   :  { %10 = sbr.rel (!%p8_p4) target bundleno = 1 (0x1), region = 55 }

// kernel: unet_forward.32
= control target key start
LH: loop header
LB: loop body
LE: loop exit
PB: predicated region body
PF: predicated region fallthrough
CT: control target
= control target key end

     0   :  { %s3609_s15 = smov 0   ;;  %s3611_s16 = smov 0   ;;  %s4731_s0 = inlined_call_operand.vmem [shape: bf16[2,1,10,10,256], index: 0, kind: input, shape index: {}]   ;;  %s4732_s1 = inlined_call_operand.vmem [shape: bf16[9,256,128], index: 1, kind: input, shape index: {}]   ;;  %s4733_s2 = inlined_call_operand.vmem [shape: f32[1,128], index: 2, kind: input, shape index: {}]   ;;  %s4734_s3 = inlined_call_operand.vmem [shape: f32[2,1,8,8,128], index: 3, kind: output, shape index: {0}]   ;;  %s4735_s4 = inlined_call_operand.vmem [shape: f32[2,1,8,128], index: 4, kind: output, shape index: {1}]  }
   0x1   :  { %s3613_s17 = smov 0  }
   0x2 LB: > { %s27_s18 = sadd.s32 1, %s3578_s16  ;;  %p2570_p0 = scmp.ge.s32.totalorder %s3582_s17, 1  ;;  %s3582_s17 = sphi %s3613_s17, %s15_s17   ;;  %s3578_s16 = sphi %s3611_s16, %s4785_s16   ;;  %s3574_s15 = sphi %s3609_s15, %s4784_s15  }
   0x3   : > { %p29_p1 = scmp.ge.s32.totalorder %s27_s18, 2  ;;  %p187_p2 = scmp.lt.s32.totalorder %s3582_s17, 3 }
   0x5   : > { %s4787_s18 = smov (%p29_p1, %s27_s18), 0  ;;  %p188_p3 = pnand %p2570_p0, %p187_p2 }
   0x7   : > { %191 = sbr.rel (%p188_p3) target bundleno = 418 (0x1a2), region = 32 }
   0xc   : > { %v3398_v0 = vld [vmem:[%s4732_s1 + $0xf8] sm:$0xff]   ;;  %v3402_v4 = vld [vmem:[%s4732_s1 + $0xf0] sm:$0xff]   ;;  %v3406_v8 = vld [vmem:[%s4732_s1 + $0xe8] sm:$0xff]   ;;  %p228_p4 = scmp.lt.s32.totalorder %s3574_s15, 1  ;;  %vm386_vm0 = vcmask 1046528   ;;  %vm814_vm1 = vcmask 1045504  }
   0xd   : > { %v3399_v1 = vld [vmem:[%s4732_s1 + $0x78] sm:$0xff]   ;;  %2997 = vmatprep.subr.bf16.mxu0 %v3398_v0  ;;  %v3403_v5 = vld [vmem:[%s4732_s1 + $0x70] sm:$0xff]   ;;  %v3407_v9 = vld [vmem:[%s4732_s1 + $0x68] sm:$0xff]   ;;  %vm2428_vm2 = vcmask 1040384   ;;  %vm2430_vm3 = vcmask 1041408  }
   0xe   : > { %v3400_v2 = vld [vmem:[%s4732_s1 + $0xb8] sm:$0xff]   ;;  %3037 = vmatprep.subr.bf16.mxu1 %v3399_v1  ;;  %v3404_v6 = vld [vmem:[%s4732_s1 + $0xb0] sm:$0xff]   ;;  %v3408_v10 = vld [vmem:[%s4732_s1 + $0xa8] sm:$0xff]   ;;  %s4789_s15 = smov (!%p228_p4, %s3574_s15), 1 }
   0xf   : > { %v3401_v3 = vld [vmem:[%s4732_s1 + $0x38] sm:$0xff]   ;;  %2998 = vmatpush3.bf16.msra.mxu0 %v3400_v2  ;;  %v3405_v7 = vld [vmem:[%s4732_s1 + $0x30] sm:$0xff]   ;;  %v3409_v11 = vld [vmem:[%s4732_s1 + $0x28] sm:$0xff]   ;;  %s3373_s27 = smul.u32 160, %s4789_s15  ;;  %s2996_s8 = sshll.u32 %s4789_s15, 6 }
  0x10   : > { %3038 = vmatpush3.bf16.msra.mxu1 %v3401_v3  ;;  %2999 = vmatprep.subr.bf16.mxu0 %v3402_v4  ;;  %v3410_v12 = vld [vmem:[%s4732_s1 + $0xe0] sm:$0xff]   ;;  %v3414_v16 = vld [vmem:[%s4732_s1 + $0xd8] sm:$0xff]   ;;  %v3418_v20 = vld [vmem:[%s4732_s1 + $0xd0] sm:$0xff]   ;;  %s4695_s13 = scalar_lea.vmem %s4734_s3, %s2996_s8  ;;  %s2574_s14 = sshll.u32 %s4789_s15, 3 }
  0x11   : > { %3039 = vmatprep.subr.bf16.mxu1 %v3403_v5  ;;  %v3411_v13 = vld [vmem:[%s4732_s1 + $0x60] sm:$0xff]   ;;  %v3415_v17 = vld [vmem:[%s4732_s1 + $0x58] sm:$0xff]   ;;  %v3419_v21 = vld [vmem:[%s4732_s1 + $0x50] sm:$0xff]   ;;  %s3727_s12 = scalar_lea.vmem %s4731_s0, %s3373_s27  ;;  %s252_s21 = scalar_lea.vmem %s4735_s4, %s2574_s14 }
  0x12   : > { %v3412_v14 = vld [vmem:[%s4732_s1 + $0xa0] sm:$0xff]   ;;  %v3416_v18 = vld [vmem:[%s4732_s1 + $0x98] sm:$0xff]   ;;  %v3420_v22 = vld [vmem:[%s4732_s1 + $0x90] sm:$0xff]  }
  0x13   : > { %3000 = vmatpush3.bf16.msra.mxu0 %v3404_v6  ;;  %v3413_v15 = vld [vmem:[%s4732_s1 + $0x20] sm:$0xff]   ;;  %v3417_v19 = vld [vmem:[%s4732_s1 + $0x18] sm:$0xff]   ;;  %v3421_v23 = vld [vmem:[%s4732_s1 + $0x10] sm:$0xff]  }
  0x14   : > { %3040 = vmatpush3.bf16.msra.mxu1 %v3405_v7  ;;  %3001 = vmatprep.subr.bf16.mxu0 %v3406_v8  ;;  %v3422_v24 = vld [vmem:[%s4732_s1 + $0xc8] sm:$0xff]   ;;  %v3426_v28 = vld [vmem:[%s4732_s1 + $0xc0] sm:$0xff]   ;;  %v3742_v34 = vld [vmem:[%s3727_s12 + $0x10] sm:$0xff] }
  0x15   : > { %3041 = vmatprep.subr.bf16.mxu1 %v3407_v9  ;;  %v3423_v25 = vld [vmem:[%s4732_s1 + $0x48] sm:$0xff]   ;;  %v3427_v29 = vld [vmem:[%s4732_s1 + $0x40] sm:$0xff]   ;;  %v3745_v35 = vld [vmem:[%s3727_s12 + $0x18] sm:$0x11]  ;;  %v279_v40 = vunpack.c.h.bf16 %v3742_v34  ;;  %v278_v53 = vunpack.c.l.bf16 %v3742_v34 }
  0x16   : > { %v3424_v26 = vld [vmem:[%s4732_s1 + $0x88] sm:$0xff]   ;;  %v3428_v30 = vld [vmem:[%s4732_s1 + $0x80] sm:$0xff]   ;;  %v280_v42 = vunpack.c.l.bf16 %v3745_v35  ;;  %v281_v43 = vunpack.c.h.bf16 %v3745_v35  ;;  %v3432_v44 = vld [vmem:[%s4732_s1 + $0x178] sm:$0xff]  }
  0x17   : > { %3002 = vmatpush3.bf16.msra.mxu0 %v3408_v10  ;;  %v3425_v27 = vld [vmem:[%s4732_s1 + $0x8] sm:$0xff]   ;;  %v3429_v31 = vld [vmem:[%s4732_s1] sm:$0xff]   ;;  %v396_v47 = vrot.slane %v279_v40, 1  ;;  %v3433_v54 = vld [vmem:[%s4732_s1 + $0x1f8] sm:$0xff]   ;;  %v393_v62 = vrot.slane %v278_v53, 1 }
  0x18   : > { %3042 = vmatpush3.bf16.msra.mxu1 %v3409_v11  ;;  %3003 = vmatprep.subr.bf16.mxu0 %v3410_v12  ;;  %v3736_v32 = vld [vmem:[%s3727_s12] sm:$0xff]  ;;  %v3739_v33 = vld [vmem:[%s3727_s12 + $0x8] sm:$0x11]  ;;  %v397_v49 = vrot.slane %v281_v43, 1  ;;  %v394_v58 = vrot.slane %v280_v42, 1  ;;  %v3435_v59 = vld [vmem:[%s4732_s1 + $0x1b8] sm:$0xff]  }
  0x19   : > { %3043 = vmatprep.subr.bf16.mxu1 %v3411_v13  ;;  %v3748_v36 = vld [vmem:[%s3727_s12 + $0x20] sm:$0xff]  ;;  %v3751_v37 = vld [vmem:[%s3727_s12 + $0x28] sm:$0x11]  ;;  %v275_v38 = vunpack.c.h.bf16 %v3736_v32  ;;  %v277_v39 = vunpack.c.h.bf16 %v3739_v33  ;;  %v276_v41 = vunpack.c.l.bf16 %v3739_v33  ;;  %v2576_v51 = vcombine.high %v3736_v32, %v3742_v34  ;;  %v3434_v1 = vld [vmem:[%s4732_s1 + $0x138] sm:$0xff]  }
  0x1a   : > { %v283_v48 = vunpack.c.h.bf16 %v3748_v36  ;;  %v274_v52 = vunpack.c.l.bf16 %v3736_v32  ;;  %v285_v55 = vunpack.c.h.bf16 %v3751_v37  ;;  %v3781_v56 = vsel %vm386_vm0, %v396_v47, %v397_v49  ;;  %v3437_v2 = vld [vmem:[%s4732_s1 + $0x1f0] sm:$0xff]   ;;  %v3447_v49 = vld [vmem:[%s4732_s1 + $0x1e0] sm:$0xff]  }
  0x1b   : > { %3004 = vmatpush3.bf16.msra.mxu0 %v3412_v14  ;;  %v390_v45 = vrot.slane %v275_v38, 1  ;;  %v391_v46 = vrot.slane %v277_v39, 1  ;;  %v388_v57 = vrot.slane %v276_v41, 1  ;;  %781 = vmatprep.mubr.bf16.mxu1 %v2576_v51  ;;  %v2575_v0 = vcombine.low %v3736_v32, %v3742_v34  ;;  %v3436_v9 = vld [vmem:[%s4732_s1 + $0x170] sm:$0xff]   ;;  %v3828_v14 = vld [vmem:[%s3727_s12 + $0x38] sm:$0x11] }
  0x1c   : > { %3044 = vmatpush3.bf16.msra.mxu1 %v3413_v15  ;;  %3005 = vmatprep.subr.bf16.mxu0 %v3414_v16  ;;  %v387_v61 = vrot.slane %v274_v52, 1  ;;  %v402_v63 = vrot.slane %v283_v48, 1  ;;  %v282_v3 = vunpack.c.l.bf16 %v3748_v36  ;;  %v3808_v5 = vsel %vm386_vm0, %v393_v62, %v394_v58  ;;  %v3439_v10 = vld [vmem:[%s4732_s1 + $0x1b0] sm:$0xff]   ;;  %v3448_v51 = vld [vmem:[%s4732_s1 + $0x120] sm:$0xff]  }
  0x1d   : > { %3045 = vmatprep.subr.bf16.mxu1 %v3415_v17  ;;  %v392_v50 = vsel %vm386_vm0, %v390_v45, %v391_v46  ;;  %v284_v6 = vunpack.c.l.bf16 %v3751_v37  ;;  %v403_v7 = vrot.slane %v285_v55, 1  ;;  %v3821_v11 = vld [vmem:[%s3727_s12 + $0x30] sm:$0xff]  ;;  %v3444_v45 = vld [vmem:[%s4732_s1 + $0x128] sm:$0xff]   ;;  %v818_v58 = vrot.slane %v275_v38, 2 }
  0x1e   : > { %v452_v60 = vpack.c.bf16 %v3781_v56, %v392_v50  ;;  %v389_v4 = vsel %vm386_vm0, %v387_v61, %v388_v57  ;;  %v399_v12 = vrot.slane %v282_v3, 1  ;;  %v287_v15 = vunpack.c.h.bf16 %v3821_v11  ;;  %v3446_v50 = vld [vmem:[%s4732_s1 + $0x160] sm:$0xff]   ;;  %v3913_v61 = vld [vmem:[%s3727_s12 + $0x58] sm:$0x11]  ;;  %v3458_v33 = vld [vmem:[%s4732_s1 + $0x110] sm:$0xff]  }
  0x1f   : > { %3006 = vmatpush3.bf16.msra.mxu0 %v3416_v18  ;;  %v451_v8 = vpack.c.bf16 %v3808_v5, %v389_v4  ;;  %v400_v13 = vrot.slane %v284_v6, 1  ;;  %v3833_v16 = vcombine.high %v3748_v36, %v3821_v11  ;;  %v286_v17 = vunpack.c.l.bf16 %v3821_v11  ;;  %v3438_v18 = vld [vmem:[%s4732_s1 + $0x130] sm:$0xff]   ;;  %v3901_v57 = vld [vmem:[%s3727_s12 + $0x40] sm:$0xff] }
  0x20   : > { %3046 = vmatpush3.bf16.msra.mxu1 %v3417_v19  ;;  %3007 = vmatprep.subr.bf16.mxu0 %v3418_v20  ;;  %v289_v19 = vunpack.c.h.bf16 %v3828_v14  ;;  %v288_v20 = vunpack.c.l.bf16 %v3828_v14  ;;  %v291_v62 = vunpack.c.h.bf16 %v3901_v57  ;;  %v3459_v35 = vld [vmem:[%s4732_s1 + $0x190] sm:$0xff]  }
  0x21   : > { %3047 = vmatprep.subr.bf16.mxu1 %v3419_v21  ;;  %620 = vmatprep.mubr.bf16.mxu0 %v452_v60  ;;  %v408_v21 = vrot.slane %v287_v15, 1  ;;  %v3910_v60 = vld [vmem:[%s3727_s12 + $0x50] sm:$0xff]  ;;  %v833_v37 = vrot.slane %v286_v17, 2 }
  0x22   : > { %v4744_v38 = vunpack.c.h.bf16 %v3910_v60  ;;  %v3924_v4 = vcombine.high %v3901_v57, %v3910_v60  ;;  %v3476_v14 = vld [vmem:[%s4732_s1 + $0x270] sm:$0xff]  }
  0x23   : > { %3008 = vmatpush3.bf16.msra.mxu0 %v3420_v22  ;;  %v405_v22 = vrot.slane %v286_v17, 1  ;;  %v3474_v17 = vld [vmem:[%s4732_s1 + $0x238] sm:$0xff]  }
  0x24   : > { %3048 = vmatpush3.bf16.msra.mxu1 %v3421_v23  ;;  %3009 = vmatprep.subr.bf16.mxu0 %v3422_v24  ;;  %v3848_v23 = vcombine.low %v3748_v36, %v3821_v11  ;;  %v3442_v24 = vld [vmem:[%s4732_s1 + $0x168] sm:$0xff]  }
  0x25   : > { %3049 = vmatprep.subr.bf16.mxu1 %v3423_v25  ;;  %v3443_v25 = vld [vmem:[%s4732_s1 + $0x1e8] sm:$0xff]  }
  0x27   : > { %3010 = vmatpush3.bf16.msra.mxu0 %v3424_v26  ;;  %v3857_v26 = vsel %vm386_vm0, %v402_v63, %v403_v7  ;;  %v4739_v63 = vunpack.c.l.bf16 %v3901_v57  ;;  %v3452_v7 = vld [vmem:[%s4732_s1 + $0x158] sm:$0xff]  }
  0x28   : > { %3050 = vmatpush3.bf16.msra.mxu1 %v3425_v27  ;;  %3011 = vmatprep.subr.bf16.mxu0 %v3426_v28  ;;  %v409_v27 = vrot.slane %v289_v19, 1  ;;  %v3862_v28 = vsel %vm386_vm0, %v399_v12, %v400_v13  ;;  %v3453_v12 = vld [vmem:[%s4732_s1 + $0x1d8] sm:$0xff]  }
  0x29   : > { %3051 = vmatprep.subr.bf16.mxu1 %v3427_v29  ;;  %v406_v29 = vrot.slane %v288_v20, 1 }
  0x2b   : > { %3012 = vmatpush3.bf16.msra.mxu0 %v3428_v30  ;;  %v3445_v30 = vld [vmem:[%s4732_s1 + $0x1a8] sm:$0xff]  }
  0x2c   : > { %3052 = vmatpush3.bf16.msra.mxu1 %v3429_v31  ;;  %3077 = vmatprep.subr.bf16.mxu0 %v3432_v44  ;;  %v3870_v31 = vsel %vm386_vm0, %v408_v21, %v409_v27  ;;  %v3873_v44 = vsel %vm386_vm0, %v405_v22, %v406_v29  ;;  %v411_v22 = vrot.slane %v4739_v63, 1  ;;  %v3954_v29 = vcombine.low %v3901_v57, %v3910_v60  ;;  %v3463_v63 = vld [vmem:[%s4732_s1 + $0x1c8] sm:$0xff]  }
  0x2d   : > { %3117 = vmatprep.subr.bf16.mxu1 %v3433_v54  ;;  %v3880_v46 = vpack.c.bf16 %v3870_v31, %v3857_v26  ;;  %v3884_v47 = vpack.c.bf16 %v3873_v44, %v3862_v28  ;;  %v3449_v54 = vld [vmem:[%s4732_s1 + $0x1a0] sm:$0xff]  }
  0x2e   : > { %621 = vmatmul.mubr.bf16.vlgmr.msra.gmra.mxu0 %v451_v8 }
  0x2f   : > { %782 = vmatmul.mubr.bf16.vlgmr.msra.gmra.mxu1 %v2575_v0  ;;  %3078 = vmatpush3.bf16.msra.mxu0 %v3434_v1  ;;  %v819_v0 = vrot.slane %v277_v39, 2  ;;  %v414_v39 = vrot.slane %v291_v62, 1 }
  0x30   : > { %3118 = vmatpush3.bf16.msra.mxu1 %v3435_v59  ;;  %3079 = vmatprep.subr.bf16.mxu0 %v3436_v9  ;;  %v3907_v59 = vld [vmem:[%s3727_s12 + $0x48] sm:$0x11]  ;;  %v4737_v9 = vunpack.c.l.bf16 %v3910_v60 }
  0x31   : > { %3119 = vmatprep.subr.bf16.mxu1 %v3437_v2  ;;  %789 = vmatprep.mubr.bf16.mxu1 %v3833_v16  ;;  %v4745_v1 = vunpack.c.h.bf16 %v3907_v59  ;;  %v4740_v2 = vunpack.c.h.bf16 %v3913_v61  ;;  %v4738_v8 = vunpack.c.l.bf16 %v3907_v59  ;;  %v820_v32 = vsel %vm814_vm1, %v818_v58, %v819_v0 }
  0x32   : > { %628 = vmatprep.mubr.bf16.mxu0 %v3880_v46 }
  0x33   : > { %3080 = vmatpush3.bf16.msra.mxu0 %v3438_v18  ;;  %v415_v13 = vrot.slane %v4745_v1, 1  ;;  %v420_v18 = vrot.slane %v4744_v38, 1  ;;  %v421_v21 = vrot.slane %v4740_v2, 1 }
  0x34   : > { %3120 = vmatpush3.bf16.msra.mxu1 %v3439_v10  ;;  %3081 = vmatprep.subr.bf16.mxu0 %v3442_v24  ;;  %v4736_v10 = vunpack.c.l.bf16 %v3913_v61  ;;  %v412_v24 = vrot.slane %v4738_v8, 1 }
  0x35   : > { %3121 = vmatprep.subr.bf16.mxu1 %v3443_v25  ;;  %v417_v25 = vrot.slane %v4737_v9, 1 }
  0x36   : > { %629 = vmatmul.mubr.bf16.gmra.mxu0 %v3884_v47  ;;  %v418_v27 = vrot.slane %v4736_v10, 1  ;;  %v3975_v10 = vsel %vm386_vm0, %v411_v22, %v412_v24  ;;  %v4021_v22 = vld [vmem:[%s3727_s12 + $0x68] sm:$0x11]  ;;  %v4024_v24 = vld [vmem:[%s3727_s12 + $0x70] sm:$0xff] }
  0x37   : > { %790 = vmatmul.mubr.bf16.gmra.mxu1 %v3848_v23  ;;  %3082 = vmatpush3.bf16.msra.mxu0 %v3444_v45  ;;  %v3960_v45 = vsel %vm386_vm0, %v414_v39, %v415_v13  ;;  %v3456_v39 = vld [vmem:[%s4732_s1 + $0x150] sm:$0xff]   ;;  %v3988_v13 = vrot.slane %v276_v41, 2  ;;  %v4007_v41 = vrot.slane %v274_v52, 2 }
  0x38   : > { %3122 = vmatpush3.bf16.msra.mxu1 %v3445_v30  ;;  %3083 = vmatprep.subr.bf16.mxu0 %v3446_v50  ;;  %v3454_v30 = vld [vmem:[%s4732_s1 + $0x118] sm:$0xff]  }
  0x39   : > { %3123 = vmatprep.subr.bf16.mxu1 %v3447_v49  ;;  %797 = vmatprep.mubr.bf16.mxu1 %v3924_v4  ;;  %v3963_v49 = vsel %vm386_vm0, %v420_v18, %v421_v21  ;;  %v3455_v50 = vld [vmem:[%s4732_s1 + $0x198] sm:$0xff]   ;;  %v3999_v21 = vrot.slane %v280_v42, 2  ;;  %v4015_v42 = vrot.slane %v278_v53, 2 }
  0x3a   : > { %v4035_v53 = vld [vmem:[%s3727_s12 + $0x78] sm:$0x11] }
  0x3b   : > { %3084 = vmatpush3.bf16.msra.mxu0 %v3448_v51  ;;  %v3978_v51 = vsel %vm386_vm0, %v417_v25, %v418_v27  ;;  %v4032_v25 = vrot.slane %v283_v48, 2  ;;  %v305_v0 = vunpack.c.h.bf16 %v4035_v53  ;;  %v4747_v48 = vunpack.c.l.bf16 %v4021_v22 }
  0x3c   : > { %3124 = vmatpush3.bf16.msra.mxu1 %v3449_v54  ;;  %v824_v54 = vrot.slane %v279_v40, 2  ;;  %3085 = vmatprep.subr.bf16.mxu0 %v3452_v7  ;;  %v825_v40 = vrot.slane %v281_v43, 2  ;;  %v3992_v18 = vpack.c.bf16 %v3978_v51, %v3975_v10  ;;  %v3457_v7 = vld [vmem:[%s4732_s1 + $0x1d0] sm:$0xff]   ;;  %v4018_v43 = vld [vmem:[%s3727_s12 + $0x60] sm:$0xff]  ;;  %v304_v8 = vunpack.c.l.bf16 %v4035_v53 }
  0x3d   : > { %3125 = vmatprep.subr.bf16.mxu1 %v3453_v12  ;;  %v3972_v12 = vpack.c.bf16 %v3963_v49, %v3960_v45  ;;  %v4741_v27 = vunpack.c.h.bf16 %v4018_v43  ;;  %v4042_v58 = vcombine.high %v4018_v43, %v4024_v24  ;;  %v433_v2 = vrot.slane %v305_v0, 1 }
  0x3e   : > { %v4028_v52 = vsel %vm814_vm1, %v824_v54, %v825_v40  ;;  %v4746_v54 = vunpack.c.l.bf16 %v4018_v43  ;;  %v3462_v40 = vld [vmem:[%s4732_s1 + $0x148] sm:$0xff]   ;;  %v430_v1 = vrot.slane %v304_v8, 1 }
  0x3f   : > { %798 = vmatmul.mubr.bf16.gmra.mxu1 %v3954_v29  ;;  %636 = vmatprep.mubr.bf16.mxu0 %v3972_v12 }
  0x40   : > { %3126 = vmatpush3.bf16.msra.mxu1 %v3455_v50  ;;  %637 = vmatmul.mubr.bf16.gmra.mxu0 %v3992_v18  ;;  %v4743_v50 = vunpack.c.h.bf16 %v4024_v24 }
  0x41   : > { %3127 = vmatprep.subr.bf16.mxu1 %v3457_v7  ;;  %3086 = vmatpush3.bf16.msra.mxu0 %v3454_v30  ;;  %v4742_v30 = vunpack.c.h.bf16 %v4021_v22  ;;  %v426_v7 = vrot.slane %v4741_v27, 1  ;;  %v423_v27 = vrot.slane %v4746_v54, 1  ;;  %v3464_v54 = vld [vmem:[%s4732_s1 + $0x108] sm:$0xff]  }
  0x42   : > { %3087 = vmatprep.subr.bf16.mxu0 %v3456_v39  ;;  %v4748_v39 = vunpack.c.l.bf16 %v4024_v24  ;;  %v432_v9 = vrot.slane %v4743_v50, 1  ;;  %805 = vmatprep.mubr.bf16.mxu1 %v4042_v58 }
  0x44   : > { %3128 = vmatpush3.bf16.msra.mxu1 %v3459_v35  ;;  %v427_v35 = vrot.slane %v4742_v30, 1  ;;  %v424_v30 = vrot.slane %v4747_v48, 1  ;;  %v429_v50 = vrot.slane %v4748_v39, 1  ;;  %v4083_v48 = vsel %vm386_vm0, %v432_v9, %v433_v2  ;;  %v3466_v9 = vld [vmem:[%s4732_s1 + $0x140] sm:$0xff]  }
  0x45   : > { %3088 = vmatpush3.bf16.msra.mxu0 %v3458_v33  ;;  %v4077_v33 = vcombine.low %v4018_v43, %v4024_v24  ;;  %3129 = vmatprep.subr.bf16.mxu1 %v3463_v63  ;;  %v831_v63 = vrot.slane %v285_v55, 2 }
  0x46   : > { %v4071_v38 = vsel %vm386_vm0, %v426_v7, %v427_v35  ;;  %3089 = vmatprep.subr.bf16.mxu0 %v3462_v40  ;;  %v4086_v39 = vsel %vm386_vm0, %v423_v27, %v424_v30  ;;  %v3465_v7 = vld [vmem:[%s4732_s1 + $0x188] sm:$0xff]   ;;  %v2696_v35 = vcombine.high %v3742_v34, %v3748_v36  ;;  %v4100_v2 = vsel %vm386_vm0, %v429_v50, %v430_v1  ;;  %v3467_v1 = vld [vmem:[%s4732_s1 + $0x1c0] sm:$0xff]  }
  0x47   : > { %v4097_v40 = vpack.c.bf16 %v4083_v48, %v4071_v38  ;;  %806 = vmatmul.mubr.bf16.gmra.mxu1 %v4077_v33  ;;  %v880_v27 = vpack.c.bf16 %v4028_v52, %v820_v32  ;;  %v836_v30 = vrot.slane %v287_v15, 2  ;;  %v4111_v55 = vpack.c.bf16 %v4100_v2, %v4086_v39  ;;  %v3468_v15 = vld [vmem:[%s4732_s1 + $0x100] sm:$0xff]  }
  0x48   : > { %3130 = vmatpush3.bf16.msra.mxu1 %v3465_v7  ;;  %v837_v50 = vrot.slane %v289_v19, 2  ;;  %v827_v32 = vrot.slane %v282_v3, 2  ;;  %v828_v19 = vrot.slane %v284_v6, 2  ;;  %1258 = vmatprep.mubr.bf16.mxu1 %v2696_v35  ;;  %v817_v7 = vsel %vm814_vm1, %v4007_v41, %v3988_v13  ;;  %v3473_v6 = vld [vmem:[%s4732_s1 + $0x2f8] sm:$0xff]  }
  0x49   : > { %3090 = vmatpush3.bf16.msra.mxu0 %v3464_v54  ;;  %644 = vmatprep.mubr.bf16.mxu0 %v4097_v40  ;;  %v3469_v54 = vld [vmem:[%s4732_s1 + $0x180] sm:$0xff]   ;;  %v4136_v3 = vsel %vm814_vm1, %v4015_v42, %v3999_v21  ;;  %v4150_v13 = vsel %vm814_vm1, %v4032_v25, %v831_v63  ;;  %v842_v41 = vrot.slane %v291_v62, 2  ;;  %v3475_v25 = vld [vmem:[%s4732_s1 + $0x2b8] sm:$0xff]   ;;  %v4749_v35 = vunpack.c.h.bf16 %v3907_v59 }
  0x4a   : > { %3091 = vmatprep.subr.bf16.mxu0 %v3466_v9  ;;  %645 = vmatmul.mubr.bf16.gmra.mxu0 %v4111_v55  ;;  %v2695_v9 = vcombine.low %v3742_v34, %v3748_v36  ;;  %v4153_v21 = vsel %vm814_vm1, %v836_v30, %v837_v50  ;;  %v2698_v34 = vcombine.high %v3821_v11, %v3901_v57  ;;  %v834_v36 = vrot.slane %v288_v20, 2  ;;  %v3477_v30 = vld [vmem:[%s4732_s1 + $0x2f0] sm:$0xff]  }
  0x4b   : > { %3131 = vmatprep.subr.bf16.mxu1 %v3467_v1  ;;  %1048 = vmatprep.mubr.bf16.mxu0 %v880_v27  ;;  %v3472_v1 = vld [vmem:[%s4732_s1 + $0x278] sm:$0xff]   ;;  %v879_v42 = vpack.c.bf16 %v4136_v3, %v817_v7  ;;  %v843_v63 = vrot.slane %v4749_v35, 2  ;;  %v4175_v20 = vpack.c.bf16 %v4153_v21, %v4150_v13  ;;  %v4750_v62 = vunpack.c.h.bf16 %v3910_v60 }
  0x4c   : > { %3132 = vmatpush3.bf16.msra.mxu1 %v3469_v54  ;;  %v4751_v50 = vunpack.c.h.bf16 %v3913_v61  ;;  %v3478_v54 = vld [vmem:[%s4732_s1 + $0x230] sm:$0xff]   ;;  %v4752_v7 = vunpack.c.l.bf16 %v3901_v57  ;;  %v4199_v35 = vsel %vm814_vm1, %v833_v37, %v834_v36  ;;  %v3484_v36 = vld [vmem:[%s4732_s1 + $0x228] sm:$0xff]  }
  0x4d   : > { %3092 = vmatpush3.bf16.msra.mxu0 %v3468_v15  ;;  %3197 = vmatprep.subr.bf16.mxu1 %v3473_v6  ;;  %v848_v27 = vrot.slane %v4750_v62, 2  ;;  %v4753_v6 = vunpack.c.l.bf16 %v3907_v59  ;;  %v3482_v62 = vld [vmem:[%s4732_s1 + $0x268] sm:$0xff]  }
  0x4e   : > { %3157 = vmatprep.subr.bf16.mxu0 %v3472_v1  ;;  %v849_v15 = vrot.slane %v4751_v50, 2  ;;  %v3479_v1 = vld [vmem:[%s4732_s1 + $0x2b0] sm:$0xff]  }
  0x4f   : > { %1259 = vmatmul.mubr.bf16.vlgmr.msra.gmra.mxu1 %v2695_v9  ;;  %v839_v9 = vrot.slane %v4752_v7, 2 }
  0x50   : > { %3198 = vmatpush3.bf16.msra.mxu1 %v3475_v25  ;;  %1266 = vmatprep.mubr.bf16.mxu1 %v2698_v34  ;;  %v840_v25 = vrot.slane %v4753_v6, 2  ;;  %v4196_v34 = vsel %vm814_vm1, %v827_v32, %v828_v19  ;;  %v3483_v32 = vld [vmem:[%s4732_s1 + $0x2e8] sm:$0xff]   ;;  %v4212_v19 = vsel %vm814_vm1, %v842_v41, %v843_v63  ;;  %v4215_v37 = vsel %vm814_vm1, %v848_v27, %v849_v15  ;;  %v3486_v15 = vld [vmem:[%s4732_s1 + $0x260] sm:$0xff]  }
  0x51   : > { %3199 = vmatprep.subr.bf16.mxu1 %v3477_v30  ;;  %v4754_v30 = vunpack.c.l.bf16 %v3910_v60  ;;  %v4228_v41 = vpack.c.bf16 %v4199_v35, %v4196_v34  ;;  %v4757_v63 = vunpack.c.h.bf16 %v4021_v22  ;;  %v4240_v7 = vpack.c.bf16 %v4215_v37, %v4212_v19 }
  0x52   : > { %1049 = vmatmul.mubr.bf16.vlgmr.msra.gmra.mxu0 %v879_v42  ;;  %v2697_v42 = vcombine.low %v3821_v11, %v3901_v57  ;;  %v4755_v11 = vunpack.c.l.bf16 %v3913_v61  ;;  %v3485_v61 = vld [vmem:[%s4732_s1 + $0x2a8] sm:$0xff]  }
  0x53   : > { %3158 = vmatpush3.bf16.msra.mxu0 %v3474_v17  ;;  %1056 = vmatprep.mubr.bf16.mxu0 %v4175_v20  ;;  %v845_v59 = vrot.slane %v4754_v30, 2  ;;  %v2700_v17 = vcombine.high %v3910_v60, %v4018_v43  ;;  %v855_v27 = vrot.slane %v4757_v63, 2  ;;  %v3487_v30 = vld [vmem:[%s4732_s1 + $0x2e0] sm:$0xff]  }
  0x54   : > { %3159 = vmatprep.subr.bf16.mxu0 %v3476_v14  ;;  %3200 = vmatpush3.bf16.msra.mxu1 %v3479_v1  ;;  %v846_v57 = vrot.slane %v4755_v11, 2  ;;  %v4756_v14 = vunpack.c.h.bf16 %v4018_v43  ;;  %v4758_v1 = vunpack.c.h.bf16 %v4024_v24  ;;  %v2699_v11 = vcombine.low %v3910_v60, %v4018_v43  ;;  %v3494_v60 = vld [vmem:[%s4732_s1 + $0x218] sm:$0xff]  }
  0x55   : > { %3201 = vmatprep.subr.bf16.mxu1 %v3483_v32  ;;  %v4258_v32 = vsel %vm814_vm1, %v839_v9, %v840_v25  ;;  %v4759_v25 = vunpack.c.l.bf16 %v4018_v43  ;;  %v4761_v43 = vunpack.c.l.bf16 %v4024_v24 }
  0x56   : > { %v854_v50 = vrot.slane %v4756_v14, 2  ;;  %v860_v6 = vrot.slane %v4758_v1, 2  ;;  %v858_v1 = vrot.slane %v304_v8, 2 }
  0x57   : > { %3160 = vmatpush3.bf16.msra.mxu0 %v3478_v54  ;;  %1267 = vmatmul.mubr.bf16.gmra.mxu1 %v2697_v42  ;;  %v861_v54 = vrot.slane %v305_v0, 2  ;;  %v3488_v42 = vld [vmem:[%s4732_s1 + $0x220] sm:$0xff]   ;;  %v4261_v0 = vsel %vm814_vm1, %v845_v59, %v846_v57  ;;  %v851_v59 = vrot.slane %v4759_v25, 2  ;;  %v4760_v57 = vunpack.c.l.bf16 %v4021_v22  ;;  %v3496_v22 = vld [vmem:[%s4732_s1 + $0x250] sm:$0xff]   ;;  %v3504_v25 = vld [vmem:[%s4732_s1 + $0x208] sm:$0xff]  }
  0x58   : > { %3161 = vmatprep.subr.bf16.mxu0 %v3482_v62  ;;  %3202 = vmatpush3.bf16.msra.mxu1 %v3485_v61  ;;  %v3489_v62 = vld [vmem:[%s4732_s1 + $0x2a0] sm:$0xff]   ;;  %v4272_v14 = vsel %vm814_vm1, %v854_v50, %v855_v27  ;;  %v4286_v63 = vpack.c.bf16 %v4261_v0, %v4258_v32  ;;  %v3495_v50 = vld [vmem:[%s4732_s1 + $0x298] sm:$0xff]   ;;  %v857_v27 = vrot.slane %v4761_v43, 2 }
  0x59   : > { %1274 = vmatprep.mubr.bf16.mxu1 %v2700_v17  ;;  %3203 = vmatprep.subr.bf16.mxu1 %v3487_v30  ;;  %v3492_v17 = vld [vmem:[%s4732_s1 + $0x258] sm:$0xff]   ;;  %v4275_v9 = vsel %vm814_vm1, %v860_v6, %v861_v54  ;;  %v852_v61 = vrot.slane %v4760_v57, 2  ;;  %v3497_v6 = vld [vmem:[%s4732_s1 + $0x2d0] sm:$0xff]   ;;  %v1312_v57 = vpack.c.bf16 %v3857_v26, %v3781_v56  ;;  %v3509_v56 = vld [vmem:[%s4732_s1 + $0x280] sm:$0xff]   ;;  %v1529_v26 = vpack.c.bf16 %v4196_v34, %v4136_v3 }
  0x5a   : > { %1057 = vmatmul.mubr.bf16.gmra.mxu0 %v4228_v41  ;;  %v3498_v30 = vld [vmem:[%s4732_s1 + $0x210] sm:$0xff]   ;;  %v3511_v43 = vld [vmem:[%s4732_s1 + $0x3f8] sm:$0xff]   ;;  %v1311_v3 = vpack.c.bf16 %v3862_v28, %v3808_v5 }
  0x5b   : > { %3162 = vmatpush3.bf16.msra.mxu0 %v3484_v36  ;;  %1064 = vmatprep.mubr.bf16.mxu0 %v4240_v7  ;;  %v3493_v36 = vld [vmem:[%s4732_s1 + $0x2d8] sm:$0xff]   ;;  %v3499_v54 = vld [vmem:[%s4732_s1 + $0x290] sm:$0xff]   ;;  %v4316_v8 = vsel %vm814_vm1, %v851_v59, %v852_v61  ;;  %v1530_v59 = vpack.c.bf16 %v4150_v13, %v4028_v52  ;;  %v3506_v61 = vld [vmem:[%s4732_s1 + $0x240] sm:$0xff]  }
  0x5c   : > { %3163 = vmatprep.subr.bf16.mxu0 %v3486_v15  ;;  %3204 = vmatpush3.bf16.msra.mxu1 %v3489_v62  ;;  %v4298_v15 = vpack.c.bf16 %v4275_v9, %v4272_v14  ;;  %v4322_v62 = vsel %vm814_vm1, %v857_v27, %v858_v1  ;;  %v3507_v52 = vld [vmem:[%s4732_s1 + $0x2c0] sm:$0xff]   ;;  %v3512_v27 = vld [vmem:[%s4732_s1 + $0x338] sm:$0xff]   ;;  %v3514_v1 = vld [vmem:[%s4732_s1 + $0x370] sm:$0xff]  }
  0x5d   : > { %3205 = vmatprep.subr.bf16.mxu1 %v3493_v36  ;;  %v3503_v36 = vld [vmem:[%s4732_s1 + $0x2c8] sm:$0xff]   ;;  %v3508_v13 = vld [vmem:[%s4732_s1 + $0x200] sm:$0xff]   ;;  %v3513_v34 = vld [vmem:[%s4732_s1 + $0x3b8] sm:$0xff]  }
  0x5e   : > { %v3515_v5 = vld [vmem:[%s4732_s1 + $0x3f0] sm:$0xff]  }
  0x5f   : > { %3164 = vmatpush3.bf16.msra.mxu0 %v3488_v42  ;;  %1275 = vmatmul.mubr.bf16.gmra.mxu1 %v2699_v11  ;;  %v4313_v42 = vld [vmem:[%s3727_s12 + $0x80] sm:$0xff]  ;;  %v3516_v28 = vld [vmem:[%s4732_s1 + $0x330] sm:$0xff]  }
  0x60   : > { %3165 = vmatprep.subr.bf16.mxu0 %v3492_v17  ;;  %3206 = vmatpush3.bf16.msra.mxu1 %v3495_v50  ;;  %v2702_v53 = vcombine.high %v4024_v24, %v4313_v42  ;;  %v2701_v11 = vcombine.low %v4024_v24, %v4313_v42  ;;  %v3502_v17 = vld [vmem:[%s4732_s1 + $0x248] sm:$0xff]   ;;  %v4339_v24 = vpack.c.bf16 %v4322_v62, %v4316_v8  ;;  %v3510_v50 = vld [vmem:[%s4732_s1 + $0x378] sm:$0xff]  }
  0x61   : > { %3207 = vmatprep.subr.bf16.mxu1 %v3497_v6  ;;  %v1314_v6 = vpack.c.bf16 %v3960_v45, %v3870_v31  ;;  %v1531_v31 = vpack.c.bf16 %v4258_v32, %v4199_v35  ;;  %v3518_v45 = vld [vmem:[%s4732_s1 + $0x368] sm:$0xff]   ;;  %v1313_v35 = vpack.c.bf16 %v3975_v10, %v3873_v44  ;;  %v3523_v44 = vld [vmem:[%s4732_s1 + $0x3e0] sm:$0xff]  }
  0x62   : > { %1065 = vmatmul.mubr.bf16.gmra.mxu0 %v4286_v63  ;;  %1282 = vmatprep.mubr.bf16.mxu1 %v2702_v53  ;;  %v3521_v32 = vld [vmem:[%s4732_s1 + $0x3a8] sm:$0xff]   ;;  %v3522_v53 = vld [vmem:[%s4732_s1 + $0x360] sm:$0xff]  }
  0x63   : > { %3166 = vmatpush3.bf16.msra.mxu0 %v3494_v60  ;;  %1072 = vmatprep.mubr.bf16.mxu0 %v4298_v15  ;;  %v3505_v60 = vld [vmem:[%s4732_s1 + $0x288] sm:$0xff]   ;;  %v3524_v10 = vld [vmem:[%s4732_s1 + $0x320] sm:$0xff]  }
  0x64   : > { %3167 = vmatprep.subr.bf16.mxu0 %v3496_v22  ;;  %3208 = vmatpush3.bf16.msra.mxu1 %v3499_v54  ;;  %v1532_v22 = vpack.c.bf16 %v4212_v19, %v4153_v21  ;;  %v3517_v21 = vld [vmem:[%s4732_s1 + $0x3b0] sm:$0xff]   ;;  %v3519_v19 = vld [vmem:[%s4732_s1 + $0x3e8] sm:$0xff]   ;;  %v1534_v54 = vpack.c.bf16 %v4272_v14, %v4215_v37  ;;  %v3525_v37 = vld [vmem:[%s4732_s1 + $0x3a0] sm:$0xff]  }
  0x65   : > { %3209 = vmatprep.subr.bf16.mxu1 %v3503_v36  ;;  %v3527_v14 = vld [vmem:[%s4732_s1 + $0x3d8] sm:$0xff]  }
  0x66   : > { %v3528_v36 = vld [vmem:[%s4732_s1 + $0x318] sm:$0xff]  }
  0x67   : > { %3168 = vmatpush3.bf16.msra.mxu0 %v3498_v30  ;;  %1283 = vmatmul.mubr.bf16.gmra.mxu1 %v2701_v11  ;;  %v3520_v30 = vld [vmem:[%s4732_s1 + $0x328] sm:$0xff]   ;;  %v1316_v11 = vpack.c.bf16 %v4071_v38, %v3963_v49  ;;  %v1533_v38 = vpack.c.bf16 %v4316_v8, %v4261_v0  ;;  %v3526_v49 = vld [vmem:[%s4732_s1 + $0x358] sm:$0xff]   ;;  %v306_v8 = vunpack.c.l.bf16 %v4313_v42 }
  0x68   : > { %3169 = vmatprep.subr.bf16.mxu0 %v3502_v17  ;;  %3210 = vmatpush3.bf16.msra.mxu1 %v3505_v60  ;;  %v307_v17 = vunpack.c.h.bf16 %v4313_v42  ;;  %v3529_v0 = vld [vmem:[%s4732_s1 + $0x398] sm:$0xff]   ;;  %v3532_v60 = vld [vmem:[%s4732_s1 + $0x310] sm:$0xff]  }
  0x69   : > { %1698 = vmatprep.mubr.bf16.mxu1 %v1530_v59  ;;  %3211 = vmatprep.subr.bf16.mxu1 %v3507_v52  ;;  %v3530_v59 = vld [vmem:[%s4732_s1 + $0x350] sm:$0xff]   ;;  %v271_v52 = vld [vmem:[%s3727_s12 + $0x88] sm:$0x11] }
  0x6a   : > { %1073 = vmatmul.mubr.bf16.gmra.mxu0 %v4339_v24 }
  0x6b   : > { %3170 = vmatpush3.bf16.msra.mxu0 %v3504_v25  ;;  %1480 = vmatprep.mubr.bf16.mxu0 %v1312_v57  ;;  %v1315_v25 = vpack.c.bf16 %v4086_v39, %v3978_v51  ;;  %v3531_v51 = vld [vmem:[%s4732_s1 + $0x3d0] sm:$0xff]   ;;  %v1306_v39 = vrot.slane %v307_v17, 1  ;;  %v1524_v57 = vrot.slane %v307_v17, 2 }
  0x6c   : > { %3171 = vmatprep.subr.bf16.mxu0 %v3506_v61  ;;  %3212 = vmatpush3.bf16.msra.mxu1 %v3509_v56  ;;  %v3533_v61 = vld [vmem:[%s4732_s1 + $0x390] sm:$0xff]   ;;  %v309_v56 = vunpack.c.h.bf16 %v271_v52 }
  0x6d   : > { %3277 = vmatprep.subr.bf16.mxu1 %v3511_v43  ;;  %v3534_v43 = vld [vmem:[%s4732_s1 + $0x348] sm:$0xff]  }
  0x6f   : > { %3172 = vmatpush3.bf16.msra.mxu0 %v3508_v13  ;;  %1699 = vmatmul.mubr.bf16.vlgmr.msra.gmra.mxu1 %v1529_v26  ;;  %v1303_v13 = vrot.slane %v306_v8, 1  ;;  %v308_v26 = vunpack.c.l.bf16 %v271_v52 }
  0x70   : > { %3237 = vmatprep.subr.bf16.mxu0 %v3510_v50  ;;  %3278 = vmatpush3.bf16.msra.mxu1 %v3513_v34  ;;  %v1521_v50 = vrot.slane %v306_v8, 2  ;;  %v3552_v8 = vld [vmem:[%s4732_s1 + $0x450] sm:$0xff]  }
  0x71   : > { %1706 = vmatprep.mubr.bf16.mxu1 %v1532_v22  ;;  %3279 = vmatprep.subr.bf16.mxu1 %v3515_v5  ;;  %v1307_v22 = vrot.slane %v309_v56, 1  ;;  %v1304_v34 = vrot.slane %v308_v26, 1 }
  0x72   : > { %1481 = vmatmul.mubr.bf16.vlgmr.msra.gmra.mxu0 %v1311_v3  ;;  %v1525_v3 = vrot.slane %v309_v56, 2 }
  0x73   : > { %3238 = vmatpush3.bf16.msra.mxu0 %v3512_v27  ;;  %1488 = vmatprep.mubr.bf16.mxu0 %v1314_v6  ;;  %v3535_v27 = vld [vmem:[%s4732_s1 + $0x3c8] sm:$0xff]   ;;  %v4464_v5 = vsel %vm386_vm0, %v1306_v39, %v1307_v22 }
  0x74   : > { %3239 = vmatprep.subr.bf16.mxu0 %v3514_v1  ;;  %3280 = vmatpush3.bf16.msra.mxu1 %v3517_v21  ;;  %v1522_v1 = vrot.slane %v308_v26, 2  ;;  %v3536_v6 = vld [vmem:[%s4732_s1 + $0x308] sm:$0xff]   ;;  %v4470_v21 = vsel %vm386_vm0, %v1303_v13, %v1304_v34 }
  0x75   : > { %3281 = vmatprep.subr.bf16.mxu1 %v3519_v19  ;;  %v1318_v19 = vpack.c.bf16 %v4464_v5, %v4083_v48  ;;  %v3540_v48 = vld [vmem:[%s4732_s1 + $0x300] sm:$0xff]   ;;  %v3556_v39 = vld [vmem:[%s4732_s1 + $0x448] sm:$0xff]  }
  0x77   : > { %3240 = vmatpush3.bf16.msra.mxu0 %v3516_v28  ;;  %1707 = vmatmul.mubr.bf16.gmra.mxu1 %v1531_v31  ;;  %v4467_v28 = vsel %vm814_vm1, %v1524_v57, %v1525_v3  ;;  %v4473_v31 = vsel %vm814_vm1, %v1521_v50, %v1522_v1  ;;  %v3558_v57 = vld [vmem:[%s4732_s1 + $0x440] sm:$0xff]  }
  0x78   : > { %3241 = vmatprep.subr.bf16.mxu0 %v3518_v45  ;;  %3282 = vmatpush3.bf16.msra.mxu1 %v3521_v32  ;;  %v3537_v45 = vld [vmem:[%s4732_s1 + $0x388] sm:$0xff]   ;;  %v3538_v32 = vld [vmem:[%s4732_s1 + $0x340] sm:$0xff]  }
  0x79   : > { %1714 = vmatprep.mubr.bf16.mxu1 %v1534_v54  ;;  %3283 = vmatprep.subr.bf16.mxu1 %v3523_v44  ;;  %v1317_v54 = vpack.c.bf16 %v4470_v21, %v4100_v2  ;;  %v3541_v2 = vld [vmem:[%s4732_s1 + $0x380] sm:$0xff]   ;;  %v4526_v44 = vld [vmem:[%s3727_s12 + $0x98] sm:$0x11] }
  0x7a   : > { %1489 = vmatmul.mubr.bf16.gmra.mxu0 %v1313_v35  ;;  %v1535_v35 = vpack.c.bf16 %v4473_v31, %v4322_v62  ;;  %v3543_v62 = vld [vmem:[%s4732_s1 + $0x438] sm:$0xff]   ;;  %v312_v17 = vunpack.c.l.bf16 %v4526_v44 }
  0x7b   : > { %3242 = vmatpush3.bf16.msra.mxu0 %v3520_v30  ;;  %1496 = vmatprep.mubr.bf16.mxu0 %v1316_v11  ;;  %v1536_v30 = vpack.c.bf16 %v4467_v28, %v4275_v9  ;;  %v3542_v9 = vld [vmem:[%s4732_s1 + $0x478] sm:$0xff]   ;;  %v3544_v11 = vld [vmem:[%s4732_s1 + $0x470] sm:$0xff]  }
  0x7c   : > { %3243 = vmatprep.subr.bf16.mxu0 %v3522_v53  ;;  %3284 = vmatpush3.bf16.msra.mxu1 %v3525_v37  ;;  %v3539_v53 = vld [vmem:[%s4732_s1 + $0x3c0] sm:$0xff]   ;;  %v2160_v50 = vrot.slane %v312_v17, 2 }
  0x7d   : > { %3285 = vmatprep.subr.bf16.mxu1 %v3527_v14 }
  0x7f   : > { %3244 = vmatpush3.bf16.msra.mxu0 %v3524_v10  ;;  %1715 = vmatmul.mubr.bf16.gmra.mxu1 %v1533_v38 }
  0x80   : > { %3245 = vmatprep.subr.bf16.mxu0 %v3526_v49  ;;  %3286 = vmatpush3.bf16.msra.mxu1 %v3529_v0  ;;  %v3549_v49 = vld [vmem:[%s4732_s1 + $0x420] sm:$0xff]   ;;  %v1948_v0 = vrot.slane %v312_v17, 1 }
  0x81   : > { %3287 = vmatprep.subr.bf16.mxu1 %v3531_v51  ;;  %1722 = vmatprep.mubr.bf16.mxu1 %v1536_v30 }
  0x82   : > { %1497 = vmatmul.mubr.bf16.gmra.mxu0 %v1315_v25 }
  0x83   : > { %3246 = vmatpush3.bf16.msra.mxu0 %v3528_v36  ;;  %1504 = vmatprep.mubr.bf16.mxu0 %v1318_v19  ;;  %v3551_v36 = vld [vmem:[%s4732_s1 + $0x418] sm:$0xff]  }
  0x84   : > { %3247 = vmatprep.subr.bf16.mxu0 %v3530_v59  ;;  %3288 = vmatpush3.bf16.msra.mxu1 %v3533_v61  ;;  %v3553_v59 = vld [vmem:[%s4732_s1 + $0x410] sm:$0xff]  }
  0x85   : > { %3289 = vmatprep.subr.bf16.mxu1 %v3535_v27 }
  0x87   : > { %3248 = vmatpush3.bf16.msra.mxu0 %v3532_v60  ;;  %1723 = vmatmul.mubr.bf16.gmra.mxu1 %v1535_v35  ;;  %v3557_v60 = vld [vmem:[%s4732_s1 + $0x408] sm:$0xff]  }
  0x88   : > { %3249 = vmatprep.subr.bf16.mxu0 %v3534_v43  ;;  %3290 = vmatpush3.bf16.msra.mxu1 %v3537_v45 }
  0x89   : > { %3291 = vmatprep.subr.bf16.mxu1 %v3539_v53  ;;  %2118 = vmatprep.mubr.bf16.mxu1 %v3880_v46  ;;  %v3546_v46 = vld [vmem:[%s4732_s1 + $0x468] sm:$0xff]  }
  0x8a   : > { %1505 = vmatmul.mubr.bf16.gmra.mxu0 %v1317_v54 }
  0x8b   : > { %3250 = vmatpush3.bf16.msra.mxu0 %v3536_v6  ;;  %1902 = vmatprep.mubr.bf16.mxu0 %v3833_v16  ;;  %v3545_v16 = vld [vmem:[%s4732_s1 + $0x430] sm:$0xff]  }
  0x8c   : > { %3251 = vmatprep.subr.bf16.mxu0 %v3538_v32  ;;  %3292 = vmatpush3.bf16.msra.mxu1 %v3541_v2 }
  0x8d   : > { %3357 = vmatprep.subr.bf16.mxu1 %v3542_v9 }
  0x8f   : > { %3252 = vmatpush3.bf16.msra.mxu0 %v3540_v48  ;;  %2119 = vmatmul.mubr.bf16.vlgmr.msra.gmra.mxu1 %v3884_v47  ;;  %v4523_v47 = vld [vmem:[%s3727_s12 + $0x90] sm:$0xff] }
  0x90   : > { %3317 = vmatprep.subr.bf16.mxu0 %v3542_v9  ;;  %3365 = vmatpush3.bf16.msra.mxu1 %v3543_v62  ;;  %v311_v10 = vunpack.c.h.bf16 %v4523_v47  ;;  %v310_v14 = vunpack.c.l.bf16 %v4523_v47 }
  0x91   : > { %3358 = vmatprep.subr.bf16.mxu1 %v3544_v11  ;;  %2126 = vmatprep.mubr.bf16.mxu1 %v3972_v12  ;;  %v313_v12 = vunpack.c.h.bf16 %v4526_v44 }
  0x92   : > { %1903 = vmatmul.mubr.bf16.vlgmr.msra.gmra.mxu0 %v3848_v23  ;;  %v3547_v23 = vld [vmem:[%s4732_s1 + $0x428] sm:$0xff]   ;;  %v1950_v37 = vrot.slane %v311_v10, 1  ;;  %v1947_v25 = vrot.slane %v310_v14, 1  ;;  %v2162_v61 = vrot.slane %v311_v10, 2  ;;  %v2159_v26 = vrot.slane %v310_v14, 2 }
  0x93   : > { %3318 = vmatpush3.bf16.msra.mxu0 %v3543_v62  ;;  %1910 = vmatprep.mubr.bf16.mxu0 %v3924_v4  ;;  %v3548_v4 = vld [vmem:[%s4732_s1 + $0x460] sm:$0xff]   ;;  %v1951_v38 = vrot.slane %v313_v12, 1  ;;  %v2163_v52 = vrot.slane %v313_v12, 2 }
  0x94   : > { %3319 = vmatprep.subr.bf16.mxu0 %v3544_v11  ;;  %3366 = vmatpush3.bf16.msra.mxu1 %v3545_v16  ;;  %v1949_v51 = vsel %vm386_vm0, %v1947_v25, %v1948_v0  ;;  %v2161_v43 = vsel %vm814_vm1, %v2159_v26, %v2160_v50 }
  0x95   : > { %3359 = vmatprep.subr.bf16.mxu1 %v3546_v46  ;;  %v2164_v13 = vsel %vm814_vm1, %v2162_v61, %v2163_v52  ;;  %v2167_v27 = vpack.c.bf16 %v2161_v43, %v4473_v31 }
  0x96   : > { %v2168_v56 = vpack.c.bf16 %v2164_v13, %v4467_v28 }
  0x97   : > { %3320 = vmatpush3.bf16.msra.mxu0 %v3545_v16  ;;  %2127 = vmatmul.mubr.bf16.gmra.mxu1 %v3992_v18  ;;  %v1952_v18 = vsel %vm386_vm0, %v1950_v37, %v1951_v38 }
  0x98   : > { %3321 = vmatprep.subr.bf16.mxu0 %v3546_v46  ;;  %3367 = vmatpush3.bf16.msra.mxu1 %v3547_v23 }
  0x99   : > { %3360 = vmatprep.subr.bf16.mxu1 %v3548_v4  ;;  %2134 = vmatprep.mubr.bf16.mxu1 %v4097_v40  ;;  %v1956_v40 = vpack.c.bf16 %v1952_v18, %v4464_v5 }
  0x9a   : > { %1911 = vmatmul.mubr.bf16.gmra.mxu0 %v3954_v29  ;;  %v3550_v29 = vld [vmem:[%s4732_s1 + $0x458] sm:$0xff]  }
  0x9b   : > { %3322 = vmatpush3.bf16.msra.mxu0 %v3547_v23  ;;  %1918 = vmatprep.mubr.bf16.mxu0 %v4042_v58  ;;  %v2848_v58 = vcombine.high %v4313_v42, %v4523_v47 }
  0x9c   : > { %3323 = vmatprep.subr.bf16.mxu0 %v3548_v4  ;;  %3368 = vmatpush3.bf16.msra.mxu1 %v3549_v49 }
  0x9d   : > { %3361 = vmatprep.subr.bf16.mxu1 %v3550_v29 }
  0x9f   : > { %3324 = vmatpush3.bf16.msra.mxu0 %v3549_v49  ;;  %2135 = vmatmul.mubr.bf16.gmra.mxu1 %v4111_v55  ;;  %v1955_v55 = vpack.c.bf16 %v1949_v51, %v4470_v21 }
  0xa0   : > { %3325 = vmatprep.subr.bf16.mxu0 %v3550_v29  ;;  %3369 = vmatpush3.bf16.msra.mxu1 %v3551_v36 }
  0xa1   : > { %3362 = vmatprep.subr.bf16.mxu1 %v3552_v8  ;;  %2142 = vmatprep.mubr.bf16.mxu1 %v1956_v40 }
  0xa2   : > { %1919 = vmatmul.mubr.bf16.gmra.mxu0 %v4077_v33  ;;  %v2847_v33 = vcombine.low %v4313_v42, %v4523_v47  ;;  %v3559_v42 = vld [vmem:[%s4732_s1 + $0x400] sm:$0xff]  }
  0xa3   : > { %3326 = vmatpush3.bf16.msra.mxu0 %v3551_v36  ;;  %1926 = vmatprep.mubr.bf16.mxu0 %v2848_v58 }
  0xa4   : > { %3327 = vmatprep.subr.bf16.mxu0 %v3552_v8  ;;  %3370 = vmatpush3.bf16.msra.mxu1 %v3553_v59 }
  0xa5   : > { %3363 = vmatprep.subr.bf16.mxu1 %v3556_v39 }
  0xa7   : > { %3328 = vmatpush3.bf16.msra.mxu0 %v3553_v59  ;;  %2143 = vmatmul.mubr.bf16.gmra.mxu1 %v1955_v55 }
  0xa8   : > { %3329 = vmatprep.subr.bf16.mxu0 %v3556_v39  ;;  %3371 = vmatpush3.bf16.msra.mxu1 %v3557_v60 }
  0xa9   : > { %3364 = vmatprep.subr.bf16.mxu1 %v3558_v57  ;;  %2346 = vmatprep.mubr.bf16.mxu1 %v4298_v15 }
  0xaa   : > { %1927 = vmatmul.mubr.bf16.gmra.mxu0 %v2847_v33 }
  0xab   : > { %3330 = vmatpush3.bf16.msra.mxu0 %v3557_v60  ;;  %2330 = vmatprep.mubr.bf16.mxu0 %v4175_v20 }
  0xac   : > { %3331 = vmatprep.subr.bf16.mxu0 %v3558_v57  ;;  %3372 = vmatpush3.bf16.msra.mxu1 %v3559_v42 }
  0xaf   : > { %3332 = vmatpush3.bf16.msra.mxu0 %v3559_v42  ;;  %2347 = vmatmul.mubr.bf16.vlgmr.msra.gmra.mxu1 %v4339_v24 }
  0xb0   : > { %2354 = vmatprep.mubr.bf16.mxu1 %v2168_v56 }
  0xb2   : > { %2331 = vmatmul.mubr.bf16.vlgmr.msra.gmra.mxu0 %v4228_v41 }
  0xb3   : > { %2338 = vmatprep.mubr.bf16.mxu0 %v4240_v7 }
  0xb7   : > { %2355 = vmatmul.mubr.bf16.gmra.mxu1 %v2167_v27 }
  0xba   : > { %2339 = vmatmul.mubr.bf16.gmra.mxu0 %v4286_v63 }
  0xee   : > { %v3013_v15 = vpop.f32.mrf.mxu0 }
  0xef   : > { %v3053_v20 = vpop.f32.mrf.mxu1 }
  0xf0   : > { %v3014_v34 = vpop.f32.mrf.mxu0 }
  0xf1   : > { %v3054_v22 = vpop.f32.mrf.mxu1  ;;  %v3015_v6 = vadd.f32 %v3014_v34, %v3013_v15 }
  0xf2   : > { %v3055_v3 = vadd.f32 %v3054_v22, %v3053_v20  ;;  %v3016_v41 = vpop.f32.mrf.mxu0 }
  0xf3   : > { %v3056_v1 = vpop.f32.mrf.mxu1 }
  0xf4   : > { %v784_v24 = vadd.f32 %v3055_v3, %v3015_v6  ;;  %v3017_v7 = vpop.f32.mrf.mxu0 }
  0xf5   : > { %v3057_v5 = vpop.f32.mrf.mxu1  ;;  %v3018_v45 = vadd.f32 %v3017_v7, %v3016_v41 }
  0xf6   : > { %v3058_v28 = vadd.f32 %v3057_v5, %v3056_v1  ;;  %v3019_v31 = vpop.f32.mrf.mxu0 }
  0xf7   : > { %v3059_v21 = vpop.f32.mrf.mxu1 }
  0xf8   : > { %v787_v30 = vadd.f32 %v3058_v28, %v3018_v45  ;;  %v3020_v35 = vpop.f32.mrf.mxu0 }
  0xf9   : > { %v3060_v19 = vpop.f32.mrf.mxu1  ;;  %v3021_v32 = vadd.f32 %v3020_v35, %v3019_v31 }
  0xfa   : > { %v3061_v54 = vadd.f32 %v3060_v19, %v3059_v21  ;;  %v3022_v48 = vpop.f32.mrf.mxu0 }
  0xfb   : > { %v3062_v63 = vpop.f32.mrf.mxu1 }
  0xfc   : > { %v792_v9 = vadd.f32 %v3061_v54, %v3021_v32  ;;  %v3023_v62 = vpop.f32.mrf.mxu0 }
  0xfd   : > { %v3063_v53 = vpop.f32.mrf.mxu1  ;;  %v3024_v16 = vadd.f32 %v3023_v62, %v3022_v48 }
  0xfe   : > { %v3064_v2 = vadd.f32 %v3063_v53, %v3062_v63 }
  0xff   : > { %v3065_v11 = vpop.f32.mrf.mxu1 }
 0x100   : > { %v795_v23 = vadd.f32 %v3064_v2, %v3024_v16  ;;  %v3025_v47 = vpop.f32.mrf.mxu0 }
 0x101   : > { %v3066_v46 = vpop.f32.mrf.mxu1 }
 0x102   : > { %v3067_v44 = vadd.f32 %v3066_v46, %v3065_v11  ;;  %v3026_v4 = vpop.f32.mrf.mxu0 }
 0x103   : > { %v3068_v10 = vpop.f32.mrf.mxu1  ;;  %v3027_v12 = vadd.f32 %v3026_v4, %v3025_v47 }
 0x104   : > { %v3028_v38 = vpop.f32.mrf.mxu0 }
 0x105   : > { %v3069_v37 = vpop.f32.mrf.mxu1  ;;  %v800_v14 = vadd.f32 %v3067_v44, %v3027_v12 }
 0x106   : > { %v3070_v49 = vadd.f32 %v3069_v37, %v3068_v10  ;;  %v3029_v17 = vpop.f32.mrf.mxu0 }
 0x107   : > { %v3030_v29 = vadd.f32 %v3029_v17, %v3028_v38  ;;  %v3071_v18 = vpop.f32.mrf.mxu1 }
 0x109   : > { %v4586_v36 = vadd.f32 %v3070_v49, %v3030_v29  ;;  %v3072_v25 = vpop.f32.mrf.mxu1 }
 0x10a   : > { %v3031_v0 = vpop.f32.mrf.mxu0  ;;  %v3073_v8 = vadd.f32 %v3072_v25, %v3071_v18 }
 0x10b   : > { %v3074_v58 = vpop.f32.mrf.mxu1 }
 0x10c   : > { %v3032_v40 = vpop.f32.mrf.mxu0 }
 0x10d   : > { %v3033_v59 = vadd.f32 %v3032_v40, %v3031_v0  ;;  %v3075_v51 = vpop.f32.mrf.mxu1 }
 0x10e   : > { %v3034_v39 = vpop.f32.mrf.mxu0  ;;  %v3076_v33 = vadd.f32 %v3075_v51, %v3074_v58 }
 0x10f   : > { %v808_v55 = vadd.f32 %v3073_v8, %v3033_v59  ;;  %v3133_v60 = vpop.f32.mrf.mxu1 }
 0x110   : > { %v3035_v57 = vpop.f32.mrf.mxu0 }
 0x111   : > { %v3036_v61 = vadd.f32 %v3035_v57, %v3034_v39  ;;  %v3134_v52 = vpop.f32.mrf.mxu1 }
 0x112   : > { %v3093_v42 = vpop.f32.mrf.mxu0  ;;  %v3135_v13 = vadd.f32 %v3134_v52, %v3133_v60 }
 0x113   : > { %v811_v56 = vadd.f32 %v3076_v33, %v3036_v61  ;;  %v3136_v26 = vpop.f32.mrf.mxu1 }
 0x114   : > { %v3094_v50 = vpop.f32.mrf.mxu0 }
 0x115   : > { %v3095_v43 = vadd.f32 %v3094_v50, %v3093_v42  ;;  %v3137_v27 = vpop.f32.mrf.mxu1 }
 0x116   : > { %v3096_v20 = vpop.f32.mrf.mxu0  ;;  %v3138_v15 = vadd.f32 %v3137_v27, %v3136_v26 }
 0x117   : > { %v1081_v22 = vadd.f32 %v3095_v43, %v784_v24  ;;  %v3139_v3 = vpop.f32.mrf.mxu1 }
 0x118   : > { %v3097_v34 = vpop.f32.mrf.mxu0 }
 0x119   : > { %v4588_v1 = vadd.f32 %v3135_v13, %v1081_v22  ;;  %v3098_v6 = vadd.f32 %v3097_v34, %v3096_v20  ;;  %v3140_v41 = vpop.f32.mrf.mxu1 }
 0x11a   : > { %v3099_v5 = vpop.f32.mrf.mxu0  ;;  %v3141_v28 = vadd.f32 %v3140_v41, %v3139_v3 }
 0x11b   : > { %v1082_v7 = vadd.f32 %v3098_v6, %v787_v30  ;;  %v3142_v21 = vpop.f32.mrf.mxu1 }
 0x11c   : > { %v3100_v45 = vpop.f32.mrf.mxu0 }
 0x11d   : > { %v4590_v19 = vadd.f32 %v3138_v15, %v1082_v7  ;;  %v3101_v31 = vadd.f32 %v3100_v45, %v3099_v5  ;;  %v3143_v54 = vpop.f32.mrf.mxu1 }
 0x11e   : > { %v3102_v63 = vpop.f32.mrf.mxu0  ;;  %v3144_v35 = vadd.f32 %v3143_v54, %v3142_v21 }
 0x11f   : > { %v1083_v32 = vadd.f32 %v3101_v31, %v792_v9  ;;  %v3145_v53 = vpop.f32.mrf.mxu1 }
 0x120   : > { %v3103_v24 = vpop.f32.mrf.mxu0 }
 0x121   : > { %v4592_v48 = vadd.f32 %v3141_v28, %v1083_v32  ;;  %v3104_v2 = vadd.f32 %v3103_v24, %v3102_v63  ;;  %v3146_v62 = vpop.f32.mrf.mxu1 }
 0x122   : > { %v3105_v11 = vpop.f32.mrf.mxu0  ;;  %v3147_v16 = vadd.f32 %v3146_v62, %v3145_v53 }
 0x123   : > { %v1084_v46 = vadd.f32 %v3104_v2, %v795_v23  ;;  %v3148_v47 = vpop.f32.mrf.mxu1 }
 0x124   : > { %v3106_v30 = vpop.f32.mrf.mxu0 }
 0x125   : > { %v4594_v44 = vadd.f32 %v3144_v35, %v1084_v46  ;;  %v3107_v10 = vadd.f32 %v3106_v30, %v3105_v11  ;;  %v3149_v4 = vpop.f32.mrf.mxu1 }
 0x126   : > { %v3108_v12 = vpop.f32.mrf.mxu0  ;;  %v3150_v37 = vadd.f32 %v3149_v4, %v3148_v47 }
 0x127   : > { %v1085_v38 = vadd.f32 %v3107_v10, %v800_v14  ;;  %v3151_v49 = vpop.f32.mrf.mxu1 }
 0x128   : > { %v3109_v9 = vpop.f32.mrf.mxu0 }
 0x129   : > { %v4596_v17 = vadd.f32 %v3147_v16, %v1085_v38  ;;  %v3110_v29 = vadd.f32 %v3109_v9, %v3108_v12  ;;  %v3152_v18 = vpop.f32.mrf.mxu1 }
 0x12a   : > { %v3111_v25 = vpop.f32.mrf.mxu0  ;;  %v3153_v0 = vadd.f32 %v3152_v18, %v3151_v49 }
 0x12b   : > { %v1086_v8 = vadd.f32 %v3110_v29, %v4586_v36  ;;  %v3154_v23 = vpop.f32.mrf.mxu1 }
 0x12c   : > { %v3112_v58 = vpop.f32.mrf.mxu0 }
 0x12d   : > { %v4599_v40 = vadd.f32 %v3150_v37, %v1086_v8  ;;  %v3113_v59 = vadd.f32 %v3112_v58, %v3111_v25  ;;  %v3155_v51 = vpop.f32.mrf.mxu1 }
 0x12e   : > { %v3114_v39 = vpop.f32.mrf.mxu0  ;;  %v3156_v33 = vadd.f32 %v3155_v51, %v3154_v23 }
 0x12f   : > { %v1087_v60 = vadd.f32 %v3113_v59, %v808_v55  ;;  %v4601_v14 = vpop.f32.mrf.mxu1 }
 0x130   : > { %v3115_v57 = vpop.f32.mrf.mxu0 }
 0x131   : > { %v4603_v61 = vadd.f32 %v3153_v0, %v1087_v60  ;;  %v3116_v52 = vadd.f32 %v3115_v57, %v3114_v39  ;;  %v3214_v42 = vpop.f32.mrf.mxu1 }
 0x132   : > { %v3173_v13 = vpop.f32.mrf.mxu0 }
 0x133   : > { %v1088_v26 = vadd.f32 %v3116_v52, %v811_v56  ;;  %v4605_v50 = vpop.f32.mrf.mxu1 }
 0x134   : > { %v3174_v36 = vpop.f32.mrf.mxu0 }
 0x135   : > { %v4607_v43 = vadd.f32 %v3156_v33, %v1088_v26  ;;  %v4609_v27 = vpop.f32.mrf.mxu1  ;;  %v3175_v60 = vadd.f32 %v3174_v36, %v3173_v13 }
 0x136   : > { %v3176_v20 = vpop.f32.mrf.mxu0  ;;  %v3218_v36 = vadd.f32 %v4609_v27, %v4605_v50 }
 0x137   : > { %4762 = vst [vmem:[#allocation2_spill] sm:$0xff] %v4607_v43  ;;  %v4611_v15 = vpop.f32.mrf.mxu1 }
 0x138   : > { %v3177_v55 = vpop.f32.mrf.mxu0 }
 0x139   : > { %v4613_v22 = vpop.f32.mrf.mxu1 }
 0x13a   : > { %v3179_v3 = vpop.f32.mrf.mxu0 }
 0x13b   : > { %v4615_v34 = vpop.f32.mrf.mxu1 }
 0x13c   : > { %v3180_v6 = vpop.f32.mrf.mxu0 }
 0x13d   : > { %v4617_v41 = vpop.f32.mrf.mxu1 }
 0x13e   : > { %v4619_v56 = vpop.f32.mrf.mxu0 }
 0x13f   : > { %v3225_v5 = vpop.f32.mrf.mxu1 }
 0x140   : > { %v4621_v28 = vpop.f32.mrf.mxu0 }
 0x141   : > { %v3226_v7 = vpop.f32.mrf.mxu1  ;;  %v3184_v50 = vadd.f32 %v4621_v28, %v4619_v56 }
 0x142   : > { %v3185_v21 = vpop.f32.mrf.mxu0 }
 0x143   : > { %v3228_v45 = vpop.f32.mrf.mxu1 }
 0x144   : > { %v3186_v31 = vpop.f32.mrf.mxu0 }
 0x145   : > { %v3229_v63 = vpop.f32.mrf.mxu1  ;;  %v3187_v26 = vadd.f32 %v3186_v31, %v3185_v21 }
 0x146   : > { %v3188_v54 = vpop.f32.mrf.mxu0 }
 0x147   : > { %v4623_v53 = vpop.f32.mrf.mxu1 }
 0x148   : > { %v3189_v35 = vpop.f32.mrf.mxu0 }
 0x149   : > { %v4625_v2 = vpop.f32.mrf.mxu1 }
 0x14a   : > { %v3191_v32 = vpop.f32.mrf.mxu0 }
 0x14b   : > { %v4629_v11 = vpop.f32.mrf.mxu1 }
 0x14c   : > { %v3192_v24 = vpop.f32.mrf.mxu0  ;;  %4763 = vst [vmem:[#allocation3_spill] sm:$0xff] %v4629_v11 }
 0x14d   : > { %v4633_v46 = vpop.f32.mrf.mxu1 }
 0x14e   : > { %v4627_v62 = vpop.f32.mrf.mxu0  ;;  %4764 = vst [vmem:[#allocation4_spill] sm:$0xff] %v4633_v46 }
 0x14f   : > { %v3293_v30 = vpop.f32.mrf.mxu1 }
 0x150   : > { %v4631_v16 = vpop.f32.mrf.mxu0 }
 0x151   : > { %v3294_v4 = vpop.f32.mrf.mxu1 }
 0x152   : > { %v3253_v47 = vpop.f32.mrf.mxu0 }
 0x153   : > { %v4635_v37 = vpop.f32.mrf.mxu1 }
 0x154   : > { %v3254_v10 = vpop.f32.mrf.mxu0  ;;  %4765 = vst [vmem:[#allocation5_spill] sm:$0xff] %v4635_v37  ;;  %v3227_v37 = vadd.f32 %v3226_v7, %v3225_v5 }
 0x155   : > { %v4637_v49 = vpop.f32.mrf.mxu1  ;;  %v3255_v21 = vadd.f32 %v3254_v10, %v3253_v47 }
 0x156   : > { %v3256_v12 = vpop.f32.mrf.mxu0  ;;  %4766 = vst [vmem:[#allocation6_spill] sm:$0xff] %v4637_v49  ;;  %v1517_v49 = vadd.f32 %v3187_v26, %v4596_v17 }
 0x157   : > { %v4639_v29 = vpop.f32.mrf.mxu1 }
 0x158   : > { %v3257_v38 = vpop.f32.mrf.mxu0  ;;  %4767 = vst [vmem:[#allocation7_spill] sm:$0xff] %v4639_v29  ;;  %v3178_v29 = vadd.f32 %v3177_v55, %v3176_v20  ;;  %v1735_v27 = vadd.f32 %v3227_v37, %v1517_v49 }
 0x159   : > { %v4641_v25 = vpop.f32.mrf.mxu1  ;;  %v3258_v5 = vadd.f32 %v3257_v38, %v3256_v12 }
 0x15a   : > { %v3259_v9 = vpop.f32.mrf.mxu0  ;;  %4768 = vst [vmem:[#allocation8_spill] sm:$0xff] %v4641_v25  ;;  %v1513_v25 = vadd.f32 %v3175_v60, %v4588_v1  ;;  %v1514_v13 = vadd.f32 %v3178_v29, %v4590_v19  ;;  %v3221_v19 = vadd.f32 %v4613_v22, %v4611_v15  ;;  %v3196_v15 = vadd.f32 %v4631_v16, %v4627_v62 }
 0x15b   : > { %v4645_v8 = vpop.f32.mrf.mxu1  ;;  %v4773_v37 = vld [vmem:[#allocation5_spill] sm:$0xff] }
 0x15c   : > { %v3260_v18 = vpop.f32.mrf.mxu0  ;;  %4770 = vst [vmem:[#allocation10_spill] sm:$0xff] %v4645_v8  ;;  %v3190_v8 = vadd.f32 %v3189_v35, %v3188_v54  ;;  %v3193_v54 = vadd.f32 %v3192_v24, %v3191_v32 }
 0x15d   : > { %v4649_v58 = vpop.f32.mrf.mxu1  ;;  %v4774_v38 = vld [vmem:[#allocation6_spill] sm:$0xff] }
 0x15e   : > { %v4643_v0 = vpop.f32.mrf.mxu0  ;;  %4772 = vst [vmem:[#allocation12_spill] sm:$0xff] %v4649_v58  ;;  %v3181_v58 = vadd.f32 %v3180_v6, %v3179_v3  ;;  %v1732_v6 = vadd.f32 %v3218_v36, %v1514_v13  ;;  %v1519_v29 = vadd.f32 %v3193_v54, %v4603_v61  ;;  %v3298_v61 = vadd.f32 %v4774_v38, %v4773_v37 }
 0x15f   : > { %4769 = vst [vmem:[#allocation9_spill] sm:$0xff] %v4643_v0  ;;  %v3305_v51 = vpop.f32.mrf.mxu1  ;;  %v3215_v0 = vadd.f32 %v3214_v42, %v4601_v14  ;;  %v1518_v14 = vadd.f32 %v3190_v8, %v4599_v40  ;;  %v3230_v42 = vadd.f32 %v3229_v63, %v3228_v45  ;;  %v3295_v45 = vadd.f32 %v3294_v4, %v3293_v30  ;;  %v4778_v60 = vld [vmem:[#allocation7_spill] sm:$0xff] }
 0x160   : > { %v4647_v23 = vpop.f32.mrf.mxu0  ;;  %v1515_v17 = vadd.f32 %v3181_v58, %v4592_v48  ;;  %v3233_v48 = vadd.f32 %v4625_v2, %v4623_v53  ;;  %v3224_v30 = vadd.f32 %v4617_v41, %v4615_v34  ;;  %v3261_v4 = vadd.f32 %v3260_v18, %v3259_v9  ;;  %v4686_v9 = vld [vmem:[%s4733_s2] ss:$0 sm:$0xff] }
 0x161   : > { %4771 = vst [vmem:[#allocation11_spill] sm:$0xff] %v4647_v23  ;;  %v3306_v33 = vpop.f32.mrf.mxu1  ;;  %v1731_v31 = vadd.f32 %v3215_v0, %v1513_v25  ;;  %v1736_v24 = vadd.f32 %v3230_v42, %v1518_v14  ;;  %v1936_v12 = vadd.f32 %v3258_v5, %v1732_v6 }
 0x162   : > { %v3265_v59 = vpop.f32.mrf.mxu0  ;;  %v3307_v32 = vadd.f32 %v3306_v33, %v3305_v51  ;;  %v1733_v28 = vadd.f32 %v3221_v19, %v1515_v17  ;;  %v1737_v58 = vadd.f32 %v3233_v48, %v1519_v29  ;;  %v4776_v51 = vld [vmem:[#allocation3_spill] sm:$0xff] }
 0x163   : > { %v3308_v52 = vpop.f32.mrf.mxu1  ;;  %v1935_v40 = vadd.f32 %v3255_v21, %v1731_v31  ;;  %v2152_v36 = vadd.f32 %v3298_v61, %v1936_v12 }
 0x164   : > { %v3266_v39 = vpop.f32.mrf.mxu0  ;;  %v1937_v33 = vadd.f32 %v3261_v4, %v1733_v28 }
 0x165   : > { %v3309_v11 = vpop.f32.mrf.mxu1  ;;  %v3267_v1 = vadd.f32 %v3266_v39, %v3265_v59  ;;  %v2151_v0 = vadd.f32 %v3295_v45, %v1935_v40  ;;  %v4775_v59 = vld [vmem:[#allocation2_spill] sm:$0xff]  ;;  %v4777_v39 = vld [vmem:[#allocation4_spill] sm:$0xff] }
 0x166   : > { %v3268_v57 = vpop.f32.mrf.mxu0  ;;  %v3310_v25 = vadd.f32 %v3309_v11, %v3308_v52  ;;  %v3236_v34 = vadd.f32 %v4777_v39, %v4776_v51  ;;  %v4780_v21 = vld [vmem:[#allocation9_spill] sm:$0xff]  ;;  %v4783_v29 = vld [vmem:[#allocation12_spill] sm:$0xff] }
 0x167   : > { %v4653_v23 = vpop.f32.mrf.mxu1  ;;  %v1939_v63 = vadd.f32 %v3267_v1, %v1735_v27 }
 0x168   : > { %v3269_v46 = vpop.f32.mrf.mxu0  ;;  %v4781_v1 = vld [vmem:[#allocation11_spill] sm:$0xff] }
 0x169   : > { %v4659_v55 = vpop.f32.mrf.mxu1  ;;  %v3270_v7 = vadd.f32 %v3269_v46, %v3268_v57  ;;  %v1516_v46 = vadd.f32 %v3184_v50, %v4594_v44  ;;  %v2155_v8 = vadd.f32 %v3307_v32, %v1939_v63  ;;  %v1520_v44 = vadd.f32 %v3196_v15, %v4775_v59  ;;  %v4779_v57 = vld [vmem:[#allocation8_spill] sm:$0xff] }
 0x16a   : > { %v3271_v43 = vpop.f32.mrf.mxu0  ;;  %v3301_v52 = vadd.f32 %v4779_v57, %v4778_v60  ;;  %v3264_v31 = vadd.f32 %v4781_v1, %v4780_v21 }
 0x16b   : > { %v4662_v3 = vpop.f32.mrf.mxu1  ;;  %v1940_v49 = vadd.f32 %v3270_v7, %v1736_v24  ;;  %v1734_v27 = vadd.f32 %v3224_v30, %v1516_v46  ;;  %v1738_v6 = vadd.f32 %v3236_v34, %v1520_v44  ;;  %v4782_v24 = vld [vmem:[#allocation10_spill] sm:$0xff] }
 0x16c   : > { %v3272_v20 = vpop.f32.mrf.mxu0  ;;  %v2153_v40 = vadd.f32 %v3301_v52, %v1937_v33  ;;  %v3304_v48 = vadd.f32 %v4783_v29, %v4782_v24 }
 0x16d   : > { %v3315_v10 = vpop.f32.mrf.mxu1  ;;  %v3273_v41 = vadd.f32 %v3272_v20, %v3271_v43  ;;  %v2156_v14 = vadd.f32 %v3310_v25, %v1940_v49  ;;  %v1938_v32 = vadd.f32 %v3264_v31, %v1734_v27 }
 0x16e   : > { %v3274_v35 = vpop.f32.mrf.mxu0 }
 0x16f   : > { %v3345_v56 = vpop.f32.mrf.mxu1  ;;  %v1941_v5 = vadd.f32 %v3273_v41, %v1737_v58 }
 0x170   : > { %v3275_v47 = vpop.f32.mrf.mxu0 }
 0x171   : > { %v3346_v2 = vpop.f32.mrf.mxu1  ;;  %v3276_v42 = vadd.f32 %v3275_v47, %v3274_v35  ;;  %v3313_v35 = vadd.f32 %v4659_v55, %v4653_v23 }
 0x172   : > { %v3333_v22 = vpop.f32.mrf.mxu0  ;;  %v3347_v16 = vadd.f32 %v3346_v2, %v3345_v56 }
 0x173   : > { %v3348_v18 = vpop.f32.mrf.mxu1  ;;  %v1942_v15 = vadd.f32 %v3276_v42, %v1738_v6  ;;  %v2157_v4 = vadd.f32 %v3313_v35, %v1941_v5 }
 0x174   : > { %v3334_v53 = vpop.f32.mrf.mxu0  ;;  %v2367_v13 = vadd.f32 %v3347_v16, %v2155_v8 }
 0x175   : > { %v3335_v62 = vadd.f32 %v3334_v53, %v3333_v22  ;;  %v3349_v20 = vpop.f32.mrf.mxu1  ;;  %v3316_v22 = vadd.f32 %v3315_v10, %v4662_v3  ;;  %v2154_v3 = vadd.f32 %v3304_v48, %v1938_v32 }
 0x176   : > { %v3336_v11 = vpop.f32.mrf.mxu0  ;;  %v2382_v17 = vadd.f32 %v4686_v9, %v2367_v13  ;;  %v3350_v50 = vadd.f32 %v3349_v20, %v3348_v18 }
 0x177   : > { %v2363_v26 = vadd.f32 %v3335_v62, %v2151_v0  ;;  %v3351_v47 = vpop.f32.mrf.mxu1  ;;  %v2158_v10 = vadd.f32 %v3316_v22, %v1942_v15 }
 0x178   : > { %v3337_v43 = vpop.f32.mrf.mxu0  ;;  %2390 = vst [vmem:[%s4695_s13 + $0x20] sm:$0xff] %v2382_v17  ;;  %v2368_v63 = vadd.f32 %v3350_v50, %v2156_v14  ;;  %v2411_v57 = vmul.f32 %v2382_v17, %v2382_v17 }
 0x179   : > { %v2378_v54 = vadd.f32 %v4686_v9, %v2363_v26  ;;  %v3338_v19 = vadd.f32 %v3337_v43, %v3336_v11  ;;  %v3352_v28 = vpop.f32.mrf.mxu1 }
 0x17a   : > { %v3339_v7 = vpop.f32.mrf.mxu0  ;;  %v2383_v55 = vadd.f32 %v4686_v9, %v2368_v63  ;;  %v3353_v30 = vadd.f32 %v3352_v28, %v3351_v47 }
 0x17b   : > { %2386 = vst [vmem:[%s4695_s13] sm:$0xff] %v2378_v54  ;;  %v2364_v45 = vadd.f32 %v3338_v19, %v2152_v36  ;;  %v3354_v37 = vpop.f32.mrf.mxu1  ;;  %v2407_v38 = vmul.f32 %v2378_v54, %v2378_v54 }
 0x17c   : > { %v3340_v56 = vpop.f32.mrf.mxu0  ;;  %2391 = vst [vmem:[%s4695_s13 + $0x28] sm:$0xff] %v2383_v55  ;;  %v2369_v53 = vadd.f32 %v3353_v30, %v2157_v4  ;;  %v2412_v13 = vmul.f32 %v2383_v55, %v2383_v55 }
 0x17d   : > { %v2379_v23 = vadd.f32 %v4686_v9, %v2364_v45  ;;  %v3341_v46 = vadd.f32 %v3340_v56, %v3339_v7  ;;  %v3355_v0 = vpop.f32.mrf.mxu1 }
 0x17e   : > { %v3342_v12 = vpop.f32.mrf.mxu0  ;;  %v3356_v58 = vadd.f32 %v3355_v0, %v3354_v37  ;;  %v2384_v59 = vadd.f32 %v4686_v9, %v2369_v53 }
 0x17f   : > { %2387 = vst [vmem:[%s4695_s13 + $0x8] sm:$0xff] %v2379_v23  ;;  %v2394_v61 = vadd.f32 %v2379_v23, %v2378_v54  ;;  %v2408_v49 = vmul.f32 %v2379_v23, %v2379_v23  ;;  %v2365_v25 = vadd.f32 %v3341_v46, %v2153_v40 }
 0x180   : > { %v3343_v2 = vpop.f32.mrf.mxu0  ;;  %v2370_v34 = vadd.f32 %v3356_v58, %v2158_v10  ;;  %2392 = vst [vmem:[%s4695_s13 + $0x30] sm:$0xff] %v2384_v59  ;;  %v2413_v1 = vmul.f32 %v2384_v59, %v2384_v59 }
 0x181   : > { %v2415_v8 = vadd.f32 %v2408_v49, %v2407_v38  ;;  %v2380_v62 = vadd.f32 %v4686_v9, %v2365_v25  ;;  %v3344_v16 = vadd.f32 %v3343_v2, %v3342_v12 }
 0x182   : > { %v2385_v18 = vadd.f32 %v4686_v9, %v2370_v34 }
 0x183   : > { %2388 = vst [vmem:[%s4695_s13 + $0x10] sm:$0xff] %v2380_v62  ;;  %v2395_v44 = vadd.f32 %v2394_v61, %v2380_v62  ;;  %v2409_v51 = vmul.f32 %v2380_v62, %v2380_v62  ;;  %v2366_v39 = vadd.f32 %v3344_v16, %v2154_v3 }
 0x184   : > { %2393 = vst [vmem:[%s4695_s13 + $0x38] sm:$0xff] %v2385_v18  ;;  %v2414_v43 = vmul.f32 %v2385_v18, %v2385_v18 }
 0x185   : > { %v2416_v41 = vadd.f32 %v2415_v8, %v2409_v51  ;;  %v2381_v11 = vadd.f32 %v4686_v9, %v2366_v39 }
 0x187   : > { %2389 = vst [vmem:[%s4695_s13 + $0x18] sm:$0xff] %v2381_v11  ;;  %v2396_v33 = vadd.f32 %v2395_v44, %v2381_v11  ;;  %v2410_v60 = vmul.f32 %v2381_v11, %v2381_v11 }
 0x189   : > { %v2397_v52 = vadd.f32 %v2396_v33, %v2382_v17  ;;  %v2417_v26 = vadd.f32 %v2416_v41, %v2410_v60 }
 0x18b   : > { %v2418_v36 = vadd.f32 %v2417_v26, %v2411_v57  ;;  %v2398_v21 = vadd.f32 %v2397_v52, %v2383_v55 }
 0x18d   : > { %v2399_v31 = vadd.f32 %v2398_v21, %v2384_v59  ;;  %v2419_v14 = vadd.f32 %v2418_v36, %v2412_v13 }
 0x18f   : > { %v2400_v42 = vadd.f32 %v2399_v31, %v2385_v18  ;;  %v2420_v20 = vadd.f32 %v2419_v14, %v2413_v1 }
 0x191   : > { %v2401_v54 = vrot.slane %v2400_v42, 4  ;;  %v2421_v19 = vadd.f32 %v2420_v20, %v2414_v43 }
 0x193   : > { %v2402_v9 = vadd.f32 %v2401_v54, %v2400_v42  ;;  %v2422_v50 = vrot.slane %v2421_v19, 4 }
 0x195   : > { %v2403_v27 = vrot.slane %v2402_v9, 2  ;;  %v2423_v6 = vadd.f32 %v2422_v50, %v2421_v19 }
 0x197   : > { %v2404_v5 = vadd.f32 %v2403_v27, %v2402_v9  ;;  %v2424_v35 = vrot.slane %v2423_v6, 2 }
 0x199   : > { %v2405_v17 = vrot.slane %v2404_v5, 1  ;;  %v2425_v7 = vadd.f32 %v2424_v35, %v2423_v6 }
 0x19b   : > { %v2426_v47 = vrot.slane %v2425_v7, 1  ;;  %v2406_v40 = vadd.f32 %v2405_v17, %v2404_v5 }
 0x19d   : > { %v2427_v45 = vadd.f32 %v2426_v47, %v2425_v7 }
 0x19f   : > { %v2429_v63 = vsel %vm2428_vm2, %v2406_v40, %v2427_v45 }
 0x1a0   : > { %v2431_v32 = vsel %vm2430_vm3, %v2429_v63, 0.0 }
 0x1a1   : > { %2432 = vst [vmem:[%s252_s21] sm:$0xff] %v2431_v32 }
 0x1a2 PF: > { %s15_s17 = sadd.s32 1, %s3582_s17   ;;  %s4784_s15 = smov %s3578_s16 }
 0x1a3   : > { %p12_p5 = scmp.ge.s32.totalorder %s15_s17, 4   ;;  %s4785_s16 = smov %s4787_s18 }
 0x1a5   :  { %14 = sbr.rel (!%p12_p5) target bundleno = 2 (0x2), region = 82 }

// kernel: unet_forward.37
= control target key start
LH: loop header
LB: loop body
LE: loop exit
PB: predicated region body
PF: predicated region fallthrough
CT: control target
= control target key end

     0   :  { %s1317_s1 = inlined_call_operand.vmem [shape: bf16[128,128], index: 1, kind: input, shape index: {}]   ;;  %s1318_s0 = inlined_call_operand.vmem [shape: bf16[512,128], index: 0, kind: input, shape index: {}]   ;;  %s1319_s2 = inlined_call_operand.vmem [shape: f32[1,128], index: 2, kind: input, shape index: {}]   ;;  %s1320_s3 = inlined_call_operand.vmem [shape: f32[512,128], index: 3, kind: output, shape index: {}]  }
   0x1   :  { %v876_v0 = vld [vmem:[%s1317_s1 + $0x38] sm:$0xff]   ;;  %v877_v1 = vld [vmem:[%s1317_s1 + $0x30] sm:$0xff]   ;;  %v878_v2 = vld [vmem:[%s1317_s1 + $0x28] sm:$0xff]  }
   0x2   :  { %780 = vmatprep.subr.bf16.mxu0 %v876_v0  ;;  %860 = vmatprep.subr.bf16.mxu1 %v876_v0  ;;  %v879_v3 = vld [vmem:[%s1317_s1 + $0x20] sm:$0xff]   ;;  %v880_v6 = vld [vmem:[%s1317_s1 + $0x18] sm:$0xff]   ;;  %v881_v7 = vld [vmem:[%s1317_s1 + $0x10] sm:$0xff]  }
   0x3   :  { %781 = vmatpush3.bf16.msra.mxu0 %v876_v0  ;;  %868 = vmatpush3.bf16.msra.mxu1 %v876_v0  ;;  %v884_v4 = vld [vmem:[%s1318_s0] sm:$0xff]   ;;  %v882_v8 = vld [vmem:[%s1317_s1 + $0x8] sm:$0xff]   ;;  %v888_v12 = vld [vmem:[%s1318_s0 + $0x10] sm:$0xff]  }
   0x4   :  { %782 = vmatprep.subr.bf16.mxu0 %v877_v1  ;;  %861 = vmatprep.subr.bf16.mxu1 %v877_v1  ;;  %v885_v5 = vld [vmem:[%s1318_s0 + $0x80] sm:$0xff]   ;;  %v886_v10 = vld [vmem:[%s1318_s0 + $0x8] sm:$0xff]   ;;  %v889_v13 = vld [vmem:[%s1318_s0 + $0x90] sm:$0xff]  }
   0x5   :  { %796 = vmatprep.mubr.bf16.mxu0 %v884_v4  ;;  %828 = vmatprep.mubr.bf16.mxu1 %v885_v5  ;;  %v883_v9 = vld [vmem:[%s1317_s1] sm:$0xff]   ;;  %v887_v11 = vld [vmem:[%s1318_s0 + $0x88] sm:$0xff]   ;;  %v890_v14 = vld [vmem:[%s1318_s0 + $0x18] sm:$0xff]  }
   0x6   :  { %v891_v15 = vld [vmem:[%s1318_s0 + $0x98] sm:$0xff]   ;;  %v892_v16 = vld [vmem:[%s1318_s0 + $0x20] sm:$0xff]   ;;  %v894_v18 = vld [vmem:[%s1318_s0 + $0x28] sm:$0xff]  }
   0x7   :  { %783 = vmatpush3.bf16.msra.mxu0 %v877_v1  ;;  %869 = vmatpush3.bf16.msra.mxu1 %v877_v1  ;;  %v893_v17 = vld [vmem:[%s1318_s0 + $0xa0] sm:$0xff]   ;;  %v895_v19 = vld [vmem:[%s1318_s0 + $0xa8] sm:$0xff]   ;;  %v896_v20 = vld [vmem:[%s1318_s0 + $0x30] sm:$0xff]  }
   0x8   :  { %784 = vmatprep.subr.bf16.mxu0 %v878_v2  ;;  %862 = vmatprep.subr.bf16.mxu1 %v878_v2  ;;  %v897_v21 = vld [vmem:[%s1318_s0 + $0xb0] sm:$0xff]   ;;  %v898_v22 = vld [vmem:[%s1318_s0 + $0x38] sm:$0xff]   ;;  %v900_v24 = vld [vmem:[%s1318_s0 + $0x40] sm:$0xff]  }
   0x9   :  { %v899_v23 = vld [vmem:[%s1318_s0 + $0xb8] sm:$0xff]   ;;  %v901_v25 = vld [vmem:[%s1318_s0 + $0xc0] sm:$0xff]   ;;  %v902_v26 = vld [vmem:[%s1318_s0 + $0x48] sm:$0xff]  }
   0xa   :  { %v903_v27 = vld [vmem:[%s1318_s0 + $0xc8] sm:$0xff]   ;;  %v904_v28 = vld [vmem:[%s1318_s0 + $0x50] sm:$0xff]   ;;  %v906_v30 = vld [vmem:[%s1318_s0 + $0x58] sm:$0xff]  }
   0xb   :  { %785 = vmatpush3.bf16.msra.mxu0 %v878_v2  ;;  %870 = vmatpush3.bf16.msra.mxu1 %v878_v2  ;;  %v905_v29 = vld [vmem:[%s1318_s0 + $0xd0] sm:$0xff]   ;;  %v907_v31 = vld [vmem:[%s1318_s0 + $0xd8] sm:$0xff]   ;;  %v908_v32 = vld [vmem:[%s1318_s0 + $0x60] sm:$0xff]  }
   0xc   :  { %786 = vmatprep.subr.bf16.mxu0 %v879_v3  ;;  %863 = vmatprep.subr.bf16.mxu1 %v879_v3  ;;  %v909_v33 = vld [vmem:[%s1318_s0 + $0xe0] sm:$0xff]   ;;  %v910_v34 = vld [vmem:[%s1318_s0 + $0x68] sm:$0xff]   ;;  %v912_v36 = vld [vmem:[%s1318_s0 + $0x70] sm:$0xff]  }
   0xd   :  { %v911_v35 = vld [vmem:[%s1318_s0 + $0xe8] sm:$0xff]   ;;  %v913_v37 = vld [vmem:[%s1318_s0 + $0xf0] sm:$0xff]   ;;  %v914_v38 = vld [vmem:[%s1318_s0 + $0x78] sm:$0xff]  }
   0xe   :  { %v915_v39 = vld [vmem:[%s1318_s0 + $0xf8] sm:$0xff]   ;;  %v1059_v40 = vld [vmem:[%s1319_s2] ss:$0 sm:$0xff] }
   0xf   :  { %787 = vmatpush3.bf16.msra.mxu0 %v879_v3  ;;  %871 = vmatpush3.bf16.msra.mxu1 %v879_v3 }
  0x10   :  { %788 = vmatprep.subr.bf16.mxu0 %v880_v6  ;;  %864 = vmatprep.subr.bf16.mxu1 %v880_v6 }
  0x13   :  { %789 = vmatpush3.bf16.msra.mxu0 %v880_v6  ;;  %872 = vmatpush3.bf16.msra.mxu1 %v880_v6 }
  0x14   :  { %790 = vmatprep.subr.bf16.mxu0 %v881_v7  ;;  %865 = vmatprep.subr.bf16.mxu1 %v881_v7 }
  0x17   :  { %791 = vmatpush3.bf16.msra.mxu0 %v881_v7  ;;  %873 = vmatpush3.bf16.msra.mxu1 %v881_v7 }
  0x18   :  { %792 = vmatprep.subr.bf16.mxu0 %v882_v8  ;;  %866 = vmatprep.subr.bf16.mxu1 %v882_v8 }
  0x1b   :  { %793 = vmatpush3.bf16.msra.mxu0 %v882_v8  ;;  %874 = vmatpush3.bf16.msra.mxu1 %v882_v8 }
  0x1c   :  { %794 = vmatprep.subr.bf16.mxu0 %v883_v9  ;;  %867 = vmatprep.subr.bf16.mxu1 %v883_v9 }
  0x1f   :  { %795 = vmatpush3.bf16.msra.mxu0 %v883_v9  ;;  %875 = vmatpush3.bf16.msra.mxu1 %v883_v9 }
  0x22   :  { %797 = vmatmul.mubr.bf16.vlgmr.msra.gmra.mxu0 %v886_v10  ;;  %829 = vmatmul.mubr.bf16.vlgmr.msra.gmra.mxu1 %v887_v11 }
  0x23   :  { %800 = vmatprep.mubr.bf16.mxu0 %v888_v12  ;;  %832 = vmatprep.mubr.bf16.mxu1 %v889_v13 }
  0x2a   :  { %801 = vmatmul.mubr.bf16.gmra.mxu0 %v890_v14  ;;  %833 = vmatmul.mubr.bf16.gmra.mxu1 %v891_v15 }
  0x2b   :  { %804 = vmatprep.mubr.bf16.mxu0 %v892_v16  ;;  %836 = vmatprep.mubr.bf16.mxu1 %v893_v17 }
  0x32   :  { %805 = vmatmul.mubr.bf16.gmra.mxu0 %v894_v18  ;;  %837 = vmatmul.mubr.bf16.gmra.mxu1 %v895_v19 }
  0x33   :  { %808 = vmatprep.mubr.bf16.mxu0 %v896_v20  ;;  %840 = vmatprep.mubr.bf16.mxu1 %v897_v21 }
  0x3a   :  { %809 = vmatmul.mubr.bf16.gmra.mxu0 %v898_v22  ;;  %841 = vmatmul.mubr.bf16.gmra.mxu1 %v899_v23 }
  0x3b   :  { %812 = vmatprep.mubr.bf16.mxu0 %v900_v24  ;;  %844 = vmatprep.mubr.bf16.mxu1 %v901_v25 }
  0x42   :  { %813 = vmatmul.mubr.bf16.gmra.mxu0 %v902_v26  ;;  %845 = vmatmul.mubr.bf16.gmra.mxu1 %v903_v27 }
  0x43   :  { %816 = vmatprep.mubr.bf16.mxu0 %v904_v28  ;;  %848 = vmatprep.mubr.bf16.mxu1 %v905_v29 }
  0x4a   :  { %817 = vmatmul.mubr.bf16.gmra.mxu0 %v906_v30  ;;  %849 = vmatmul.mubr.bf16.gmra.mxu1 %v907_v31 }
  0x4b   :  { %820 = vmatprep.mubr.bf16.mxu0 %v908_v32  ;;  %852 = vmatprep.mubr.bf16.mxu1 %v909_v33 }
  0x52   :  { %821 = vmatmul.mubr.bf16.gmra.mxu0 %v910_v34  ;;  %853 = vmatmul.mubr.bf16.gmra.mxu1 %v911_v35 }
  0x53   :  { %824 = vmatprep.mubr.bf16.mxu0 %v912_v36  ;;  %856 = vmatprep.mubr.bf16.mxu1 %v913_v37 }
  0x5a   :  { %825 = vmatmul.mubr.bf16.gmra.mxu0 %v914_v38  ;;  %857 = vmatmul.mubr.bf16.gmra.mxu1 %v915_v39 }
  0xe2   :  { %v798_v41 = vpop.f32.mrf.mxu0  ;;  %v830_v42 = vpop.f32.mrf.mxu1 }
  0xe3   :  { %v385_v43 = vadd.f32 %v798_v41, %v1059_v40  ;;  %v513_v44 = vadd.f32 %v830_v42, %v1059_v40 }
  0xe4   :  { %v376_v45 = vpop.f32.mrf.mxu0  ;;  %v504_v46 = vpop.f32.mrf.mxu1 }
  0xe5   :  { %633 = vst [vmem:[%s1320_s3 + $0x10] sm:$0xff] %v385_v43  ;;  %665 = vst [vmem:[%s1320_s3 + $0x110] sm:$0xff] %v513_v44  ;;  %v377_v47 = vadd.f32 %v1059_v40, %v376_v45  ;;  %v505_v48 = vadd.f32 %v1059_v40, %v504_v46 }
  0xe6   :  { %v799_v49 = vpop.f32.mrf.mxu0  ;;  %v831_v50 = vpop.f32.mrf.mxu1 }
  0xe7   :  { %631 = vst [vmem:[%s1320_s3] sm:$0xff] %v377_v47  ;;  %663 = vst [vmem:[%s1320_s3 + $0x100] sm:$0xff] %v505_v48  ;;  %v388_v51 = vadd.f32 %v799_v49, %v1059_v40  ;;  %v516_v52 = vadd.f32 %v831_v50, %v1059_v40 }
  0xe8   :  { %v379_v53 = vpop.f32.mrf.mxu0  ;;  %v507_v54 = vpop.f32.mrf.mxu1 }
  0xe9   :  { %634 = vst [vmem:[%s1320_s3 + $0x18] sm:$0xff] %v388_v51  ;;  %666 = vst [vmem:[%s1320_s3 + $0x118] sm:$0xff] %v516_v52  ;;  %v380_v55 = vadd.f32 %v1059_v40, %v379_v53  ;;  %v508_v56 = vadd.f32 %v1059_v40, %v507_v54 }
  0xea   :  { %v802_v57 = vpop.f32.mrf.mxu0  ;;  %v834_v58 = vpop.f32.mrf.mxu1 }
  0xeb   :  { %632 = vst [vmem:[%s1320_s3 + $0x8] sm:$0xff] %v380_v55  ;;  %664 = vst [vmem:[%s1320_s3 + $0x108] sm:$0xff] %v508_v56  ;;  %v401_v59 = vadd.f32 %v802_v57, %v1059_v40  ;;  %v529_v60 = vadd.f32 %v834_v58, %v1059_v40 }
  0xec   :  { %v392_v61 = vpop.f32.mrf.mxu0  ;;  %v520_v62 = vpop.f32.mrf.mxu1 }
  0xed   :  { %637 = vst [vmem:[%s1320_s3 + $0x30] sm:$0xff] %v401_v59  ;;  %669 = vst [vmem:[%s1320_s3 + $0x130] sm:$0xff] %v529_v60  ;;  %v393_v63 = vadd.f32 %v1059_v40, %v392_v61  ;;  %v521_v0 = vadd.f32 %v1059_v40, %v520_v62 }
  0xee   :  { %v803_v1 = vpop.f32.mrf.mxu0  ;;  %v835_v2 = vpop.f32.mrf.mxu1 }
  0xef   :  { %635 = vst [vmem:[%s1320_s3 + $0x20] sm:$0xff] %v393_v63  ;;  %667 = vst [vmem:[%s1320_s3 + $0x120] sm:$0xff] %v521_v0  ;;  %v404_v3 = vadd.f32 %v803_v1, %v1059_v40  ;;  %v532_v4 = vadd.f32 %v835_v2, %v1059_v40 }
  0xf0   :  { %v395_v5 = vpop.f32.mrf.mxu0  ;;  %v523_v6 = vpop.f32.mrf.mxu1 }
  0xf1   :  { %638 = vst [vmem:[%s1320_s3 + $0x38] sm:$0xff] %v404_v3  ;;  %670 = vst [vmem:[%s1320_s3 + $0x138] sm:$0xff] %v532_v4  ;;  %v396_v7 = vadd.f32 %v1059_v40, %v395_v5  ;;  %v524_v8 = vadd.f32 %v1059_v40, %v523_v6 }
  0xf2   :  { %v806_v9 = vpop.f32.mrf.mxu0  ;;  %v838_v10 = vpop.f32.mrf.mxu1 }
  0xf3   :  { %636 = vst [vmem:[%s1320_s3 + $0x28] sm:$0xff] %v396_v7  ;;  %668 = vst [vmem:[%s1320_s3 + $0x128] sm:$0xff] %v524_v8  ;;  %v417_v11 = vadd.f32 %v806_v9, %v1059_v40  ;;  %v545_v12 = vadd.f32 %v838_v10, %v1059_v40 }
  0xf4   :  { %v408_v13 = vpop.f32.mrf.mxu0  ;;  %v536_v14 = vpop.f32.mrf.mxu1 }
  0xf5   :  { %641 = vst [vmem:[%s1320_s3 + $0x50] sm:$0xff] %v417_v11  ;;  %673 = vst [vmem:[%s1320_s3 + $0x150] sm:$0xff] %v545_v12  ;;  %v409_v15 = vadd.f32 %v1059_v40, %v408_v13  ;;  %v537_v16 = vadd.f32 %v1059_v40, %v536_v14 }
  0xf6   :  { %v807_v17 = vpop.f32.mrf.mxu0  ;;  %v839_v18 = vpop.f32.mrf.mxu1 }
  0xf7   :  { %639 = vst [vmem:[%s1320_s3 + $0x40] sm:$0xff] %v409_v15  ;;  %671 = vst [vmem:[%s1320_s3 + $0x140] sm:$0xff] %v537_v16  ;;  %v420_v19 = vadd.f32 %v807_v17, %v1059_v40  ;;  %v548_v20 = vadd.f32 %v839_v18, %v1059_v40 }
  0xf8   :  { %v411_v21 = vpop.f32.mrf.mxu0  ;;  %v539_v22 = vpop.f32.mrf.mxu1 }
  0xf9   :  { %642 = vst [vmem:[%s1320_s3 + $0x58] sm:$0xff] %v420_v19  ;;  %674 = vst [vmem:[%s1320_s3 + $0x158] sm:$0xff] %v548_v20  ;;  %v412_v23 = vadd.f32 %v1059_v40, %v411_v21  ;;  %v540_v24 = vadd.f32 %v1059_v40, %v539_v22 }
  0xfa   :  { %v810_v25 = vpop.f32.mrf.mxu0  ;;  %v842_v26 = vpop.f32.mrf.mxu1 }
  0xfb   :  { %640 = vst [vmem:[%s1320_s3 + $0x48] sm:$0xff] %v412_v23  ;;  %672 = vst [vmem:[%s1320_s3 + $0x148] sm:$0xff] %v540_v24  ;;  %v433_v27 = vadd.f32 %v810_v25, %v1059_v40  ;;  %v561_v28 = vadd.f32 %v842_v26, %v1059_v40 }
  0xfc   :  { %v424_v29 = vpop.f32.mrf.mxu0  ;;  %v552_v30 = vpop.f32.mrf.mxu1 }
  0xfd   :  { %645 = vst [vmem:[%s1320_s3 + $0x70] sm:$0xff] %v433_v27  ;;  %677 = vst [vmem:[%s1320_s3 + $0x170] sm:$0xff] %v561_v28  ;;  %v425_v31 = vadd.f32 %v1059_v40, %v424_v29  ;;  %v553_v32 = vadd.f32 %v1059_v40, %v552_v30 }
  0xfe   :  { %v811_v33 = vpop.f32.mrf.mxu0  ;;  %v843_v34 = vpop.f32.mrf.mxu1 }
  0xff   :  { %643 = vst [vmem:[%s1320_s3 + $0x60] sm:$0xff] %v425_v31  ;;  %675 = vst [vmem:[%s1320_s3 + $0x160] sm:$0xff] %v553_v32  ;;  %v436_v35 = vadd.f32 %v811_v33, %v1059_v40  ;;  %v564_v36 = vadd.f32 %v843_v34, %v1059_v40 }
 0x100   :  { %v427_v37 = vpop.f32.mrf.mxu0  ;;  %v555_v38 = vpop.f32.mrf.mxu1 }
 0x101   :  { %646 = vst [vmem:[%s1320_s3 + $0x78] sm:$0xff] %v436_v35  ;;  %678 = vst [vmem:[%s1320_s3 + $0x178] sm:$0xff] %v564_v36  ;;  %v428_v39 = vadd.f32 %v1059_v40, %v427_v37  ;;  %v556_v41 = vadd.f32 %v1059_v40, %v555_v38 }
 0x102   :  { %v814_v42 = vpop.f32.mrf.mxu0  ;;  %v846_v43 = vpop.f32.mrf.mxu1 }
 0x103   :  { %644 = vst [vmem:[%s1320_s3 + $0x68] sm:$0xff] %v428_v39  ;;  %676 = vst [vmem:[%s1320_s3 + $0x168] sm:$0xff] %v556_v41  ;;  %v449_v44 = vadd.f32 %v814_v42, %v1059_v40  ;;  %v577_v45 = vadd.f32 %v846_v43, %v1059_v40 }
 0x104   :  { %v440_v46 = vpop.f32.mrf.mxu0  ;;  %v568_v47 = vpop.f32.mrf.mxu1 }
 0x105   :  { %649 = vst [vmem:[%s1320_s3 + $0x90] sm:$0xff] %v449_v44  ;;  %681 = vst [vmem:[%s1320_s3 + $0x190] sm:$0xff] %v577_v45  ;;  %v441_v48 = vadd.f32 %v1059_v40, %v440_v46  ;;  %v569_v49 = vadd.f32 %v1059_v40, %v568_v47 }
 0x106   :  { %v815_v50 = vpop.f32.mrf.mxu0  ;;  %v847_v51 = vpop.f32.mrf.mxu1 }
 0x107   :  { %647 = vst [vmem:[%s1320_s3 + $0x80] sm:$0xff] %v441_v48  ;;  %679 = vst [vmem:[%s1320_s3 + $0x180] sm:$0xff] %v569_v49  ;;  %v452_v52 = vadd.f32 %v815_v50, %v1059_v40  ;;  %v580_v53 = vadd.f32 %v847_v51, %v1059_v40 }
 0x108   :  { %v443_v54 = vpop.f32.mrf.mxu0  ;;  %v571_v55 = vpop.f32.mrf.mxu1 }
 0x109   :  { %650 = vst [vmem:[%s1320_s3 + $0x98] sm:$0xff] %v452_v52  ;;  %682 = vst [vmem:[%s1320_s3 + $0x198] sm:$0xff] %v580_v53  ;;  %v444_v56 = vadd.f32 %v1059_v40, %v443_v54  ;;  %v572_v57 = vadd.f32 %v1059_v40, %v571_v55 }
 0x10a   :  { %v818_v58 = vpop.f32.mrf.mxu0  ;;  %v850_v59 = vpop.f32.mrf.mxu1 }
 0x10b   :  { %648 = vst [vmem:[%s1320_s3 + $0x88] sm:$0xff] %v444_v56  ;;  %680 = vst [vmem:[%s1320_s3 + $0x188] sm:$0xff] %v572_v57  ;;  %v465_v60 = vadd.f32 %v818_v58, %v1059_v40  ;;  %v593_v61 = vadd.f32 %v850_v59, %v1059_v40 }
 0x10c   :  { %v456_v62 = vpop.f32.mrf.mxu0  ;;  %v584_v63 = vpop.f32.mrf.mxu1 }
 0x10d   :  { %653 = vst [vmem:[%s1320_s3 + $0xb0] sm:$0xff] %v465_v60  ;;  %685 = vst [vmem:[%s1320_s3 + $0x1b0] sm:$0xff] %v593_v61  ;;  %v457_v0 = vadd.f32 %v1059_v40, %v456_v62  ;;  %v585_v1 = vadd.f32 %v1059_v40, %v584_v63 }
 0x10e   :  { %v819_v2 = vpop.f32.mrf.mxu0  ;;  %v851_v3 = vpop.f32.mrf.mxu1 }
 0x10f   :  { %651 = vst [vmem:[%s1320_s3 + $0xa0] sm:$0xff] %v457_v0  ;;  %683 = vst [vmem:[%s1320_s3 + $0x1a0] sm:$0xff] %v585_v1  ;;  %v468_v4 = vadd.f32 %v819_v2, %v1059_v40  ;;  %v596_v5 = vadd.f32 %v851_v3, %v1059_v40 }
 0x110   :  { %v459_v6 = vpop.f32.mrf.mxu0  ;;  %v587_v7 = vpop.f32.mrf.mxu1 }
 0x111   :  { %654 = vst [vmem:[%s1320_s3 + $0xb8] sm:$0xff] %v468_v4  ;;  %686 = vst [vmem:[%s1320_s3 + $0x1b8] sm:$0xff] %v596_v5  ;;  %v460_v8 = vadd.f32 %v1059_v40, %v459_v6  ;;  %v588_v9 = vadd.f32 %v1059_v40, %v587_v7 }
 0x112   :  { %v822_v10 = vpop.f32.mrf.mxu0  ;;  %v854_v11 = vpop.f32.mrf.mxu1 }
 0x113   :  { %652 = vst [vmem:[%s1320_s3 + $0xa8] sm:$0xff] %v460_v8  ;;  %684 = vst [vmem:[%s1320_s3 + $0x1a8] sm:$0xff] %v588_v9  ;;  %v481_v12 = vadd.f32 %v822_v10, %v1059_v40  ;;  %v609_v13 = vadd.f32 %v854_v11, %v1059_v40 }
 0x114   :  { %v472_v14 = vpop.f32.mrf.mxu0  ;;  %v600_v15 = vpop.f32.mrf.mxu1 }
 0x115   :  { %657 = vst [vmem:[%s1320_s3 + $0xd0] sm:$0xff] %v481_v12  ;;  %689 = vst [vmem:[%s1320_s3 + $0x1d0] sm:$0xff] %v609_v13  ;;  %v473_v16 = vadd.f32 %v1059_v40, %v472_v14  ;;  %v601_v17 = vadd.f32 %v1059_v40, %v600_v15 }
 0x116   :  { %v823_v18 = vpop.f32.mrf.mxu0  ;;  %v855_v19 = vpop.f32.mrf.mxu1 }
 0x117   :  { %655 = vst [vmem:[%s1320_s3 + $0xc0] sm:$0xff] %v473_v16  ;;  %687 = vst [vmem:[%s1320_s3 + $0x1c0] sm:$0xff] %v601_v17  ;;  %v484_v20 = vadd.f32 %v823_v18, %v1059_v40  ;;  %v612_v21 = vadd.f32 %v855_v19, %v1059_v40 }
 0x118   :  { %v475_v22 = vpop.f32.mrf.mxu0  ;;  %v603_v23 = vpop.f32.mrf.mxu1 }
 0x119   :  { %658 = vst [vmem:[%s1320_s3 + $0xd8] sm:$0xff] %v484_v20  ;;  %690 = vst [vmem:[%s1320_s3 + $0x1d8] sm:$0xff] %v612_v21  ;;  %v476_v24 = vadd.f32 %v1059_v40, %v475_v22  ;;  %v604_v25 = vadd.f32 %v1059_v40, %v603_v23 }
 0x11a   :  { %v826_v26 = vpop.f32.mrf.mxu0  ;;  %v858_v27 = vpop.f32.mrf.mxu1 }
 0x11b   :  { %656 = vst [vmem:[%s1320_s3 + $0xc8] sm:$0xff] %v476_v24  ;;  %688 = vst [vmem:[%s1320_s3 + $0x1c8] sm:$0xff] %v604_v25  ;;  %v497_v28 = vadd.f32 %v826_v26, %v1059_v40  ;;  %v625_v29 = vadd.f32 %v858_v27, %v1059_v40 }
 0x11c   :  { %v488_v30 = vpop.f32.mrf.mxu0  ;;  %v616_v31 = vpop.f32.mrf.mxu1 }
 0x11d   :  { %661 = vst [vmem:[%s1320_s3 + $0xf0] sm:$0xff] %v497_v28  ;;  %693 = vst [vmem:[%s1320_s3 + $0x1f0] sm:$0xff] %v625_v29  ;;  %v489_v32 = vadd.f32 %v1059_v40, %v488_v30  ;;  %v617_v33 = vadd.f32 %v1059_v40, %v616_v31 }
 0x11e   :  { %v827_v34 = vpop.f32.mrf.mxu0  ;;  %v859_v35 = vpop.f32.mrf.mxu1 }
 0x11f   :  { %659 = vst [vmem:[%s1320_s3 + $0xe0] sm:$0xff] %v489_v32  ;;  %691 = vst [vmem:[%s1320_s3 + $0x1e0] sm:$0xff] %v617_v33  ;;  %v500_v36 = vadd.f32 %v827_v34, %v1059_v40  ;;  %v628_v37 = vadd.f32 %v859_v35, %v1059_v40 }
 0x120   :  { %v491_v38 = vpop.f32.mrf.mxu0  ;;  %v619_v39 = vpop.f32.mrf.mxu1 }
 0x121   :  { %662 = vst [vmem:[%s1320_s3 + $0xf8] sm:$0xff] %v500_v36  ;;  %694 = vst [vmem:[%s1320_s3 + $0x1f8] sm:$0xff] %v628_v37  ;;  %v492_v41 = vadd.f32 %v1059_v40, %v491_v38  ;;  %v620_v42 = vadd.f32 %v1059_v40, %v619_v39 }
 0x123   :  { %660 = vst [vmem:[%s1320_s3 + $0xe8] sm:$0xff] %v492_v41  ;;  %692 = vst [vmem:[%s1320_s3 + $0x1e8] sm:$0xff] %v620_v42 }

</bundles_post_ra>
